<compile_context>
chip_gen: v7x
topology: tpu7x:2x2x1
jax: 0.10.0
libtpu: 0.0.40
codegen_flags: <defaults>
</compile_context>

<pallas_src>
import functools

import numpy as np
import jax
import jax.numpy as jnp
from jax.experimental import pallas as pl
from jax.experimental.pallas import tpu as pltpu


class Config:
    z_size = 32
    g_feature_size = 8
    num_channels = 3


config = Config()

K_SIZE = 4            # ConvTranspose2d kernel size (all layers)
EPS = 1e-5            # nn.BatchNorm2d default eps
LEAKY_SLOPE = 0.2     # nn.LeakyReLU negative slope
STRIDES = (1, 2, 2, 2, 2)
PADS = (0, 1, 1, 1, 1)


def _round_up(x, m):
    return ((x + m - 1) // m) * m


def _layer_dims():
    gf = config.g_feature_size
    chans = [config.z_size, gf * 8, gf * 4, gf * 2, gf, config.num_channels]
    dims, h = [], 1
    for li in range(5):
        s, p = STRIDES[li], PADS[li]
        oh = (h - 1) * s + K_SIZE - 2 * p
        dims.append(dict(cin=chans[li], cout=chans[li + 1],
                         cp=_round_up(chans[li + 1], 8),
                         h=h, w=h, oh=oh, ow=oh, stride=s, pad=p))
        h = oh
    return dims


LAYER_DIMS = _layer_dims()     # 1x1 -> 4 -> 8 -> 16 -> 32 -> 64


# --------------------------- in-kernel helpers ------------------------------

def _fold_to_channels(v, c):
    """(1, c*2^k) lane vector -> per-channel sums (1, c) by repeated halving."""
    width = v.shape[1]
    while width > c:
        half = width // 2
        v = v[:, :half] + v[:, half:width]
        width = half
    return v


def _tile_channels(v, width):
    """(1, c) -> (1, width) by repeated lane concatenation (width = c*2^k)."""
    while v.shape[1] < width:
        v = jnp.concatenate([v, v], axis=1)
    return v


def _bn_lrelu(y, gamma, beta, c, count):
    """Training-mode BatchNorm2d (two-pass batch stats) + LeakyReLU(0.2).

    y: (rows, width) f32 with lanes grouped as (..., channel); channel = lane % c.
    gamma/beta: (1, c).  count = number of pixels per channel (N*OH*OW)."""
    width = y.shape[1]
    mean = _fold_to_channels(jnp.sum(y, axis=0, keepdims=True), c) / count
    d = y - _tile_channels(mean, width)
    var = _fold_to_channels(jnp.sum(d * d, axis=0, keepdims=True), c) / count
    var = jnp.maximum(var, 0.0)                       # f32 safety clamp
    scale = gamma * jax.lax.rsqrt(var + EPS)          # (1, c)
    z = d * _tile_channels(scale, width) + _tile_channels(beta, width)
    return jnp.where(z >= 0, z, LEAKY_SLOPE * z)


def _deconv_accumulate(xb, w_ref, acc_ref, tmp_ref, taps, n_batch, h_in, lane_blk):
    """Stride-2 ConvTranspose: 4 kh-tap MXU matmuls + row-shifted VMEM adds.

    xb:      (N*H, W*Cin) bf16, rows ordered (n, ih), lanes (iw, ci).
    w_ref:   (W*Cin, 4*OW*Cp) bf16 structured weight; column block kh holds the
             full kw/ow scatter-add for that kh (lanes ordered (ow, c)).
    acc_ref: (N*H, 2*OW*Cp) f32; row (n, m), lanes (ph, ow, c); oh = 2*m + ph.
             Row-major identical to the NHWC output."""
    for kh, ph, full, m0, i0, ln in taps:
        c = jnp.dot(xb, w_ref[:, kh * lane_blk:(kh + 1) * lane_blk],
                    preferred_element_type=jnp.float32)
        if full:                                    # covers every (m, ph) once
            acc_ref[:, ph * lane_blk:(ph + 1) * lane_blk] = c
        else:                                       # +/-1 row shift within each n
            tmp_ref[...] = c
            for n in range(n_batch):
                d0 = n * h_in + m0
                s0 = n * h_in + i0
                acc_ref[d0:d0 + ln, ph * lane_blk:(ph + 1) * lane_blk] = (
                    acc_ref[d0:d0 + ln, ph * lane_blk:(ph + 1) * lane_blk]
                    + tmp_ref[s0:s0 + ln, :])


def _taps_stride2(h_in):
    # (kh, ph, full_coverage, dst_m_start, src_ih_start, length)
    # full taps first so the accumulator is fully initialized before the adds.
    return ((1, 0, True, 0, 0, h_in),
            (2, 1, True, 0, 0, h_in),
            (0, 1, False, 0, 1, h_in - 1),
            (3, 0, False, 1, 0, h_in - 1))


# ------------------------------ Pallas kernels ------------------------------

def _block_first_kernel(x_ref, g_ref, b_ref, w_ref, o_ref, *, cout, count):
    # 1x1 spatial input: ConvTranspose == plain matmul producing (oh, ow, c)
    # packed lanes; fuse BN (batch stats) + LeakyReLU epilogue.
    y = jnp.dot(x_ref[...], w_ref[...], preferred_element_type=jnp.float32)
    o_ref[...] = _bn_lrelu(y, g_ref[...], b_ref[...], cout, count).astype(o_ref.dtype)


def _block_mid_kernel(x_ref, g_ref, b_ref, w_ref, o_ref, acc_ref, tmp_ref, *,
                      taps, n_batch, h_in, lane_blk, cout, count):
    _deconv_accumulate(x_ref[...], w_ref, acc_ref, tmp_ref, taps,
                       n_batch, h_in, lane_blk)
    o_ref[...] = _bn_lrelu(acc_ref[...], g_ref[...], b_ref[...],
                           cout, count).astype(o_ref.dtype)


def _block_last_kernel(x_ref, w_ref, o_ref, acc_ref, tmp_ref, *,
                       taps, n_batch, h_in, lane_blk):
    _deconv_accumulate(x_ref[...], w_ref, acc_ref, tmp_ref, taps,
                       n_batch, h_in, lane_blk)
    o_ref[...] = jnp.tanh(acc_ref[...])              # Tanh fused (EUP slot)


# ----------------------------- kernel wrappers ------------------------------

def _params_1step():
    return pltpu.CompilerParams(dimension_semantics=("arbitrary",))


def conv_block_first(x, gamma, beta, wbig, *, cout, count):
    rows, k = x.shape
    width = wbig.shape[1]
    kern = functools.partial(_block_first_kernel, cout=cout, count=count)
    return pl.pallas_call(
        kern,
        out_shape=jax.ShapeDtypeStruct((rows, width), jnp.bfloat16),
        grid_spec=pltpu.PrefetchScalarGridSpec(
            num_scalar_prefetch=0, grid=(1,),
            in_specs=[pl.BlockSpec((rows, k), lambda i: (0, 0)),
                      pl.BlockSpec(gamma.shape, lambda i: (0, 0)),
                      pl.BlockSpec(beta.shape, lambda i: (0, 0)),
                      pl.BlockSpec(wbig.shape, lambda i: (0, 0))],
            out_specs=pl.BlockSpec((rows, width), lambda i: (0, 0))),
        compiler_params=_params_1step(),
    )(x, gamma, beta, wbig)


def conv_block_mid(x, gamma, beta, wbig, *, taps, n_batch, h_in, lane_blk,
                   cout, count):
    rows, k = x.shape
    out_w = 2 * lane_blk
    kern = functools.partial(_block_mid_kernel, taps=taps, n_batch=n_batch,
                             h_in=h_in, lane_blk=lane_blk, cout=cout, count=count)
    return pl.pallas_call(
        kern,
        out_shape=jax.ShapeDtypeStruct((rows, out_w), jnp.bfloat16),
        grid_spec=pltpu.PrefetchScalarGridSpec(
            num_scalar_prefetch=0, grid=(1,),
            in_specs=[pl.BlockSpec((rows, k), lambda i: (0, 0)),
                      pl.BlockSpec(gamma.shape, lambda i: (0, 0)),
                      pl.BlockSpec(beta.shape, lambda i: (0, 0)),
                      pl.BlockSpec(wbig.shape, lambda i: (0, 0))],
            out_specs=pl.BlockSpec((rows, out_w), lambda i: (0, 0)),
            scratch_shapes=[pltpu.VMEM((rows, out_w), jnp.float32),
                            pltpu.VMEM((rows, lane_blk), jnp.float32)]),
        compiler_params=_params_1step(),
    )(x, gamma, beta, wbig)


def conv_block_last(x, wbig, *, taps, n_batch, h_in, lane_blk):
    rows, k = x.shape
    out_w = 2 * lane_blk
    kern = functools.partial(_block_last_kernel, taps=taps, n_batch=n_batch,
                             h_in=h_in, lane_blk=lane_blk)
    return pl.pallas_call(
        kern,
        out_shape=jax.ShapeDtypeStruct((rows, out_w), jnp.float32),
        grid_spec=pltpu.PrefetchScalarGridSpec(
            num_scalar_prefetch=0, grid=(1,),
            in_specs=[pl.BlockSpec((rows, k), lambda i: (0, 0)),
                      pl.BlockSpec(wbig.shape, lambda i: (0, 0))],
            out_specs=pl.BlockSpec((rows, out_w), lambda i: (0, 0)),
            scratch_shapes=[pltpu.VMEM((rows, out_w), jnp.float32),
                            pltpu.VMEM((rows, lane_blk), jnp.float32)]),
        compiler_params=_params_1step(),
    )(x, wbig)


# ------------------------------- parameters ---------------------------------

def init_params(key):
    """DCGAN-style N(0, 0.02) ConvTranspose2d weights, PyTorch layout (CIN,COUT,4,4)."""
    weights = []
    for d in LAYER_DIMS:
        key, sub = jax.random.split(key)
        weights.append(0.02 * jax.random.normal(
            sub, (d["cin"], d["cout"], K_SIZE, K_SIZE), jnp.float32))
    return weights


def _build_wbig(w4, cout_pad, stride, pad, w_in):
    """Structured weight folding the W/kw scatter-add of col2im into the matmul.

    Wb[iw*Cin + ci, (kh*OW + ow)*Cp + co] = W[ci, co, kh, ow - stride*iw + pad]
    (zero where the tap index is out of range or ow is cropped by padding)."""
    cin, cout, k, _ = w4.shape
    ow_full = (w_in - 1) * stride + k - 2 * pad
    w4 = np.asarray(w4)
    wb = np.zeros((w_in * cin, k * ow_full * cout_pad), np.float32)
    for iw in range(w_in):
        for kw in range(k):
            ow = stride * iw + kw - pad
            if 0 <= ow < ow_full:
                for kh in range(k):
                    c0 = (kh * ow_full + ow) * cout_pad
                    wb[iw * cin:(iw + 1) * cin, c0:c0 + cout] = w4[:, :, kh, kw]
    return jnp.asarray(wb, jnp.bfloat16)


def prepare_generator_params(weights):
    """Precompute (outside jit) the bf16 structured weights + BN affine params."""
    wbigs, gammas, betas = [], [], []
    for li, (w, d) in enumerate(zip(weights, LAYER_DIMS)):
        wbigs.append(_build_wbig(w, d["cp"], d["stride"], d["pad"], d["w"]))
        if li < 4:                                   # last conv has no BatchNorm
            gammas.append(jnp.ones((1, d["cout"]), jnp.float32))
            betas.append(jnp.zeros((1, d["cout"]), jnp.float32))
    return {"wbigs": wbigs, "gammas": gammas, "betas": betas}


# ------------------------------- generator ----------------------------------

def generator_forward(z_nchw, params):
    wbigs, gammas, betas = params["wbigs"], params["gammas"], params["betas"]
    n = z_nchw.shape[0]

    # Block 0: ConvT(z_size -> gf*8, 4, 1, 0) on 1x1 input + BN0 + LeakyReLU.
    d0 = LAYER_DIMS[0]
    x = z_nchw.reshape(n, d0["cin"]).astype(jnp.bfloat16)
    y = conv_block_first(x, gammas[0], betas[0], wbigs[0],
                         cout=d0["cout"], count=n * d0["oh"] * d0["ow"])

    # Blocks 1..3: fused ConvT(4,2,1) + BN + LeakyReLU.  Between kernels the
    # packed output is only *relabelled* (row-major-preserving reshape).
    for li in range(1, 4):
        d = LAYER_DIMS[li]
        x = y.reshape(n * d["h"], d["w"] * d["cin"])
        y = conv_block_mid(x, gammas[li], betas[li], wbigs[li],
                           taps=_taps_stride2(d["h"]), n_batch=n, h_in=d["h"],
                           lane_blk=d["ow"] * d["cp"], cout=d["cout"],
                           count=n * d["oh"] * d["ow"])

    # Block 4: fused ConvT(4,2,1) + Tanh.
    d = LAYER_DIMS[4]
    x = y.reshape(n * d["h"], d["w"] * d["cin"])
    y = conv_block_last(x, wbigs[4], taps=_taps_stride2(d["h"]), n_batch=n,
                        h_in=d["h"], lane_blk=d["ow"] * d["cp"])

    # Packed (N*H, 2*OW*Cp) is row-major identical to NHWC; drop the 3->8
    # channel padding and return NCHW like the PyTorch module.
    out = y.reshape(n, d["oh"], d["ow"], d["cp"])[..., :config.num_channels]
    return jnp.transpose(out, (0, 3, 1, 2))


if __name__ == "__main__":
    key = jax.random.PRNGKey(0)
    kz, kp = jax.random.split(key)
    weights = init_params(kp)
    params = prepare_generator_params(weights)       # weight prep hoisted out of jit

    z = jax.random.normal(kz, (2, config.z_size, 1, 1), jnp.float32)

    fwd = jax.jit(generator_forward)
    out = jax.block_until_ready(fwd(z, params))

    assert out.shape == (2, config.num_channels, 64, 64), out.shape
    assert bool(jnp.all(jnp.isfinite(out)))
    assert bool(jnp.all(jnp.abs(out) <= 1.0 + 1e-6))  # tanh range
    print("KERNEL_OK")
</pallas_src>

<mosaic_0001>
module attributes {stable_mosaic.version = 11 : i64} {
  func.func @_block_first_kernel(%arg0: i32, %arg1: memref<2x32xbf16, #tpu.memory_space<vmem>>, %arg2: memref<1x64xf32, #tpu.memory_space<vmem>>, %arg3: memref<1x64xf32, #tpu.memory_space<vmem>>, %arg4: memref<32x1024xbf16, #tpu.memory_space<vmem>>, %arg5: memref<2x1024xbf16, #tpu.memory_space<vmem>>) attributes {dimension_semantics = [#tpu.dimension_semantics<arbitrary>], iteration_bounds = array<i64: 1>, scalar_prefetch = 0 : i64, scratch_operands = 0 : i64, tpu.core_type = #tpu.core_type<tc>, window_params = [{pipeline_mode = #tpu.pipeline_mode<synchronous>, transform_indices = @transform_0, window_bounds = array<i64: 2, 32>}, {pipeline_mode = #tpu.pipeline_mode<synchronous>, transform_indices = @transform_1, window_bounds = array<i64: 1, 64>}, {pipeline_mode = #tpu.pipeline_mode<synchronous>, transform_indices = @transform_2, window_bounds = array<i64: 1, 64>}, {pipeline_mode = #tpu.pipeline_mode<synchronous>, transform_indices = @transform_3, window_bounds = array<i64: 32, 1024>}, {pipeline_mode = #tpu.pipeline_mode<synchronous>, transform_indices = @transform_4, window_bounds = array<i64: 2, 1024>}]} {
    %c0 = arith.constant 0 : index
    %c0_0 = arith.constant 0 : index
    %0 = vector.load %arg1[%c0, %c0_0] : memref<2x32xbf16, #tpu.memory_space<vmem>>, vector<2x32xbf16>
    %c0_1 = arith.constant 0 : index
    %c0_2 = arith.constant 0 : index
    %1 = vector.load %arg4[%c0_1, %c0_2] : memref<32x1024xbf16, #tpu.memory_space<vmem>>, vector<32x1024xbf16>
    %cst = arith.constant dense<0.000000e+00> : vector<2x1024xf32>
    %2 = tpu.matmul %0, %1, %cst {dimension_numbers = #tpu.dot_dimension_numbers<[1], [0], [0], [1], [0, 0, 1, 1], [], []>} : vector<2x32xbf16>, vector<32x1024xbf16>, vector<2x1024xf32> -> vector<2x1024xf32>
    %c0_3 = arith.constant 0 : index
    %c0_4 = arith.constant 0 : index
    %3 = vector.load %arg2[%c0_3, %c0_4] : memref<1x64xf32, #tpu.memory_space<vmem>>, vector<1x64xf32>
    %c0_5 = arith.constant 0 : index
    %c0_6 = arith.constant 0 : index
    %4 = vector.load %arg3[%c0_5, %c0_6] : memref<1x64xf32, #tpu.memory_space<vmem>>, vector<1x64xf32>
    %cst_7 = arith.constant dense<0.000000e+00> : vector<1024xf32>
    %5 = vector.multi_reduction <add>, %2, %cst_7 [0] : vector<2x1024xf32> to vector<1024xf32>
    %6 = vector.shape_cast %5 : vector<1024xf32> to vector<1x1024xf32>
    %7 = vector.extract_strided_slice %6 {offsets = [0, 0], sizes = [1, 512], strides = [1, 1]} : vector<1x1024xf32> to vector<1x512xf32>
    %8 = vector.extract_strided_slice %6 {offsets = [0, 512], sizes = [1, 512], strides = [1, 1]} : vector<1x1024xf32> to vector<1x512xf32>
    %9 = arith.addf %7, %8 : vector<1x512xf32>
    %10 = vector.extract_strided_slice %9 {offsets = [0, 0], sizes = [1, 256], strides = [1, 1]} : vector<1x512xf32> to vector<1x256xf32>
    %11 = vector.extract_strided_slice %9 {offsets = [0, 256], sizes = [1, 256], strides = [1, 1]} : vector<1x512xf32> to vector<1x256xf32>
    %12 = arith.addf %10, %11 : vector<1x256xf32>
    %13 = vector.extract_strided_slice %12 {offsets = [0, 0], sizes = [1, 128], strides = [1, 1]} : vector<1x256xf32> to vector<1x128xf32>
    %14 = vector.extract_strided_slice %12 {offsets = [0, 128], sizes = [1, 128], strides = [1, 1]} : vector<1x256xf32> to vector<1x128xf32>
    %15 = arith.addf %13, %14 : vector<1x128xf32>
    %16 = vector.extract_strided_slice %15 {offsets = [0, 0], sizes = [1, 64], strides = [1, 1]} : vector<1x128xf32> to vector<1x64xf32>
    %17 = vector.extract_strided_slice %15 {offsets = [0, 64], sizes = [1, 64], strides = [1, 1]} : vector<1x128xf32> to vector<1x64xf32>
    %18 = arith.addf %16, %17 : vector<1x64xf32>
    %cst_8 = arith.constant 3.200000e+01 : f32
    %19 = vector.broadcast %cst_8 : f32 to vector<1x64xf32>
    %20 = arith.divf %18, %19 : vector<1x64xf32>
    %21 = tpu.concatenate %20, %20 in 1 : vector<1x64xf32>, vector<1x64xf32> -> vector<1x128xf32>
    %22 = tpu.concatenate %21, %21 in 1 : vector<1x128xf32>, vector<1x128xf32> -> vector<1x256xf32>
    %23 = tpu.concatenate %22, %22 in 1 : vector<1x256xf32>, vector<1x256xf32> -> vector<1x512xf32>
    %24 = tpu.concatenate %23, %23 in 1 : vector<1x512xf32>, vector<1x512xf32> -> vector<1x1024xf32>
    %25 = vector.broadcast %24 : vector<1x1024xf32> to vector<2x1024xf32>
    %26 = arith.subf %2, %25 : vector<2x1024xf32>
    %27 = arith.mulf %26, %26 : vector<2x1024xf32>
    %cst_9 = arith.constant dense<0.000000e+00> : vector<1024xf32>
    %28 = vector.multi_reduction <add>, %27, %cst_9 [0] : vector<2x1024xf32> to vector<1024xf32>
    %29 = vector.shape_cast %28 : vector<1024xf32> to vector<1x1024xf32>
    %30 = vector.extract_strided_slice %29 {offsets = [0, 0], sizes = [1, 512], strides = [1, 1]} : vector<1x1024xf32> to vector<1x512xf32>
    %31 = vector.extract_strided_slice %29 {offsets = [0, 512], sizes = [1, 512], strides = [1, 1]} : vector<1x1024xf32> to vector<1x512xf32>
    %32 = arith.addf %30, %31 : vector<1x512xf32>
    %33 = vector.extract_strided_slice %32 {offsets = [0, 0], sizes = [1, 256], strides = [1, 1]} : vector<1x512xf32> to vector<1x256xf32>
    %34 = vector.extract_strided_slice %32 {offsets = [0, 256], sizes = [1, 256], strides = [1, 1]} : vector<1x512xf32> to vector<1x256xf32>
    %35 = arith.addf %33, %34 : vector<1x256xf32>
    %36 = vector.extract_strided_slice %35 {offsets = [0, 0], sizes = [1, 128], strides = [1, 1]} : vector<1x256xf32> to vector<1x128xf32>
    %37 = vector.extract_strided_slice %35 {offsets = [0, 128], sizes = [1, 128], strides = [1, 1]} : vector<1x256xf32> to vector<1x128xf32>
    %38 = arith.addf %36, %37 : vector<1x128xf32>
    %39 = vector.extract_strided_slice %38 {offsets = [0, 0], sizes = [1, 64], strides = [1, 1]} : vector<1x128xf32> to vector<1x64xf32>
    %40 = vector.extract_strided_slice %38 {offsets = [0, 64], sizes = [1, 64], strides = [1, 1]} : vector<1x128xf32> to vector<1x64xf32>
    %41 = arith.addf %39, %40 : vector<1x64xf32>
    %cst_10 = arith.constant 3.200000e+01 : f32
    %42 = vector.broadcast %cst_10 : f32 to vector<1x64xf32>
    %43 = arith.divf %41, %42 : vector<1x64xf32>
    %cst_11 = arith.constant 0.000000e+00 : f32
    %44 = vector.broadcast %cst_11 : f32 to vector<1x64xf32>
    %45 = arith.maximumf %43, %44 : vector<1x64xf32>
    %cst_12 = arith.constant 9.99999974E-6 : f32
    %46 = vector.broadcast %cst_12 : f32 to vector<1x64xf32>
    %47 = arith.addf %45, %46 : vector<1x64xf32>
    %48 = math.rsqrt %47 : vector<1x64xf32>
    %49 = arith.mulf %3, %48 : vector<1x64xf32>
    %50 = tpu.concatenate %49, %49 in 1 : vector<1x64xf32>, vector<1x64xf32> -> vector<1x128xf32>
    %51 = tpu.concatenate %50, %50 in 1 : vector<1x128xf32>, vector<1x128xf32> -> vector<1x256xf32>
    %52 = tpu.concatenate %51, %51 in 1 : vector<1x256xf32>, vector<1x256xf32> -> vector<1x512xf32>
    %53 = tpu.concatenate %52, %52 in 1 : vector<1x512xf32>, vector<1x512xf32> -> vector<1x1024xf32>
    %54 = vector.broadcast %53 : vector<1x1024xf32> to vector<2x1024xf32>
    %55 = arith.mulf %26, %54 : vector<2x1024xf32>
    %56 = tpu.concatenate %4, %4 in 1 : vector<1x64xf32>, vector<1x64xf32> -> vector<1x128xf32>
    %57 = tpu.concatenate %56, %56 in 1 : vector<1x128xf32>, vector<1x128xf32> -> vector<1x256xf32>
    %58 = tpu.concatenate %57, %57 in 1 : vector<1x256xf32>, vector<1x256xf32> -> vector<1x512xf32>
    %59 = tpu.concatenate %58, %58 in 1 : vector<1x512xf32>, vector<1x512xf32> -> vector<1x1024xf32>
    %60 = vector.broadcast %59 : vector<1x1024xf32> to vector<2x1024xf32>
    %61 = arith.addf %55, %60 : vector<2x1024xf32>
    %cst_13 = arith.constant 0.000000e+00 : f32
    %62 = vector.broadcast %cst_13 : f32 to vector<2x1024xf32>
    %63 = arith.cmpf oge, %61, %62 : vector<2x1024xf32>
    %cst_14 = arith.constant 2.000000e-01 : f32
    %64 = vector.broadcast %cst_14 : f32 to vector<2x1024xf32>
    %65 = arith.mulf %64, %61 : vector<2x1024xf32>
    %66 = arith.select %63, %61, %65 : vector<2x1024xi1>, vector<2x1024xf32>
    %67 = arith.truncf %66 : vector<2x1024xf32> to vector<2x1024xbf16>
    %c0_15 = arith.constant 0 : index
    %c0_16 = arith.constant 0 : index
    %68 = vector.load %arg5[%c0_15, %c0_16] : memref<2x1024xbf16, #tpu.memory_space<vmem>>, vector<2x1024xbf16>
    tpu.vector_store %arg5[%c0_15, %c0_16], %67 {strides = array<i32>} : memref<2x1024xbf16, #tpu.memory_space<vmem>>, vector<2x1024xbf16>,
    return
  }
  func.func @transform_0(%arg0: i32) -> (i32, i32) {
    %c0_i32 = arith.constant 0 : i32
    %c0_i32_0 = arith.constant 0 : i32
    %c0_i32_1 = arith.constant 0 : i32
    return %c0_i32, %c0_i32_0 : i32, i32
  }
  func.func @transform_1(%arg0: i32) -> (i32, i32) {
    %c0_i32 = arith.constant 0 : i32
    %c0_i32_0 = arith.constant 0 : i32
    %c0_i32_1 = arith.constant 0 : i32
    return %c0_i32, %c0_i32_0 : i32, i32
  }
  func.func @transform_2(%arg0: i32) -> (i32, i32) {
    %c0_i32 = arith.constant 0 : i32
    %c0_i32_0 = arith.constant 0 : i32
    %c0_i32_1 = arith.constant 0 : i32
    return %c0_i32, %c0_i32_0 : i32, i32
  }
  func.func @transform_3(%arg0: i32) -> (i32, i32) {
    %c0_i32 = arith.constant 0 : i32
    %c0_i32_0 = arith.constant 0 : i32
    %c0_i32_1 = arith.constant 0 : i32
    return %c0_i32, %c0_i32_0 : i32, i32
  }
  func.func @transform_4(%arg0: i32) -> (i32, i32) {
    %c0_i32 = arith.constant 0 : i32
    %c0_i32_0 = arith.constant 0 : i32
    %c0_i32_1 = arith.constant 0 : i32
    return %c0_i32, %c0_i32_0 : i32, i32
  }
}

module attributes {stable_mosaic.version = 11 : i64} {
  func.func @_block_mid_kernel(%arg0: i32, %arg1: memref<8x256xbf16, #tpu.memory_space<vmem>>, %arg2: memref<1x32xf32, #tpu.memory_space<vmem>>, %arg3: memref<1x32xf32, #tpu.memory_space<vmem>>, %arg4: memref<256x1024xbf16, #tpu.memory_space<vmem>>, %arg5: memref<8x512xbf16, #tpu.memory_space<vmem>>, %arg6: memref<8x512xf32, #tpu.memory_space<vmem>>, %arg7: memref<8x256xf32, #tpu.memory_space<vmem>>) attributes {dimension_semantics = [#tpu.dimension_semantics<arbitrary>], iteration_bounds = array<i64: 1>, scalar_prefetch = 0 : i64, scratch_operands = 2 : i64, tpu.core_type = #tpu.core_type<tc>, window_params = [{pipeline_mode = #tpu.pipeline_mode<synchronous>, transform_indices = @transform_0, window_bounds = array<i64: 8, 256>}, {pipeline_mode = #tpu.pipeline_mode<synchronous>, transform_indices = @transform_1, window_bounds = array<i64: 1, 32>}, {pipeline_mode = #tpu.pipeline_mode<synchronous>, transform_indices = @transform_2, window_bounds = array<i64: 1, 32>}, {pipeline_mode = #tpu.pipeline_mode<synchronous>, transform_indices = @transform_3, window_bounds = array<i64: 256, 1024>}, {pipeline_mode = #tpu.pipeline_mode<synchronous>, transform_indices = @transform_4, window_bounds = array<i64: 8, 512>}]} {
    %c0 = arith.constant 0 : index
    %c0_0 = arith.constant 0 : index
    %0 = vector.load %arg1[%c0, %c0_0] : memref<8x256xbf16, #tpu.memory_space<vmem>>, vector<8x256xbf16>
    %c0_1 = arith.constant 0 : index
    %c256 = arith.constant 256 : index
    %1 = vector.load %arg4[%c0_1, %c256] : memref<256x1024xbf16, #tpu.memory_space<vmem>>, vector<256x256xbf16>
    %cst = arith.constant dense<0.000000e+00> : vector<8x256xf32>
    %2 = tpu.matmul %0, %1, %cst {dimension_numbers = #tpu.dot_dimension_numbers<[1], [0], [0], [1], [0, 0, 1, 1], [], []>} : vector<8x256xbf16>, vector<256x256xbf16>, vector<8x256xf32> -> vector<8x256xf32>
    %c0_2 = arith.constant 0 : index
    %c0_3 = arith.constant 0 : index
    %3 = vector.load %arg6[%c0_2, %c0_3] : memref<8x512xf32, #tpu.memory_space<vmem>>, vector<8x256xf32>
    tpu.vector_store %arg6[%c0_2, %c0_3], %2 {strides = array<i32>} : memref<8x512xf32, #tpu.memory_space<vmem>>, vector<8x256xf32>,
    %c0_4 = arith.constant 0 : index
    %c512 = arith.constant 512 : index
    %4 = vector.load %arg4[%c0_4, %c512] : memref<256x1024xbf16, #tpu.memory_space<vmem>>, vector<256x256xbf16>
    %cst_5 = arith.constant dense<0.000000e+00> : vector<8x256xf32>
    %5 = tpu.matmul %0, %4, %cst_5 {dimension_numbers = #tpu.dot_dimension_numbers<[1], [0], [0], [1], [0, 0, 1, 1], [], []>} : vector<8x256xbf16>, vector<256x256xbf16>, vector<8x256xf32> -> vector<8x256xf32>
    %c0_6 = arith.constant 0 : index
    %c256_7 = arith.constant 256 : index
    %6 = vector.load %arg6[%c0_6, %c256_7] : memref<8x512xf32, #tpu.memory_space<vmem>>, vector<8x256xf32>
    tpu.vector_store %arg6[%c0_6, %c256_7], %5 {strides = array<i32>} : memref<8x512xf32, #tpu.memory_space<vmem>>, vector<8x256xf32>,
    %c0_8 = arith.constant 0 : index
    %c0_9 = arith.constant 0 : index
    %7 = vector.load %arg4[%c0_8, %c0_9] : memref<256x1024xbf16, #tpu.memory_space<vmem>>, vector<256x256xbf16>
    %cst_10 = arith.constant dense<0.000000e+00> : vector<8x256xf32>
    %8 = tpu.matmul %0, %7, %cst_10 {dimension_numbers = #tpu.dot_dimension_numbers<[1], [0], [0], [1], [0, 0, 1, 1], [], []>} : vector<8x256xbf16>, vector<256x256xbf16>, vector<8x256xf32> -> vector<8x256xf32>
    %c0_11 = arith.constant 0 : index
    %c0_12 = arith.constant 0 : index
    %9 = vector.load %arg7[%c0_11, %c0_12] : memref<8x256xf32, #tpu.memory_space<vmem>>, vector<8x256xf32>
    tpu.vector_store %arg7[%c0_11, %c0_12], %8 {strides = array<i32>} : memref<8x256xf32, #tpu.memory_space<vmem>>, vector<8x256xf32>,
    %c0_13 = arith.constant 0 : index
    %c256_14 = arith.constant 256 : index
    %10 = vector.load %arg6[%c0_13, %c256_14] : memref<8x512xf32, #tpu.memory_space<vmem>>, vector<3x256xf32>
    %c1 = arith.constant 1 : index
    %c0_15 = arith.constant 0 : index
    %11 = vector.load %arg7[%c1, %c0_15] : memref<8x256xf32, #tpu.memory_space<vmem>>, vector<3x256xf32>
    %12 = arith.addf %10, %11 : vector<3x256xf32>
    %c0_16 = arith.constant 0 : index
    %c256_17 = arith.constant 256 : index
    %13 = vector.load %arg6[%c0_16, %c256_17] : memref<8x512xf32, #tpu.memory_space<vmem>>, vector<3x256xf32>
    tpu.vector_store %arg6[%c0_16, %c256_17], %12 {strides = array<i32>} : memref<8x512xf32, #tpu.memory_space<vmem>>, vector<3x256xf32>,
    %c4 = arith.constant 4 : index
    %c256_18 = arith.constant 256 : index
    %14 = vector.load %arg6[%c4, %c256_18] : memref<8x512xf32, #tpu.memory_space<vmem>>, vector<3x256xf32>
    %c5 = arith.constant 5 : index
    %c0_19 = arith.constant 0 : index
    %15 = vector.load %arg7[%c5, %c0_19] : memref<8x256xf32, #tpu.memory_space<vmem>>, vector<3x256xf32>
    %16 = arith.addf %14, %15 : vector<3x256xf32>
    %c4_20 = arith.constant 4 : index
    %c256_21 = arith.constant 256 : index
    %17 = vector.load %arg6[%c4_20, %c256_21] : memref<8x512xf32, #tpu.memory_space<vmem>>, vector<3x256xf32>
    tpu.vector_store %arg6[%c4_20, %c256_21], %16 {strides = array<i32>} : memref<8x512xf32, #tpu.memory_space<vmem>>, vector<3x256xf32>,
    %c0_22 = arith.constant 0 : index
    %c768 = arith.constant 768 : index
    %18 = vector.load %arg4[%c0_22, %c768] : memref<256x1024xbf16, #tpu.memory_space<vmem>>, vector<256x256xbf16>
    %cst_23 = arith.constant dense<0.000000e+00> : vector<8x256xf32>
    %19 = tpu.matmul %0, %18, %cst_23 {dimension_numbers = #tpu.dot_dimension_numbers<[1], [0], [0], [1], [0, 0, 1, 1], [], []>} : vector<8x256xbf16>, vector<256x256xbf16>, vector<8x256xf32> -> vector<8x256xf32>
    %c0_24 = arith.constant 0 : index
    %c0_25 = arith.constant 0 : index
    %20 = vector.load %arg7[%c0_24, %c0_25] : memref<8x256xf32, #tpu.memory_space<vmem>>, vector<8x256xf32>
    tpu.vector_store %arg7[%c0_24, %c0_25], %19 {strides = array<i32>} : memref<8x256xf32, #tpu.memory_space<vmem>>, vector<8x256xf32>,
    %c1_26 = arith.constant 1 : index
    %c0_27 = arith.constant 0 : index
    %21 = vector.load %arg6[%c1_26, %c0_27] : memref<8x512xf32, #tpu.memory_space<vmem>>, vector<3x256xf32>
    %c0_28 = arith.constant 0 : index
    %c0_29 = arith.constant 0 : index
    %22 = vector.load %arg7[%c0_28, %c0_29] : memref<8x256xf32, #tpu.memory_space<vmem>>, vector<3x256xf32>
    %23 = arith.addf %21, %22 : vector<3x256xf32>
    %c1_30 = arith.constant 1 : index
    %c0_31 = arith.constant 0 : index
    %24 = vector.load %arg6[%c1_30, %c0_31] : memref<8x512xf32, #tpu.memory_space<vmem>>, vector<3x256xf32>
    tpu.vector_store %arg6[%c1_30, %c0_31], %23 {strides = array<i32>} : memref<8x512xf32, #tpu.memory_space<vmem>>, vector<3x256xf32>,
    %c5_32 = arith.constant 5 : index
    %c0_33 = arith.constant 0 : index
    %25 = vector.load %arg6[%c5_32, %c0_33] : memref<8x512xf32, #tpu.memory_space<vmem>>, vector<3x256xf32>
    %c4_34 = arith.constant 4 : index
    %c0_35 = arith.constant 0 : index
    %26 = vector.load %arg7[%c4_34, %c0_35] : memref<8x256xf32, #tpu.memory_space<vmem>>, vector<3x256xf32>
    %27 = arith.addf %25, %26 : vector<3x256xf32>
    %c5_36 = arith.constant 5 : index
    %c0_37 = arith.constant 0 : index
    %28 = vector.load %arg6[%c5_36, %c0_37] : memref<8x512xf32, #tpu.memory_space<vmem>>, vector<3x256xf32>
    tpu.vector_store %arg6[%c5_36, %c0_37], %27 {strides = array<i32>} : memref<8x512xf32, #tpu.memory_space<vmem>>, vector<3x256xf32>,
    %c0_38 = arith.constant 0 : index
    %c0_39 = arith.constant 0 : index
    %29 = vector.load %arg6[%c0_38, %c0_39] : memref<8x512xf32, #tpu.memory_space<vmem>>, vector<8x512xf32>
    %c0_40 = arith.constant 0 : index
    %c0_41 = arith.constant 0 : index
    %30 = vector.load %arg2[%c0_40, %c0_41] : memref<1x32xf32, #tpu.memory_space<vmem>>, vector<1x32xf32>
    %c0_42 = arith.constant 0 : index
    %c0_43 = arith.constant 0 : index
    %31 = vector.load %arg3[%c0_42, %c0_43] : memref<1x32xf32, #tpu.memory_space<vmem>>, vector<1x32xf32>
    %cst_44 = arith.constant dense<0.000000e+00> : vector<512xf32>
    %32 = vector.multi_reduction <add>, %29, %cst_44 [0] : vector<8x512xf32> to vector<512xf32>
    %33 = vector.shape_cast %32 : vector<512xf32> to vector<1x512xf32>
    %34 = vector.extract_strided_slice %33 {offsets = [0, 0], sizes = [1, 256], strides = [1, 1]} : vector<1x512xf32> to vector<1x256xf32>
    %35 = vector.extract_strided_slice %33 {offsets = [0, 256], sizes = [1, 256], strides = [1, 1]} : vector<1x512xf32> to vector<1x256xf32>
    %36 = arith.addf %34, %35 : vector<1x256xf32>
    %37 = vector.extract_strided_slice %36 {offsets = [0, 0], sizes = [1, 128], strides = [1, 1]} : vector<1x256xf32> to vector<1x128xf32>
    %38 = vector.extract_strided_slice %36 {offsets = [0, 128], sizes = [1, 128], strides = [1, 1]} : vector<1x256xf32> to vector<1x128xf32>
    %39 = arith.addf %37, %38 : vector<1x128xf32>
    %40 = vector.extract_strided_slice %39 {offsets = [0, 0], sizes = [1, 64], strides = [1, 1]} : vector<1x128xf32> to vector<1x64xf32>
    %41 = vector.extract_strided_slice %39 {offsets = [0, 64], sizes = [1, 64], strides = [1, 1]} : vector<1x128xf32> to vector<1x64xf32>
    %42 = arith.addf %40, %41 : vector<1x64xf32>
    %43 = vector.extract_strided_slice %42 {offsets = [0, 0], sizes = [1, 32], strides = [1, 1]} : vector<1x64xf32> to vector<1x32xf32>
    %44 = vector.extract_strided_slice %42 {offsets = [0, 32], sizes = [1, 32], strides = [1, 1]} : vector<1x64xf32> to vector<1x32xf32>
    %45 = arith.addf %43, %44 : vector<1x32xf32>
    %cst_45 = arith.constant 1.280000e+02 : f32
    %46 = vector.broadcast %cst_45 : f32 to vector<1x32xf32>
    %47 = arith.divf %45, %46 : vector<1x32xf32>
    %48 = tpu.concatenate %47, %47 in 1 : vector<1x32xf32>, vector<1x32xf32> -> vector<1x64xf32>
    %49 = tpu.concatenate %48, %48 in 1 : vector<1x64xf32>, vector<1x64xf32> -> vector<1x128xf32>
    %50 = tpu.concatenate %49, %49 in 1 : vector<1x128xf32>, vector<1x128xf32> -> vector<1x256xf32>
    %51 = tpu.concatenate %50, %50 in 1 : vector<1x256xf32>, vector<1x256xf32> -> vector<1x512xf32>
    %52 = vector.broadcast %51 : vector<1x512xf32> to vector<8x512xf32>
    %53 = arith.subf %29, %52 : vector<8x512xf32>
    %54 = arith.mulf %53, %53 : vector<8x512xf32>
    %cst_46 = arith.constant dense<0.000000e+00> : vector<512xf32>
    %55 = vector.multi_reduction <add>, %54, %cst_46 [0] : vector<8x512xf32> to vector<512xf32>
    %56 = vector.shape_cast %55 : vector<512xf32> to vector<1x512xf32>
    %57 = vector.extract_strided_slice %56 {offsets = [0, 0], sizes = [1, 256], strides = [1, 1]} : vector<1x512xf32> to vector<1x256xf32>
    %58 = vector.extract_strided_slice %56 {offsets = [0, 256], sizes = [1, 256], strides = [1, 1]} : vector<1x512xf32> to vector<1x256xf32>
    %59 = arith.addf %57, %58 : vector<1x256xf32>
    %60 = vector.extract_strided_slice %59 {offsets = [0, 0], sizes = [1, 128], strides = [1, 1]} : vector<1x256xf32> to vector<1x128xf32>
    %61 = vector.extract_strided_slice %59 {offsets = [0, 128], sizes = [1, 128], strides = [1, 1]} : vector<1x256xf32> to vector<1x128xf32>
    %62 = arith.addf %60, %61 : vector<1x128xf32>
    %63 = vector.extract_strided_slice %62 {offsets = [0, 0], sizes = [1, 64], strides = [1, 1]} : vector<1x128xf32> to vector<1x64xf32>
    %64 = vector.extract_strided_slice %62 {offsets = [0, 64], sizes = [1, 64], strides = [1, 1]} : vector<1x128xf32> to vector<1x64xf32>
    %65 = arith.addf %63, %64 : vector<1x64xf32>
    %66 = vector.extract_strided_slice %65 {offsets = [0, 0], sizes = [1, 32], strides = [1, 1]} : vector<1x64xf32> to vector<1x32xf32>
    %67 = vector.extract_strided_slice %65 {offsets = [0, 32], sizes = [1, 32], strides = [1, 1]} : vector<1x64xf32> to vector<1x32xf32>
    %68 = arith.addf %66, %67 : vector<1x32xf32>
    %cst_47 = arith.constant 1.280000e+02 : f32
    %69 = vector.broadcast %cst_47 : f32 to vector<1x32xf32>
    %70 = arith.divf %68, %69 : vector<1x32xf32>
    %cst_48 = arith.constant 0.000000e+00 : f32
    %71 = vector.broadcast %cst_48 : f32 to vector<1x32xf32>
    %72 = arith.maximumf %70, %71 : vector<1x32xf32>
    %cst_49 = arith.constant 9.99999974E-6 : f32
    %73 = vector.broadcast %cst_49 : f32 to vector<1x32xf32>
    %74 = arith.addf %72, %73 : vector<1x32xf32>
    %75 = math.rsqrt %74 : vector<1x32xf32>
    %76 = arith.mulf %30, %75 : vector<1x32xf32>
    %77 = tpu.concatenate %76, %76 in 1 : vector<1x32xf32>, vector<1x32xf32> -> vector<1x64xf32>
    %78 = tpu.concatenate %77, %77 in 1 : vector<1x64xf32>, vector<1x64xf32> -> vector<1x128xf32>
    %79 = tpu.concatenate %78, %78 in 1 : vector<1x128xf32>, vector<1x128xf32> -> vector<1x256xf32>
    %80 = tpu.concatenate %79, %79 in 1 : vector<1x256xf32>, vector<1x256xf32> -> vector<1x512xf32>
    %81 = vector.broadcast %80 : vector<1x512xf32> to vector<8x512xf32>
    %82 = arith.mulf %53, %81 : vector<8x512xf32>
    %83 = tpu.concatenate %31, %31 in 1 : vector<1x32xf32>, vector<1x32xf32> -> vector<1x64xf32>
    %84 = tpu.concatenate %83, %83 in 1 : vector<1x64xf32>, vector<1x64xf32> -> vector<1x128xf32>
    %85 = tpu.concatenate %84, %84 in 1 : vector<1x128xf32>, vector<1x128xf32> -> vector<1x256xf32>
    %86 = tpu.concatenate %85, %85 in 1 : vector<1x256xf32>, vector<1x256xf32> -> vector<1x512xf32>
    %87 = vector.broadcast %86 : vector<1x512xf32> to vector<8x512xf32>
    %88 = arith.addf %82, %87 : vector<8x512xf32>
    %cst_50 = arith.constant 0.000000e+00 : f32
    %89 = vector.broadcast %cst_50 : f32 to vector<8x512xf32>
    %90 = arith.cmpf oge, %88, %89 : vector<8x512xf32>
    %cst_51 = arith.constant 2.000000e-01 : f32
    %91 = vector.broadcast %cst_51 : f32 to vector<8x512xf32>
    %92 = arith.mulf %91, %88 : vector<8x512xf32>
    %93 = arith.select %90, %88, %92 : vector<8x512xi1>, vector<8x512xf32>
    %94 = arith.truncf %93 : vector<8x512xf32> to vector<8x512xbf16>
    %c0_52 = arith.constant 0 : index
    %c0_53 = arith.constant 0 : index
    %95 = vector.load %arg5[%c0_52, %c0_53] : memref<8x512xbf16, #tpu.memory_space<vmem>>, vector<8x512xbf16>
    tpu.vector_store %arg5[%c0_52, %c0_53], %94 {strides = array<i32>} : memref<8x512xbf16, #tpu.memory_space<vmem>>, vector<8x512xbf16>,
    return
  }
  func.func @transform_0(%arg0: i32) -> (i32, i32) {
    %c0_i32 = arith.constant 0 : i32
    %c0_i32_0 = arith.constant 0 : i32
    %c0_i32_1 = arith.constant 0 : i32
    return %c0_i32, %c0_i32_0 : i32, i32
  }
  func.func @transform_1(%arg0: i32) -> (i32, i32) {
    %c0_i32 = arith.constant 0 : i32
    %c0_i32_0 = arith.constant 0 : i32
    %c0_i32_1 = arith.constant 0 : i32
    return %c0_i32, %c0_i32_0 : i32, i32
  }
  func.func @transform_2(%arg0: i32) -> (i32, i32) {
    %c0_i32 = arith.constant 0 : i32
    %c0_i32_0 = arith.constant 0 : i32
    %c0_i32_1 = arith.constant 0 : i32
    return %c0_i32, %c0_i32_0 : i32, i32
  }
  func.func @transform_3(%arg0: i32) -> (i32, i32) {
    %c0_i32 = arith.constant 0 : i32
    %c0_i32_0 = arith.constant 0 : i32
    %c0_i32_1 = arith.constant 0 : i32
    return %c0_i32, %c0_i32_0 : i32, i32
  }
  func.func @transform_4(%arg0: i32) -> (i32, i32) {
    %c0_i32 = arith.constant 0 : i32
    %c0_i32_0 = arith.constant 0 : i32
    %c0_i32_1 = arith.constant 0 : i32
    return %c0_i32, %c0_i32_0 : i32, i32
  }
}

module attributes {stable_mosaic.version = 11 : i64} {
  func.func @_block_mid_kernel(%arg0: i32, %arg1: memref<16x256xbf16, #tpu.memory_space<vmem>>, %arg2: memref<1x16xf32, #tpu.memory_space<vmem>>, %arg3: memref<1x16xf32, #tpu.memory_space<vmem>>, %arg4: memref<256x1024xbf16, #tpu.memory_space<vmem>>, %arg5: memref<16x512xbf16, #tpu.memory_space<vmem>>, %arg6: memref<16x512xf32, #tpu.memory_space<vmem>>, %arg7: memref<16x256xf32, #tpu.memory_space<vmem>>) attributes {dimension_semantics = [#tpu.dimension_semantics<arbitrary>], iteration_bounds = array<i64: 1>, scalar_prefetch = 0 : i64, scratch_operands = 2 : i64, tpu.core_type = #tpu.core_type<tc>, window_params = [{pipeline_mode = #tpu.pipeline_mode<synchronous>, transform_indices = @transform_0, window_bounds = array<i64: 16, 256>}, {pipeline_mode = #tpu.pipeline_mode<synchronous>, transform_indices = @transform_1, window_bounds = array<i64: 1, 16>}, {pipeline_mode = #tpu.pipeline_mode<synchronous>, transform_indices = @transform_2, window_bounds = array<i64: 1, 16>}, {pipeline_mode = #tpu.pipeline_mode<synchronous>, transform_indices = @transform_3, window_bounds = array<i64: 256, 1024>}, {pipeline_mode = #tpu.pipeline_mode<synchronous>, transform_indices = @transform_4, window_bounds = array<i64: 16, 512>}]} {
    %c0 = arith.constant 0 : index
    %c0_0 = arith.constant 0 : index
    %0 = vector.load %arg1[%c0, %c0_0] : memref<16x256xbf16, #tpu.memory_space<vmem>>, vector<16x256xbf16>
    %c0_1 = arith.constant 0 : index
    %c256 = arith.constant 256 : index
    %1 = vector.load %arg4[%c0_1, %c256] : memref<256x1024xbf16, #tpu.memory_space<vmem>>, vector<256x256xbf16>
    %cst = arith.constant dense<0.000000e+00> : vector<16x256xf32>
    %2 = tpu.matmul %0, %1, %cst {dimension_numbers = #tpu.dot_dimension_numbers<[1], [0], [0], [1], [0, 0, 1, 1], [], []>} : vector<16x256xbf16>, vector<256x256xbf16>, vector<16x256xf32> -> vector<16x256xf32>
    %c0_2 = arith.constant 0 : index
    %c0_3 = arith.constant 0 : index
    %3 = vector.load %arg6[%c0_2, %c0_3] : memref<16x512xf32, #tpu.memory_space<vmem>>, vector<16x256xf32>
    tpu.vector_store %arg6[%c0_2, %c0_3], %2 {strides = array<i32>} : memref<16x512xf32, #tpu.memory_space<vmem>>, vector<16x256xf32>,
    %c0_4 = arith.constant 0 : index
    %c512 = arith.constant 512 : index
    %4 = vector.load %arg4[%c0_4, %c512] : memref<256x1024xbf16, #tpu.memory_space<vmem>>, vector<256x256xbf16>
    %cst_5 = arith.constant dense<0.000000e+00> : vector<16x256xf32>
    %5 = tpu.matmul %0, %4, %cst_5 {dimension_numbers = #tpu.dot_dimension_numbers<[1], [0], [0], [1], [0, 0, 1, 1], [], []>} : vector<16x256xbf16>, vector<256x256xbf16>, vector<16x256xf32> -> vector<16x256xf32>
    %c0_6 = arith.constant 0 : index
    %c256_7 = arith.constant 256 : index
    %6 = vector.load %arg6[%c0_6, %c256_7] : memref<16x512xf32, #tpu.memory_space<vmem>>, vector<16x256xf32>
    tpu.vector_store %arg6[%c0_6, %c256_7], %5 {strides = array<i32>} : memref<16x512xf32, #tpu.memory_space<vmem>>, vector<16x256xf32>,
    %c0_8 = arith.constant 0 : index
    %c0_9 = arith.constant 0 : index
    %7 = vector.load %arg4[%c0_8, %c0_9] : memref<256x1024xbf16, #tpu.memory_space<vmem>>, vector<256x256xbf16>
    %cst_10 = arith.constant dense<0.000000e+00> : vector<16x256xf32>
    %8 = tpu.matmul %0, %7, %cst_10 {dimension_numbers = #tpu.dot_dimension_numbers<[1], [0], [0], [1], [0, 0, 1, 1], [], []>} : vector<16x256xbf16>, vector<256x256xbf16>, vector<16x256xf32> -> vector<16x256xf32>
    %c0_11 = arith.constant 0 : index
    %c0_12 = arith.constant 0 : index
    %9 = vector.load %arg7[%c0_11, %c0_12] : memref<16x256xf32, #tpu.memory_space<vmem>>, vector<16x256xf32>
    tpu.vector_store %arg7[%c0_11, %c0_12], %8 {strides = array<i32>} : memref<16x256xf32, #tpu.memory_space<vmem>>, vector<16x256xf32>,
    %c0_13 = arith.constant 0 : index
    %c256_14 = arith.constant 256 : index
    %10 = vector.load %arg6[%c0_13, %c256_14] : memref<16x512xf32, #tpu.memory_space<vmem>>, vector<7x256xf32>
    %c1 = arith.constant 1 : index
    %c0_15 = arith.constant 0 : index
    %11 = vector.load %arg7[%c1, %c0_15] : memref<16x256xf32, #tpu.memory_space<vmem>>, vector<7x256xf32>
    %12 = arith.addf %10, %11 : vector<7x256xf32>
    %c0_16 = arith.constant 0 : index
    %c256_17 = arith.constant 256 : index
    %13 = vector.load %arg6[%c0_16, %c256_17] : memref<16x512xf32, #tpu.memory_space<vmem>>, vector<7x256xf32>
    tpu.vector_store %arg6[%c0_16, %c256_17], %12 {strides = array<i32>} : memref<16x512xf32, #tpu.memory_space<vmem>>, vector<7x256xf32>,
    %c8 = arith.constant 8 : index
    %c256_18 = arith.constant 256 : index
    %14 = vector.load %arg6[%c8, %c256_18] : memref<16x512xf32, #tpu.memory_space<vmem>>, vector<7x256xf32>
    %c9 = arith.constant 9 : index
    %c0_19 = arith.constant 0 : index
    %15 = vector.load %arg7[%c9, %c0_19] : memref<16x256xf32, #tpu.memory_space<vmem>>, vector<7x256xf32>
    %16 = arith.addf %14, %15 : vector<7x256xf32>
    %c8_20 = arith.constant 8 : index
    %c256_21 = arith.constant 256 : index
    %17 = vector.load %arg6[%c8_20, %c256_21] : memref<16x512xf32, #tpu.memory_space<vmem>>, vector<7x256xf32>
    tpu.vector_store %arg6[%c8_20, %c256_21], %16 {strides = array<i32>} : memref<16x512xf32, #tpu.memory_space<vmem>>, vector<7x256xf32>,
    %c0_22 = arith.constant 0 : index
    %c768 = arith.constant 768 : index
    %18 = vector.load %arg4[%c0_22, %c768] : memref<256x1024xbf16, #tpu.memory_space<vmem>>, vector<256x256xbf16>
    %cst_23 = arith.constant dense<0.000000e+00> : vector<16x256xf32>
    %19 = tpu.matmul %0, %18, %cst_23 {dimension_numbers = #tpu.dot_dimension_numbers<[1], [0], [0], [1], [0, 0, 1, 1], [], []>} : vector<16x256xbf16>, vector<256x256xbf16>, vector<16x256xf32> -> vector<16x256xf32>
    %c0_24 = arith.constant 0 : index
    %c0_25 = arith.constant 0 : index
    %20 = vector.load %arg7[%c0_24, %c0_25] : memref<16x256xf32, #tpu.memory_space<vmem>>, vector<16x256xf32>
    tpu.vector_store %arg7[%c0_24, %c0_25], %19 {strides = array<i32>} : memref<16x256xf32, #tpu.memory_space<vmem>>, vector<16x256xf32>,
    %c1_26 = arith.constant 1 : index
    %c0_27 = arith.constant 0 : index
    %21 = vector.load %arg6[%c1_26, %c0_27] : memref<16x512xf32, #tpu.memory_space<vmem>>, vector<7x256xf32>
    %c0_28 = arith.constant 0 : index
    %c0_29 = arith.constant 0 : index
    %22 = vector.load %arg7[%c0_28, %c0_29] : memref<16x256xf32, #tpu.memory_space<vmem>>, vector<7x256xf32>
    %23 = arith.addf %21, %22 : vector<7x256xf32>
    %c1_30 = arith.constant 1 : index
    %c0_31 = arith.constant 0 : index
    %24 = vector.load %arg6[%c1_30, %c0_31] : memref<16x512xf32, #tpu.memory_space<vmem>>, vector<7x256xf32>
    tpu.vector_store %arg6[%c1_30, %c0_31], %23 {strides = array<i32>} : memref<16x512xf32, #tpu.memory_space<vmem>>, vector<7x256xf32>,
    %c9_32 = arith.constant 9 : index
    %c0_33 = arith.constant 0 : index
    %25 = vector.load %arg6[%c9_32, %c0_33] : memref<16x512xf32, #tpu.memory_space<vmem>>, vector<7x256xf32>
    %c8_34 = arith.constant 8 : index
    %c0_35 = arith.constant 0 : index
    %26 = vector.load %arg7[%c8_34, %c0_35] : memref<16x256xf32, #tpu.memory_space<vmem>>, vector<7x256xf32>
    %27 = arith.addf %25, %26 : vector<7x256xf32>
    %c9_36 = arith.constant 9 : index
    %c0_37 = arith.constant 0 : index
    %28 = vector.load %arg6[%c9_36, %c0_37] : memref<16x512xf32, #tpu.memory_space<vmem>>, vector<7x256xf32>
    tpu.vector_store %arg6[%c9_36, %c0_37], %27 {strides = array<i32>} : memref<16x512xf32, #tpu.memory_space<vmem>>, vector<7x256xf32>,
    %c0_38 = arith.constant 0 : index
    %c0_39 = arith.constant 0 : index
    %29 = vector.load %arg6[%c0_38, %c0_39] : memref<16x512xf32, #tpu.memory_space<vmem>>, vector<16x512xf32>
    %c0_40 = arith.constant 0 : index
    %c0_41 = arith.constant 0 : index
    %30 = vector.load %arg2[%c0_40, %c0_41] : memref<1x16xf32, #tpu.memory_space<vmem>>, vector<1x16xf32>
    %c0_42 = arith.constant 0 : index
    %c0_43 = arith.constant 0 : index
    %31 = vector.load %arg3[%c0_42, %c0_43] : memref<1x16xf32, #tpu.memory_space<vmem>>, vector<1x16xf32>
    %cst_44 = arith.constant dense<0.000000e+00> : vector<512xf32>
    %32 = vector.multi_reduction <add>, %29, %cst_44 [0] : vector<16x512xf32> to vector<512xf32>
    %33 = vector.shape_cast %32 : vector<512xf32> to vector<1x512xf32>
    %34 = vector.extract_strided_slice %33 {offsets = [0, 0], sizes = [1, 256], strides = [1, 1]} : vector<1x512xf32> to vector<1x256xf32>
    %35 = vector.extract_strided_slice %33 {offsets = [0, 256], sizes = [1, 256], strides = [1, 1]} : vector<1x512xf32> to vector<1x256xf32>
    %36 = arith.addf %34, %35 : vector<1x256xf32>
    %37 = vector.extract_strided_slice %36 {offsets = [0, 0], sizes = [1, 128], strides = [1, 1]} : vector<1x256xf32> to vector<1x128xf32>
    %38 = vector.extract_strided_slice %36 {offsets = [0, 128], sizes = [1, 128], strides = [1, 1]} : vector<1x256xf32> to vector<1x128xf32>
    %39 = arith.addf %37, %38 : vector<1x128xf32>
    %40 = vector.extract_strided_slice %39 {offsets = [0, 0], sizes = [1, 64], strides = [1, 1]} : vector<1x128xf32> to vector<1x64xf32>
    %41 = vector.extract_strided_slice %39 {offsets = [0, 64], sizes = [1, 64], strides = [1, 1]} : vector<1x128xf32> to vector<1x64xf32>
    %42 = arith.addf %40, %41 : vector<1x64xf32>
    %43 = vector.extract_strided_slice %42 {offsets = [0, 0], sizes = [1, 32], strides = [1, 1]} : vector<1x64xf32> to vector<1x32xf32>
    %44 = vector.extract_strided_slice %42 {offsets = [0, 32], sizes = [1, 32], strides = [1, 1]} : vector<1x64xf32> to vector<1x32xf32>
    %45 = arith.addf %43, %44 : vector<1x32xf32>
    %46 = vector.extract_strided_slice %45 {offsets = [0, 0], sizes = [1, 16], strides = [1, 1]} : vector<1x32xf32> to vector<1x16xf32>
    %47 = vector.extract_strided_slice %45 {offsets = [0, 16], sizes = [1, 16], strides = [1, 1]} : vector<1x32xf32> to vector<1x16xf32>
    %48 = arith.addf %46, %47 : vector<1x16xf32>
    %cst_45 = arith.constant 5.120000e+02 : f32
    %49 = vector.broadcast %cst_45 : f32 to vector<1x16xf32>
    %50 = arith.divf %48, %49 : vector<1x16xf32>
    %51 = tpu.concatenate %50, %50 in 1 : vector<1x16xf32>, vector<1x16xf32> -> vector<1x32xf32>
    %52 = tpu.concatenate %51, %51 in 1 : vector<1x32xf32>, vector<1x32xf32> -> vector<1x64xf32>
    %53 = tpu.concatenate %52, %52 in 1 : vector<1x64xf32>, vector<1x64xf32> -> vector<1x128xf32>
    %54 = tpu.concatenate %53, %53 in 1 : vector<1x128xf32>, vector<1x128xf32> -> vector<1x256xf32>
    %55 = tpu.concatenate %54, %54 in 1 : vector<1x256xf32>, vector<1x256xf32> -> vector<1x512xf32>
    %56 = vector.broadcast %55 : vector<1x512xf32> to vector<16x512xf32>
    %57 = arith.subf %29, %56 : vector<16x512xf32>
    %58 = arith.mulf %57, %57 : vector<16x512xf32>
    %cst_46 = arith.constant dense<0.000000e+00> : vector<512xf32>
    %59 = vector.multi_reduction <add>, %58, %cst_46 [0] : vector<16x512xf32> to vector<512xf32>
    %60 = vector.shape_cast %59 : vector<512xf32> to vector<1x512xf32>
    %61 = vector.extract_strided_slice %60 {offsets = [0, 0], sizes = [1, 256], strides = [1, 1]} : vector<1x512xf32> to vector<1x256xf32>
    %62 = vector.extract_strided_slice %60 {offsets = [0, 256], sizes = [1, 256], strides = [1, 1]} : vector<1x512xf32> to vector<1x256xf32>
    %63 = arith.addf %61, %62 : vector<1x256xf32>
    %64 = vector.extract_strided_slice %63 {offsets = [0, 0], sizes = [1, 128], strides = [1, 1]} : vector<1x256xf32> to vector<1x128xf32>
    %65 = vector.extract_strided_slice %63 {offsets = [0, 128], sizes = [1, 128], strides = [1, 1]} : vector<1x256xf32> to vector<1x128xf32>
    %66 = arith.addf %64, %65 : vector<1x128xf32>
    %67 = vector.extract_strided_slice %66 {offsets = [0, 0], sizes = [1, 64], strides = [1, 1]} : vector<1x128xf32> to vector<1x64xf32>
    %68 = vector.extract_strided_slice %66 {offsets = [0, 64], sizes = [1, 64], strides = [1, 1]} : vector<1x128xf32> to vector<1x64xf32>
    %69 = arith.addf %67, %68 : vector<1x64xf32>
    %70 = vector.extract_strided_slice %69 {offsets = [0, 0], sizes = [1, 32], strides = [1, 1]} : vector<1x64xf32> to vector<1x32xf32>
    %71 = vector.extract_strided_slice %69 {offsets = [0, 32], sizes = [1, 32], strides = [1, 1]} : vector<1x64xf32> to vector<1x32xf32>
    %72 = arith.addf %70, %71 : vector<1x32xf32>
    %73 = vector.extract_strided_slice %72 {offsets = [0, 0], sizes = [1, 16], strides = [1, 1]} : vector<1x32xf32> to vector<1x16xf32>
    %74 = vector.extract_strided_slice %72 {offsets = [0, 16], sizes = [1, 16], strides = [1, 1]} : vector<1x32xf32> to vector<1x16xf32>
    %75 = arith.addf %73, %74 : vector<1x16xf32>
    %cst_47 = arith.constant 5.120000e+02 : f32
    %76 = vector.broadcast %cst_47 : f32 to vector<1x16xf32>
    %77 = arith.divf %75, %76 : vector<1x16xf32>
    %cst_48 = arith.constant 0.000000e+00 : f32
    %78 = vector.broadcast %cst_48 : f32 to vector<1x16xf32>
    %79 = arith.maximumf %77, %78 : vector<1x16xf32>
    %cst_49 = arith.constant 9.99999974E-6 : f32
    %80 = vector.broadcast %cst_49 : f32 to vector<1x16xf32>
    %81 = arith.addf %79, %80 : vector<1x16xf32>
    %82 = math.rsqrt %81 : vector<1x16xf32>
    %83 = arith.mulf %30, %82 : vector<1x16xf32>
    %84 = tpu.concatenate %83, %83 in 1 : vector<1x16xf32>, vector<1x16xf32> -> vector<1x32xf32>
    %85 = tpu.concatenate %84, %84 in 1 : vector<1x32xf32>, vector<1x32xf32> -> vector<1x64xf32>
    %86 = tpu.concatenate %85, %85 in 1 : vector<1x64xf32>, vector<1x64xf32> -> vector<1x128xf32>
    %87 = tpu.concatenate %86, %86 in 1 : vector<1x128xf32>, vector<1x128xf32> -> vector<1x256xf32>
    %88 = tpu.concatenate %87, %87 in 1 : vector<1x256xf32>, vector<1x256xf32> -> vector<1x512xf32>
    %89 = vector.broadcast %88 : vector<1x512xf32> to vector<16x512xf32>
    %90 = arith.mulf %57, %89 : vector<16x512xf32>
    %91 = tpu.concatenate %31, %31 in 1 : vector<1x16xf32>, vector<1x16xf32> -> vector<1x32xf32>
    %92 = tpu.concatenate %91, %91 in 1 : vector<1x32xf32>, vector<1x32xf32> -> vector<1x64xf32>
    %93 = tpu.concatenate %92, %92 in 1 : vector<1x64xf32>, vector<1x64xf32> -> vector<1x128xf32>
    %94 = tpu.concatenate %93, %93 in 1 : vector<1x128xf32>, vector<1x128xf32> -> vector<1x256xf32>
    %95 = tpu.concatenate %94, %94 in 1 : vector<1x256xf32>, vector<1x256xf32> -> vector<1x512xf32>
    %96 = vector.broadcast %95 : vector<1x512xf32> to vector<16x512xf32>
    %97 = arith.addf %90, %96 : vector<16x512xf32>
    %cst_50 = arith.constant 0.000000e+00 : f32
    %98 = vector.broadcast %cst_50 : f32 to vector<16x512xf32>
    %99 = arith.cmpf oge, %97, %98 : vector<16x512xf32>
    %cst_51 = arith.constant 2.000000e-01 : f32
    %100 = vector.broadcast %cst_51 : f32 to vector<16x512xf32>
    %101 = arith.mulf %100, %97 : vector<16x512xf32>
    %102 = arith.select %99, %97, %101 : vector<16x512xi1>, vector<16x512xf32>
    %103 = arith.truncf %102 : vector<16x512xf32> to vector<16x512xbf16>
    %c0_52 = arith.constant 0 : index
    %c0_53 = arith.constant 0 : index
    %104 = vector.load %arg5[%c0_52, %c0_53] : memref<16x512xbf16, #tpu.memory_space<vmem>>, vector<16x512xbf16>
    tpu.vector_store %arg5[%c0_52, %c0_53], %103 {strides = array<i32>} : memref<16x512xbf16, #tpu.memory_space<vmem>>, vector<16x512xbf16>,
    return
  }
  func.func @transform_0(%arg0: i32) -> (i32, i32) {
    %c0_i32 = arith.constant 0 : i32
    %c0_i32_0 = arith.constant 0 : i32
    %c0_i32_1 = arith.constant 0 : i32
    return %c0_i32, %c0_i32_0 : i32, i32
  }
  func.func @transform_1(%arg0: i32) -> (i32, i32) {
    %c0_i32 = arith.constant 0 : i32
    %c0_i32_0 = arith.constant 0 : i32
    %c0_i32_1 = arith.constant 0 : i32
    return %c0_i32, %c0_i32_0 : i32, i32
  }
  func.func @transform_2(%arg0: i32) -> (i32, i32) {
    %c0_i32 = arith.constant 0 : i32
    %c0_i32_0 = arith.constant 0 : i32
    %c0_i32_1 = arith.constant 0 : i32
    return %c0_i32, %c0_i32_0 : i32, i32
  }
  func.func @transform_3(%arg0: i32) -> (i32, i32) {
    %c0_i32 = arith.constant 0 : i32
    %c0_i32_0 = arith.constant 0 : i32
    %c0_i32_1 = arith.constant 0 : i32
    return %c0_i32, %c0_i32_0 : i32, i32
  }
  func.func @transform_4(%arg0: i32) -> (i32, i32) {
    %c0_i32 = arith.constant 0 : i32
    %c0_i32_0 = arith.constant 0 : i32
    %c0_i32_1 = arith.constant 0 : i32
    return %c0_i32, %c0_i32_0 : i32, i32
  }
}

module attributes {stable_mosaic.version = 11 : i64} {
  func.func @_block_mid_kernel(%arg0: i32, %arg1: memref<32x256xbf16, #tpu.memory_space<vmem>>, %arg2: memref<1x8xf32, #tpu.memory_space<vmem>>, %arg3: memref<1x8xf32, #tpu.memory_space<vmem>>, %arg4: memref<256x1024xbf16, #tpu.memory_space<vmem>>, %arg5: memref<32x512xbf16, #tpu.memory_space<vmem>>, %arg6: memref<32x512xf32, #tpu.memory_space<vmem>>, %arg7: memref<32x256xf32, #tpu.memory_space<vmem>>) attributes {dimension_semantics = [#tpu.dimension_semantics<arbitrary>], iteration_bounds = array<i64: 1>, scalar_prefetch = 0 : i64, scratch_operands = 2 : i64, tpu.core_type = #tpu.core_type<tc>, window_params = [{pipeline_mode = #tpu.pipeline_mode<synchronous>, transform_indices = @transform_0, window_bounds = array<i64: 32, 256>}, {pipeline_mode = #tpu.pipeline_mode<synchronous>, transform_indices = @transform_1, window_bounds = array<i64: 1, 8>}, {pipeline_mode = #tpu.pipeline_mode<synchronous>, transform_indices = @transform_2, window_bounds = array<i64: 1, 8>}, {pipeline_mode = #tpu.pipeline_mode<synchronous>, transform_indices = @transform_3, window_bounds = array<i64: 256, 1024>}, {pipeline_mode = #tpu.pipeline_mode<synchronous>, transform_indices = @transform_4, window_bounds = array<i64: 32, 512>}]} {
    %c0 = arith.constant 0 : index
    %c0_0 = arith.constant 0 : index
    %0 = vector.load %arg1[%c0, %c0_0] : memref<32x256xbf16, #tpu.memory_space<vmem>>, vector<32x256xbf16>
    %c0_1 = arith.constant 0 : index
    %c256 = arith.constant 256 : index
    %1 = vector.load %arg4[%c0_1, %c256] : memref<256x1024xbf16, #tpu.memory_space<vmem>>, vector<256x256xbf16>
    %cst = arith.constant dense<0.000000e+00> : vector<32x256xf32>
    %2 = tpu.matmul %0, %1, %cst {dimension_numbers = #tpu.dot_dimension_numbers<[1], [0], [0], [1], [0, 0, 1, 1], [], []>} : vector<32x256xbf16>, vector<256x256xbf16>, vector<32x256xf32> -> vector<32x256xf32>
    %c0_2 = arith.constant 0 : index
    %c0_3 = arith.constant 0 : index
    %3 = vector.load %arg6[%c0_2, %c0_3] : memref<32x512xf32, #tpu.memory_space<vmem>>, vector<32x256xf32>
    tpu.vector_store %arg6[%c0_2, %c0_3], %2 {strides = array<i32>} : memref<32x512xf32, #tpu.memory_space<vmem>>, vector<32x256xf32>,
    %c0_4 = arith.constant 0 : index
    %c512 = arith.constant 512 : index
    %4 = vector.load %arg4[%c0_4, %c512] : memref<256x1024xbf16, #tpu.memory_space<vmem>>, vector<256x256xbf16>
    %cst_5 = arith.constant dense<0.000000e+00> : vector<32x256xf32>
    %5 = tpu.matmul %0, %4, %cst_5 {dimension_numbers = #tpu.dot_dimension_numbers<[1], [0], [0], [1], [0, 0, 1, 1], [], []>} : vector<32x256xbf16>, vector<256x256xbf16>, vector<32x256xf32> -> vector<32x256xf32>
    %c0_6 = arith.constant 0 : index
    %c256_7 = arith.constant 256 : index
    %6 = vector.load %arg6[%c0_6, %c256_7] : memref<32x512xf32, #tpu.memory_space<vmem>>, vector<32x256xf32>
    tpu.vector_store %arg6[%c0_6, %c256_7], %5 {strides = array<i32>} : memref<32x512xf32, #tpu.memory_space<vmem>>, vector<32x256xf32>,
    %c0_8 = arith.constant 0 : index
    %c0_9 = arith.constant 0 : index
    %7 = vector.load %arg4[%c0_8, %c0_9] : memref<256x1024xbf16, #tpu.memory_space<vmem>>, vector<256x256xbf16>
    %cst_10 = arith.constant dense<0.000000e+00> : vector<32x256xf32>
    %8 = tpu.matmul %0, %7, %cst_10 {dimension_numbers = #tpu.dot_dimension_numbers<[1], [0], [0], [1], [0, 0, 1, 1], [], []>} : vector<32x256xbf16>, vector<256x256xbf16>, vector<32x256xf32> -> vector<32x256xf32>
    %c0_11 = arith.constant 0 : index
    %c0_12 = arith.constant 0 : index
    %9 = vector.load %arg7[%c0_11, %c0_12] : memref<32x256xf32, #tpu.memory_space<vmem>>, vector<32x256xf32>
    tpu.vector_store %arg7[%c0_11, %c0_12], %8 {strides = array<i32>} : memref<32x256xf32, #tpu.memory_space<vmem>>, vector<32x256xf32>,
    %c0_13 = arith.constant 0 : index
    %c256_14 = arith.constant 256 : index
    %10 = vector.load %arg6[%c0_13, %c256_14] : memref<32x512xf32, #tpu.memory_space<vmem>>, vector<15x256xf32>
    %c1 = arith.constant 1 : index
    %c0_15 = arith.constant 0 : index
    %11 = vector.load %arg7[%c1, %c0_15] : memref<32x256xf32, #tpu.memory_space<vmem>>, vector<15x256xf32>
    %12 = arith.addf %10, %11 : vector<15x256xf32>
    %c0_16 = arith.constant 0 : index
    %c256_17 = arith.constant 256 : index
    %13 = vector.load %arg6[%c0_16, %c256_17] : memref<32x512xf32, #tpu.memory_space<vmem>>, vector<15x256xf32>
    tpu.vector_store %arg6[%c0_16, %c256_17], %12 {strides = array<i32>} : memref<32x512xf32, #tpu.memory_space<vmem>>, vector<15x256xf32>,
    %c16 = arith.constant 16 : index
    %c256_18 = arith.constant 256 : index
    %14 = vector.load %arg6[%c16, %c256_18] : memref<32x512xf32, #tpu.memory_space<vmem>>, vector<15x256xf32>
    %c17 = arith.constant 17 : index
    %c0_19 = arith.constant 0 : index
    %15 = vector.load %arg7[%c17, %c0_19] : memref<32x256xf32, #tpu.memory_space<vmem>>, vector<15x256xf32>
    %16 = arith.addf %14, %15 : vector<15x256xf32>
    %c16_20 = arith.constant 16 : index
    %c256_21 = arith.constant 256 : index
    %17 = vector.load %arg6[%c16_20, %c256_21] : memref<32x512xf32, #tpu.memory_space<vmem>>, vector<15x256xf32>
    tpu.vector_store %arg6[%c16_20, %c256_21], %16 {strides = array<i32>} : memref<32x512xf32, #tpu.memory_space<vmem>>, vector<15x256xf32>,
    %c0_22 = arith.constant 0 : index
    %c768 = arith.constant 768 : index
    %18 = vector.load %arg4[%c0_22, %c768] : memref<256x1024xbf16, #tpu.memory_space<vmem>>, vector<256x256xbf16>
    %cst_23 = arith.constant dense<0.000000e+00> : vector<32x256xf32>
    %19 = tpu.matmul %0, %18, %cst_23 {dimension_numbers = #tpu.dot_dimension_numbers<[1], [0], [0], [1], [0, 0, 1, 1], [], []>} : vector<32x256xbf16>, vector<256x256xbf16>, vector<32x256xf32> -> vector<32x256xf32>
    %c0_24 = arith.constant 0 : index
    %c0_25 = arith.constant 0 : index
    %20 = vector.load %arg7[%c0_24, %c0_25] : memref<32x256xf32, #tpu.memory_space<vmem>>, vector<32x256xf32>
    tpu.vector_store %arg7[%c0_24, %c0_25], %19 {strides = array<i32>} : memref<32x256xf32, #tpu.memory_space<vmem>>, vector<32x256xf32>,
    %c1_26 = arith.constant 1 : index
    %c0_27 = arith.constant 0 : index
    %21 = vector.load %arg6[%c1_26, %c0_27] : memref<32x512xf32, #tpu.memory_space<vmem>>, vector<15x256xf32>
    %c0_28 = arith.constant 0 : index
    %c0_29 = arith.constant 0 : index
    %22 = vector.load %arg7[%c0_28, %c0_29] : memref<32x256xf32, #tpu.memory_space<vmem>>, vector<15x256xf32>
    %23 = arith.addf %21, %22 : vector<15x256xf32>
    %c1_30 = arith.constant 1 : index
    %c0_31 = arith.constant 0 : index
    %24 = vector.load %arg6[%c1_30, %c0_31] : memref<32x512xf32, #tpu.memory_space<vmem>>, vector<15x256xf32>
    tpu.vector_store %arg6[%c1_30, %c0_31], %23 {strides = array<i32>} : memref<32x512xf32, #tpu.memory_space<vmem>>, vector<15x256xf32>,
    %c17_32 = arith.constant 17 : index
    %c0_33 = arith.constant 0 : index
    %25 = vector.load %arg6[%c17_32, %c0_33] : memref<32x512xf32, #tpu.memory_space<vmem>>, vector<15x256xf32>
    %c16_34 = arith.constant 16 : index
    %c0_35 = arith.constant 0 : index
    %26 = vector.load %arg7[%c16_34, %c0_35] : memref<32x256xf32, #tpu.memory_space<vmem>>, vector<15x256xf32>
    %27 = arith.addf %25, %26 : vector<15x256xf32>
    %c17_36 = arith.constant 17 : index
    %c0_37 = arith.constant 0 : index
    %28 = vector.load %arg6[%c17_36, %c0_37] : memref<32x512xf32, #tpu.memory_space<vmem>>, vector<15x256xf32>
    tpu.vector_store %arg6[%c17_36, %c0_37], %27 {strides = array<i32>} : memref<32x512xf32, #tpu.memory_space<vmem>>, vector<15x256xf32>,
    %c0_38 = arith.constant 0 : index
    %c0_39 = arith.constant 0 : index
    %29 = vector.load %arg6[%c0_38, %c0_39] : memref<32x512xf32, #tpu.memory_space<vmem>>, vector<32x512xf32>
    %c0_40 = arith.constant 0 : index
    %c0_41 = arith.constant 0 : index
    %30 = vector.load %arg2[%c0_40, %c0_41] : memref<1x8xf32, #tpu.memory_space<vmem>>, vector<1x8xf32>
    %c0_42 = arith.constant 0 : index
    %c0_43 = arith.constant 0 : index
    %31 = vector.load %arg3[%c0_42, %c0_43] : memref<1x8xf32, #tpu.memory_space<vmem>>, vector<1x8xf32>
    %cst_44 = arith.constant dense<0.000000e+00> : vector<512xf32>
    %32 = vector.multi_reduction <add>, %29, %cst_44 [0] : vector<32x512xf32> to vector<512xf32>
    %33 = vector.shape_cast %32 : vector<512xf32> to vector<1x512xf32>
    %34 = vector.extract_strided_slice %33 {offsets = [0, 0], sizes = [1, 256], strides = [1, 1]} : vector<1x512xf32> to vector<1x256xf32>
    %35 = vector.extract_strided_slice %33 {offsets = [0, 256], sizes = [1, 256], strides = [1, 1]} : vector<1x512xf32> to vector<1x256xf32>
    %36 = arith.addf %34, %35 : vector<1x256xf32>
    %37 = vector.extract_strided_slice %36 {offsets = [0, 0], sizes = [1, 128], strides = [1, 1]} : vector<1x256xf32> to vector<1x128xf32>
    %38 = vector.extract_strided_slice %36 {offsets = [0, 128], sizes = [1, 128], strides = [1, 1]} : vector<1x256xf32> to vector<1x128xf32>
    %39 = arith.addf %37, %38 : vector<1x128xf32>
    %40 = vector.extract_strided_slice %39 {offsets = [0, 0], sizes = [1, 64], strides = [1, 1]} : vector<1x128xf32> to vector<1x64xf32>
    %41 = vector.extract_strided_slice %39 {offsets = [0, 64], sizes = [1, 64], strides = [1, 1]} : vector<1x128xf32> to vector<1x64xf32>
    %42 = arith.addf %40, %41 : vector<1x64xf32>
    %43 = vector.extract_strided_slice %42 {offsets = [0, 0], sizes = [1, 32], strides = [1, 1]} : vector<1x64xf32> to vector<1x32xf32>
    %44 = vector.extract_strided_slice %42 {offsets = [0, 32], sizes = [1, 32], strides = [1, 1]} : vector<1x64xf32> to vector<1x32xf32>
    %45 = arith.addf %43, %44 : vector<1x32xf32>
    %46 = vector.extract_strided_slice %45 {offsets = [0, 0], sizes = [1, 16], strides = [1, 1]} : vector<1x32xf32> to vector<1x16xf32>
    %47 = vector.extract_strided_slice %45 {offsets = [0, 16], sizes = [1, 16], strides = [1, 1]} : vector<1x32xf32> to vector<1x16xf32>
    %48 = arith.addf %46, %47 : vector<1x16xf32>
    %49 = vector.extract_strided_slice %48 {offsets = [0, 0], sizes = [1, 8], strides = [1, 1]} : vector<1x16xf32> to vector<1x8xf32>
    %50 = vector.extract_strided_slice %48 {offsets = [0, 8], sizes = [1, 8], strides = [1, 1]} : vector<1x16xf32> to vector<1x8xf32>
    %51 = arith.addf %49, %50 : vector<1x8xf32>
    %cst_45 = arith.constant 2.048000e+03 : f32
    %52 = vector.broadcast %cst_45 : f32 to vector<1x8xf32>
    %53 = arith.divf %51, %52 : vector<1x8xf32>
    %54 = tpu.concatenate %53, %53 in 1 : vector<1x8xf32>, vector<1x8xf32> -> vector<1x16xf32>
    %55 = tpu.concatenate %54, %54 in 1 : vector<1x16xf32>, vector<1x16xf32> -> vector<1x32xf32>
    %56 = tpu.concatenate %55, %55 in 1 : vector<1x32xf32>, vector<1x32xf32> -> vector<1x64xf32>
    %57 = tpu.concatenate %56, %56 in 1 : vector<1x64xf32>, vector<1x64xf32> -> vector<1x128xf32>
    %58 = tpu.concatenate %57, %57 in 1 : vector<1x128xf32>, vector<1x128xf32> -> vector<1x256xf32>
    %59 = tpu.concatenate %58, %58 in 1 : vector<1x256xf32>, vector<1x256xf32> -> vector<1x512xf32>
    %60 = vector.broadcast %59 : vector<1x512xf32> to vector<32x512xf32>
    %61 = arith.subf %29, %60 : vector<32x512xf32>
    %62 = arith.mulf %61, %61 : vector<32x512xf32>
    %cst_46 = arith.constant dense<0.000000e+00> : vector<512xf32>
    %63 = vector.multi_reduction <add>, %62, %cst_46 [0] : vector<32x512xf32> to vector<512xf32>
    %64 = vector.shape_cast %63 : vector<512xf32> to vector<1x512xf32>
    %65 = vector.extract_strided_slice %64 {offsets = [0, 0], sizes = [1, 256], strides = [1, 1]} : vector<1x512xf32> to vector<1x256xf32>
    %66 = vector.extract_strided_slice %64 {offsets = [0, 256], sizes = [1, 256], strides = [1, 1]} : vector<1x512xf32> to vector<1x256xf32>
    %67 = arith.addf %65, %66 : vector<1x256xf32>
    %68 = vector.extract_strided_slice %67 {offsets = [0, 0], sizes = [1, 128], strides = [1, 1]} : vector<1x256xf32> to vector<1x128xf32>
    %69 = vector.extract_strided_slice %67 {offsets = [0, 128], sizes = [1, 128], strides = [1, 1]} : vector<1x256xf32> to vector<1x128xf32>
    %70 = arith.addf %68, %69 : vector<1x128xf32>
    %71 = vector.extract_strided_slice %70 {offsets = [0, 0], sizes = [1, 64], strides = [1, 1]} : vector<1x128xf32> to vector<1x64xf32>
    %72 = vector.extract_strided_slice %70 {offsets = [0, 64], sizes = [1, 64], strides = [1, 1]} : vector<1x128xf32> to vector<1x64xf32>
    %73 = arith.addf %71, %72 : vector<1x64xf32>
    %74 = vector.extract_strided_slice %73 {offsets = [0, 0], sizes = [1, 32], strides = [1, 1]} : vector<1x64xf32> to vector<1x32xf32>
    %75 = vector.extract_strided_slice %73 {offsets = [0, 32], sizes = [1, 32], strides = [1, 1]} : vector<1x64xf32> to vector<1x32xf32>
    %76 = arith.addf %74, %75 : vector<1x32xf32>
    %77 = vector.extract_strided_slice %76 {offsets = [0, 0], sizes = [1, 16], strides = [1, 1]} : vector<1x32xf32> to vector<1x16xf32>
    %78 = vector.extract_strided_slice %76 {offsets = [0, 16], sizes = [1, 16], strides = [1, 1]} : vector<1x32xf32> to vector<1x16xf32>
    %79 = arith.addf %77, %78 : vector<1x16xf32>
    %80 = vector.extract_strided_slice %79 {offsets = [0, 0], sizes = [1, 8], strides = [1, 1]} : vector<1x16xf32> to vector<1x8xf32>
    %81 = vector.extract_strided_slice %79 {offsets = [0, 8], sizes = [1, 8], strides = [1, 1]} : vector<1x16xf32> to vector<1x8xf32>
    %82 = arith.addf %80, %81 : vector<1x8xf32>
    %cst_47 = arith.constant 2.048000e+03 : f32
    %83 = vector.broadcast %cst_47 : f32 to vector<1x8xf32>
    %84 = arith.divf %82, %83 : vector<1x8xf32>
    %cst_48 = arith.constant 0.000000e+00 : f32
    %85 = vector.broadcast %cst_48 : f32 to vector<1x8xf32>
    %86 = arith.maximumf %84, %85 : vector<1x8xf32>
    %cst_49 = arith.constant 9.99999974E-6 : f32
    %87 = vector.broadcast %cst_49 : f32 to vector<1x8xf32>
    %88 = arith.addf %86, %87 : vector<1x8xf32>
    %89 = math.rsqrt %88 : vector<1x8xf32>
    %90 = arith.mulf %30, %89 : vector<1x8xf32>
    %91 = tpu.concatenate %90, %90 in 1 : vector<1x8xf32>, vector<1x8xf32> -> vector<1x16xf32>
    %92 = tpu.concatenate %91, %91 in 1 : vector<1x16xf32>, vector<1x16xf32> -> vector<1x32xf32>
    %93 = tpu.concatenate %92, %92 in 1 : vector<1x32xf32>, vector<1x32xf32> -> vector<1x64xf32>
    %94 = tpu.concatenate %93, %93 in 1 : vector<1x64xf32>, vector<1x64xf32> -> vector<1x128xf32>
    %95 = tpu.concatenate %94, %94 in 1 : vector<1x128xf32>, vector<1x128xf32> -> vector<1x256xf32>
    %96 = tpu.concatenate %95, %95 in 1 : vector<1x256xf32>, vector<1x256xf32> -> vector<1x512xf32>
    %97 = vector.broadcast %96 : vector<1x512xf32> to vector<32x512xf32>
    %98 = arith.mulf %61, %97 : vector<32x512xf32>
    %99 = tpu.concatenate %31, %31 in 1 : vector<1x8xf32>, vector<1x8xf32> -> vector<1x16xf32>
    %100 = tpu.concatenate %99, %99 in 1 : vector<1x16xf32>, vector<1x16xf32> -> vector<1x32xf32>
    %101 = tpu.concatenate %100, %100 in 1 : vector<1x32xf32>, vector<1x32xf32> -> vector<1x64xf32>
    %102 = tpu.concatenate %101, %101 in 1 : vector<1x64xf32>, vector<1x64xf32> -> vector<1x128xf32>
    %103 = tpu.concatenate %102, %102 in 1 : vector<1x128xf32>, vector<1x128xf32> -> vector<1x256xf32>
    %104 = tpu.concatenate %103, %103 in 1 : vector<1x256xf32>, vector<1x256xf32> -> vector<1x512xf32>
    %105 = vector.broadcast %104 : vector<1x512xf32> to vector<32x512xf32>
    %106 = arith.addf %98, %105 : vector<32x512xf32>
    %cst_50 = arith.constant 0.000000e+00 : f32
    %107 = vector.broadcast %cst_50 : f32 to vector<32x512xf32>
    %108 = arith.cmpf oge, %106, %107 : vector<32x512xf32>
    %cst_51 = arith.constant 2.000000e-01 : f32
    %109 = vector.broadcast %cst_51 : f32 to vector<32x512xf32>
    %110 = arith.mulf %109, %106 : vector<32x512xf32>
    %111 = arith.select %108, %106, %110 : vector<32x512xi1>, vector<32x512xf32>
    %112 = arith.truncf %111 : vector<32x512xf32> to vector<32x512xbf16>
    %c0_52 = arith.constant 0 : index
    %c0_53 = arith.constant 0 : index
    %113 = vector.load %arg5[%c0_52, %c0_53] : memref<32x512xbf16, #tpu.memory_space<vmem>>, vector<32x512xbf16>
    tpu.vector_store %arg5[%c0_52, %c0_53], %112 {strides = array<i32>} : memref<32x512xbf16, #tpu.memory_space<vmem>>, vector<32x512xbf16>,
    return
  }
  func.func @transform_0(%arg0: i32) -> (i32, i32) {
    %c0_i32 = arith.constant 0 : i32
    %c0_i32_0 = arith.constant 0 : i32
    %c0_i32_1 = arith.constant 0 : i32
    return %c0_i32, %c0_i32_0 : i32, i32
  }
  func.func @transform_1(%arg0: i32) -> (i32, i32) {
    %c0_i32 = arith.constant 0 : i32
    %c0_i32_0 = arith.constant 0 : i32
    %c0_i32_1 = arith.constant 0 : i32
    return %c0_i32, %c0_i32_0 : i32, i32
  }
  func.func @transform_2(%arg0: i32) -> (i32, i32) {
    %c0_i32 = arith.constant 0 : i32
    %c0_i32_0 = arith.constant 0 : i32
    %c0_i32_1 = arith.constant 0 : i32
    return %c0_i32, %c0_i32_0 : i32, i32
  }
  func.func @transform_3(%arg0: i32) -> (i32, i32) {
    %c0_i32 = arith.constant 0 : i32
    %c0_i32_0 = arith.constant 0 : i32
    %c0_i32_1 = arith.constant 0 : i32
    return %c0_i32, %c0_i32_0 : i32, i32
  }
  func.func @transform_4(%arg0: i32) -> (i32, i32) {
    %c0_i32 = arith.constant 0 : i32
    %c0_i32_0 = arith.constant 0 : i32
    %c0_i32_1 = arith.constant 0 : i32
    return %c0_i32, %c0_i32_0 : i32, i32
  }
}

module attributes {stable_mosaic.version = 11 : i64} {
  func.func @_block_last_kernel(%arg0: i32, %arg1: memref<64x256xbf16, #tpu.memory_space<vmem>>, %arg2: memref<256x2048xbf16, #tpu.memory_space<vmem>>, %arg3: memref<64x1024xf32, #tpu.memory_space<vmem>>, %arg4: memref<64x1024xf32, #tpu.memory_space<vmem>>, %arg5: memref<64x512xf32, #tpu.memory_space<vmem>>) attributes {dimension_semantics = [#tpu.dimension_semantics<arbitrary>], iteration_bounds = array<i64: 1>, scalar_prefetch = 0 : i64, scratch_operands = 2 : i64, tpu.core_type = #tpu.core_type<tc>, window_params = [{pipeline_mode = #tpu.pipeline_mode<synchronous>, transform_indices = @transform_0, window_bounds = array<i64: 64, 256>}, {pipeline_mode = #tpu.pipeline_mode<synchronous>, transform_indices = @transform_1, window_bounds = array<i64: 256, 2048>}, {pipeline_mode = #tpu.pipeline_mode<synchronous>, transform_indices = @transform_2, window_bounds = array<i64: 64, 1024>}]} {
    %c0 = arith.constant 0 : index
    %c0_0 = arith.constant 0 : index
    %0 = vector.load %arg1[%c0, %c0_0] : memref<64x256xbf16, #tpu.memory_space<vmem>>, vector<64x256xbf16>
    %c0_1 = arith.constant 0 : index
    %c512 = arith.constant 512 : index
    %1 = vector.load %arg2[%c0_1, %c512] : memref<256x2048xbf16, #tpu.memory_space<vmem>>, vector<256x512xbf16>
    %cst = arith.constant dense<0.000000e+00> : vector<64x512xf32>
    %2 = tpu.matmul %0, %1, %cst {dimension_numbers = #tpu.dot_dimension_numbers<[1], [0], [0], [1], [0, 0, 1, 1], [], []>} : vector<64x256xbf16>, vector<256x512xbf16>, vector<64x512xf32> -> vector<64x512xf32>
    %c0_2 = arith.constant 0 : index
    %c0_3 = arith.constant 0 : index
    %3 = vector.load %arg4[%c0_2, %c0_3] : memref<64x1024xf32, #tpu.memory_space<vmem>>, vector<64x512xf32>
    tpu.vector_store %arg4[%c0_2, %c0_3], %2 {strides = array<i32>} : memref<64x1024xf32, #tpu.memory_space<vmem>>, vector<64x512xf32>,
    %c0_4 = arith.constant 0 : index
    %c1024 = arith.constant 1024 : index
    %4 = vector.load %arg2[%c0_4, %c1024] : memref<256x2048xbf16, #tpu.memory_space<vmem>>, vector<256x512xbf16>
    %cst_5 = arith.constant dense<0.000000e+00> : vector<64x512xf32>
    %5 = tpu.matmul %0, %4, %cst_5 {dimension_numbers = #tpu.dot_dimension_numbers<[1], [0], [0], [1], [0, 0, 1, 1], [], []>} : vector<64x256xbf16>, vector<256x512xbf16>, vector<64x512xf32> -> vector<64x512xf32>
    %c0_6 = arith.constant 0 : index
    %c512_7 = arith.constant 512 : index
    %6 = vector.load %arg4[%c0_6, %c512_7] : memref<64x1024xf32, #tpu.memory_space<vmem>>, vector<64x512xf32>
    tpu.vector_store %arg4[%c0_6, %c512_7], %5 {strides = array<i32>} : memref<64x1024xf32, #tpu.memory_space<vmem>>, vector<64x512xf32>,
    %c0_8 = arith.constant 0 : index
    %c0_9 = arith.constant 0 : index
    %7 = vector.load %arg2[%c0_8, %c0_9] : memref<256x2048xbf16, #tpu.memory_space<vmem>>, vector<256x512xbf16>
    %cst_10 = arith.constant dense<0.000000e+00> : vector<64x512xf32>
    %8 = tpu.matmul %0, %7, %cst_10 {dimension_numbers = #tpu.dot_dimension_numbers<[1], [0], [0], [1], [0, 0, 1, 1], [], []>} : vector<64x256xbf16>, vector<256x512xbf16>, vector<64x512xf32> -> vector<64x512xf32>
    %c0_11 = arith.constant 0 : index
    %c0_12 = arith.constant 0 : index
    %9 = vector.load %arg5[%c0_11, %c0_12] : memref<64x512xf32, #tpu.memory_space<vmem>>, vector<64x512xf32>
    tpu.vector_store %arg5[%c0_11, %c0_12], %8 {strides = array<i32>} : memref<64x512xf32, #tpu.memory_space<vmem>>, vector<64x512xf32>,
    %c0_13 = arith.constant 0 : index
    %c512_14 = arith.constant 512 : index
    %10 = vector.load %arg4[%c0_13, %c512_14] : memref<64x1024xf32, #tpu.memory_space<vmem>>, vector<31x512xf32>
    %c1 = arith.constant 1 : index
    %c0_15 = arith.constant 0 : index
    %11 = vector.load %arg5[%c1, %c0_15] : memref<64x512xf32, #tpu.memory_space<vmem>>, vector<31x512xf32>
    %12 = arith.addf %10, %11 : vector<31x512xf32>
    %c0_16 = arith.constant 0 : index
    %c512_17 = arith.constant 512 : index
    %13 = vector.load %arg4[%c0_16, %c512_17] : memref<64x1024xf32, #tpu.memory_space<vmem>>, vector<31x512xf32>
    tpu.vector_store %arg4[%c0_16, %c512_17], %12 {strides = array<i32>} : memref<64x1024xf32, #tpu.memory_space<vmem>>, vector<31x512xf32>,
    %c32 = arith.constant 32 : index
    %c512_18 = arith.constant 512 : index
    %14 = vector.load %arg4[%c32, %c512_18] : memref<64x1024xf32, #tpu.memory_space<vmem>>, vector<31x512xf32>
    %c33 = arith.constant 33 : index
    %c0_19 = arith.constant 0 : index
    %15 = vector.load %arg5[%c33, %c0_19] : memref<64x512xf32, #tpu.memory_space<vmem>>, vector<31x512xf32>
    %16 = arith.addf %14, %15 : vector<31x512xf32>
    %c32_20 = arith.constant 32 : index
    %c512_21 = arith.constant 512 : index
    %17 = vector.load %arg4[%c32_20, %c512_21] : memref<64x1024xf32, #tpu.memory_space<vmem>>, vector<31x512xf32>
    tpu.vector_store %arg4[%c32_20, %c512_21], %16 {strides = array<i32>} : memref<64x1024xf32, #tpu.memory_space<vmem>>, vector<31x512xf32>,
    %c0_22 = arith.constant 0 : index
    %c1536 = arith.constant 1536 : index
    %18 = vector.load %arg2[%c0_22, %c1536] : memref<256x2048xbf16, #tpu.memory_space<vmem>>, vector<256x512xbf16>
    %cst_23 = arith.constant dense<0.000000e+00> : vector<64x512xf32>
    %19 = tpu.matmul %0, %18, %cst_23 {dimension_numbers = #tpu.dot_dimension_numbers<[1], [0], [0], [1], [0, 0, 1, 1], [], []>} : vector<64x256xbf16>, vector<256x512xbf16>, vector<64x512xf32> -> vector<64x512xf32>
    %c0_24 = arith.constant 0 : index
    %c0_25 = arith.constant 0 : index
    %20 = vector.load %arg5[%c0_24, %c0_25] : memref<64x512xf32, #tpu.memory_space<vmem>>, vector<64x512xf32>
    tpu.vector_store %arg5[%c0_24, %c0_25], %19 {strides = array<i32>} : memref<64x512xf32, #tpu.memory_space<vmem>>, vector<64x512xf32>,
    %c1_26 = arith.constant 1 : index
    %c0_27 = arith.constant 0 : index
    %21 = vector.load %arg4[%c1_26, %c0_27] : memref<64x1024xf32, #tpu.memory_space<vmem>>, vector<31x512xf32>
    %c0_28 = arith.constant 0 : index
    %c0_29 = arith.constant 0 : index
    %22 = vector.load %arg5[%c0_28, %c0_29] : memref<64x512xf32, #tpu.memory_space<vmem>>, vector<31x512xf32>
    %23 = arith.addf %21, %22 : vector<31x512xf32>
    %c1_30 = arith.constant 1 : index
    %c0_31 = arith.constant 0 : index
    %24 = vector.load %arg4[%c1_30, %c0_31] : memref<64x1024xf32, #tpu.memory_space<vmem>>, vector<31x512xf32>
    tpu.vector_store %arg4[%c1_30, %c0_31], %23 {strides = array<i32>} : memref<64x1024xf32, #tpu.memory_space<vmem>>, vector<31x512xf32>,
    %c33_32 = arith.constant 33 : index
    %c0_33 = arith.constant 0 : index
    %25 = vector.load %arg4[%c33_32, %c0_33] : memref<64x1024xf32, #tpu.memory_space<vmem>>, vector<31x512xf32>
    %c32_34 = arith.constant 32 : index
    %c0_35 = arith.constant 0 : index
    %26 = vector.load %arg5[%c32_34, %c0_35] : memref<64x512xf32, #tpu.memory_space<vmem>>, vector<31x512xf32>
    %27 = arith.addf %25, %26 : vector<31x512xf32>
    %c33_36 = arith.constant 33 : index
    %c0_37 = arith.constant 0 : index
    %28 = vector.load %arg4[%c33_36, %c0_37] : memref<64x1024xf32, #tpu.memory_space<vmem>>, vector<31x512xf32>
    tpu.vector_store %arg4[%c33_36, %c0_37], %27 {strides = array<i32>} : memref<64x1024xf32, #tpu.memory_space<vmem>>, vector<31x512xf32>,
    %c0_38 = arith.constant 0 : index
    %c0_39 = arith.constant 0 : index
    %29 = vector.load %arg4[%c0_38, %c0_39] : memref<64x1024xf32, #tpu.memory_space<vmem>>, vector<64x1024xf32>
    %30 = math.tanh %29 : vector<64x1024xf32>
    %c0_40 = arith.constant 0 : index
    %c0_41 = arith.constant 0 : index
    %31 = vector.load %arg3[%c0_40, %c0_41] : memref<64x1024xf32, #tpu.memory_space<vmem>>, vector<64x1024xf32>
    tpu.vector_store %arg3[%c0_40, %c0_41], %30 {strides = array<i32>} : memref<64x1024xf32, #tpu.memory_space<vmem>>, vector<64x1024xf32>,
    return
  }
  func.func @transform_0(%arg0: i32) -> (i32, i32) {
    %c0_i32 = arith.constant 0 : i32
    %c0_i32_0 = arith.constant 0 : i32
    %c0_i32_1 = arith.constant 0 : i32
    return %c0_i32, %c0_i32_0 : i32, i32
  }
  func.func @transform_1(%arg0: i32) -> (i32, i32) {
    %c0_i32 = arith.constant 0 : i32
    %c0_i32_0 = arith.constant 0 : i32
    %c0_i32_1 = arith.constant 0 : i32
    return %c0_i32, %c0_i32_0 : i32, i32
  }
  func.func @transform_2(%arg0: i32) -> (i32, i32) {
    %c0_i32 = arith.constant 0 : i32
    %c0_i32_0 = arith.constant 0 : i32
    %c0_i32_1 = arith.constant 0 : i32
    return %c0_i32, %c0_i32_0 : i32, i32
  }
}

</mosaic_0001>

<bundles_post_ra>
// kernel: generator_forward.5
= control target key start
LH: loop header
LB: loop body
LE: loop exit
PB: predicated region body
PF: predicated region fallthrough
CT: control target
= control target key end

     0   :  { %9 = vsyncpa [#allocation3], 0  ;;  %s929_s0 = inlined_call_operand.vmem [shape: bf16[2,32], index: 0, kind: input, shape index: {}]   ;;  %s930_s1 = inlined_call_operand.hbm [shape: f32[1,64], index: 1, kind: input, shape index: {}]   ;;  %s931_s2 = inlined_call_operand.hbm [shape: f32[1,64], index: 2, kind: input, shape index: {}]   ;;  %s932_s3 = inlined_call_operand.hbm [shape: bf16[32,1024], index: 3, kind: input, shape index: {}]   ;;  %s933_s4 = inlined_call_operand.vmem [shape: bf16[2,1024], index: 4, kind: output, shape index: {}]  }
   0x1   :  { %10 = vsyncpa [#allocation5], 0  ;;  %s735_s15 = smov [#allocation4]   ;;  %s736_s17 = smov [#allocation2]  }
   0x2   :  { %s29_s16 = sshll.u32 %s735_s15, 4  ;;  %s19_s18 = sshll.u32 %s736_s17, 4  ;;  %s30_s16 = int_to_ptr.vmem [resolvable:$true] %s29_s16  ;;  %s20_s18 = int_to_ptr.vmem [resolvable:$true] %s19_s18 }
   0x3   :  { %s665_s21 = scalar_lea.hbm %s931_s2, 16 }
   0x4   :  { %p666_p0 = scmp.ne.s32.totalorder %s931_s2, %s665_s21  ;;  %p669_p1 = scmp.lt.u32.totalorder %s665_s21, %s931_s2 }
   0x6   :  { %p671_p2 = pnand %p669_p1, %p666_p0 }
   0x8   :  { %674 = shalt.err (!%p671_p2)
}
   0x9   :  { %s675_s26 = scalar_lea.vmem %s30_s16, 16  ;;  %s679_s27 = scalar_lea.vmem %s30_s16, 32 }
   0xa   :  { %p676_p3 = scmp.ne.s32.totalorder %s30_s16, %s675_s26  ;;  %p680_p4 = scmp.lt.s32.totalorder %s30_s16, %s30_s16 }
   0xb   :  { %p681_p5 = scmp.lt.s32.totalorder %s679_s27, %s675_s26 }
   0xd   :  { %p682_p6 = por %p681_p5, %p680_p4 }
   0xf   :  { %p683_p7 = pnand %p682_p6, %p676_p3 }
  0x11   :  { %686 = shalt.err (!%p683_p7)
}
  0x12   :  { %32 = dma.hbm_to_vmem [thread:$0]  %s931_s2, 16, %s30_s16, [#allocation5]  }
  0x13   :  { %s687_s6 = scalar_lea.hbm %s930_s1, 16 }
  0x14   :  { %p688_p8 = scmp.ne.s32.totalorder %s930_s1, %s687_s6  ;;  %p691_p9 = scmp.lt.u32.totalorder %s687_s6, %s930_s1 }
  0x16   :  { %p693_p10 = pnand %p691_p9, %p688_p8 }
  0x18   :  { %696 = shalt.err (!%p693_p10)
}
  0x19   :  { %s697_s11 = scalar_lea.vmem %s20_s18, 16  ;;  %s701_s12 = scalar_lea.vmem %s20_s18, 32 }
  0x1a   :  { %p698_p11 = scmp.ne.s32.totalorder %s20_s18, %s697_s11  ;;  %p702_p12 = scmp.lt.s32.totalorder %s20_s18, %s20_s18 }
  0x1b   :  { %p703_p13 = scmp.lt.s32.totalorder %s701_s12, %s697_s11 }
  0x1d   :  { %p704_p0 = por %p703_p13, %p702_p12 }
  0x1f   :  { %p705_p1 = pnand %p704_p0, %p698_p11 }
  0x21   :  { %708 = shalt.err (!%p705_p1)
}
  0x22   :  { %22 = dma.hbm_to_vmem [thread:$0]  %s930_s1, 16, %s20_s18, [#allocation3]  }
  0x23   :  { %s737_s14 = smov [#allocation6]   ;;  %s709_s19 = scalar_lea.hbm %s932_s3, 2048 }
  0x24   :  { %s38_s15 = sshll.u32 %s737_s14, 4  ;;  %p710_p2 = scmp.ne.s32.totalorder %s932_s3, %s709_s19  ;;  %s39_s15 = int_to_ptr.vmem [resolvable:$true] %s38_s15 }
  0x25   :  { %p713_p3 = scmp.lt.u32.totalorder %s709_s19, %s932_s3 }
  0x27   :  { %p715_p4 = pnand %p713_p3, %p710_p2 }
  0x29   :  { %718 = shalt.err (!%p715_p4)
}
  0x2a   :  { %s719_s24 = scalar_lea.vmem %s39_s15, 2048  ;;  %p724_p6 = scmp.lt.s32.totalorder %s39_s15, %s39_s15 }
  0x2b   :  { %p720_p5 = scmp.ne.s32.totalorder %s39_s15, %s719_s24  ;;  %p725_p7 = scmp.lt.s32.totalorder %s719_s24, %s719_s24 }
  0x2d   :  { %p726_p8 = por %p725_p7, %p724_p6 }
  0x2f   :  { %p727_p9 = pnand %p726_p8, %p720_p5 }
  0x31   :  { %730 = shalt.err (!%p727_p9)
}
  0x32   :  { %s738_s1 = smov 512   ;;  %s739_s18 = smov 32  }
  0x33   :  { %44 = dma.hbm_to_vmem [thread:$0]  %s932_s3, 2048, %s39_s15, [#allocation5], %s738_s1, %s738_s1, %s739_s18  }
  0x34   :  { %731 = dma.done.wait [#allocation3], 16  }
  0x35   :  { %732 = vsyncadd [#allocation3], 4294967280 }
  0x36   :  { %733 = dma.done.wait [#allocation5], 2064  }
  0x37   :  { %734 = vsyncadd [#allocation5], 4294965232  ;;  %v740_v0 = vmov 0   ;;  %v56_v1 = vld [vmem:[#allocation6] sm:$0xff]  ;;  %v57_v3 = vld [vmem:[#allocation6 + $0x8] sm:$0xff]  ;;  %vm152_vm0 = vcmask 261120  }
  0x38   :  { %188 = vmatprep.mubr.bf16.mxu0 %v740_v0  ;;  %229 = vmatprep.mubr.bf16.mxu1 %v740_v0  ;;  %v60_v2 = vld [vmem:[#allocation6 + $0x20] sm:$0xff]  ;;  %v61_v5 = vld [vmem:[#allocation6 + $0x28] sm:$0xff]  ;;  %v58_v15 = vld [vmem:[#allocation6 + $0x10] sm:$0xff]  ;;  %vm322_vm1 = vcmask 1041408   ;;  %vm397_vm2 = vcmask 523264  }
  0x39   :  { %v632_v4 = vcombine.high %v56_v1, %v60_v2  ;;  %v631_v6 = vcombine.low %v56_v1, %v60_v2  ;;  %v64_v7 = vld [vmem:[#allocation6 + $0x40] sm:$0xff]  ;;  %v634_v9 = vcombine.high %v57_v3, %v61_v5  ;;  %v633_v10 = vcombine.low %v57_v3, %v61_v5  ;;  %v65_v12 = vld [vmem:[#allocation6 + $0x48] sm:$0xff]  ;;  %v62_v16 = vld [vmem:[#allocation6 + $0x30] sm:$0xff] }
  0x3a   :  { %v68_v8 = vld [vmem:[#allocation6 + $0x60] sm:$0xff]  ;;  %v69_v13 = vld [vmem:[#allocation6 + $0x68] sm:$0xff]  ;;  %v59_v17 = vld [vmem:[#allocation6 + $0x18] sm:$0xff]  ;;  %v636_v21 = vcombine.high %v58_v15, %v62_v16  ;;  %v635_v28 = vcombine.low %v58_v15, %v62_v16 }
  0x3b   :  { %v640_v11 = vcombine.high %v64_v7, %v68_v8  ;;  %156 = vmatprep.subr.bf16.mxu0 %v632_v4  ;;  %v642_v14 = vcombine.high %v65_v12, %v69_v13  ;;  %197 = vmatprep.subr.bf16.mxu1 %v634_v9  ;;  %v639_v18 = vcombine.low %v64_v7, %v68_v8  ;;  %v63_v19 = vld [vmem:[#allocation6 + $0x38] sm:$0xff]  ;;  %v66_v23 = vld [vmem:[#allocation6 + $0x50] sm:$0xff] }
  0x3c   :  { %157 = vmatpush1.bf16.msra.mxu0 %v631_v6  ;;  %198 = vmatpush1.bf16.msra.mxu1 %v633_v10  ;;  %v641_v20 = vcombine.low %v65_v12, %v69_v13  ;;  %v638_v22 = vcombine.high %v59_v17, %v63_v19  ;;  %v70_v24 = vld [vmem:[#allocation6 + $0x70] sm:$0xff]  ;;  %v67_v25 = vld [vmem:[#allocation6 + $0x58] sm:$0xff]  ;;  %v637_v29 = vcombine.low %v59_v17, %v63_v19 }
  0x3d   :  { %158 = vmatprep.subr.bf16.mxu0 %v640_v11  ;;  %199 = vmatprep.subr.bf16.mxu1 %v642_v14  ;;  %v71_v26 = vld [vmem:[#allocation6 + $0x78] sm:$0xff]  ;;  %v644_v30 = vcombine.high %v66_v23, %v70_v24  ;;  %v643_v32 = vcombine.low %v66_v23, %v70_v24 }
  0x3e   :  { %v55_v27 = vld [vmem:[%s929_s0] sm:$0x1]  ;;  %v646_v31 = vcombine.high %v67_v25, %v71_v26  ;;  %v645_v33 = vcombine.low %v67_v25, %v71_v26  ;;  %s741_s0 = smov 64  }
  0x40   :  { %159 = vmatpush1.bf16.msra.mxu0 %v639_v18  ;;  %200 = vmatpush1.bf16.msra.mxu1 %v641_v20 }
  0x41   :  { %238 = vmatprep.subr.bf16.mxu0 %v636_v21  ;;  %279 = vmatprep.subr.bf16.mxu1 %v638_v22 }
  0x43   :  { %647 = vmatmul.mubr.msk.bf16.vlgmr.msra.gmra.mrb[0].mxu0 %vm152_vm0, %v55_v27  ;;  %648 = vmatmul.mubr.msk.bf16.vlgmr.msra.gmra.mrb[0].mxu1 %vm152_vm0, %v55_v27 }
  0x44   :  { %239 = vmatpush1.bf16.msra.mxu0 %v635_v28  ;;  %280 = vmatpush1.bf16.msra.mxu1 %v637_v29 }
  0x45   :  { %240 = vmatprep.subr.bf16.mxu0 %v644_v30  ;;  %281 = vmatprep.subr.bf16.mxu1 %v646_v31 }
  0x46   :  { %270 = vmatprep.mubr.bf16.mxu0 %v740_v0  ;;  %311 = vmatprep.mubr.bf16.mxu1 %v740_v0 }
  0x48   :  { %241 = vmatpush1.bf16.msra.mxu0 %v643_v32  ;;  %282 = vmatpush1.bf16.msra.mxu1 %v645_v33 }
  0x4b   :  { %649 = vmatmul.mubr.msk.bf16.vlgmr.msra.gmra.mrb[4].mxu0 %vm152_vm0, %v55_v27  ;;  %650 = vmatmul.mubr.msk.bf16.vlgmr.msra.gmra.mrb[4].mxu1 %vm152_vm0, %v55_v27 }
 0x116   :  { %v811_v34 = vpop.f32.mrb[0].mxu0  ;;  %v815_v36 = vpop.f32.mrb[0].mxu1 }
 0x117   :  { %v323_v35 = vsel %vm322_vm1, %v811_v34, 0.0  ;;  %v817_v37 = vpop.f32.mrb[1].mxu0  ;;  %v337_v39 = vsel %vm322_vm1, %v815_v36, 0.0  ;;  %v823_v41 = vpop.f32.mrb[1].mxu1 }
 0x118   :  { %v324_v38 = vrot.slane %v323_v35, 4  ;;  %v330_v40 = vsel %vm322_vm1, %v817_v37, 0.0  ;;  %v194_v42 = vpop.f32.mrb[2].mxu0  ;;  %v338_v43 = vrot.slane %v337_v39, 4  ;;  %v344_v45 = vsel %vm322_vm1, %v823_v41, 0.0  ;;  %v235_v46 = vpop.f32.mrb[2].mxu1 }
 0x119   :  { %v331_v44 = vrot.slane %v330_v40, 4  ;;  %v195_v47 = vpop.f32.mrb[3].mxu0  ;;  %v345_v49 = vrot.slane %v344_v45, 4  ;;  %v236_v50 = vpop.f32.mrb[3].mxu1 }
 0x11a   :  { %v325_v48 = vadd.f32 %v324_v38, %v323_v35  ;;  %v339_v51 = vadd.f32 %v338_v43, %v337_v39 }
 0x11b   :  { %v332_v52 = vadd.f32 %v331_v44, %v330_v40  ;;  %v346_v54 = vadd.f32 %v345_v49, %v344_v45 }
 0x11c   :  { %v326_v53 = vrot.slane %v325_v48, 2  ;;  %v340_v56 = vrot.slane %v339_v51, 2 }
 0x11d   :  { %v333_v60 = vrot.slane %v332_v52, 2  ;;  %v347_v6 = vrot.slane %v346_v54, 2 }
 0x11e   :  { %v827_v55 = vpop.f32.mrb[4].mxu0  ;;  %v831_v58 = vpop.f32.mrb[4].mxu1  ;;  %v327_v1 = vadd.f32 %v326_v53, %v325_v48  ;;  %v341_v10 = vadd.f32 %v340_v56, %v339_v51 }
 0x11f   :  { %v351_v57 = vsel %vm322_vm1, %v827_v55, 0.0  ;;  %v833_v59 = vpop.f32.mrb[5].mxu0  ;;  %v365_v62 = vsel %vm322_vm1, %v831_v58, 0.0  ;;  %v837_v63 = vpop.f32.mrb[5].mxu1  ;;  %v334_v13 = vadd.f32 %v333_v60, %v332_v52  ;;  %v348_v19 = vadd.f32 %v347_v6, %v346_v54 }
 0x120   :  { %v352_v61 = vrot.slane %v351_v57, 4  ;;  %v276_v0 = vpop.f32.mrb[6].mxu0  ;;  %v366_v2 = vrot.slane %v365_v62, 4  ;;  %v358_v3 = vsel %vm322_vm1, %v833_v59, 0.0  ;;  %v317_v4 = vpop.f32.mrb[6].mxu1  ;;  %v372_v12 = vsel %vm322_vm1, %v837_v63, 0.0 }
 0x121   :  { %v277_v5 = vpop.f32.mrb[7].mxu0  ;;  %v359_v8 = vrot.slane %v358_v3, 4  ;;  %v318_v9 = vpop.f32.mrb[7].mxu1  ;;  %v373_v16 = vrot.slane %v372_v12, 4  ;;  %v328_v17 = vrot.slane %v327_v1, 1  ;;  %v342_v23 = vrot.slane %v341_v10, 1 }
 0x122   :  { %v353_v7 = vadd.f32 %v352_v61, %v351_v57  ;;  %v367_v11 = vadd.f32 %v366_v2, %v365_v62  ;;  %v335_v25 = vrot.slane %v334_v13, 1  ;;  %v349_v31 = vrot.slane %v348_v19, 1 }
 0x123   :  { %v360_v15 = vadd.f32 %v359_v8, %v358_v3  ;;  %v374_v22 = vadd.f32 %v373_v16, %v372_v12  ;;  %v329_v29 = vadd.f32 %v328_v17, %v327_v1  ;;  %v343_v38 = vadd.f32 %v342_v23, %v341_v10 }
 0x124   :  { %v354_v14 = vrot.slane %v353_v7, 2  ;;  %v368_v18 = vrot.slane %v367_v11, 2  ;;  %v336_v40 = vadd.f32 %v335_v25, %v334_v13  ;;  %v350_v46 = vadd.f32 %v349_v31, %v348_v19 }
 0x125   :  { %v361_v21 = vrot.slane %v360_v15, 2  ;;  %v375_v28 = vrot.slane %v374_v22, 2  ;;  %v399_v57 = vlaneseq }
 0x126   :  { %v355_v20 = vadd.f32 %v354_v14, %v353_v7  ;;  %v369_v24 = vadd.f32 %v368_v18, %v367_v11 }
 0x127   :  { %v362_v27 = vadd.f32 %v361_v21, %v360_v15  ;;  %v376_v35 = vadd.f32 %v375_v28, %v374_v22  ;;  %v845_v60 = vshrl.u32 %v399_v57, 7 }
 0x128   :  { %v356_v26 = vrot.slane %v355_v20, 1  ;;  %v370_v30 = vrot.slane %v369_v24, 1 }
 0x129   :  { %v363_v33 = vrot.slane %v362_v27, 1  ;;  %v377_v43 = vrot.slane %v376_v35, 1  ;;  %v848_v61 = vsub.s32 0, %v845_v60 }
 0x12a   :  { %v357_v32 = vadd.f32 %v356_v26, %v355_v20  ;;  %v371_v39 = vadd.f32 %v370_v30, %v369_v24 }
 0x12b   :  { %v364_v42 = vadd.f32 %v363_v33, %v362_v27  ;;  %v378_v47 = vadd.f32 %v377_v43, %v376_v35 }
 0x12c   :  { %v379_v44 = vadd.f32 %v357_v32, %v329_v29  ;;  %v381_v45 = vadd.f32 %v371_v39, %v343_v38 }
 0x12d   :  { %v380_v48 = vadd.f32 %v364_v42, %v336_v40  ;;  %v382_v50 = vadd.f32 %v378_v47, %v350_v46 }
 0x12e   :  { %v383_v49 = vadd.f32 %v381_v45, %v379_v44 }
 0x12f   :  { %v384_v51 = vadd.f32 %v382_v50, %v380_v48 }
 0x131   :  { %v385_v52 = vadd.f32 %v384_v51, %v383_v49 }
 0x133   :  { %387 = vrot.lane.b32.xlu0 %v385_v52, %s741_s0 }
 0x1a5   :  { %v388_v53 = vpop.permute.xlu0 %387 }
 0x1a6   :  { %v390_v54 = vadd.f32 %v388_v53, %v385_v52 }
 0x1a8   :  { %v392_v56 = vmul.f32 0.03125, %v390_v54 }
 0x1aa   :  { %394 = vrot.lane.b32.xlu0 %v392_v56, %s741_s0 }
 0x21c   :  { %v395_v62 = vpop.permute.xlu0 %394 }
 0x21d   :  { %v398_v0 = vsel %vm397_vm2, %v392_v56, %v395_v62 }
 0x21e   :  { %v402_v1 = vrot.slane %v398_v0, %v848_v61 }
 0x220   :  { %v853_v2 = vsub.f32 %v811_v34, %v402_v1  ;;  %v856_v3 = vsub.f32 %v817_v37, %v402_v1  ;;  %v859_v4 = vsub.f32 %v815_v36, %v402_v1  ;;  %v862_v5 = vsub.f32 %v823_v41, %v402_v1 }
 0x221   :  { %v865_v6 = vsub.f32 %v827_v55, %v402_v1  ;;  %v868_v7 = vsub.f32 %v833_v59, %v402_v1  ;;  %v871_v8 = vsub.f32 %v831_v58, %v402_v1  ;;  %v874_v34 = vsub.f32 %v837_v63, %v402_v1 }
 0x222   :  { %v411_v37 = vmul.f32 %v853_v2, %v853_v2  ;;  %v412_v36 = vmul.f32 %v856_v3, %v856_v3  ;;  %v413_v41 = vmul.f32 %v859_v4, %v859_v4  ;;  %v414_v55 = vmul.f32 %v862_v5, %v862_v5 }
 0x223   :  { %v415_v59 = vmul.f32 %v865_v6, %v865_v6  ;;  %v416_v58 = vmul.f32 %v868_v7, %v868_v7  ;;  %v417_v63 = vmul.f32 %v871_v8, %v871_v8  ;;  %v418_v9 = vmul.f32 %v874_v34, %v874_v34 }
 0x224   :  { %v419_v10 = vsel %vm322_vm1, %v411_v37, 0.0  ;;  %v426_v11 = vsel %vm322_vm1, %v412_v36, 0.0  ;;  %v433_v12 = vsel %vm322_vm1, %v413_v41, 0.0  ;;  %v440_v13 = vsel %vm322_vm1, %v414_v55, 0.0 }
 0x225   :  { %v420_v14 = vrot.slane %v419_v10, 4  ;;  %v427_v15 = vrot.slane %v426_v11, 4  ;;  %v434_v16 = vrot.slane %v433_v12, 4  ;;  %v441_v17 = vrot.slane %v440_v13, 4 }
 0x226   :  { %v447_v18 = vsel %vm322_vm1, %v415_v59, 0.0  ;;  %v454_v19 = vsel %vm322_vm1, %v416_v58, 0.0  ;;  %v461_v20 = vsel %vm322_vm1, %v417_v63, 0.0  ;;  %v468_v21 = vsel %vm322_vm1, %v418_v9, 0.0 }
 0x227   :  { %v421_v22 = vadd.f32 %v420_v14, %v419_v10  ;;  %v428_v23 = vadd.f32 %v427_v15, %v426_v11  ;;  %v435_v24 = vadd.f32 %v434_v16, %v433_v12  ;;  %v442_v25 = vadd.f32 %v441_v17, %v440_v13 }
 0x228   :  { %v448_v26 = vrot.slane %v447_v18, 4  ;;  %v455_v27 = vrot.slane %v454_v19, 4  ;;  %v462_v28 = vrot.slane %v461_v20, 4  ;;  %v469_v29 = vrot.slane %v468_v21, 4 }
 0x229   :  { %v422_v30 = vrot.slane %v421_v22, 2  ;;  %v429_v31 = vrot.slane %v428_v23, 2  ;;  %v436_v32 = vrot.slane %v435_v24, 2  ;;  %v443_v33 = vrot.slane %v442_v25, 2 }
 0x22a   :  { %v449_v35 = vadd.f32 %v448_v26, %v447_v18  ;;  %v456_v38 = vadd.f32 %v455_v27, %v454_v19  ;;  %v463_v39 = vadd.f32 %v462_v28, %v461_v20  ;;  %v470_v40 = vadd.f32 %v469_v29, %v468_v21  ;;  %v321_v19 = vld [vmem:[#allocation4] sm:$0x1]  ;;  %v320_v26 = vld [vmem:[#allocation2] sm:$0x1] }
 0x22b   :  { %v423_v42 = vadd.f32 %v422_v30, %v421_v22  ;;  %v430_v43 = vadd.f32 %v429_v31, %v428_v23  ;;  %v437_v44 = vadd.f32 %v436_v32, %v435_v24  ;;  %v444_v45 = vadd.f32 %v443_v33, %v442_v25 }
 0x22c   :  { %v450_v46 = vrot.slane %v449_v35, 2  ;;  %v457_v47 = vrot.slane %v456_v38, 2  ;;  %v464_v48 = vrot.slane %v463_v39, 2  ;;  %v471_v49 = vrot.slane %v470_v40, 2 }
 0x22d   :  { %v424_v50 = vrot.slane %v423_v42, 1  ;;  %v431_v51 = vrot.slane %v430_v43, 1  ;;  %v438_v52 = vrot.slane %v437_v44, 1  ;;  %v445_v53 = vrot.slane %v444_v45, 1 }
 0x22e   :  { %v451_v54 = vadd.f32 %v450_v46, %v449_v35  ;;  %v458_v56 = vadd.f32 %v457_v47, %v456_v38  ;;  %v465_v57 = vadd.f32 %v464_v48, %v463_v39  ;;  %v472_v62 = vadd.f32 %v471_v49, %v470_v40 }
 0x22f   :  { %v425_v0 = vadd.f32 %v424_v50, %v423_v42  ;;  %v432_v1 = vadd.f32 %v431_v51, %v430_v43  ;;  %v439_v37 = vadd.f32 %v438_v52, %v437_v44  ;;  %v446_v36 = vadd.f32 %v445_v53, %v444_v45 }
 0x230   :  { %v452_v41 = vrot.slane %v451_v54, 1  ;;  %v459_v55 = vrot.slane %v458_v56, 1  ;;  %v466_v59 = vrot.slane %v465_v57, 1  ;;  %v473_v58 = vrot.slane %v472_v62, 1 }
 0x231   :  { %v517_v20 = vrot.slane %v321_v19, %v848_v61  ;;  %v742_v31 = vmov 1966171168  }
 0x232   :  { %v453_v63 = vadd.f32 %v452_v41, %v451_v54  ;;  %v460_v9 = vadd.f32 %v459_v55, %v458_v56  ;;  %v467_v10 = vadd.f32 %v466_v59, %v465_v57  ;;  %v474_v11 = vadd.f32 %v473_v58, %v472_v62 }
 0x233   :  { %518 = vrot.lane.b32.xlu0 %v517_v20, %s741_s0  ;;  %v579_v32 = vunpack.c.l.s4 %v742_v31 }
 0x234   :  { %v475_v12 = vadd.f32 %v453_v63, %v425_v0  ;;  %v476_v13 = vadd.f32 %v460_v9, %v432_v1  ;;  %v477_v14 = vadd.f32 %v467_v10, %v439_v37  ;;  %v478_v15 = vadd.f32 %v474_v11, %v446_v36 }
 0x235   :  { %v580_v42 = vunpack.c.0.s8 %v579_v32 }
 0x236   :  { %v479_v16 = vadd.f32 %v477_v14, %v475_v12  ;;  %v480_v17 = vadd.f32 %v478_v15, %v476_v13 }
 0x238   :  { %v481_v18 = vadd.f32 %v480_v17, %v479_v16 }
 0x23a   :  { %483 = vrot.lane.b32.xlu1 %v481_v18, %s741_s0 }
 0x2a5   :  { %v519_v30 = vpop.permute.xlu0 %518 }
 0x2a6   :  { %v521_v33 = vsel %vm397_vm2, %v321_v19, %v519_v30 }
 0x2a7   :  { %v525_v40 = vrot.slane %v521_v33, %v848_v61 }
 0x2ac   :  { %v484_v21 = vpop.permute.xlu1 %483 }
 0x2ad   :  { %v486_v22 = vadd.f32 %v484_v21, %v481_v18 }
 0x2af   :  { %v487_v23 = vmul.f32 0.03125, %v486_v22 }
 0x2b1   :  { %v488_v24 = vmax.f32 %v487_v23, 0.0 }
 0x2b3   :  { %v489_v25 = vadd.f32 1e-05, %v488_v24 }
 0x2b5   :  { %663 = vrsqrt.f32 %v489_v25 }
 0x2bf   :  { %v664_v27 = vpop.eup %663 }
 0x2c0   :  { %v491_v28 = vmul.f32 %v664_v27, %v320_v26 }
 0x2c2   :  { %v496_v29 = vrot.slane %v491_v28, %v848_v61 }
 0x2c4   :  { %497 = vrot.lane.b32.xlu1 %v496_v29, %s741_s0 }
 0x336   :  { %v498_v35 = vpop.permute.xlu1 %497 }
 0x337   :  { %v500_v38 = vsel %vm397_vm2, %v491_v28, %v498_v35 }
 0x338   :  { %v504_v39 = vrot.slane %v500_v38, %v848_v61 }
 0x33a   :  { %v505_v43 = vmul.f32 %v504_v39, %v853_v2  ;;  %v506_v44 = vmul.f32 %v504_v39, %v856_v3  ;;  %v507_v45 = vmul.f32 %v504_v39, %v859_v4  ;;  %v508_v46 = vmul.f32 %v504_v39, %v862_v5 }
 0x33b   :  { %v509_v47 = vmul.f32 %v504_v39, %v865_v6  ;;  %v510_v48 = vmul.f32 %v504_v39, %v868_v7  ;;  %v511_v49 = vmul.f32 %v504_v39, %v871_v8  ;;  %v512_v50 = vmul.f32 %v504_v39, %v874_v34 }
 0x33c   :  { %v526_v51 = vadd.f32 %v525_v40, %v505_v43  ;;  %v527_v52 = vadd.f32 %v525_v40, %v506_v44  ;;  %v528_v61 = vadd.f32 %v525_v40, %v507_v45  ;;  %v529_v53 = vadd.f32 %v525_v40, %v508_v46 }
 0x33d   :  { %v530_v54 = vadd.f32 %v525_v40, %v509_v47  ;;  %v531_v2 = vadd.f32 %v525_v40, %v510_v48  ;;  %v532_v56 = vadd.f32 %v525_v40, %v511_v49  ;;  %v533_v3 = vadd.f32 %v525_v40, %v512_v50 }
 0x33e   :  { %vm534_vm3 = vcmp.ge.f32.partialorder %v526_v51, 0.0  ;;  %vm535_vm4 = vcmp.ge.f32.partialorder %v527_v52, 0.0  ;;  %vm536_vm5 = vcmp.ge.f32.partialorder %v528_v61, 0.0  ;;  %vm537_vm6 = vcmp.ge.f32.partialorder %v529_v53, 0.0 }
 0x33f   :  { %vm538_vm7 = vcmp.ge.f32.partialorder %v530_v54, 0.0  ;;  %vm539_vm8 = vcmp.ge.f32.partialorder %v531_v2, 0.0  ;;  %vm540_vm9 = vcmp.ge.f32.partialorder %v532_v56, 0.0  ;;  %vm541_vm10 = vcmp.ge.f32.partialorder %v533_v3, 0.0 }
 0x340   :  { %v542_v4 = vmul.f32 0.2, %v526_v51  ;;  %v543_v5 = vmul.f32 0.2, %v527_v52  ;;  %v544_v6 = vmul.f32 0.2, %v528_v61  ;;  %v583_v7 = vsub.s32 %v580_v42, %v845_v60 }
 0x341   :  { %v545_v8 = vmul.f32 0.2, %v529_v53  ;;  %v546_v34 = vmul.f32 0.2, %v530_v54  ;;  %v547_v57 = vmul.f32 0.2, %v531_v2 }
 0x342   :  { %v548_v62 = vmul.f32 0.2, %v532_v56  ;;  %v549_v0 = vmul.f32 0.2, %v533_v3  ;;  %v550_v1 = vsel %vm534_vm3, %v526_v51, %v542_v4  ;;  %v551_v37 = vsel %vm535_vm4, %v527_v52, %v543_v5 }
 0x343   :  { %v552_v36 = vsel %vm536_vm5, %v528_v61, %v544_v6  ;;  %v553_v41 = vsel %vm537_vm6, %v529_v53, %v545_v8  ;;  %v554_v55 = vsel %vm538_vm7, %v530_v54, %v546_v34  ;;  %v555_v59 = vsel %vm539_vm8, %v531_v2, %v547_v57 }
 0x344   :  { %v556_v58 = vsel %vm540_vm9, %v532_v56, %v548_v62  ;;  %v557_v60 = vsel %vm541_vm10, %v533_v3, %v549_v0  ;;  %v651_v63 = vpack.c.bf16 %v551_v37, %v550_v1  ;;  %v652_v9 = vpack.c.bf16 %v553_v41, %v552_v36 }
 0x345   :  { %v653_v10 = vpack.c.bf16 %v555_v59, %v554_v55  ;;  %v654_v11 = vpack.c.bf16 %v557_v60, %v556_v58 }
 0x346   :  { %v584_v12 = vrot.slane %v651_v63, %v583_v7  ;;  %v591_v13 = vrot.slane %v652_v9, %v583_v7 }
 0x347   :  { %v598_v14 = vrot.slane %v653_v10, %v583_v7  ;;  %v605_v15 = vrot.slane %v654_v11, %v583_v7 }
 0x348   :  { %v606_v16 = vcombine.low %v584_v12, %v591_v13 }
 0x349   :  { %v607_v17 = vcombine.low %v598_v14, %v605_v15 }
 0x34a   :  { %v614_v18 = vrot.slane %v606_v16, %v583_v7 }
 0x34b   :  { %v621_v19 = vrot.slane %v607_v17, %v583_v7 }
 0x34d   :  { %v622_v20 = vcombine.low %v614_v18, %v621_v19 }
 0x34f   :  { %624 = vst [vmem:[%s933_s4] sm:$0xff] %v622_v20 }
 0x350   :  { %629 = vsyncpa [#allocation3], 1 }
 0x351   :  { %630 = vsyncpa [#allocation5], 1 }

// kernel: generator_forward.6
= control target key start
LH: loop header
LB: loop body
LE: loop exit
PB: predicated region body
PF: predicated region fallthrough
CT: control target
= control target key end

     0   :  { %9 = vsyncpa [#allocation5], 0  ;;  %s1603_s0 = inlined_call_operand.vmem [shape: bf16[8,256], index: 0, kind: input, shape index: {}]   ;;  %s1604_s1 = inlined_call_operand.hbm [shape: f32[1,32], index: 1, kind: input, shape index: {}]   ;;  %s1605_s2 = inlined_call_operand.hbm [shape: f32[1,32], index: 2, kind: input, shape index: {}]   ;;  %s1606_s3 = inlined_call_operand.hbm [shape: bf16[256,1024], index: 3, kind: input, shape index: {}]   ;;  %s1607_s4 = inlined_call_operand.vmem [shape: bf16[8,512], index: 4, kind: output, shape index: {}]  }
   0x1   :  { %10 = vsyncpa [#allocation7], 0  ;;  %s1464_s15 = smov [#allocation6]   ;;  %s1465_s17 = smov [#allocation4]  }
   0x2   :  { %s29_s16 = sshll.u32 %s1464_s15, 4  ;;  %s19_s18 = sshll.u32 %s1465_s17, 4  ;;  %s30_s16 = int_to_ptr.vmem [resolvable:$true] %s29_s16  ;;  %s20_s18 = int_to_ptr.vmem [resolvable:$true] %s19_s18 }
   0x3   :  { %s1394_s21 = scalar_lea.hbm %s1605_s2, 16 }
   0x4   :  { %p1395_p0 = scmp.ne.s32.totalorder %s1605_s2, %s1394_s21  ;;  %p1398_p1 = scmp.lt.u32.totalorder %s1394_s21, %s1605_s2 }
   0x6   :  { %p1400_p2 = pnand %p1398_p1, %p1395_p0 }
   0x8   :  { %1403 = shalt.err (!%p1400_p2)
}
   0x9   :  { %s1404_s26 = scalar_lea.vmem %s30_s16, 16  ;;  %s1408_s27 = scalar_lea.vmem %s30_s16, 32 }
   0xa   :  { %p1405_p3 = scmp.ne.s32.totalorder %s30_s16, %s1404_s26  ;;  %p1409_p4 = scmp.lt.s32.totalorder %s30_s16, %s30_s16 }
   0xb   :  { %p1410_p5 = scmp.lt.s32.totalorder %s1408_s27, %s1404_s26 }
   0xd   :  { %p1411_p6 = por %p1410_p5, %p1409_p4 }
   0xf   :  { %p1412_p7 = pnand %p1411_p6, %p1405_p3 }
  0x11   :  { %1415 = shalt.err (!%p1412_p7)
}
  0x12   :  { %32 = dma.hbm_to_vmem [thread:$0]  %s1605_s2, 16, %s30_s16, [#allocation7]  }
  0x13   :  { %s1416_s6 = scalar_lea.hbm %s1604_s1, 16 }
  0x14   :  { %p1417_p8 = scmp.ne.s32.totalorder %s1604_s1, %s1416_s6  ;;  %p1420_p9 = scmp.lt.u32.totalorder %s1416_s6, %s1604_s1 }
  0x16   :  { %p1422_p10 = pnand %p1420_p9, %p1417_p8 }
  0x18   :  { %1425 = shalt.err (!%p1422_p10)
}
  0x19   :  { %s1426_s11 = scalar_lea.vmem %s20_s18, 16  ;;  %s1430_s12 = scalar_lea.vmem %s20_s18, 32 }
  0x1a   :  { %p1427_p11 = scmp.ne.s32.totalorder %s20_s18, %s1426_s11  ;;  %p1431_p12 = scmp.lt.s32.totalorder %s20_s18, %s20_s18 }
  0x1b   :  { %p1432_p13 = scmp.lt.s32.totalorder %s1430_s12, %s1426_s11 }
  0x1d   :  { %p1433_p0 = por %p1432_p13, %p1431_p12 }
  0x1f   :  { %p1434_p1 = pnand %p1433_p0, %p1427_p11 }
  0x21   :  { %1437 = shalt.err (!%p1434_p1)
}
  0x22   :  { %22 = dma.hbm_to_vmem [thread:$0]  %s1604_s1, 16, %s20_s18, [#allocation5]  }
  0x23   :  { %s1466_s14 = smov [#allocation8]   ;;  %s1438_s19 = scalar_lea.hbm %s1606_s3, 16384 }
  0x24   :  { %s38_s15 = sshll.u32 %s1466_s14, 4  ;;  %p1439_p2 = scmp.ne.s32.totalorder %s1606_s3, %s1438_s19  ;;  %s39_s15 = int_to_ptr.vmem [resolvable:$true] %s38_s15 }
  0x25   :  { %p1442_p3 = scmp.lt.u32.totalorder %s1438_s19, %s1606_s3 }
  0x27   :  { %p1444_p4 = pnand %p1442_p3, %p1439_p2 }
  0x29   :  { %1447 = shalt.err (!%p1444_p4)
}
  0x2a   :  { %s1448_s24 = scalar_lea.vmem %s39_s15, 16384  ;;  %p1453_p6 = scmp.lt.s32.totalorder %s39_s15, %s39_s15 }
  0x2b   :  { %p1449_p5 = scmp.ne.s32.totalorder %s39_s15, %s1448_s24  ;;  %p1454_p7 = scmp.lt.s32.totalorder %s1448_s24, %s1448_s24 }
  0x2d   :  { %p1455_p8 = por %p1454_p7, %p1453_p6 }
  0x2f   :  { %p1456_p9 = pnand %p1455_p8, %p1449_p5 }
  0x31   :  { %1459 = shalt.err (!%p1456_p9)
}
  0x32   :  { %s1467_s1 = smov 512   ;;  %s1468_s18 = smov 32  }
  0x33   :  { %44 = dma.hbm_to_vmem [thread:$0]  %s1606_s3, 16384, %s39_s15, [#allocation7], %s1467_s1, %s1467_s1, %s1468_s18  }
  0x34   :  { %1460 = dma.done.wait [#allocation5], 16  }
  0x35   :  { %1461 = vsyncadd [#allocation5], 4294967280 }
  0x36   :  { %1462 = dma.done.wait [#allocation7], 16400  }
  0x37   :  { %1463 = vsyncadd [#allocation7], 4294950896  ;;  %v55_v0 = vld [vmem:[#allocation8 + $0x8] sm:$0xff]  ;;  %v297_v6 = vld [vmem:[#allocation8 + $0x10] sm:$0xff]  ;;  %s1470_s28 = smov 96   ;;  %vm1107_vm0 = vcmask 261120  }
  0x38   :  { %v56_v1 = vld [vmem:[#allocation8 + $0x28] sm:$0xff]  ;;  %v298_v7 = vld [vmem:[#allocation8 + $0x30] sm:$0xff]  ;;  %vm1113_vm1 = vcmask 523264  }
  0x39   :  { %v57_v2 = vld [vmem:[#allocation8 + $0x48] sm:$0xff]  ;;  %v1252_v3 = vcombine.high %v55_v0, %v56_v1  ;;  %v1251_v4 = vcombine.low %v55_v0, %v56_v1  ;;  %v1284_v9 = vcombine.high %v297_v6, %v298_v7  ;;  %v1283_v10 = vcombine.low %v297_v6, %v298_v7  ;;  %v299_v13 = vld [vmem:[#allocation8 + $0x50] sm:$0xff] }
  0x3a   :  { %v58_v5 = vld [vmem:[#allocation8 + $0x68] sm:$0xff]  ;;  %v300_v14 = vld [vmem:[#allocation8 + $0x70] sm:$0xff] }
  0x3b   :  { %v1254_v8 = vcombine.high %v57_v2, %v58_v5  ;;  %v59_v11 = vld [vmem:[#allocation8 + $0x88] sm:$0xff]  ;;  %254 = vmatprep.subr.bf16.mxu0 %v1252_v3  ;;  %v1253_v15 = vcombine.low %v57_v2, %v58_v5  ;;  %489 = vmatprep.subr.bf16.mxu1 %v1284_v9  ;;  %v1286_v16 = vcombine.high %v299_v13, %v300_v14  ;;  %v301_v17 = vld [vmem:[#allocation8 + $0x90] sm:$0xff] }
  0x3c   :  { %v60_v12 = vld [vmem:[#allocation8 + $0xa8] sm:$0xff]  ;;  %255 = vmatpush1.bf16.msra.mxu0 %v1251_v4  ;;  %v302_v18 = vld [vmem:[#allocation8 + $0xb0] sm:$0xff]  ;;  %490 = vmatpush1.bf16.msra.mxu1 %v1283_v10  ;;  %v1285_v20 = vcombine.low %v299_v13, %v300_v14 }
  0x3d   :  { %256 = vmatprep.subr.bf16.mxu0 %v1254_v8  ;;  %v1256_v19 = vcombine.high %v59_v11, %v60_v12  ;;  %491 = vmatprep.subr.bf16.mxu1 %v1286_v16  ;;  %v61_v21 = vld [vmem:[#allocation8 + $0xc8] sm:$0xff]  ;;  %v1288_v23 = vcombine.high %v301_v17, %v302_v18  ;;  %v303_v24 = vld [vmem:[#allocation8 + $0xd0] sm:$0xff]  ;;  %v1255_v26 = vcombine.low %v59_v11, %v60_v12 }
  0x3e   :  { %v62_v22 = vld [vmem:[#allocation8 + $0xe8] sm:$0xff]  ;;  %v304_v25 = vld [vmem:[#allocation8 + $0xf0] sm:$0xff]  ;;  %v1287_v28 = vcombine.low %v301_v17, %v302_v18 }
  0x3f   :  { %v1258_v27 = vcombine.high %v61_v21, %v62_v22  ;;  %v63_v29 = vld [vmem:[#allocation8 + $0x108] sm:$0xff]  ;;  %v1290_v31 = vcombine.high %v303_v24, %v304_v25  ;;  %v305_v32 = vld [vmem:[#allocation8 + $0x110] sm:$0xff]  ;;  %v1257_v34 = vcombine.low %v61_v21, %v62_v22  ;;  %v1289_v36 = vcombine.low %v303_v24, %v304_v25 }
  0x40   :  { %257 = vmatpush1.bf16.msra.mxu0 %v1253_v15  ;;  %492 = vmatpush1.bf16.msra.mxu1 %v1285_v20  ;;  %v64_v30 = vld [vmem:[#allocation8 + $0x128] sm:$0xff]  ;;  %v306_v33 = vld [vmem:[#allocation8 + $0x130] sm:$0xff] }
  0x41   :  { %258 = vmatprep.subr.bf16.mxu0 %v1256_v19  ;;  %493 = vmatprep.subr.bf16.mxu1 %v1288_v23  ;;  %v1260_v35 = vcombine.high %v63_v29, %v64_v30  ;;  %v65_v37 = vld [vmem:[#allocation8 + $0x148] sm:$0xff]  ;;  %v1292_v39 = vcombine.high %v305_v32, %v306_v33  ;;  %v307_v40 = vld [vmem:[#allocation8 + $0x150] sm:$0xff]  ;;  %v1259_v42 = vcombine.low %v63_v29, %v64_v30 }
  0x42   :  { %v66_v38 = vld [vmem:[#allocation8 + $0x168] sm:$0xff]  ;;  %v308_v41 = vld [vmem:[#allocation8 + $0x170] sm:$0xff]  ;;  %v1291_v44 = vcombine.low %v305_v32, %v306_v33 }
  0x43   :  { %v1262_v43 = vcombine.high %v65_v37, %v66_v38  ;;  %v67_v45 = vld [vmem:[#allocation8 + $0x188] sm:$0xff]  ;;  %v1294_v47 = vcombine.high %v307_v40, %v308_v41  ;;  %v309_v48 = vld [vmem:[#allocation8 + $0x190] sm:$0xff]  ;;  %v1261_v50 = vcombine.low %v65_v37, %v66_v38  ;;  %v1293_v53 = vcombine.low %v307_v40, %v308_v41 }
  0x44   :  { %259 = vmatpush1.bf16.msra.mxu0 %v1255_v26  ;;  %494 = vmatpush1.bf16.msra.mxu1 %v1287_v28  ;;  %v68_v46 = vld [vmem:[#allocation8 + $0x1a8] sm:$0xff]  ;;  %v310_v49 = vld [vmem:[#allocation8 + $0x1b0] sm:$0xff] }
  0x45   :  { %260 = vmatprep.subr.bf16.mxu0 %v1258_v27  ;;  %495 = vmatprep.subr.bf16.mxu1 %v1290_v31  ;;  %v1536_v51 = vld [vmem:[%s1603_s0] sm:$0xff]  ;;  %v1264_v52 = vcombine.high %v67_v45, %v68_v46  ;;  %v1296_v57 = vcombine.high %v309_v48, %v310_v49  ;;  %v1263_v60 = vcombine.low %v67_v45, %v68_v46  ;;  %s1469_s0 = smov 64  }
  0x46   :  { %v1540_v54 = vcombine.high %v1536_v51, %v1536_v51  ;;  %v69_v55 = vld [vmem:[#allocation8 + $0x1c8] sm:$0xff]  ;;  %v311_v58 = vld [vmem:[#allocation8 + $0x1d0] sm:$0xff]  ;;  %v1295_v62 = vcombine.low %v309_v48, %v310_v49 }
  0x47   :  { %v70_v56 = vld [vmem:[#allocation8 + $0x1e8] sm:$0xff]  ;;  %v312_v59 = vld [vmem:[#allocation8 + $0x1f0] sm:$0xff] }
  0x48   :  { %261 = vmatpush1.bf16.msra.mxu0 %v1257_v34  ;;  %496 = vmatpush1.bf16.msra.mxu1 %v1289_v36  ;;  %v1266_v61 = vcombine.high %v69_v55, %v70_v56  ;;  %v71_v63 = vld [vmem:[#allocation8 + $0x208] sm:$0xff]  ;;  %v1298_v1 = vcombine.high %v311_v58, %v312_v59  ;;  %v313_v2 = vld [vmem:[#allocation8 + $0x210] sm:$0xff]  ;;  %v1265_v4 = vcombine.low %v69_v55, %v70_v56 }
  0x49   :  { %262 = vmatprep.subr.bf16.mxu0 %v1260_v35  ;;  %497 = vmatprep.subr.bf16.mxu1 %v1292_v39  ;;  %v72_v0 = vld [vmem:[#allocation8 + $0x228] sm:$0xff]  ;;  %v314_v3 = vld [vmem:[#allocation8 + $0x230] sm:$0xff]  ;;  %v1297_v6 = vcombine.low %v311_v58, %v312_v59 }
  0x4a   :  { %286 = vmatprep.mubr.bf16.mxu0 %v1540_v54  ;;  %521 = vmatprep.mubr.bf16.mxu1 %v1540_v54  ;;  %v1268_v5 = vcombine.high %v71_v63, %v72_v0  ;;  %v73_v7 = vld [vmem:[#allocation8 + $0x248] sm:$0xff]  ;;  %v1300_v9 = vcombine.high %v313_v2, %v314_v3  ;;  %v315_v10 = vld [vmem:[#allocation8 + $0x250] sm:$0xff]  ;;  %v1267_v12 = vcombine.low %v71_v63, %v72_v0 }
  0x4b   :  { %v74_v8 = vld [vmem:[#allocation8 + $0x268] sm:$0xff]  ;;  %v316_v11 = vld [vmem:[#allocation8 + $0x270] sm:$0xff]  ;;  %v1299_v14 = vcombine.low %v313_v2, %v314_v3  ;;  %v533_v2 = vld [vmem:[#allocation8 + $0x20] sm:$0xff] }
  0x4c   :  { %263 = vmatpush1.bf16.msra.mxu0 %v1259_v42  ;;  %498 = vmatpush1.bf16.msra.mxu1 %v1291_v44  ;;  %v1270_v13 = vcombine.high %v73_v7, %v74_v8  ;;  %v75_v15 = vld [vmem:[#allocation8 + $0x288] sm:$0xff]  ;;  %v1302_v17 = vcombine.high %v315_v10, %v316_v11  ;;  %v317_v18 = vld [vmem:[#allocation8 + $0x290] sm:$0xff]  ;;  %v1269_v20 = vcombine.low %v73_v7, %v74_v8 }
  0x4d   :  { %264 = vmatprep.subr.bf16.mxu0 %v1262_v43  ;;  %499 = vmatprep.subr.bf16.mxu1 %v1294_v47  ;;  %v76_v16 = vld [vmem:[#allocation8 + $0x2a8] sm:$0xff]  ;;  %v318_v19 = vld [vmem:[#allocation8 + $0x2b0] sm:$0xff]  ;;  %v1301_v22 = vcombine.low %v315_v10, %v316_v11  ;;  %v535_v10 = vld [vmem:[#allocation8 + $0x60] sm:$0xff] }
  0x4e   :  { %v1272_v21 = vcombine.high %v75_v15, %v76_v16  ;;  %v77_v23 = vld [vmem:[#allocation8 + $0x2c8] sm:$0xff]  ;;  %v1304_v25 = vcombine.high %v317_v18, %v318_v19  ;;  %v319_v26 = vld [vmem:[#allocation8 + $0x2d0] sm:$0xff]  ;;  %v1271_v28 = vcombine.low %v75_v15, %v76_v16  ;;  %v1303_v30 = vcombine.low %v317_v18, %v318_v19  ;;  %v536_v18 = vld [vmem:[#allocation8 + $0x80] sm:$0xff] }
  0x4f   :  { %v78_v24 = vld [vmem:[#allocation8 + $0x2e8] sm:$0xff]  ;;  %v320_v27 = vld [vmem:[#allocation8 + $0x2f0] sm:$0xff]  ;;  %v537_v19 = vld [vmem:[#allocation8 + $0xa0] sm:$0xff] }
  0x50   :  { %265 = vmatpush1.bf16.msra.mxu0 %v1261_v50  ;;  %500 = vmatpush1.bf16.msra.mxu1 %v1293_v53  ;;  %v1274_v29 = vcombine.high %v77_v23, %v78_v24  ;;  %v79_v31 = vld [vmem:[#allocation8 + $0x308] sm:$0xff]  ;;  %v1306_v33 = vcombine.high %v319_v26, %v320_v27  ;;  %v321_v34 = vld [vmem:[#allocation8 + $0x310] sm:$0xff]  ;;  %v1273_v36 = vcombine.low %v77_v23, %v78_v24 }
  0x51   :  { %266 = vmatprep.subr.bf16.mxu0 %v1264_v52  ;;  %501 = vmatprep.subr.bf16.mxu1 %v1296_v57  ;;  %v80_v32 = vld [vmem:[#allocation8 + $0x328] sm:$0xff]  ;;  %v322_v35 = vld [vmem:[#allocation8 + $0x330] sm:$0xff]  ;;  %v1305_v38 = vcombine.low %v319_v26, %v320_v27  ;;  %v539_v26 = vld [vmem:[#allocation8 + $0xe0] sm:$0xff] }
  0x52   :  { %v1276_v37 = vcombine.high %v79_v31, %v80_v32  ;;  %v81_v39 = vld [vmem:[#allocation8 + $0x348] sm:$0xff]  ;;  %v1308_v41 = vcombine.high %v321_v34, %v322_v35  ;;  %v323_v42 = vld [vmem:[#allocation8 + $0x350] sm:$0xff]  ;;  %v1275_v44 = vcombine.low %v79_v31, %v80_v32  ;;  %v1307_v46 = vcombine.low %v321_v34, %v322_v35  ;;  %v541_v34 = vld [vmem:[#allocation8 + $0x120] sm:$0xff] }
  0x53   :  { %v82_v40 = vld [vmem:[#allocation8 + $0x368] sm:$0xff]  ;;  %v324_v43 = vld [vmem:[#allocation8 + $0x370] sm:$0xff] }
  0x54   :  { %267 = vmatpush1.bf16.msra.mxu0 %v1263_v60  ;;  %502 = vmatpush1.bf16.msra.mxu1 %v1295_v62  ;;  %v1278_v45 = vcombine.high %v81_v39, %v82_v40  ;;  %v83_v47 = vld [vmem:[#allocation8 + $0x388] sm:$0xff]  ;;  %v1310_v49 = vcombine.high %v323_v42, %v324_v43  ;;  %v325_v50 = vld [vmem:[#allocation8 + $0x390] sm:$0xff]  ;;  %v1277_v53 = vcombine.low %v81_v39, %v82_v40 }
  0x55   :  { %268 = vmatprep.subr.bf16.mxu0 %v1266_v61  ;;  %503 = vmatprep.subr.bf16.mxu1 %v1298_v1  ;;  %v84_v48 = vld [vmem:[#allocation8 + $0x3a8] sm:$0xff]  ;;  %v326_v52 = vld [vmem:[#allocation8 + $0x3b0] sm:$0xff]  ;;  %v1309_v56 = vcombine.low %v323_v42, %v324_v43  ;;  %v532_v1 = vld [vmem:[#allocation8] sm:$0xff] }
  0x56   :  { %v1280_v55 = vcombine.high %v83_v47, %v84_v48  ;;  %v85_v57 = vld [vmem:[#allocation8 + $0x3c8] sm:$0xff]  ;;  %v1312_v59 = vcombine.high %v325_v50, %v326_v52  ;;  %v327_v60 = vld [vmem:[#allocation8 + $0x3d0] sm:$0xff]  ;;  %v1279_v62 = vcombine.low %v83_v47, %v84_v48  ;;  %v1311_v0 = vcombine.low %v325_v50, %v326_v52  ;;  %v805_v43 = vld [vmem:[#allocation8 + $0x158] sm:$0xff] }
  0x57   :  { %v86_v58 = vld [vmem:[#allocation8 + $0x3e8] sm:$0xff]  ;;  %v328_v61 = vld [vmem:[#allocation8 + $0x3f0] sm:$0xff]  ;;  %v1316_v7 = vcombine.high %v532_v1, %v533_v2  ;;  %v1315_v15 = vcombine.low %v532_v1, %v533_v2  ;;  %v544_v48 = vld [vmem:[#allocation8 + $0x180] sm:$0xff] }
  0x58   :  { %269 = vmatpush1.bf16.msra.mxu0 %v1265_v4  ;;  %504 = vmatpush1.bf16.msra.mxu1 %v1297_v6  ;;  %v1282_v63 = vcombine.high %v85_v57, %v86_v58  ;;  %v1314_v3 = vcombine.high %v327_v60, %v328_v61  ;;  %v795_v4 = vld [vmem:[#allocation8 + $0x18] sm:$0xff]  ;;  %v1281_v6 = vcombine.low %v85_v57, %v86_v58  ;;  %v546_v58 = vld [vmem:[#allocation8 + $0x1c0] sm:$0xff] }
  0x59   :  { %270 = vmatprep.subr.bf16.mxu0 %v1268_v5  ;;  %505 = vmatprep.subr.bf16.mxu1 %v1300_v9  ;;  %v796_v5 = vld [vmem:[#allocation8 + $0x38] sm:$0xff]  ;;  %v1313_v8 = vcombine.low %v327_v60, %v328_v61  ;;  %v534_v9 = vld [vmem:[#allocation8 + $0x40] sm:$0xff] }
  0x5a   :  { %v1348_v11 = vcombine.high %v795_v4, %v796_v5  ;;  %v1318_v16 = vcombine.high %v534_v9, %v535_v10  ;;  %v1317_v23 = vcombine.low %v534_v9, %v535_v10  ;;  %v807_v52 = vld [vmem:[#allocation8 + $0x198] sm:$0xff]  ;;  %v548_v2 = vld [vmem:[#allocation8 + $0x200] sm:$0xff] }
  0x5b   :  { %v809_v61 = vld [vmem:[#allocation8 + $0x1d8] sm:$0xff]  ;;  %v550_v10 = vld [vmem:[#allocation8 + $0x240] sm:$0xff] }
  0x5c   :  { %271 = vmatpush1.bf16.msra.mxu0 %v1267_v12  ;;  %506 = vmatpush1.bf16.msra.mxu1 %v1299_v14  ;;  %v1546_v12 = vcombine.low %v1536_v51, %v1536_v51  ;;  %v798_v14 = vld [vmem:[#allocation8 + $0x78] sm:$0xff]  ;;  %v1320_v51 = vcombine.high %v536_v18, %v537_v19 }
  0x5d   :  { %272 = vmatprep.subr.bf16.mxu0 %v1270_v13  ;;  %507 = vmatprep.subr.bf16.mxu1 %v1302_v17  ;;  %v797_v13 = vld [vmem:[#allocation8 + $0x58] sm:$0xff]  ;;  %v1347_v17 = vcombine.low %v795_v4, %v796_v5 }
  0x5e   :  { %v1349_v24 = vcombine.low %v797_v13, %v798_v14  ;;  %v811_v5 = vld [vmem:[#allocation8 + $0x218] sm:$0xff] }
  0x60   :  { %273 = vmatpush1.bf16.msra.mxu0 %v1269_v20  ;;  %508 = vmatpush1.bf16.msra.mxu1 %v1301_v22  ;;  %v1350_v20 = vcombine.high %v797_v13, %v798_v14  ;;  %v800_v22 = vld [vmem:[#allocation8 + $0xb8] sm:$0xff] }
  0x61   :  { %274 = vmatprep.subr.bf16.mxu0 %v1272_v21  ;;  %509 = vmatprep.subr.bf16.mxu1 %v1304_v25  ;;  %v799_v21 = vld [vmem:[#allocation8 + $0x98] sm:$0xff]  ;;  %v538_v25 = vld [vmem:[#allocation8 + $0xc0] sm:$0xff] }
  0x62   :  { %v1352_v27 = vcombine.high %v799_v21, %v800_v22  ;;  %v1322_v31 = vcombine.high %v538_v25, %v539_v26  ;;  %v1351_v32 = vcombine.low %v799_v21, %v800_v22  ;;  %v813_v14 = vld [vmem:[#allocation8 + $0x258] sm:$0xff] }
  0x63   :  { %v815_v22 = vld [vmem:[#allocation8 + $0x298] sm:$0xff] }
  0x64   :  { %275 = vmatpush1.bf16.msra.mxu0 %v1271_v28  ;;  %510 = vmatpush1.bf16.msra.mxu1 %v1303_v30  ;;  %v801_v28 = vld [vmem:[#allocation8 + $0xd8] sm:$0xff]  ;;  %v1319_v30 = vcombine.low %v536_v18, %v537_v19  ;;  %v552_v19 = vld [vmem:[#allocation8 + $0x280] sm:$0xff] }
  0x65   :  { %276 = vmatprep.subr.bf16.mxu0 %v1274_v29  ;;  %511 = vmatprep.subr.bf16.mxu1 %v1306_v33  ;;  %v802_v29 = vld [vmem:[#allocation8 + $0xf8] sm:$0xff]  ;;  %v540_v33 = vld [vmem:[#allocation8 + $0x100] sm:$0xff] }
  0x66   :  { %v1354_v35 = vcombine.high %v801_v28, %v802_v29  ;;  %v1324_v39 = vcombine.high %v540_v33, %v541_v34  ;;  %v1353_v40 = vcombine.low %v801_v28, %v802_v29  ;;  %v817_v29 = vld [vmem:[#allocation8 + $0x2d8] sm:$0xff] }
  0x68   :  { %277 = vmatpush1.bf16.msra.mxu0 %v1273_v36  ;;  %512 = vmatpush1.bf16.msra.mxu1 %v1305_v38  ;;  %v803_v36 = vld [vmem:[#allocation8 + $0x118] sm:$0xff]  ;;  %v1321_v38 = vcombine.low %v538_v25, %v539_v26  ;;  %v554_v26 = vld [vmem:[#allocation8 + $0x2c0] sm:$0xff] }
  0x69   :  { %278 = vmatprep.subr.bf16.mxu0 %v1276_v37  ;;  %513 = vmatprep.subr.bf16.mxu1 %v1308_v41  ;;  %v804_v37 = vld [vmem:[#allocation8 + $0x138] sm:$0xff]  ;;  %v543_v41 = vld [vmem:[#allocation8 + $0x160] sm:$0xff] }
  0x6a   :  { %v1356_v42 = vcombine.high %v803_v36, %v804_v37  ;;  %v1355_v47 = vcombine.low %v803_v36, %v804_v37  ;;  %v819_v37 = vld [vmem:[#allocation8 + $0x318] sm:$0xff] }
  0x6c   :  { %279 = vmatpush1.bf16.msra.mxu0 %v1275_v44  ;;  %514 = vmatpush1.bf16.msra.mxu1 %v1307_v46  ;;  %v806_v44 = vld [vmem:[#allocation8 + $0x178] sm:$0xff] }
  0x6d   :  { %280 = vmatprep.subr.bf16.mxu0 %v1278_v45  ;;  %515 = vmatprep.subr.bf16.mxu1 %v1310_v49  ;;  %v1323_v45 = vcombine.low %v540_v33, %v541_v34  ;;  %v545_v49 = vld [vmem:[#allocation8 + $0x1a0] sm:$0xff]  ;;  %v1358_v50 = vcombine.high %v805_v43, %v806_v44  ;;  %v1357_v57 = vcombine.low %v805_v43, %v806_v44  ;;  %v821_v44 = vld [vmem:[#allocation8 + $0x358] sm:$0xff] }
  0x6e   :  { %v556_v34 = vld [vmem:[#allocation8 + $0x300] sm:$0xff] }
  0x70   :  { %281 = vmatpush1.bf16.msra.mxu0 %v1277_v53  ;;  %516 = vmatpush1.bf16.msra.mxu1 %v1309_v56  ;;  %v808_v53 = vld [vmem:[#allocation8 + $0x1b8] sm:$0xff]  ;;  %v1328_v56 = vcombine.high %v544_v48, %v545_v49 }
  0x71   :  { %282 = vmatprep.subr.bf16.mxu0 %v1280_v55  ;;  %517 = vmatprep.subr.bf16.mxu1 %v1312_v59  ;;  %v547_v59 = vld [vmem:[#allocation8 + $0x1e0] sm:$0xff]  ;;  %v1360_v60 = vcombine.high %v807_v52, %v808_v53  ;;  %v1359_v1 = vcombine.low %v807_v52, %v808_v53  ;;  %v823_v53 = vld [vmem:[#allocation8 + $0x398] sm:$0xff] }
  0x74   :  { %283 = vmatpush1.bf16.msra.mxu0 %v1279_v62  ;;  %518 = vmatpush1.bf16.msra.mxu1 %v1311_v0  ;;  %v810_v62 = vld [vmem:[#allocation8 + $0x1f8] sm:$0xff]  ;;  %v1330_v0 = vcombine.high %v546_v58, %v547_v59 }
  0x75   :  { %284 = vmatprep.subr.bf16.mxu0 %v1282_v63  ;;  %519 = vmatprep.subr.bf16.mxu1 %v1314_v3  ;;  %v1327_v63 = vcombine.low %v544_v48, %v545_v49  ;;  %v549_v3 = vld [vmem:[#allocation8 + $0x220] sm:$0xff]  ;;  %v1362_v4 = vcombine.high %v809_v61, %v810_v62  ;;  %v1361_v9 = vcombine.low %v809_v61, %v810_v62  ;;  %v825_v62 = vld [vmem:[#allocation8 + $0x3d8] sm:$0xff] }
  0x76   :  { %v560_v49 = vld [vmem:[#allocation8 + $0x380] sm:$0xff] }
  0x78   :  { %285 = vmatpush1.bf16.msra.mxu0 %v1281_v6  ;;  %520 = vmatpush1.bf16.msra.mxu1 %v1313_v8  ;;  %v812_v6 = vld [vmem:[#allocation8 + $0x238] sm:$0xff]  ;;  %v1332_v8 = vcombine.high %v548_v2, %v549_v3 }
  0x79   :  { %724 = vmatprep.subr.bf16.mxu0 %v1316_v7  ;;  %987 = vmatprep.subr.bf16.mxu1 %v1348_v11  ;;  %v1329_v7 = vcombine.low %v546_v58, %v547_v59  ;;  %v551_v11 = vld [vmem:[#allocation8 + $0x260] sm:$0xff]  ;;  %v1364_v13 = vcombine.high %v811_v5, %v812_v6  ;;  %v1363_v18 = vcombine.low %v811_v5, %v812_v6 }
  0x7a   :  { %v562_v59 = vld [vmem:[#allocation8 + $0x3c0] sm:$0xff] }
  0x7b   :  { %287 = vmatmul.mubr.bf16.vlgmr.msra.gmra.mrb[0].mxu0 %v1546_v12  ;;  %522 = vmatmul.mubr.bf16.vlgmr.msra.gmra.mrb[0].mxu1 %v1546_v12 }
  0x7c   :  { %725 = vmatpush1.bf16.msra.mxu0 %v1315_v15  ;;  %988 = vmatpush1.bf16.msra.mxu1 %v1347_v17  ;;  %v814_v15 = vld [vmem:[#allocation8 + $0x278] sm:$0xff]  ;;  %v1334_v17 = vcombine.high %v550_v10, %v551_v11 }
  0x7d   :  { %726 = vmatprep.subr.bf16.mxu0 %v1318_v16  ;;  %989 = vmatprep.subr.bf16.mxu1 %v1350_v20  ;;  %v1331_v16 = vcombine.low %v548_v2, %v549_v3  ;;  %v553_v20 = vld [vmem:[#allocation8 + $0x2a0] sm:$0xff]  ;;  %v1366_v21 = vcombine.high %v813_v14, %v814_v15  ;;  %v1365_v25 = vcombine.low %v813_v14, %v814_v15 }
  0x7e   :  { %756 = vmatprep.mubr.bf16.mxu0 %v1540_v54  ;;  %1019 = vmatprep.mubr.bf16.mxu1 %v1540_v54  ;;  %v542_v54 = vld [vmem:[#allocation8 + $0x140] sm:$0xff] }
  0x7f   :  { %v1326_v46 = vcombine.high %v542_v54, %v543_v41  ;;  %v1325_v55 = vcombine.low %v542_v54, %v543_v41  ;;  %v558_v41 = vld [vmem:[#allocation8 + $0x340] sm:$0xff] }
  0x80   :  { %727 = vmatpush1.bf16.msra.mxu0 %v1317_v23  ;;  %990 = vmatpush1.bf16.msra.mxu1 %v1349_v24  ;;  %v816_v23 = vld [vmem:[#allocation8 + $0x2b8] sm:$0xff]  ;;  %v1336_v24 = vcombine.high %v552_v19, %v553_v20 }
  0x81   :  { %728 = vmatprep.subr.bf16.mxu0 %v1320_v51  ;;  %991 = vmatprep.subr.bf16.mxu1 %v1352_v27  ;;  %v1333_v51 = vcombine.low %v550_v10, %v551_v11  ;;  %v555_v27 = vld [vmem:[#allocation8 + $0x2e0] sm:$0xff]  ;;  %v1368_v28 = vcombine.high %v815_v22, %v816_v23  ;;  %v1367_v33 = vcombine.low %v815_v22, %v816_v23 }
  0x84   :  { %729 = vmatpush1.bf16.msra.mxu0 %v1319_v30  ;;  %992 = vmatpush1.bf16.msra.mxu1 %v1351_v32  ;;  %v818_v30 = vld [vmem:[#allocation8 + $0x2f8] sm:$0xff]  ;;  %v1338_v32 = vcombine.high %v554_v26, %v555_v27 }
  0x85   :  { %730 = vmatprep.subr.bf16.mxu0 %v1322_v31  ;;  %993 = vmatprep.subr.bf16.mxu1 %v1354_v35  ;;  %v1335_v31 = vcombine.low %v552_v19, %v553_v20  ;;  %v557_v35 = vld [vmem:[#allocation8 + $0x320] sm:$0xff]  ;;  %v1370_v36 = vcombine.high %v817_v29, %v818_v30  ;;  %v1369_v54 = vcombine.low %v817_v29, %v818_v30 }
  0x88   :  { %731 = vmatpush1.bf16.msra.mxu0 %v1321_v38  ;;  %994 = vmatpush1.bf16.msra.mxu1 %v1353_v40  ;;  %v820_v38 = vld [vmem:[#allocation8 + $0x338] sm:$0xff]  ;;  %v1340_v40 = vcombine.high %v556_v34, %v557_v35 }
  0x89   :  { %732 = vmatprep.subr.bf16.mxu0 %v1324_v39  ;;  %995 = vmatprep.subr.bf16.mxu1 %v1356_v42  ;;  %v1337_v39 = vcombine.low %v554_v26, %v555_v27  ;;  %v559_v42 = vld [vmem:[#allocation8 + $0x360] sm:$0xff]  ;;  %v1372_v43 = vcombine.high %v819_v37, %v820_v38  ;;  %v1371_v48 = vcombine.low %v819_v37, %v820_v38 }
  0x8c   :  { %733 = vmatpush1.bf16.msra.mxu0 %v1323_v45  ;;  %996 = vmatpush1.bf16.msra.mxu1 %v1355_v47  ;;  %v822_v45 = vld [vmem:[#allocation8 + $0x378] sm:$0xff]  ;;  %v1342_v47 = vcombine.high %v558_v41, %v559_v42 }
  0x8d   :  { %734 = vmatprep.subr.bf16.mxu0 %v1326_v46  ;;  %997 = vmatprep.subr.bf16.mxu1 %v1358_v50  ;;  %v1339_v46 = vcombine.low %v556_v34, %v557_v35  ;;  %v561_v50 = vld [vmem:[#allocation8 + $0x3a0] sm:$0xff]  ;;  %v1374_v52 = vcombine.high %v821_v44, %v822_v45  ;;  %v1373_v58 = vcombine.low %v821_v44, %v822_v45 }
  0x90   :  { %735 = vmatpush1.bf16.msra.mxu0 %v1325_v55  ;;  %998 = vmatpush1.bf16.msra.mxu1 %v1357_v57  ;;  %v824_v55 = vld [vmem:[#allocation8 + $0x3b8] sm:$0xff]  ;;  %v1344_v57 = vcombine.high %v560_v49, %v561_v50 }
  0x91   :  { %736 = vmatprep.subr.bf16.mxu0 %v1328_v56  ;;  %999 = vmatprep.subr.bf16.mxu1 %v1360_v60  ;;  %v1341_v56 = vcombine.low %v558_v41, %v559_v42  ;;  %v563_v60 = vld [vmem:[#allocation8 + $0x3e0] sm:$0xff]  ;;  %v1376_v61 = vcombine.high %v823_v53, %v824_v55  ;;  %v1375_v2 = vcombine.low %v823_v53, %v824_v55 }
  0x94   :  { %737 = vmatpush1.bf16.msra.mxu0 %v1327_v63  ;;  %1000 = vmatpush1.bf16.msra.mxu1 %v1359_v1  ;;  %v826_v63 = vld [vmem:[#allocation8 + $0x3f8] sm:$0xff]  ;;  %v1346_v1 = vcombine.high %v562_v59, %v563_v60 }
  0x95   :  { %738 = vmatprep.subr.bf16.mxu0 %v1330_v0  ;;  %1001 = vmatprep.subr.bf16.mxu1 %v1362_v4  ;;  %v1343_v0 = vcombine.low %v560_v49, %v561_v50  ;;  %v1378_v3 = vcombine.high %v825_v62, %v826_v63  ;;  %v1345_v4 = vcombine.low %v562_v59, %v563_v60 }
  0x96   :  { %v1377_v5 = vcombine.low %v825_v62, %v826_v63 }
  0x98   :  { %739 = vmatpush1.bf16.msra.mxu0 %v1329_v7  ;;  %1002 = vmatpush1.bf16.msra.mxu1 %v1361_v9 }
  0x99   :  { %740 = vmatprep.subr.bf16.mxu0 %v1332_v8  ;;  %1003 = vmatprep.subr.bf16.mxu1 %v1364_v13 }
  0x9c   :  { %741 = vmatpush1.bf16.msra.mxu0 %v1331_v16  ;;  %1004 = vmatpush1.bf16.msra.mxu1 %v1363_v18 }
  0x9d   :  { %742 = vmatprep.subr.bf16.mxu0 %v1334_v17  ;;  %1005 = vmatprep.subr.bf16.mxu1 %v1366_v21 }
  0xa0   :  { %743 = vmatpush1.bf16.msra.mxu0 %v1333_v51  ;;  %1006 = vmatpush1.bf16.msra.mxu1 %v1365_v25 }
  0xa1   :  { %744 = vmatprep.subr.bf16.mxu0 %v1336_v24  ;;  %1007 = vmatprep.subr.bf16.mxu1 %v1368_v28 }
  0xa4   :  { %745 = vmatpush1.bf16.msra.mxu0 %v1335_v31  ;;  %1008 = vmatpush1.bf16.msra.mxu1 %v1367_v33 }
  0xa5   :  { %746 = vmatprep.subr.bf16.mxu0 %v1338_v32  ;;  %1009 = vmatprep.subr.bf16.mxu1 %v1370_v36 }
  0xa8   :  { %747 = vmatpush1.bf16.msra.mxu0 %v1337_v39  ;;  %1010 = vmatpush1.bf16.msra.mxu1 %v1369_v54 }
  0xa9   :  { %748 = vmatprep.subr.bf16.mxu0 %v1340_v40  ;;  %1011 = vmatprep.subr.bf16.mxu1 %v1372_v43 }
  0xac   :  { %749 = vmatpush1.bf16.msra.mxu0 %v1339_v46  ;;  %1012 = vmatpush1.bf16.msra.mxu1 %v1371_v48 }
  0xad   :  { %750 = vmatprep.subr.bf16.mxu0 %v1342_v47  ;;  %1013 = vmatprep.subr.bf16.mxu1 %v1374_v52 }
  0xb0   :  { %751 = vmatpush1.bf16.msra.mxu0 %v1341_v56  ;;  %1014 = vmatpush1.bf16.msra.mxu1 %v1373_v58 }
  0xb1   :  { %752 = vmatprep.subr.bf16.mxu0 %v1344_v57  ;;  %1015 = vmatprep.subr.bf16.mxu1 %v1376_v61 }
  0xb4   :  { %753 = vmatpush1.bf16.msra.mxu0 %v1343_v0  ;;  %1016 = vmatpush1.bf16.msra.mxu1 %v1375_v2 }
  0xb5   :  { %754 = vmatprep.subr.bf16.mxu0 %v1346_v1  ;;  %1017 = vmatprep.subr.bf16.mxu1 %v1378_v3 }
  0xb8   :  { %755 = vmatpush1.bf16.msra.mxu0 %v1345_v4  ;;  %1018 = vmatpush1.bf16.msra.mxu1 %v1377_v5 }
  0xbb   :  { %757 = vmatmul.mubr.bf16.vlgmr.msra.gmra.mrb[4].mxu0 %v1546_v12  ;;  %1020 = vmatmul.mubr.bf16.vlgmr.msra.gmra.mrb[4].mxu1 %v1546_v12 }
 0x14e   :  { %v288_v6 = vpop.f32.mrb[0].mxu0  ;;  %v523_v8 = vpop.f32.mrb[0].mxu1 }
 0x14f   :  { %295 = vst [vmem:[#allocation2] sm:$0xff] %v288_v6  ;;  %v290_v7 = vpop.f32.mrb[1].mxu0  ;;  %530 = vst [vmem:[#allocation2 + $0x10] sm:$0xff] %v523_v8  ;;  %v525_v10 = vpop.f32.mrb[1].mxu1 }
 0x150   :  { %296 = vst [vmem:[#allocation2 + $0x8] sm:$0xff] %v290_v7  ;;  %v292_v9 = vpop.f32.mrb[2].mxu0  ;;  %531 = vst [vmem:[#allocation2 + $0x18] sm:$0xff] %v525_v10  ;;  %v527_v13 = vpop.f32.mrb[2].mxu1 }
 0x151   :  { %v293_v11 = vpop.f32.mrb[3].mxu0  ;;  %v528_v14 = vpop.f32.mrb[3].mxu1 }
 0x156   :  { %v767_v27 = vld [vmem:[#allocation2 + $0x10] sm:$0x7]  ;;  %v781_v28 = vld [vmem:[#allocation2 + $0x10] sm:$0x70]  ;;  %v1030_v42 = vld [vmem:[#allocation2] sm:$0xe] }
 0x157   :  { %v768_v33 = vld [vmem:[#allocation2 + $0x18] sm:$0x7]  ;;  %v782_v34 = vld [vmem:[#allocation2 + $0x18] sm:$0x70]  ;;  %v1044_v43 = vld [vmem:[#allocation2] sm:$0xe0] }
 0x158   :  { %v1031_v46 = vld [vmem:[#allocation2 + $0x8] sm:$0xe]  ;;  %v1045_v47 = vld [vmem:[#allocation2 + $0x8] sm:$0xe0] }
 0x18e   :  { %v758_v15 = vpop.f32.mrb[4].mxu0  ;;  %v1021_v17 = vpop.f32.mrb[4].mxu1 }
 0x18f   :  { %765 = vst [vmem:[#allocation3] sm:$0xff] %v758_v15  ;;  %v760_v16 = vpop.f32.mrb[5].mxu0  ;;  %v1023_v19 = vpop.f32.mrb[5].mxu1 }
 0x190   :  { %766 = vst [vmem:[#allocation3 + $0x8] sm:$0xff] %v760_v16  ;;  %v762_v18 = vpop.f32.mrb[6].mxu0  ;;  %v1025_v20 = vpop.f32.mrb[6].mxu1 }
 0x191   :  { %v763_v12 = vpop.f32.mrb[7].mxu0  ;;  %v1026_v21 = vpop.f32.mrb[7].mxu1 }
 0x196   :  { %v769_v22 = vld [vmem:[#allocation3] sm:$0xe]  ;;  %v783_v23 = vld [vmem:[#allocation3] sm:$0xe0] }
 0x197   :  { %v773_v51 = vrot.slane %v769_v22, 1  ;;  %v787_v24 = vrot.slane %v783_v23, 1  ;;  %1028 = vst [vmem:[#allocation3] sm:$0xff] %v1021_v17  ;;  %v770_v25 = vld [vmem:[#allocation3 + $0x8] sm:$0xe] }
 0x198   :  { %v784_v26 = vld [vmem:[#allocation3 + $0x8] sm:$0xe0]  ;;  %v774_v29 = vrot.slane %v770_v25, 1 }
 0x199   :  { %v788_v30 = vrot.slane %v784_v26, 1  ;;  %1029 = vst [vmem:[#allocation3 + $0x8] sm:$0xff] %v1023_v19  ;;  %v777_v31 = vadd.f32 %v773_v51, %v767_v27  ;;  %v791_v32 = vadd.f32 %v787_v24, %v781_v28  ;;  %v1115_v27 = vlaneseq }
 0x19a   :  { %v778_v35 = vadd.f32 %v774_v29, %v768_v33 }
 0x19b   :  { %v792_v36 = vadd.f32 %v788_v30, %v782_v34  ;;  %779 = vst [vmem:[#allocation2 + $0x10] sm:$0x7] %v777_v31  ;;  %793 = vst [vmem:[#allocation2 + $0x10] sm:$0x70] %v791_v32  ;;  %v1116_v28 = vshrl.u32 %v1115_v27, 7 }
 0x19c   :  { %780 = vst [vmem:[#allocation2 + $0x18] sm:$0x7] %v778_v35 }
 0x19d   :  { %794 = vst [vmem:[#allocation2 + $0x18] sm:$0x70] %v792_v36  ;;  %v1559_v29 = vsub.s32 0, %v1116_v28 }
 0x19e   :  { %v1032_v37 = vld [vmem:[#allocation3] sm:$0x7]  ;;  %v1046_v38 = vld [vmem:[#allocation3] sm:$0x70] }
 0x19f   :  { %v1036_v39 = vrot.slane %v1032_v37, 7  ;;  %v1050_v40 = vrot.slane %v1046_v38, 7 }
 0x1a0   :  { %v1033_v54 = vld [vmem:[#allocation3 + $0x8] sm:$0x7]  ;;  %v1047_v41 = vld [vmem:[#allocation3 + $0x8] sm:$0x70] }
 0x1a1   :  { %v1037_v44 = vrot.slane %v1033_v54, 7  ;;  %v1051_v45 = vrot.slane %v1047_v41, 7  ;;  %v1040_v48 = vadd.f32 %v1036_v39, %v1030_v42  ;;  %v1054_v49 = vadd.f32 %v1050_v40, %v1044_v43 }
 0x1a2   :  { %v1060_v53 = vld [vmem:[#allocation2 + $0x10] sm:$0xff] }
 0x1a3   :  { %v1041_v50 = vadd.f32 %v1037_v44, %v1031_v46  ;;  %v1055_v52 = vadd.f32 %v1051_v45, %v1045_v47  ;;  %1042 = vst [vmem:[#allocation2] sm:$0xe] %v1040_v48  ;;  %1056 = vst [vmem:[#allocation2] sm:$0xe0] %v1054_v49  ;;  %v1076_v56 = vrot.slane %v1060_v53, 4 }
 0x1a4   :  { %v1061_v55 = vld [vmem:[#allocation2 + $0x18] sm:$0xff] }
 0x1a5   :  { %1043 = vst [vmem:[#allocation2 + $0x8] sm:$0xe] %v1041_v50  ;;  %1057 = vst [vmem:[#allocation2 + $0x8] sm:$0xe0] %v1055_v52  ;;  %v1082_v57 = vrot.slane %v1061_v55, 4  ;;  %v1077_v58 = vadd.f32 %v1076_v56, %v1060_v53 }
 0x1a7   :  { %v1083_v59 = vadd.f32 %v1082_v57, %v1061_v55  ;;  %v1078_v60 = vrot.slane %v1077_v58, 2 }
 0x1a9   :  { %v1084_v62 = vrot.slane %v1083_v59, 2  ;;  %v1079_v3 = vadd.f32 %v1078_v60, %v1077_v58 }
 0x1aa   :  { %v1058_v61 = vld [vmem:[#allocation2] sm:$0xff] }
 0x1ab   :  { %v1064_v0 = vrot.slane %v1058_v61, 4  ;;  %v1085_v5 = vadd.f32 %v1084_v62, %v1083_v59  ;;  %v1080_v9 = vrot.slane %v1079_v3, 1 }
 0x1ac   :  { %v1059_v63 = vld [vmem:[#allocation2 + $0x8] sm:$0xff] }
 0x1ad   :  { %v1070_v1 = vrot.slane %v1059_v63, 4  ;;  %v1065_v2 = vadd.f32 %v1064_v0, %v1058_v61  ;;  %v1086_v11 = vrot.slane %v1085_v5, 1  ;;  %v1081_v16 = vadd.f32 %v1080_v9, %v1079_v3 }
 0x1af   :  { %v1071_v4 = vadd.f32 %v1070_v1, %v1059_v63  ;;  %v1066_v6 = vrot.slane %v1065_v2, 2  ;;  %v1087_v18 = vadd.f32 %v1086_v11, %v1085_v5 }
 0x1b1   :  { %v1072_v7 = vrot.slane %v1071_v4, 2  ;;  %v1067_v8 = vadd.f32 %v1066_v6, %v1065_v2  ;;  %v1063_v6 = vld [vmem:[#allocation6] sm:$0x1] }
 0x1b3   :  { %v1073_v10 = vadd.f32 %v1072_v7, %v1071_v4  ;;  %v1068_v13 = vrot.slane %v1067_v8, 1 }
 0x1b5   :  { %v1074_v14 = vrot.slane %v1073_v10, 1  ;;  %v1069_v15 = vadd.f32 %v1068_v13, %v1067_v8  ;;  %v1195_v8 = vrot.slane %v1063_v6, %v1559_v29 }
 0x1b7   :  { %v1075_v17 = vadd.f32 %v1074_v14, %v1073_v10  ;;  %v1088_v19 = vadd.f32 %v1081_v16, %v1069_v15 }
 0x1b9   :  { %v1089_v12 = vadd.f32 %v1087_v18, %v1075_v17  ;;  %v1062_v17 = vld [vmem:[#allocation4] sm:$0x1] }
 0x1bb   :  { %v1090_v20 = vadd.f32 %v1089_v12, %v1088_v19 }
 0x1bd   :  { %1092 = vrot.lane.b32.xlu0 %v1090_v20, %s1469_s0 }
 0x22f   :  { %v1093_v21 = vpop.permute.xlu0 %1092 }
 0x230   :  { %v1095_v22 = vadd.f32 %v1093_v21, %v1090_v20 }
 0x232   :  { %1097 = vrot.lane.b32.xlu0 %v1095_v22, %s1470_s28 }
 0x2a4   :  { %v1098_v23 = vpop.permute.xlu0 %1097 }
 0x2a5   :  { %v1100_v51 = vadd.f32 %v1098_v23, %v1095_v22 }
 0x2a7   :  { %v1102_v24 = vmul.f32 0.0078125, %v1100_v51 }
 0x2a9   :  { %1104 = vrot.lane.b32.xlu1 %v1102_v24, %s1468_s18 }
 0x31b   :  { %v1105_v25 = vpop.permute.xlu1 %1104 }
 0x31c   :  { %v1108_v26 = vsel %vm1107_vm0, %v1102_v24, %v1105_v25 }
 0x31d   :  { %1110 = vrot.lane.b32.xlu1 %v1108_v26, %s1469_s0 }
 0x38f   :  { %v1111_v30 = vpop.permute.xlu1 %1110 }
 0x390   :  { %v1114_v31 = vsel %vm1113_vm1, %v1108_v26, %v1111_v30 }
 0x391   :  { %v1118_v32 = vrot.slane %v1114_v31, %v1559_v29 }
 0x393   :  { %v1563_v33 = vsub.f32 %v1058_v61, %v1118_v32  ;;  %v1565_v34 = vsub.f32 %v1059_v63, %v1118_v32  ;;  %v1567_v35 = vsub.f32 %v1060_v53, %v1118_v32  ;;  %v1569_v36 = vsub.f32 %v1061_v55, %v1118_v32 }
 0x395   :  { %v1123_v37 = vmul.f32 %v1563_v33, %v1563_v33  ;;  %v1124_v38 = vmul.f32 %v1565_v34, %v1565_v34  ;;  %v1125_v39 = vmul.f32 %v1567_v35, %v1567_v35  ;;  %v1126_v40 = vmul.f32 %v1569_v36, %v1569_v36 }
 0x397   :  { %v1127_v54 = vrot.slane %v1123_v37, 4  ;;  %v1133_v41 = vrot.slane %v1124_v38, 4  ;;  %v1139_v42 = vrot.slane %v1125_v39, 4  ;;  %v1145_v43 = vrot.slane %v1126_v40, 4 }
 0x399   :  { %v1128_v44 = vadd.f32 %v1127_v54, %v1123_v37  ;;  %v1134_v45 = vadd.f32 %v1133_v41, %v1124_v38  ;;  %v1140_v46 = vadd.f32 %v1139_v42, %v1125_v39  ;;  %v1146_v47 = vadd.f32 %v1145_v43, %v1126_v40 }
 0x39b   :  { %v1129_v48 = vrot.slane %v1128_v44, 2  ;;  %v1135_v49 = vrot.slane %v1134_v45, 2  ;;  %v1141_v50 = vrot.slane %v1140_v46, 2  ;;  %v1147_v52 = vrot.slane %v1146_v47, 2 }
 0x39d   :  { %v1130_v53 = vadd.f32 %v1129_v48, %v1128_v44  ;;  %v1136_v55 = vadd.f32 %v1135_v49, %v1134_v45  ;;  %v1142_v56 = vadd.f32 %v1141_v50, %v1140_v46  ;;  %v1148_v57 = vadd.f32 %v1147_v52, %v1146_v47 }
 0x39f   :  { %v1131_v58 = vrot.slane %v1130_v53, 1  ;;  %v1137_v59 = vrot.slane %v1136_v55, 1  ;;  %v1143_v60 = vrot.slane %v1142_v56, 1  ;;  %v1149_v61 = vrot.slane %v1148_v57, 1 }
 0x3a1   :  { %v1132_v62 = vadd.f32 %v1131_v58, %v1130_v53  ;;  %v1138_v63 = vadd.f32 %v1137_v59, %v1136_v55  ;;  %v1144_v0 = vadd.f32 %v1143_v60, %v1142_v56  ;;  %v1150_v1 = vadd.f32 %v1149_v61, %v1148_v57 }
 0x3a3   :  { %v1151_v2 = vadd.f32 %v1144_v0, %v1132_v62  ;;  %v1152_v3 = vadd.f32 %v1150_v1, %v1138_v63 }
 0x3a5   :  { %v1153_v4 = vadd.f32 %v1152_v3, %v1151_v2 }
 0x3a7   :  { %1155 = vrot.lane.b32.xlu0 %v1153_v4, %s1469_s0 }
 0x419   :  { %v1156_v5 = vpop.permute.xlu0 %1155 }
 0x41a   :  { %v1158_v7 = vadd.f32 %v1156_v5, %v1153_v4 }
 0x41c   :  { %1160 = vrot.lane.b32.xlu1 %v1158_v7, %s1470_s28 }
 0x420   :  { %1196 = vrot.lane.b32.xlu1 %v1195_v8, %s1468_s18 }
 0x48e   :  { %v1161_v9 = vpop.permute.xlu1 %1160 }
 0x48f   :  { %v1163_v10 = vadd.f32 %v1161_v9, %v1158_v7 }
 0x491   :  { %v1164_v11 = vmul.f32 0.0078125, %v1163_v10 }
 0x492   :  { %v1197_v13 = vpop.permute.xlu1 %1196 }
 0x493   :  { %v1165_v14 = vmax.f32 %v1164_v11, 0.0  ;;  %v1199_v15 = vsel %vm1107_vm0, %v1063_v6, %v1197_v13 }
 0x494   :  { %1201 = vrot.lane.b32.xlu1 %v1199_v15, %s1469_s0 }
 0x495   :  { %v1166_v16 = vadd.f32 1e-05, %v1165_v14 }
 0x497   :  { %1392 = vrsqrt.f32 %v1166_v16 }
 0x4a1   :  { %v1393_v18 = vpop.eup %1392 }
 0x4a2   :  { %v1168_v19 = vmul.f32 %v1393_v18, %v1062_v17 }
 0x4a4   :  { %v1173_v12 = vrot.slane %v1168_v19, %v1559_v29 }
 0x4a6   :  { %1174 = vrot.lane.b32.xlu0 %v1173_v12, %s1468_s18 }
 0x506   :  { %v1202_v22 = vpop.permute.xlu1 %1201 }
 0x507   :  { %v1204_v23 = vsel %vm1113_vm1, %v1199_v15, %v1202_v22 }
 0x508   :  { %v1208_v26 = vrot.slane %v1204_v23, %v1559_v29 }
 0x518   :  { %v1175_v20 = vpop.permute.xlu0 %1174 }
 0x519   :  { %v1177_v21 = vsel %vm1107_vm0, %v1168_v19, %v1175_v20 }
 0x51a   :  { %1179 = vrot.lane.b32.xlu0 %v1177_v21, %s1469_s0 }
 0x58c   :  { %v1180_v51 = vpop.permute.xlu0 %1179 }
 0x58d   :  { %v1182_v24 = vsel %vm1113_vm1, %v1177_v21, %v1180_v51 }
 0x58e   :  { %v1186_v25 = vrot.slane %v1182_v24, %v1559_v29 }
 0x590   :  { %v1187_v27 = vmul.f32 %v1186_v25, %v1563_v33  ;;  %v1188_v28 = vmul.f32 %v1186_v25, %v1565_v34  ;;  %v1189_v30 = vmul.f32 %v1186_v25, %v1567_v35  ;;  %v1190_v31 = vmul.f32 %v1186_v25, %v1569_v36 }
 0x592   :  { %v1209_v32 = vadd.f32 %v1208_v26, %v1187_v27  ;;  %v1210_v37 = vadd.f32 %v1208_v26, %v1188_v28  ;;  %v1211_v38 = vadd.f32 %v1208_v26, %v1189_v30  ;;  %v1212_v39 = vadd.f32 %v1208_v26, %v1190_v31 }
 0x594   :  { %vm1213_vm2 = vcmp.ge.f32.partialorder %v1209_v32, 0.0  ;;  %vm1214_vm3 = vcmp.ge.f32.partialorder %v1210_v37, 0.0  ;;  %vm1215_vm4 = vcmp.ge.f32.partialorder %v1211_v38, 0.0  ;;  %vm1216_vm5 = vcmp.ge.f32.partialorder %v1212_v39, 0.0 }
 0x595   :  { %v1217_v40 = vmul.f32 0.2, %v1209_v32  ;;  %v1218_v54 = vmul.f32 0.2, %v1210_v37  ;;  %v1219_v41 = vmul.f32 0.2, %v1211_v38 }
 0x596   :  { %v1220_v29 = vmul.f32 0.2, %v1212_v39 }
 0x597   :  { %v1221_v42 = vsel %vm1213_vm2, %v1209_v32, %v1217_v40  ;;  %v1222_v33 = vsel %vm1214_vm3, %v1210_v37, %v1218_v54  ;;  %v1223_v43 = vsel %vm1215_vm4, %v1211_v38, %v1219_v41 }
 0x598   :  { %v1224_v34 = vsel %vm1216_vm5, %v1212_v39, %v1220_v29  ;;  %v1381_v44 = vpack.c.bf16 %v1222_v33, %v1221_v42 }
 0x599   :  { %v1382_v35 = vpack.c.bf16 %v1224_v34, %v1223_v43 }
 0x59a   :  { %1241 = vst [vmem:[%s1607_s4] sm:$0xff] %v1381_v44 }
 0x59b   :  { %1242 = vst [vmem:[%s1607_s4 + $0x8] sm:$0xff] %v1382_v35 }
 0x59c   :  { %1247 = vsyncpa [#allocation5], 1 }
 0x59d   :  { %1248 = vsyncpa [#allocation7], 1 }

// kernel: generator_forward.7
= control target key start
LH: loop header
LB: loop body
LE: loop exit
PB: predicated region body
PF: predicated region fallthrough
CT: control target
= control target key end

     0   :  { %9 = vsyncpa [#allocation5], 0  ;;  %s1763_s0 = inlined_call_operand.vmem [shape: bf16[16,256], index: 0, kind: input, shape index: {}]   ;;  %s1764_s1 = inlined_call_operand.hbm [shape: f32[1,16], index: 1, kind: input, shape index: {}]   ;;  %s1765_s2 = inlined_call_operand.hbm [shape: f32[1,16], index: 2, kind: input, shape index: {}]   ;;  %s1766_s3 = inlined_call_operand.hbm [shape: bf16[256,1024], index: 3, kind: input, shape index: {}]   ;;  %s1767_s4 = inlined_call_operand.vmem [shape: bf16[16,512], index: 4, kind: output, shape index: {}]  }
   0x1   :  { %10 = vsyncpa [#allocation7], 0  ;;  %s1567_s15 = smov [#allocation6]   ;;  %s1568_s17 = smov [#allocation4]  }
   0x2   :  { %s29_s16 = sshll.u32 %s1567_s15, 4  ;;  %s19_s18 = sshll.u32 %s1568_s17, 4  ;;  %s30_s16 = int_to_ptr.vmem [resolvable:$true] %s29_s16  ;;  %s20_s18 = int_to_ptr.vmem [resolvable:$true] %s19_s18 }
   0x3   :  { %s1497_s21 = scalar_lea.hbm %s1765_s2, 16 }
   0x4   :  { %p1498_p0 = scmp.ne.s32.totalorder %s1765_s2, %s1497_s21  ;;  %p1501_p1 = scmp.lt.u32.totalorder %s1497_s21, %s1765_s2 }
   0x6   :  { %p1503_p2 = pnand %p1501_p1, %p1498_p0 }
   0x8   :  { %1506 = shalt.err (!%p1503_p2)
}
   0x9   :  { %s1507_s26 = scalar_lea.vmem %s30_s16, 16  ;;  %s1511_s27 = scalar_lea.vmem %s30_s16, 32 }
   0xa   :  { %p1508_p3 = scmp.ne.s32.totalorder %s30_s16, %s1507_s26  ;;  %p1512_p4 = scmp.lt.s32.totalorder %s30_s16, %s30_s16 }
   0xb   :  { %p1513_p5 = scmp.lt.s32.totalorder %s1511_s27, %s1507_s26 }
   0xd   :  { %p1514_p6 = por %p1513_p5, %p1512_p4 }
   0xf   :  { %p1515_p7 = pnand %p1514_p6, %p1508_p3 }
  0x11   :  { %1518 = shalt.err (!%p1515_p7)
}
  0x12   :  { %32 = dma.hbm_to_vmem [thread:$0]  %s1765_s2, 16, %s30_s16, [#allocation7]  }
  0x13   :  { %s1519_s6 = scalar_lea.hbm %s1764_s1, 16 }
  0x14   :  { %p1520_p8 = scmp.ne.s32.totalorder %s1764_s1, %s1519_s6  ;;  %p1523_p9 = scmp.lt.u32.totalorder %s1519_s6, %s1764_s1 }
  0x16   :  { %p1525_p10 = pnand %p1523_p9, %p1520_p8 }
  0x18   :  { %1528 = shalt.err (!%p1525_p10)
}
  0x19   :  { %s1529_s11 = scalar_lea.vmem %s20_s18, 16  ;;  %s1533_s12 = scalar_lea.vmem %s20_s18, 32 }
  0x1a   :  { %p1530_p11 = scmp.ne.s32.totalorder %s20_s18, %s1529_s11  ;;  %p1534_p12 = scmp.lt.s32.totalorder %s20_s18, %s20_s18 }
  0x1b   :  { %p1535_p13 = scmp.lt.s32.totalorder %s1533_s12, %s1529_s11 }
  0x1d   :  { %p1536_p0 = por %p1535_p13, %p1534_p12 }
  0x1f   :  { %p1537_p1 = pnand %p1536_p0, %p1530_p11 }
  0x21   :  { %1540 = shalt.err (!%p1537_p1)
}
  0x22   :  { %22 = dma.hbm_to_vmem [thread:$0]  %s1764_s1, 16, %s20_s18, [#allocation5]  }
  0x23   :  { %s1569_s14 = smov [#allocation8]   ;;  %s1541_s19 = scalar_lea.hbm %s1766_s3, 16384 }
  0x24   :  { %s38_s15 = sshll.u32 %s1569_s14, 4  ;;  %p1542_p2 = scmp.ne.s32.totalorder %s1766_s3, %s1541_s19  ;;  %s39_s15 = int_to_ptr.vmem [resolvable:$true] %s38_s15 }
  0x25   :  { %p1545_p3 = scmp.lt.u32.totalorder %s1541_s19, %s1766_s3 }
  0x27   :  { %p1547_p4 = pnand %p1545_p3, %p1542_p2 }
  0x29   :  { %1550 = shalt.err (!%p1547_p4)
}
  0x2a   :  { %s1551_s24 = scalar_lea.vmem %s39_s15, 16384  ;;  %p1556_p6 = scmp.lt.s32.totalorder %s39_s15, %s39_s15 }
  0x2b   :  { %p1552_p5 = scmp.ne.s32.totalorder %s39_s15, %s1551_s24  ;;  %p1557_p7 = scmp.lt.s32.totalorder %s1551_s24, %s1551_s24 }
  0x2d   :  { %p1558_p8 = por %p1557_p7, %p1556_p6 }
  0x2f   :  { %p1559_p9 = pnand %p1558_p8, %p1552_p5 }
  0x31   :  { %1562 = shalt.err (!%p1559_p9)
}
  0x32   :  { %s1570_s1 = smov 512   ;;  %s1571_s18 = smov 32  }
  0x33   :  { %44 = dma.hbm_to_vmem [thread:$0]  %s1766_s3, 16384, %s39_s15, [#allocation7], %s1570_s1, %s1570_s1, %s1571_s18  }
  0x34   :  { %1563 = dma.done.wait [#allocation5], 16  }
  0x35   :  { %1564 = vsyncadd [#allocation5], 4294967280 }
  0x36   :  { %1565 = dma.done.wait [#allocation7], 16400  }
  0x37   :  { %1566 = vsyncadd [#allocation7], 4294950896  ;;  %v56_v0 = vld [vmem:[#allocation8 + $0x8] sm:$0xff]  ;;  %v305_v6 = vld [vmem:[#allocation8 + $0x10] sm:$0xff]  ;;  %s1573_s30 = smov 96   ;;  %s1574_s5 = smov 112  }
  0x38   :  { %v57_v1 = vld [vmem:[#allocation8 + $0x28] sm:$0xff]  ;;  %v306_v7 = vld [vmem:[#allocation8 + $0x30] sm:$0xff]  ;;  %s1575_s6 = smov 16   ;;  %vm1140_vm0 = vcmask 130048   ;;  %vm1146_vm1 = vcmask 261120   ;;  %vm1152_vm2 = vcmask 523264  }
  0x39   :  { %v58_v2 = vld [vmem:[#allocation8 + $0x48] sm:$0xff]  ;;  %v1348_v3 = vcombine.high %v56_v0, %v57_v1  ;;  %v1347_v4 = vcombine.low %v56_v0, %v57_v1  ;;  %v1380_v9 = vcombine.high %v305_v6, %v306_v7  ;;  %v1379_v10 = vcombine.low %v305_v6, %v306_v7  ;;  %v307_v13 = vld [vmem:[#allocation8 + $0x50] sm:$0xff] }
  0x3a   :  { %v59_v5 = vld [vmem:[#allocation8 + $0x68] sm:$0xff]  ;;  %v308_v14 = vld [vmem:[#allocation8 + $0x70] sm:$0xff] }
  0x3b   :  { %v1350_v8 = vcombine.high %v58_v2, %v59_v5  ;;  %v60_v11 = vld [vmem:[#allocation8 + $0x88] sm:$0xff]  ;;  %258 = vmatprep.subr.bf16.mxu0 %v1348_v3  ;;  %v1349_v15 = vcombine.low %v58_v2, %v59_v5  ;;  %497 = vmatprep.subr.bf16.mxu1 %v1380_v9  ;;  %v1382_v16 = vcombine.high %v307_v13, %v308_v14  ;;  %v309_v17 = vld [vmem:[#allocation8 + $0x90] sm:$0xff] }
  0x3c   :  { %v61_v12 = vld [vmem:[#allocation8 + $0xa8] sm:$0xff]  ;;  %259 = vmatpush1.bf16.msra.mxu0 %v1347_v4  ;;  %v310_v18 = vld [vmem:[#allocation8 + $0xb0] sm:$0xff]  ;;  %498 = vmatpush1.bf16.msra.mxu1 %v1379_v10  ;;  %v1381_v20 = vcombine.low %v307_v13, %v308_v14 }
  0x3d   :  { %260 = vmatprep.subr.bf16.mxu0 %v1350_v8  ;;  %v1352_v19 = vcombine.high %v60_v11, %v61_v12  ;;  %499 = vmatprep.subr.bf16.mxu1 %v1382_v16  ;;  %v62_v21 = vld [vmem:[#allocation8 + $0xc8] sm:$0xff]  ;;  %v1384_v23 = vcombine.high %v309_v17, %v310_v18  ;;  %v311_v24 = vld [vmem:[#allocation8 + $0xd0] sm:$0xff]  ;;  %v1351_v26 = vcombine.low %v60_v11, %v61_v12 }
  0x3e   :  { %v63_v22 = vld [vmem:[#allocation8 + $0xe8] sm:$0xff]  ;;  %v312_v25 = vld [vmem:[#allocation8 + $0xf0] sm:$0xff]  ;;  %v1383_v28 = vcombine.low %v309_v17, %v310_v18 }
  0x3f   :  { %v1354_v27 = vcombine.high %v62_v21, %v63_v22  ;;  %v64_v29 = vld [vmem:[#allocation8 + $0x108] sm:$0xff]  ;;  %v1386_v31 = vcombine.high %v311_v24, %v312_v25  ;;  %v313_v32 = vld [vmem:[#allocation8 + $0x110] sm:$0xff]  ;;  %v1353_v34 = vcombine.low %v62_v21, %v63_v22  ;;  %v1385_v36 = vcombine.low %v311_v24, %v312_v25 }
  0x40   :  { %261 = vmatpush1.bf16.msra.mxu0 %v1349_v15  ;;  %500 = vmatpush1.bf16.msra.mxu1 %v1381_v20  ;;  %v65_v30 = vld [vmem:[#allocation8 + $0x128] sm:$0xff]  ;;  %v314_v33 = vld [vmem:[#allocation8 + $0x130] sm:$0xff] }
  0x41   :  { %262 = vmatprep.subr.bf16.mxu0 %v1352_v19  ;;  %501 = vmatprep.subr.bf16.mxu1 %v1384_v23  ;;  %v1356_v35 = vcombine.high %v64_v29, %v65_v30  ;;  %v66_v37 = vld [vmem:[#allocation8 + $0x148] sm:$0xff]  ;;  %v1388_v39 = vcombine.high %v313_v32, %v314_v33  ;;  %v315_v40 = vld [vmem:[#allocation8 + $0x150] sm:$0xff]  ;;  %v1355_v42 = vcombine.low %v64_v29, %v65_v30 }
  0x42   :  { %v67_v38 = vld [vmem:[#allocation8 + $0x168] sm:$0xff]  ;;  %v316_v41 = vld [vmem:[#allocation8 + $0x170] sm:$0xff]  ;;  %v1387_v44 = vcombine.low %v313_v32, %v314_v33 }
  0x43   :  { %v1358_v43 = vcombine.high %v66_v37, %v67_v38  ;;  %v68_v45 = vld [vmem:[#allocation8 + $0x188] sm:$0xff]  ;;  %v1390_v47 = vcombine.high %v315_v40, %v316_v41  ;;  %v317_v48 = vld [vmem:[#allocation8 + $0x190] sm:$0xff]  ;;  %v1357_v50 = vcombine.low %v66_v37, %v67_v38  ;;  %v1389_v52 = vcombine.low %v315_v40, %v316_v41 }
  0x44   :  { %263 = vmatpush1.bf16.msra.mxu0 %v1351_v26  ;;  %502 = vmatpush1.bf16.msra.mxu1 %v1383_v28  ;;  %v69_v46 = vld [vmem:[#allocation8 + $0x1a8] sm:$0xff]  ;;  %v318_v49 = vld [vmem:[#allocation8 + $0x1b0] sm:$0xff] }
  0x45   :  { %264 = vmatprep.subr.bf16.mxu0 %v1354_v27  ;;  %503 = vmatprep.subr.bf16.mxu1 %v1386_v31  ;;  %v1360_v51 = vcombine.high %v68_v45, %v69_v46  ;;  %v1641_v53 = vld [vmem:[%s1763_s0 + $0x4] ss:$8 sps:$4 sm:$0xff]   ;;  %v1392_v56 = vcombine.high %v317_v48, %v318_v49  ;;  %v319_v57 = vld [vmem:[#allocation8 + $0x1d0] sm:$0xff]  ;;  %v1359_v59 = vcombine.low %v68_v45, %v69_v46 }
  0x46   :  { %v70_v54 = vld [vmem:[#allocation8 + $0x1c8] sm:$0xff]  ;;  %v320_v58 = vld [vmem:[#allocation8 + $0x1f0] sm:$0xff]  ;;  %290 = vmatprep.mubr.bf16.mxu0 %v1641_v53  ;;  %529 = vmatprep.mubr.bf16.mxu1 %v1641_v53  ;;  %v1391_v61 = vcombine.low %v317_v48, %v318_v49 }
  0x47   :  { %v71_v55 = vld [vmem:[#allocation8 + $0x1e8] sm:$0xff]  ;;  %v1394_v0 = vcombine.high %v319_v57, %v320_v58  ;;  %v321_v1 = vld [vmem:[#allocation8 + $0x210] sm:$0xff]  ;;  %v1393_v5 = vcombine.low %v319_v57, %v320_v58 }
  0x48   :  { %265 = vmatpush1.bf16.msra.mxu0 %v1353_v34  ;;  %504 = vmatpush1.bf16.msra.mxu1 %v1385_v36  ;;  %v1362_v60 = vcombine.high %v70_v54, %v71_v55  ;;  %v72_v62 = vld [vmem:[#allocation8 + $0x208] sm:$0xff]  ;;  %v322_v2 = vld [vmem:[#allocation8 + $0x230] sm:$0xff]  ;;  %v1361_v3 = vcombine.low %v70_v54, %v71_v55 }
  0x49   :  { %266 = vmatprep.subr.bf16.mxu0 %v1356_v35  ;;  %505 = vmatprep.subr.bf16.mxu1 %v1388_v39  ;;  %v73_v63 = vld [vmem:[#allocation8 + $0x228] sm:$0xff]  ;;  %v1396_v8 = vcombine.high %v321_v1, %v322_v2  ;;  %v323_v9 = vld [vmem:[#allocation8 + $0x250] sm:$0xff]  ;;  %v1395_v13 = vcombine.low %v321_v1, %v322_v2  ;;  %v811_v2 = vld [vmem:[#allocation8 + $0x18] sm:$0xff] }
  0x4a   :  { %v1364_v4 = vcombine.high %v72_v62, %v73_v63  ;;  %v74_v6 = vld [vmem:[#allocation8 + $0x248] sm:$0xff]  ;;  %v324_v10 = vld [vmem:[#allocation8 + $0x270] sm:$0xff]  ;;  %v1363_v11 = vcombine.low %v72_v62, %v73_v63  ;;  %v544_v63 = vld [vmem:[#allocation8] sm:$0xff] }
  0x4b   :  { %v75_v7 = vld [vmem:[#allocation8 + $0x268] sm:$0xff]  ;;  %v1398_v16 = vcombine.high %v323_v9, %v324_v10  ;;  %v325_v17 = vld [vmem:[#allocation8 + $0x290] sm:$0xff]  ;;  %v1397_v21 = vcombine.low %v323_v9, %v324_v10  ;;  %v1648_v10 = vld [vmem:[%s1763_s0] ss:$8 sps:$4 sm:$0xff]   ;;  %s1572_s0 = smov 64  }
  0x4c   :  { %267 = vmatpush1.bf16.msra.mxu0 %v1355_v42  ;;  %506 = vmatpush1.bf16.msra.mxu1 %v1387_v44  ;;  %v1366_v12 = vcombine.high %v74_v6, %v75_v7  ;;  %v76_v14 = vld [vmem:[#allocation8 + $0x288] sm:$0xff]  ;;  %v326_v18 = vld [vmem:[#allocation8 + $0x2b0] sm:$0xff]  ;;  %v1365_v19 = vcombine.low %v74_v6, %v75_v7  ;;  %v546_v7 = vld [vmem:[#allocation8 + $0x40] sm:$0xff] }
  0x4d   :  { %268 = vmatprep.subr.bf16.mxu0 %v1358_v43  ;;  %507 = vmatprep.subr.bf16.mxu1 %v1390_v47  ;;  %v77_v15 = vld [vmem:[#allocation8 + $0x2a8] sm:$0xff]  ;;  %v1400_v24 = vcombine.high %v325_v17, %v326_v18  ;;  %v327_v25 = vld [vmem:[#allocation8 + $0x2d0] sm:$0xff]  ;;  %v1399_v29 = vcombine.low %v325_v17, %v326_v18  ;;  %v549_v17 = vld [vmem:[#allocation8 + $0xa0] sm:$0xff] }
  0x4e   :  { %v1368_v20 = vcombine.high %v76_v14, %v77_v15  ;;  %v78_v22 = vld [vmem:[#allocation8 + $0x2c8] sm:$0xff]  ;;  %v328_v26 = vld [vmem:[#allocation8 + $0x2f0] sm:$0xff]  ;;  %v1367_v27 = vcombine.low %v76_v14, %v77_v15 }
  0x4f   :  { %v79_v23 = vld [vmem:[#allocation8 + $0x2e8] sm:$0xff]  ;;  %v1402_v32 = vcombine.high %v327_v25, %v328_v26  ;;  %v329_v33 = vld [vmem:[#allocation8 + $0x310] sm:$0xff]  ;;  %v1401_v37 = vcombine.low %v327_v25, %v328_v26  ;;  %v551_v25 = vld [vmem:[#allocation8 + $0xe0] sm:$0xff] }
  0x50   :  { %269 = vmatpush1.bf16.msra.mxu0 %v1357_v50  ;;  %508 = vmatpush1.bf16.msra.mxu1 %v1389_v52  ;;  %v1370_v28 = vcombine.high %v78_v22, %v79_v23  ;;  %v80_v30 = vld [vmem:[#allocation8 + $0x308] sm:$0xff]  ;;  %v330_v34 = vld [vmem:[#allocation8 + $0x330] sm:$0xff]  ;;  %v1369_v35 = vcombine.low %v78_v22, %v79_v23 }
  0x51   :  { %270 = vmatprep.subr.bf16.mxu0 %v1360_v51  ;;  %509 = vmatprep.subr.bf16.mxu1 %v1392_v56  ;;  %v81_v31 = vld [vmem:[#allocation8 + $0x328] sm:$0xff]  ;;  %v1404_v40 = vcombine.high %v329_v33, %v330_v34  ;;  %v331_v41 = vld [vmem:[#allocation8 + $0x350] sm:$0xff]  ;;  %v1403_v45 = vcombine.low %v329_v33, %v330_v34  ;;  %v553_v33 = vld [vmem:[#allocation8 + $0x120] sm:$0xff] }
  0x52   :  { %v1372_v36 = vcombine.high %v80_v30, %v81_v31  ;;  %v82_v38 = vld [vmem:[#allocation8 + $0x348] sm:$0xff]  ;;  %v332_v42 = vld [vmem:[#allocation8 + $0x370] sm:$0xff]  ;;  %v1371_v43 = vcombine.low %v80_v30, %v81_v31 }
  0x53   :  { %v83_v39 = vld [vmem:[#allocation8 + $0x368] sm:$0xff]  ;;  %v1406_v48 = vcombine.high %v331_v41, %v332_v42  ;;  %v333_v49 = vld [vmem:[#allocation8 + $0x390] sm:$0xff]  ;;  %v1405_v54 = vcombine.low %v331_v41, %v332_v42  ;;  %v821_v42 = vld [vmem:[#allocation8 + $0x158] sm:$0xff] }
  0x54   :  { %271 = vmatpush1.bf16.msra.mxu0 %v1359_v59  ;;  %510 = vmatpush1.bf16.msra.mxu1 %v1391_v61  ;;  %v1374_v44 = vcombine.high %v82_v38, %v83_v39  ;;  %v84_v46 = vld [vmem:[#allocation8 + $0x388] sm:$0xff]  ;;  %v334_v50 = vld [vmem:[#allocation8 + $0x3b0] sm:$0xff]  ;;  %v1373_v51 = vcombine.low %v82_v38, %v83_v39 }
  0x55   :  { %272 = vmatprep.subr.bf16.mxu0 %v1362_v60  ;;  %511 = vmatprep.subr.bf16.mxu1 %v1394_v0  ;;  %v85_v47 = vld [vmem:[#allocation8 + $0x3a8] sm:$0xff]  ;;  %v1408_v57 = vcombine.high %v333_v49, %v334_v50  ;;  %v335_v58 = vld [vmem:[#allocation8 + $0x3d0] sm:$0xff]  ;;  %v1407_v62 = vcombine.low %v333_v49, %v334_v50  ;;  %v545_v0 = vld [vmem:[#allocation8 + $0x20] sm:$0xff] }
  0x56   :  { %v1376_v52 = vcombine.high %v84_v46, %v85_v47  ;;  %v86_v55 = vld [vmem:[#allocation8 + $0x3c8] sm:$0xff]  ;;  %v336_v59 = vld [vmem:[#allocation8 + $0x3f0] sm:$0xff]  ;;  %v1375_v60 = vcombine.low %v84_v46, %v85_v47  ;;  %v556_v47 = vld [vmem:[#allocation8 + $0x180] sm:$0xff] }
  0x57   :  { %v87_v56 = vld [vmem:[#allocation8 + $0x3e8] sm:$0xff]  ;;  %v1410_v1 = vcombine.high %v335_v58, %v336_v59  ;;  %v1409_v6 = vcombine.low %v335_v58, %v336_v59  ;;  %v823_v50 = vld [vmem:[#allocation8 + $0x198] sm:$0xff] }
  0x58   :  { %273 = vmatpush1.bf16.msra.mxu0 %v1361_v3  ;;  %512 = vmatpush1.bf16.msra.mxu1 %v1393_v5  ;;  %v1378_v61 = vcombine.high %v86_v55, %v87_v56  ;;  %v812_v3 = vld [vmem:[#allocation8 + $0x38] sm:$0xff]  ;;  %v1412_v5 = vcombine.high %v544_v63, %v545_v0 }
  0x59   :  { %274 = vmatprep.subr.bf16.mxu0 %v1364_v4  ;;  %513 = vmatprep.subr.bf16.mxu1 %v1396_v8  ;;  %v1377_v4 = vcombine.low %v86_v55, %v87_v56  ;;  %v547_v8 = vld [vmem:[#allocation8 + $0x60] sm:$0xff]  ;;  %v1444_v9 = vcombine.high %v811_v2, %v812_v3  ;;  %v1443_v15 = vcombine.low %v811_v2, %v812_v3  ;;  %v825_v59 = vld [vmem:[#allocation8 + $0x1d8] sm:$0xff] }
  0x5a   :  { %v1414_v14 = vcombine.high %v546_v7, %v547_v8  ;;  %v558_v56 = vld [vmem:[#allocation8 + $0x1c0] sm:$0xff]  ;;  %v827_v3 = vld [vmem:[#allocation8 + $0x218] sm:$0xff] }
  0x5c   :  { %275 = vmatpush1.bf16.msra.mxu0 %v1363_v11  ;;  %514 = vmatpush1.bf16.msra.mxu1 %v1395_v13  ;;  %v813_v11 = vld [vmem:[#allocation8 + $0x58] sm:$0xff]  ;;  %v1411_v13 = vcombine.low %v544_v63, %v545_v0  ;;  %v560_v0 = vld [vmem:[#allocation8 + $0x200] sm:$0xff] }
  0x5d   :  { %276 = vmatprep.subr.bf16.mxu0 %v1366_v12  ;;  %515 = vmatprep.subr.bf16.mxu1 %v1398_v16  ;;  %v814_v12 = vld [vmem:[#allocation8 + $0x78] sm:$0xff]  ;;  %v548_v16 = vld [vmem:[#allocation8 + $0x80] sm:$0xff] }
  0x5e   :  { %v1446_v18 = vcombine.high %v813_v11, %v814_v12  ;;  %v1416_v22 = vcombine.high %v548_v16, %v549_v17  ;;  %v1445_v23 = vcombine.low %v813_v11, %v814_v12  ;;  %v829_v12 = vld [vmem:[#allocation8 + $0x258] sm:$0xff] }
  0x60   :  { %277 = vmatpush1.bf16.msra.mxu0 %v1365_v19  ;;  %516 = vmatpush1.bf16.msra.mxu1 %v1397_v21  ;;  %v815_v19 = vld [vmem:[#allocation8 + $0x98] sm:$0xff]  ;;  %v1413_v21 = vcombine.low %v546_v7, %v547_v8  ;;  %v562_v8 = vld [vmem:[#allocation8 + $0x240] sm:$0xff] }
  0x61   :  { %278 = vmatprep.subr.bf16.mxu0 %v1368_v20  ;;  %517 = vmatprep.subr.bf16.mxu1 %v1400_v24  ;;  %v816_v20 = vld [vmem:[#allocation8 + $0xb8] sm:$0xff]  ;;  %v550_v24 = vld [vmem:[#allocation8 + $0xc0] sm:$0xff] }
  0x62   :  { %v1448_v26 = vcombine.high %v815_v19, %v816_v20  ;;  %v1418_v30 = vcombine.high %v550_v24, %v551_v25  ;;  %v1447_v31 = vcombine.low %v815_v19, %v816_v20  ;;  %v831_v20 = vld [vmem:[#allocation8 + $0x298] sm:$0xff] }
  0x64   :  { %279 = vmatpush1.bf16.msra.mxu0 %v1367_v27  ;;  %518 = vmatpush1.bf16.msra.mxu1 %v1399_v29  ;;  %v817_v27 = vld [vmem:[#allocation8 + $0xd8] sm:$0xff]  ;;  %v1415_v29 = vcombine.low %v548_v16, %v549_v17  ;;  %v564_v17 = vld [vmem:[#allocation8 + $0x280] sm:$0xff] }
  0x65   :  { %280 = vmatprep.subr.bf16.mxu0 %v1370_v28  ;;  %519 = vmatprep.subr.bf16.mxu1 %v1402_v32  ;;  %v818_v28 = vld [vmem:[#allocation8 + $0xf8] sm:$0xff]  ;;  %v552_v32 = vld [vmem:[#allocation8 + $0x100] sm:$0xff] }
  0x66   :  { %v1450_v34 = vcombine.high %v817_v27, %v818_v28  ;;  %v1420_v38 = vcombine.high %v552_v32, %v553_v33  ;;  %v1449_v39 = vcombine.low %v817_v27, %v818_v28  ;;  %v833_v28 = vld [vmem:[#allocation8 + $0x2d8] sm:$0xff] }
  0x68   :  { %281 = vmatpush1.bf16.msra.mxu0 %v1369_v35  ;;  %520 = vmatpush1.bf16.msra.mxu1 %v1401_v37  ;;  %v819_v35 = vld [vmem:[#allocation8 + $0x118] sm:$0xff]  ;;  %v1417_v37 = vcombine.low %v550_v24, %v551_v25  ;;  %v566_v25 = vld [vmem:[#allocation8 + $0x2c0] sm:$0xff] }
  0x69   :  { %282 = vmatprep.subr.bf16.mxu0 %v1372_v36  ;;  %521 = vmatprep.subr.bf16.mxu1 %v1404_v40  ;;  %v820_v36 = vld [vmem:[#allocation8 + $0x138] sm:$0xff]  ;;  %v555_v40 = vld [vmem:[#allocation8 + $0x160] sm:$0xff] }
  0x6a   :  { %v1452_v41 = vcombine.high %v819_v35, %v820_v36  ;;  %v1451_v46 = vcombine.low %v819_v35, %v820_v36  ;;  %v835_v36 = vld [vmem:[#allocation8 + $0x318] sm:$0xff] }
  0x6c   :  { %283 = vmatpush1.bf16.msra.mxu0 %v1371_v43  ;;  %522 = vmatpush1.bf16.msra.mxu1 %v1403_v45  ;;  %v822_v43 = vld [vmem:[#allocation8 + $0x178] sm:$0xff] }
  0x6d   :  { %284 = vmatprep.subr.bf16.mxu0 %v1374_v44  ;;  %523 = vmatprep.subr.bf16.mxu1 %v1406_v48  ;;  %v1419_v44 = vcombine.low %v552_v32, %v553_v33  ;;  %v557_v48 = vld [vmem:[#allocation8 + $0x1a0] sm:$0xff]  ;;  %v1454_v49 = vcombine.high %v821_v42, %v822_v43  ;;  %v1453_v55 = vcombine.low %v821_v42, %v822_v43  ;;  %v837_v43 = vld [vmem:[#allocation8 + $0x358] sm:$0xff] }
  0x6e   :  { %v568_v33 = vld [vmem:[#allocation8 + $0x300] sm:$0xff] }
  0x70   :  { %285 = vmatpush1.bf16.msra.mxu0 %v1373_v51  ;;  %524 = vmatpush1.bf16.msra.mxu1 %v1405_v54  ;;  %v824_v51 = vld [vmem:[#allocation8 + $0x1b8] sm:$0xff]  ;;  %v1424_v54 = vcombine.high %v556_v47, %v557_v48 }
  0x71   :  { %286 = vmatprep.subr.bf16.mxu0 %v1376_v52  ;;  %525 = vmatprep.subr.bf16.mxu1 %v1408_v57  ;;  %v559_v57 = vld [vmem:[#allocation8 + $0x1e0] sm:$0xff]  ;;  %v1456_v58 = vcombine.high %v823_v50, %v824_v51  ;;  %v1455_v63 = vcombine.low %v823_v50, %v824_v51  ;;  %v839_v51 = vld [vmem:[#allocation8 + $0x398] sm:$0xff] }
  0x74   :  { %287 = vmatpush1.bf16.msra.mxu0 %v1375_v60  ;;  %526 = vmatpush1.bf16.msra.mxu1 %v1407_v62  ;;  %v826_v60 = vld [vmem:[#allocation8 + $0x1f8] sm:$0xff]  ;;  %v1426_v62 = vcombine.high %v558_v56, %v559_v57 }
  0x75   :  { %288 = vmatprep.subr.bf16.mxu0 %v1378_v61  ;;  %527 = vmatprep.subr.bf16.mxu1 %v1410_v1  ;;  %v1423_v61 = vcombine.low %v556_v47, %v557_v48  ;;  %v561_v1 = vld [vmem:[#allocation8 + $0x220] sm:$0xff]  ;;  %v1458_v2 = vcombine.high %v825_v59, %v826_v60  ;;  %v1457_v7 = vcombine.low %v825_v59, %v826_v60  ;;  %v841_v60 = vld [vmem:[#allocation8 + $0x3d8] sm:$0xff] }
  0x76   :  { %v572_v48 = vld [vmem:[#allocation8 + $0x380] sm:$0xff] }
  0x78   :  { %289 = vmatpush1.bf16.msra.mxu0 %v1377_v4  ;;  %528 = vmatpush1.bf16.msra.mxu1 %v1409_v6  ;;  %v828_v4 = vld [vmem:[#allocation8 + $0x238] sm:$0xff]  ;;  %v1428_v6 = vcombine.high %v560_v0, %v561_v1 }
  0x79   :  { %736 = vmatprep.subr.bf16.mxu0 %v1412_v5  ;;  %1003 = vmatprep.subr.bf16.mxu1 %v1444_v9  ;;  %v1425_v5 = vcombine.low %v558_v56, %v559_v57  ;;  %v563_v9 = vld [vmem:[#allocation8 + $0x260] sm:$0xff]  ;;  %v1460_v11 = vcombine.high %v827_v3, %v828_v4  ;;  %v1459_v16 = vcombine.low %v827_v3, %v828_v4 }
  0x7a   :  { %v574_v57 = vld [vmem:[#allocation8 + $0x3c0] sm:$0xff] }
  0x7b   :  { %291 = vmatmul.mubr.bf16.vlgmr.msra.gmra.mrb[0].mxu0 %v1648_v10  ;;  %530 = vmatmul.mubr.bf16.vlgmr.msra.gmra.mrb[0].mxu1 %v1648_v10 }
  0x7c   :  { %737 = vmatpush1.bf16.msra.mxu0 %v1411_v13  ;;  %1004 = vmatpush1.bf16.msra.mxu1 %v1443_v15  ;;  %v830_v13 = vld [vmem:[#allocation8 + $0x278] sm:$0xff]  ;;  %v1430_v15 = vcombine.high %v562_v8, %v563_v9 }
  0x7d   :  { %738 = vmatprep.subr.bf16.mxu0 %v1414_v14  ;;  %1005 = vmatprep.subr.bf16.mxu1 %v1446_v18  ;;  %v1427_v14 = vcombine.low %v560_v0, %v561_v1  ;;  %v565_v18 = vld [vmem:[#allocation8 + $0x2a0] sm:$0xff]  ;;  %v1462_v19 = vcombine.high %v829_v12, %v830_v13  ;;  %v1461_v24 = vcombine.low %v829_v12, %v830_v13 }
  0x7e   :  { %768 = vmatprep.mubr.bf16.mxu0 %v1641_v53  ;;  %1035 = vmatprep.mubr.bf16.mxu1 %v1641_v53  ;;  %v554_v53 = vld [vmem:[#allocation8 + $0x140] sm:$0xff] }
  0x7f   :  { %v1422_v45 = vcombine.high %v554_v53, %v555_v40  ;;  %v1421_v52 = vcombine.low %v554_v53, %v555_v40  ;;  %v570_v40 = vld [vmem:[#allocation8 + $0x340] sm:$0xff] }
  0x80   :  { %739 = vmatpush1.bf16.msra.mxu0 %v1413_v21  ;;  %1006 = vmatpush1.bf16.msra.mxu1 %v1445_v23  ;;  %v832_v21 = vld [vmem:[#allocation8 + $0x2b8] sm:$0xff]  ;;  %v1432_v23 = vcombine.high %v564_v17, %v565_v18 }
  0x81   :  { %740 = vmatprep.subr.bf16.mxu0 %v1416_v22  ;;  %1007 = vmatprep.subr.bf16.mxu1 %v1448_v26  ;;  %v1429_v22 = vcombine.low %v562_v8, %v563_v9  ;;  %v567_v26 = vld [vmem:[#allocation8 + $0x2e0] sm:$0xff]  ;;  %v1464_v27 = vcombine.high %v831_v20, %v832_v21  ;;  %v1463_v32 = vcombine.low %v831_v20, %v832_v21 }
  0x84   :  { %741 = vmatpush1.bf16.msra.mxu0 %v1415_v29  ;;  %1008 = vmatpush1.bf16.msra.mxu1 %v1447_v31  ;;  %v834_v29 = vld [vmem:[#allocation8 + $0x2f8] sm:$0xff]  ;;  %v1434_v31 = vcombine.high %v566_v25, %v567_v26 }
  0x85   :  { %742 = vmatprep.subr.bf16.mxu0 %v1418_v30  ;;  %1009 = vmatprep.subr.bf16.mxu1 %v1450_v34  ;;  %v1431_v30 = vcombine.low %v564_v17, %v565_v18  ;;  %v569_v34 = vld [vmem:[#allocation8 + $0x320] sm:$0xff]  ;;  %v1466_v35 = vcombine.high %v833_v28, %v834_v29  ;;  %v1465_v53 = vcombine.low %v833_v28, %v834_v29 }
  0x88   :  { %743 = vmatpush1.bf16.msra.mxu0 %v1417_v37  ;;  %1010 = vmatpush1.bf16.msra.mxu1 %v1449_v39  ;;  %v836_v37 = vld [vmem:[#allocation8 + $0x338] sm:$0xff]  ;;  %v1436_v39 = vcombine.high %v568_v33, %v569_v34 }
  0x89   :  { %744 = vmatprep.subr.bf16.mxu0 %v1420_v38  ;;  %1011 = vmatprep.subr.bf16.mxu1 %v1452_v41  ;;  %v1433_v38 = vcombine.low %v566_v25, %v567_v26  ;;  %v571_v41 = vld [vmem:[#allocation8 + $0x360] sm:$0xff]  ;;  %v1468_v42 = vcombine.high %v835_v36, %v836_v37  ;;  %v1467_v47 = vcombine.low %v835_v36, %v836_v37 }
  0x8c   :  { %745 = vmatpush1.bf16.msra.mxu0 %v1419_v44  ;;  %1012 = vmatpush1.bf16.msra.mxu1 %v1451_v46  ;;  %v838_v44 = vld [vmem:[#allocation8 + $0x378] sm:$0xff]  ;;  %v1438_v46 = vcombine.high %v570_v40, %v571_v41 }
  0x8d   :  { %746 = vmatprep.subr.bf16.mxu0 %v1422_v45  ;;  %1013 = vmatprep.subr.bf16.mxu1 %v1454_v49  ;;  %v1435_v45 = vcombine.low %v568_v33, %v569_v34  ;;  %v573_v49 = vld [vmem:[#allocation8 + $0x3a0] sm:$0xff]  ;;  %v1470_v50 = vcombine.high %v837_v43, %v838_v44  ;;  %v1469_v56 = vcombine.low %v837_v43, %v838_v44 }
  0x90   :  { %747 = vmatpush1.bf16.msra.mxu0 %v1421_v52  ;;  %1014 = vmatpush1.bf16.msra.mxu1 %v1453_v55  ;;  %v840_v52 = vld [vmem:[#allocation8 + $0x3b8] sm:$0xff]  ;;  %v1440_v55 = vcombine.high %v572_v48, %v573_v49 }
  0x91   :  { %748 = vmatprep.subr.bf16.mxu0 %v1424_v54  ;;  %1015 = vmatprep.subr.bf16.mxu1 %v1456_v58  ;;  %v1437_v54 = vcombine.low %v570_v40, %v571_v41  ;;  %v575_v58 = vld [vmem:[#allocation8 + $0x3e0] sm:$0xff]  ;;  %v1472_v59 = vcombine.high %v839_v51, %v840_v52  ;;  %v1471_v0 = vcombine.low %v839_v51, %v840_v52 }
  0x94   :  { %749 = vmatpush1.bf16.msra.mxu0 %v1423_v61  ;;  %1016 = vmatpush1.bf16.msra.mxu1 %v1455_v63  ;;  %v842_v61 = vld [vmem:[#allocation8 + $0x3f8] sm:$0xff]  ;;  %v1442_v63 = vcombine.high %v574_v57, %v575_v58 }
  0x95   :  { %750 = vmatprep.subr.bf16.mxu0 %v1426_v62  ;;  %1017 = vmatprep.subr.bf16.mxu1 %v1458_v2  ;;  %v1439_v62 = vcombine.low %v572_v48, %v573_v49  ;;  %v1474_v1 = vcombine.high %v841_v60, %v842_v61  ;;  %v1441_v2 = vcombine.low %v574_v57, %v575_v58 }
  0x96   :  { %v1473_v3 = vcombine.low %v841_v60, %v842_v61 }
  0x98   :  { %751 = vmatpush1.bf16.msra.mxu0 %v1425_v5  ;;  %1018 = vmatpush1.bf16.msra.mxu1 %v1457_v7 }
  0x99   :  { %752 = vmatprep.subr.bf16.mxu0 %v1428_v6  ;;  %1019 = vmatprep.subr.bf16.mxu1 %v1460_v11 }
  0x9c   :  { %753 = vmatpush1.bf16.msra.mxu0 %v1427_v14  ;;  %1020 = vmatpush1.bf16.msra.mxu1 %v1459_v16 }
  0x9d   :  { %754 = vmatprep.subr.bf16.mxu0 %v1430_v15  ;;  %1021 = vmatprep.subr.bf16.mxu1 %v1462_v19 }
  0xa0   :  { %755 = vmatpush1.bf16.msra.mxu0 %v1429_v22  ;;  %1022 = vmatpush1.bf16.msra.mxu1 %v1461_v24 }
  0xa1   :  { %756 = vmatprep.subr.bf16.mxu0 %v1432_v23  ;;  %1023 = vmatprep.subr.bf16.mxu1 %v1464_v27 }
  0xa4   :  { %757 = vmatpush1.bf16.msra.mxu0 %v1431_v30  ;;  %1024 = vmatpush1.bf16.msra.mxu1 %v1463_v32 }
  0xa5   :  { %758 = vmatprep.subr.bf16.mxu0 %v1434_v31  ;;  %1025 = vmatprep.subr.bf16.mxu1 %v1466_v35 }
  0xa8   :  { %759 = vmatpush1.bf16.msra.mxu0 %v1433_v38  ;;  %1026 = vmatpush1.bf16.msra.mxu1 %v1465_v53 }
  0xa9   :  { %760 = vmatprep.subr.bf16.mxu0 %v1436_v39  ;;  %1027 = vmatprep.subr.bf16.mxu1 %v1468_v42 }
  0xac   :  { %761 = vmatpush1.bf16.msra.mxu0 %v1435_v45  ;;  %1028 = vmatpush1.bf16.msra.mxu1 %v1467_v47 }
  0xad   :  { %762 = vmatprep.subr.bf16.mxu0 %v1438_v46  ;;  %1029 = vmatprep.subr.bf16.mxu1 %v1470_v50 }
  0xb0   :  { %763 = vmatpush1.bf16.msra.mxu0 %v1437_v54  ;;  %1030 = vmatpush1.bf16.msra.mxu1 %v1469_v56 }
  0xb1   :  { %764 = vmatprep.subr.bf16.mxu0 %v1440_v55  ;;  %1031 = vmatprep.subr.bf16.mxu1 %v1472_v59 }
  0xb4   :  { %765 = vmatpush1.bf16.msra.mxu0 %v1439_v62  ;;  %1032 = vmatpush1.bf16.msra.mxu1 %v1471_v0 }
  0xb5   :  { %766 = vmatprep.subr.bf16.mxu0 %v1442_v63  ;;  %1033 = vmatprep.subr.bf16.mxu1 %v1474_v1 }
  0xb8   :  { %767 = vmatpush1.bf16.msra.mxu0 %v1441_v2  ;;  %1034 = vmatpush1.bf16.msra.mxu1 %v1473_v3 }
  0xbb   :  { %769 = vmatmul.mubr.bf16.vlgmr.msra.gmra.mrb[4].mxu0 %v1648_v10  ;;  %1036 = vmatmul.mubr.bf16.vlgmr.msra.gmra.mrb[4].mxu1 %v1648_v10 }
 0x14e   :  { %v292_v4 = vpop.f32.mrb[0].mxu0  ;;  %v531_v6 = vpop.f32.mrb[0].mxu1 }
 0x14f   :  { %301 = vst [vmem:[#allocation2] sm:$0xff] %v292_v4  ;;  %v294_v5 = vpop.f32.mrb[1].mxu0  ;;  %540 = vst [vmem:[#allocation2 + $0x10] sm:$0xff] %v531_v6  ;;  %v533_v8 = vpop.f32.mrb[1].mxu1 }
 0x150   :  { %302 = vst [vmem:[#allocation2 + $0x8] sm:$0xff] %v294_v5  ;;  %v296_v7 = vpop.f32.mrb[2].mxu0  ;;  %541 = vst [vmem:[#allocation2 + $0x18] sm:$0xff] %v533_v8  ;;  %v535_v11 = vpop.f32.mrb[2].mxu1 }
 0x151   :  { %303 = vst [vmem:[#allocation2 + $0x20] sm:$0xff] %v296_v7  ;;  %v298_v9 = vpop.f32.mrb[3].mxu0  ;;  %542 = vst [vmem:[#allocation2 + $0x30] sm:$0xff] %v535_v11  ;;  %v537_v12 = vpop.f32.mrb[3].mxu1 }
 0x152   :  { %304 = vst [vmem:[#allocation2 + $0x28] sm:$0xff] %v298_v9  ;;  %543 = vst [vmem:[#allocation2 + $0x38] sm:$0xff] %v537_v12 }
 0x156   :  { %v783_v23 = vld [vmem:[#allocation2 + $0x10] sm:$0x7f]  ;;  %v1050_v39 = vld [vmem:[#allocation2] sm:$0xfe] }
 0x157   :  { %v784_v27 = vld [vmem:[#allocation2 + $0x18] sm:$0x7f]  ;;  %v1051_v41 = vld [vmem:[#allocation2 + $0x8] sm:$0xfe] }
 0x158   :  { %v797_v31 = vld [vmem:[#allocation2 + $0x30] sm:$0x7f]  ;;  %v1064_v45 = vld [vmem:[#allocation2 + $0x20] sm:$0xfe] }
 0x159   :  { %v798_v34 = vld [vmem:[#allocation2 + $0x38] sm:$0x7f]  ;;  %v1065_v48 = vld [vmem:[#allocation2 + $0x28] sm:$0xfe] }
 0x18e   :  { %v770_v13 = vpop.f32.mrb[4].mxu0  ;;  %v1037_v10 = vpop.f32.mrb[4].mxu1 }
 0x18f   :  { %779 = vst [vmem:[#allocation3] sm:$0xff] %v770_v13  ;;  %v772_v14 = vpop.f32.mrb[5].mxu0  ;;  %v1039_v16 = vpop.f32.mrb[5].mxu1 }
 0x190   :  { %780 = vst [vmem:[#allocation3 + $0x8] sm:$0xff] %v772_v14  ;;  %v774_v15 = vpop.f32.mrb[6].mxu0  ;;  %v1041_v18 = vpop.f32.mrb[6].mxu1 }
 0x191   :  { %781 = vst [vmem:[#allocation3 + $0x10] sm:$0xff] %v774_v15  ;;  %v776_v17 = vpop.f32.mrb[7].mxu0  ;;  %v1043_v19 = vpop.f32.mrb[7].mxu1 }
 0x192   :  { %782 = vst [vmem:[#allocation3 + $0x18] sm:$0xff] %v776_v17 }
 0x196   :  { %v785_v20 = vld [vmem:[#allocation3] sm:$0xfe] }
 0x197   :  { %v789_v21 = vrot.slane %v785_v20, 1  ;;  %1046 = vst [vmem:[#allocation3] sm:$0xff] %v1037_v10  ;;  %v786_v22 = vld [vmem:[#allocation3 + $0x8] sm:$0xfe] }
 0x198   :  { %v790_v24 = vrot.slane %v786_v22, 1  ;;  %1047 = vst [vmem:[#allocation3 + $0x8] sm:$0xff] %v1039_v16  ;;  %v799_v25 = vld [vmem:[#allocation3 + $0x10] sm:$0xfe] }
 0x199   :  { %v793_v26 = vadd.f32 %v789_v21, %v783_v23  ;;  %v803_v28 = vrot.slane %v799_v25, 1  ;;  %1048 = vst [vmem:[#allocation3 + $0x10] sm:$0xff] %v1041_v18  ;;  %v800_v29 = vld [vmem:[#allocation3 + $0x18] sm:$0xfe] }
 0x19a   :  { %v794_v30 = vadd.f32 %v790_v24, %v784_v27  ;;  %v804_v32 = vrot.slane %v800_v29, 1  ;;  %1049 = vst [vmem:[#allocation3 + $0x18] sm:$0xff] %v1043_v19 }
 0x19b   :  { %795 = vst [vmem:[#allocation2 + $0x10] sm:$0x7f] %v793_v26  ;;  %v807_v33 = vadd.f32 %v803_v28, %v797_v31 }
 0x19c   :  { %796 = vst [vmem:[#allocation2 + $0x18] sm:$0x7f] %v794_v30  ;;  %v808_v35 = vadd.f32 %v804_v32, %v798_v34 }
 0x19d   :  { %809 = vst [vmem:[#allocation2 + $0x30] sm:$0x7f] %v807_v33 }
 0x19e   :  { %v1052_v36 = vld [vmem:[#allocation3] sm:$0x7f]  ;;  %810 = vst [vmem:[#allocation2 + $0x38] sm:$0x7f] %v808_v35 }
 0x19f   :  { %v1056_v37 = vrot.slane %v1052_v36, 7  ;;  %v1053_v38 = vld [vmem:[#allocation3 + $0x8] sm:$0x7f] }
 0x1a0   :  { %v1057_v53 = vrot.slane %v1053_v38, 7  ;;  %v1066_v40 = vld [vmem:[#allocation3 + $0x10] sm:$0x7f]  ;;  %v1154_v38 = vlaneseq }
 0x1a1   :  { %v1060_v42 = vadd.f32 %v1056_v37, %v1050_v39  ;;  %v1070_v43 = vrot.slane %v1066_v40, 7  ;;  %v1067_v44 = vld [vmem:[#allocation3 + $0x18] sm:$0x7f] }
 0x1a2   :  { %v1061_v46 = vadd.f32 %v1057_v53, %v1051_v41  ;;  %v1071_v47 = vrot.slane %v1067_v44, 7  ;;  %v1656_v51 = vld [vmem:[#allocation2 + $0x10] sm:$0xff]  ;;  %v1155_v39 = vshrl.u32 %v1154_v38, 7 }
 0x1a3   :  { %1062 = vst [vmem:[#allocation2] sm:$0xfe] %v1060_v42  ;;  %v1074_v49 = vadd.f32 %v1070_v43, %v1064_v45  ;;  %v1660_v54 = vld [vmem:[#allocation2 + $0x18] sm:$0xff] }
 0x1a4   :  { %1063 = vst [vmem:[#allocation2 + $0x8] sm:$0xfe] %v1061_v46  ;;  %v1075_v50 = vadd.f32 %v1071_v47, %v1065_v48  ;;  %v1658_v52 = vld [vmem:[#allocation2 + $0x30] sm:$0xff]  ;;  %v1676_v53 = vsub.s32 0, %v1155_v39 }
 0x1a5   :  { %1076 = vst [vmem:[#allocation2 + $0x20] sm:$0xfe] %v1074_v49  ;;  %v1662_v55 = vld [vmem:[#allocation2 + $0x38] sm:$0xff]  ;;  %v1102_v56 = vadd.f32 %v1658_v52, %v1656_v51 }
 0x1a6   :  { %1077 = vst [vmem:[#allocation2 + $0x28] sm:$0xfe] %v1075_v50  ;;  %v1109_v57 = vadd.f32 %v1662_v55, %v1660_v54 }
 0x1a7   :  { %v1103_v58 = vrot.slane %v1102_v56, 4 }
 0x1a8   :  { %v1110_v59 = vrot.slane %v1109_v57, 4 }
 0x1a9   :  { %v1104_v60 = vadd.f32 %v1103_v58, %v1102_v56 }
 0x1aa   :  { %v1111_v61 = vadd.f32 %v1110_v59, %v1109_v57  ;;  %v1078_v62 = vld [vmem:[#allocation2] sm:$0xff] }
 0x1ab   :  { %v1079_v0 = vld [vmem:[#allocation2 + $0x8] sm:$0xff]  ;;  %v1105_v3 = vrot.slane %v1104_v60, 2 }
 0x1ac   :  { %v1082_v63 = vld [vmem:[#allocation2 + $0x20] sm:$0xff]  ;;  %v1112_v5 = vrot.slane %v1111_v61, 2 }
 0x1ad   :  { %v1083_v1 = vld [vmem:[#allocation2 + $0x28] sm:$0xff]  ;;  %v1088_v2 = vadd.f32 %v1082_v63, %v1078_v62  ;;  %v1106_v9 = vadd.f32 %v1105_v3, %v1104_v60 }
 0x1ae   :  { %v1095_v4 = vadd.f32 %v1083_v1, %v1079_v0  ;;  %v1113_v12 = vadd.f32 %v1112_v5, %v1111_v61 }
 0x1af   :  { %v1089_v6 = vrot.slane %v1088_v2, 4  ;;  %v1107_v15 = vrot.slane %v1106_v9, 1 }
 0x1b0   :  { %v1096_v7 = vrot.slane %v1095_v4, 4  ;;  %v1114_v17 = vrot.slane %v1113_v12, 1 }
 0x1b1   :  { %v1090_v8 = vadd.f32 %v1089_v6, %v1088_v2  ;;  %v1108_v21 = vadd.f32 %v1107_v15, %v1106_v9 }
 0x1b2   :  { %v1097_v11 = vadd.f32 %v1096_v7, %v1095_v4  ;;  %v1115_v23 = vadd.f32 %v1114_v17, %v1113_v12 }
 0x1b3   :  { %v1091_v13 = vrot.slane %v1090_v8, 2 }
 0x1b4   :  { %v1098_v14 = vrot.slane %v1097_v11, 2 }
 0x1b5   :  { %v1092_v10 = vadd.f32 %v1091_v13, %v1090_v8 }
 0x1b6   :  { %v1099_v16 = vadd.f32 %v1098_v14, %v1097_v11 }
 0x1b7   :  { %v1093_v18 = vrot.slane %v1092_v10, 1 }
 0x1b8   :  { %v1100_v19 = vrot.slane %v1099_v16, 1 }
 0x1b9   :  { %v1094_v20 = vadd.f32 %v1093_v18, %v1092_v10 }
 0x1ba   :  { %v1101_v22 = vadd.f32 %v1100_v19, %v1099_v16 }
 0x1bb   :  { %v1116_v24 = vadd.f32 %v1108_v21, %v1094_v20 }
 0x1bc   :  { %v1117_v25 = vadd.f32 %v1115_v23, %v1101_v22 }
 0x1be   :  { %v1118_v26 = vadd.f32 %v1117_v25, %v1116_v24 }
 0x1c0   :  { %1120 = vrot.lane.b32.xlu0 %v1118_v26, %s1572_s0 }
 0x232   :  { %v1121_v27 = vpop.permute.xlu0 %1120 }
 0x233   :  { %v1123_v28 = vadd.f32 %v1121_v27, %v1118_v26 }
 0x235   :  { %1125 = vrot.lane.b32.xlu0 %v1123_v28, %s1573_s30 }
 0x2a7   :  { %v1126_v29 = vpop.permute.xlu0 %1125 }
 0x2a8   :  { %v1128_v30 = vadd.f32 %v1126_v29, %v1123_v28 }
 0x2aa   :  { %1130 = vrot.lane.b32.xlu1 %v1128_v30, %s1574_s5 }
 0x31c   :  { %v1131_v31 = vpop.permute.xlu1 %1130 }
 0x31d   :  { %v1133_v32 = vadd.f32 %v1131_v31, %v1128_v30  ;;  %v1087_v30 = vld [vmem:[#allocation6] sm:$0x1] }
 0x31f   :  { %v1135_v33 = vmul.f32 0.001953125, %v1133_v32  ;;  %v1260_v32 = vrot.slane %v1087_v30, %v1676_v53 }
 0x321   :  { %1137 = vrot.lane.b32.xlu1 %v1135_v33, %s1575_s6 }
 0x393   :  { %v1138_v34 = vpop.permute.xlu1 %1137 }
 0x394   :  { %v1141_v35 = vsel %vm1140_vm0, %v1135_v33, %v1138_v34 }
 0x395   :  { %1143 = vrot.lane.b32.xlu0 %v1141_v35, %s1571_s18 }
 0x407   :  { %v1144_v36 = vpop.permute.xlu0 %1143 }
 0x408   :  { %v1147_v37 = vsel %vm1146_vm1, %v1141_v35, %v1144_v36 }
 0x409   :  { %1149 = vrot.lane.b32.xlu1 %v1147_v37, %s1572_s0 }
 0x47b   :  { %v1150_v40 = vpop.permute.xlu1 %1149 }
 0x47c   :  { %v1153_v41 = vsel %vm1152_vm2, %v1147_v37, %v1150_v40  ;;  %v1086_v40 = vld [vmem:[#allocation4] sm:$0x1] }
 0x47d   :  { %v1157_v42 = vrot.slane %v1153_v41, %v1676_v53 }
 0x47f   :  { %v1680_v43 = vsub.f32 %v1078_v62, %v1157_v42  ;;  %v1682_v44 = vsub.f32 %v1079_v0, %v1157_v42  ;;  %v1685_v45 = vsub.f32 %v1656_v51, %v1157_v42  ;;  %v1688_v46 = vsub.f32 %v1660_v54, %v1157_v42 }
 0x480   :  { %v1690_v47 = vsub.f32 %v1082_v63, %v1157_v42  ;;  %v1692_v48 = vsub.f32 %v1083_v1, %v1157_v42  ;;  %v1695_v49 = vsub.f32 %v1658_v52, %v1157_v42  ;;  %v1698_v50 = vsub.f32 %v1662_v55, %v1157_v42 }
 0x481   :  { %v1166_v56 = vmul.f32 %v1680_v43, %v1680_v43  ;;  %v1167_v51 = vmul.f32 %v1682_v44, %v1682_v44  ;;  %v1168_v54 = vmul.f32 %v1685_v45, %v1685_v45  ;;  %v1169_v57 = vmul.f32 %v1688_v46, %v1688_v46 }
 0x482   :  { %v1170_v58 = vmul.f32 %v1690_v47, %v1690_v47  ;;  %v1171_v52 = vmul.f32 %v1692_v48, %v1692_v48  ;;  %v1172_v55 = vmul.f32 %v1695_v49, %v1695_v49  ;;  %v1173_v59 = vmul.f32 %v1698_v50, %v1698_v50 }
 0x484   :  { %v1174_v60 = vadd.f32 %v1170_v58, %v1166_v56  ;;  %v1181_v61 = vadd.f32 %v1171_v52, %v1167_v51  ;;  %v1188_v62 = vadd.f32 %v1172_v55, %v1168_v54  ;;  %v1195_v63 = vadd.f32 %v1173_v59, %v1169_v57 }
 0x486   :  { %v1175_v0 = vrot.slane %v1174_v60, 4  ;;  %v1182_v1 = vrot.slane %v1181_v61, 4  ;;  %v1189_v2 = vrot.slane %v1188_v62, 4  ;;  %v1196_v3 = vrot.slane %v1195_v63, 4 }
 0x488   :  { %v1176_v4 = vadd.f32 %v1175_v0, %v1174_v60  ;;  %v1183_v5 = vadd.f32 %v1182_v1, %v1181_v61  ;;  %v1190_v6 = vadd.f32 %v1189_v2, %v1188_v62  ;;  %v1197_v7 = vadd.f32 %v1196_v3, %v1195_v63 }
 0x48a   :  { %v1177_v8 = vrot.slane %v1176_v4, 2  ;;  %v1184_v9 = vrot.slane %v1183_v5, 2  ;;  %v1191_v11 = vrot.slane %v1190_v6, 2  ;;  %v1198_v12 = vrot.slane %v1197_v7, 2 }
 0x48c   :  { %v1178_v13 = vadd.f32 %v1177_v8, %v1176_v4  ;;  %v1185_v14 = vadd.f32 %v1184_v9, %v1183_v5  ;;  %v1192_v10 = vadd.f32 %v1191_v11, %v1190_v6  ;;  %v1199_v15 = vadd.f32 %v1198_v12, %v1197_v7 }
 0x48e   :  { %v1179_v16 = vrot.slane %v1178_v13, 1  ;;  %v1186_v17 = vrot.slane %v1185_v14, 1  ;;  %v1193_v18 = vrot.slane %v1192_v10, 1  ;;  %v1200_v19 = vrot.slane %v1199_v15, 1 }
 0x490   :  { %v1180_v20 = vadd.f32 %v1179_v16, %v1178_v13  ;;  %v1187_v21 = vadd.f32 %v1186_v17, %v1185_v14  ;;  %v1194_v22 = vadd.f32 %v1193_v18, %v1192_v10  ;;  %v1201_v23 = vadd.f32 %v1200_v19, %v1199_v15 }
 0x492   :  { %v1202_v24 = vadd.f32 %v1194_v22, %v1180_v20  ;;  %v1203_v25 = vadd.f32 %v1201_v23, %v1187_v21 }
 0x494   :  { %v1204_v26 = vadd.f32 %v1203_v25, %v1202_v24 }
 0x496   :  { %1206 = vrot.lane.b32.xlu0 %v1204_v26, %s1572_s0 }
 0x508   :  { %v1207_v27 = vpop.permute.xlu0 %1206 }
 0x509   :  { %v1209_v28 = vadd.f32 %v1207_v27, %v1204_v26 }
 0x50b   :  { %1211 = vrot.lane.b32.xlu1 %v1209_v28, %s1573_s30 }
 0x57d   :  { %v1212_v29 = vpop.permute.xlu1 %1211 }
 0x57e   :  { %v1214_v31 = vadd.f32 %v1212_v29, %v1209_v28 }
 0x580   :  { %1216 = vrot.lane.b32.xlu0 %v1214_v31, %s1574_s5 }
 0x584   :  { %1261 = vrot.lane.b32.xlu0 %v1260_v32, %s1575_s6 }
 0x5f2   :  { %v1217_v33 = vpop.permute.xlu0 %1216 }
 0x5f3   :  { %v1219_v34 = vadd.f32 %v1217_v33, %v1214_v31 }
 0x5f5   :  { %v1220_v35 = vmul.f32 0.001953125, %v1219_v34 }
 0x5f6   :  { %v1262_v36 = vpop.permute.xlu0 %1261 }
 0x5f7   :  { %v1221_v37 = vmax.f32 %v1220_v35, 0.0  ;;  %v1264_v38 = vsel %vm1140_vm0, %v1087_v30, %v1262_v36 }
 0x5f8   :  { %1266 = vrot.lane.b32.xlu0 %v1264_v38, %s1571_s18 }
 0x5f9   :  { %v1222_v39 = vadd.f32 1e-05, %v1221_v37 }
 0x5fb   :  { %1495 = vrsqrt.f32 %v1222_v39 }
 0x605   :  { %v1496_v41 = vpop.eup %1495 }
 0x606   :  { %v1224_v42 = vmul.f32 %v1496_v41, %v1086_v40 }
 0x608   :  { %v1229_v56 = vrot.slane %v1224_v42, %v1676_v53 }
 0x60a   :  { %1230 = vrot.lane.b32.xlu1 %v1229_v56, %s1575_s6 }
 0x66a   :  { %v1267_v51 = vpop.permute.xlu0 %1266 }
 0x66b   :  { %v1269_v54 = vsel %vm1146_vm1, %v1264_v38, %v1267_v51 }
 0x66c   :  { %1271 = vrot.lane.b32.xlu0 %v1269_v54, %s1572_s0 }
 0x67c   :  { %v1231_v57 = vpop.permute.xlu1 %1230 }
 0x67d   :  { %v1233_v58 = vsel %vm1140_vm0, %v1224_v42, %v1231_v57 }
 0x67e   :  { %1235 = vrot.lane.b32.xlu1 %v1233_v58, %s1571_s18 }
 0x6de   :  { %v1272_v59 = vpop.permute.xlu0 %1271 }
 0x6df   :  { %v1274_v60 = vsel %vm1152_vm2, %v1269_v54, %v1272_v59 }
 0x6e0   :  { %v1278_v0 = vrot.slane %v1274_v60, %v1676_v53 }
 0x6f0   :  { %v1236_v52 = vpop.permute.xlu1 %1235 }
 0x6f1   :  { %v1238_v55 = vsel %vm1146_vm1, %v1233_v58, %v1236_v52 }
 0x6f2   :  { %1240 = vrot.lane.b32.xlu1 %v1238_v55, %s1572_s0 }
 0x764   :  { %v1241_v61 = vpop.permute.xlu1 %1240 }
 0x765   :  { %v1243_v62 = vsel %vm1152_vm2, %v1238_v55, %v1241_v61 }
 0x766   :  { %v1247_v63 = vrot.slane %v1243_v62, %v1676_v53 }
 0x768   :  { %v1248_v1 = vmul.f32 %v1247_v63, %v1680_v43  ;;  %v1249_v2 = vmul.f32 %v1247_v63, %v1682_v44  ;;  %v1250_v3 = vmul.f32 %v1247_v63, %v1685_v45  ;;  %v1251_v4 = vmul.f32 %v1247_v63, %v1688_v46 }
 0x769   :  { %v1252_v5 = vmul.f32 %v1247_v63, %v1690_v47  ;;  %v1253_v6 = vmul.f32 %v1247_v63, %v1692_v48  ;;  %v1254_v7 = vmul.f32 %v1247_v63, %v1695_v49  ;;  %v1255_v8 = vmul.f32 %v1247_v63, %v1698_v50 }
 0x76a   :  { %v1279_v9 = vadd.f32 %v1278_v0, %v1248_v1  ;;  %v1280_v11 = vadd.f32 %v1278_v0, %v1249_v2  ;;  %v1281_v12 = vadd.f32 %v1278_v0, %v1250_v3  ;;  %v1282_v53 = vadd.f32 %v1278_v0, %v1251_v4 }
 0x76b   :  { %v1283_v13 = vadd.f32 %v1278_v0, %v1252_v5  ;;  %v1284_v43 = vadd.f32 %v1278_v0, %v1253_v6  ;;  %v1285_v14 = vadd.f32 %v1278_v0, %v1254_v7  ;;  %v1286_v44 = vadd.f32 %v1278_v0, %v1255_v8 }
 0x76c   :  { %vm1287_vm3 = vcmp.ge.f32.partialorder %v1279_v9, 0.0  ;;  %vm1288_vm4 = vcmp.ge.f32.partialorder %v1280_v11, 0.0  ;;  %vm1289_vm5 = vcmp.ge.f32.partialorder %v1281_v12, 0.0  ;;  %vm1290_vm6 = vcmp.ge.f32.partialorder %v1282_v53, 0.0 }
 0x76d   :  { %vm1291_vm7 = vcmp.ge.f32.partialorder %v1283_v13, 0.0  ;;  %vm1292_vm8 = vcmp.ge.f32.partialorder %v1284_v43, 0.0  ;;  %vm1293_vm9 = vcmp.ge.f32.partialorder %v1285_v14, 0.0  ;;  %vm1294_vm10 = vcmp.ge.f32.partialorder %v1286_v44, 0.0 }
 0x76e   :  { %v1295_v45 = vmul.f32 0.2, %v1279_v9  ;;  %v1296_v46 = vmul.f32 0.2, %v1280_v11  ;;  %v1297_v47 = vmul.f32 0.2, %v1281_v12 }
 0x76f   :  { %v1298_v48 = vmul.f32 0.2, %v1282_v53  ;;  %v1299_v49 = vmul.f32 0.2, %v1283_v13  ;;  %v1300_v50 = vmul.f32 0.2, %v1284_v43 }
 0x770   :  { %v1301_v10 = vmul.f32 0.2, %v1285_v14  ;;  %v1302_v15 = vmul.f32 0.2, %v1286_v44  ;;  %v1303_v16 = vsel %vm1287_vm3, %v1279_v9, %v1295_v45  ;;  %v1304_v17 = vsel %vm1288_vm4, %v1280_v11, %v1296_v46 }
 0x771   :  { %v1305_v18 = vsel %vm1289_vm5, %v1281_v12, %v1297_v47  ;;  %v1306_v19 = vsel %vm1290_vm6, %v1282_v53, %v1298_v48  ;;  %v1307_v20 = vsel %vm1291_vm7, %v1283_v13, %v1299_v49  ;;  %v1308_v21 = vsel %vm1292_vm8, %v1284_v43, %v1300_v50 }
 0x772   :  { %v1309_v22 = vsel %vm1293_vm9, %v1285_v14, %v1301_v10  ;;  %v1310_v23 = vsel %vm1294_vm10, %v1286_v44, %v1302_v15  ;;  %v1479_v24 = vpack.c.bf16 %v1304_v17, %v1303_v16  ;;  %v1480_v25 = vpack.c.bf16 %v1306_v19, %v1305_v18 }
 0x773   :  { %v1481_v26 = vpack.c.bf16 %v1308_v21, %v1307_v20  ;;  %v1482_v27 = vpack.c.bf16 %v1310_v23, %v1309_v22 }
 0x774   :  { %1335 = vst [vmem:[%s1767_s4] sm:$0xff] %v1479_v24  ;;  %1336 = vst [vmem:[%s1767_s4 + $0x8] sm:$0xff] %v1480_v25 }
 0x775   :  { %1337 = vst [vmem:[%s1767_s4 + $0x10] sm:$0xff] %v1481_v26  ;;  %1338 = vst [vmem:[%s1767_s4 + $0x18] sm:$0xff] %v1482_v27 }
 0x776   :  { %1343 = vsyncpa [#allocation5], 1 }
 0x777   :  { %1344 = vsyncpa [#allocation7], 1 }

// kernel: generator_forward.8
= control target key start
LH: loop header
LB: loop body
LE: loop exit
PB: predicated region body
PF: predicated region fallthrough
CT: control target
= control target key end

     0   :  { %9 = vsyncpa [#allocation5], 0  ;;  %s2226_s0 = inlined_call_operand.vmem [shape: bf16[32,256], index: 0, kind: input, shape index: {}]   ;;  %s2227_s1 = inlined_call_operand.hbm [shape: f32[1,8], index: 1, kind: input, shape index: {}]   ;;  %s2228_s2 = inlined_call_operand.hbm [shape: f32[1,8], index: 2, kind: input, shape index: {}]   ;;  %s2229_s3 = inlined_call_operand.hbm [shape: bf16[256,1024], index: 3, kind: input, shape index: {}]   ;;  %s2230_s4 = inlined_call_operand.vmem [shape: bf16[32,512], index: 4, kind: output, shape index: {}]  }
   0x1   :  { %10 = vsyncpa [#allocation7], 0  ;;  %s1850_s15 = smov [#allocation6]   ;;  %s1851_s17 = smov [#allocation4]  }
   0x2   :  { %s29_s16 = sshll.u32 %s1850_s15, 4  ;;  %s19_s18 = sshll.u32 %s1851_s17, 4  ;;  %s30_s16 = int_to_ptr.vmem [resolvable:$true] %s29_s16  ;;  %s20_s18 = int_to_ptr.vmem [resolvable:$true] %s19_s18 }
   0x3   :  { %s1780_s21 = scalar_lea.hbm %s2228_s2, 16 }
   0x4   :  { %p1781_p0 = scmp.ne.s32.totalorder %s2228_s2, %s1780_s21  ;;  %p1784_p1 = scmp.lt.u32.totalorder %s1780_s21, %s2228_s2 }
   0x6   :  { %p1786_p2 = pnand %p1784_p1, %p1781_p0 }
   0x8   :  { %1789 = shalt.err (!%p1786_p2)
}
   0x9   :  { %s1790_s26 = scalar_lea.vmem %s30_s16, 16  ;;  %s1794_s27 = scalar_lea.vmem %s30_s16, 32 }
   0xa   :  { %p1791_p3 = scmp.ne.s32.totalorder %s30_s16, %s1790_s26  ;;  %p1795_p4 = scmp.lt.s32.totalorder %s30_s16, %s30_s16 }
   0xb   :  { %p1796_p5 = scmp.lt.s32.totalorder %s1794_s27, %s1790_s26 }
   0xd   :  { %p1797_p6 = por %p1796_p5, %p1795_p4 }
   0xf   :  { %p1798_p7 = pnand %p1797_p6, %p1791_p3 }
  0x11   :  { %1801 = shalt.err (!%p1798_p7)
}
  0x12   :  { %32 = dma.hbm_to_vmem [thread:$0]  %s2228_s2, 16, %s30_s16, [#allocation7]  }
  0x13   :  { %s1802_s6 = scalar_lea.hbm %s2227_s1, 16 }
  0x14   :  { %p1803_p8 = scmp.ne.s32.totalorder %s2227_s1, %s1802_s6  ;;  %p1806_p9 = scmp.lt.u32.totalorder %s1802_s6, %s2227_s1 }
  0x16   :  { %p1808_p10 = pnand %p1806_p9, %p1803_p8 }
  0x18   :  { %1811 = shalt.err (!%p1808_p10)
}
  0x19   :  { %s1812_s11 = scalar_lea.vmem %s20_s18, 16  ;;  %s1816_s12 = scalar_lea.vmem %s20_s18, 32 }
  0x1a   :  { %p1813_p11 = scmp.ne.s32.totalorder %s20_s18, %s1812_s11  ;;  %p1817_p12 = scmp.lt.s32.totalorder %s20_s18, %s20_s18 }
  0x1b   :  { %p1818_p13 = scmp.lt.s32.totalorder %s1816_s12, %s1812_s11 }
  0x1d   :  { %p1819_p0 = por %p1818_p13, %p1817_p12 }
  0x1f   :  { %p1820_p1 = pnand %p1819_p0, %p1813_p11 }
  0x21   :  { %1823 = shalt.err (!%p1820_p1)
}
  0x22   :  { %22 = dma.hbm_to_vmem [thread:$0]  %s2227_s1, 16, %s20_s18, [#allocation5]  }
  0x23   :  { %s1852_s14 = smov [#allocation8]   ;;  %s1824_s19 = scalar_lea.hbm %s2229_s3, 16384 }
  0x24   :  { %s38_s15 = sshll.u32 %s1852_s14, 4  ;;  %p1825_p2 = scmp.ne.s32.totalorder %s2229_s3, %s1824_s19  ;;  %s39_s15 = int_to_ptr.vmem [resolvable:$true] %s38_s15 }
  0x25   :  { %p1828_p3 = scmp.lt.u32.totalorder %s1824_s19, %s2229_s3 }
  0x27   :  { %p1830_p4 = pnand %p1828_p3, %p1825_p2 }
  0x29   :  { %1833 = shalt.err (!%p1830_p4)
}
  0x2a   :  { %s1834_s24 = scalar_lea.vmem %s39_s15, 16384  ;;  %p1839_p6 = scmp.lt.s32.totalorder %s39_s15, %s39_s15 }
  0x2b   :  { %p1835_p5 = scmp.ne.s32.totalorder %s39_s15, %s1834_s24  ;;  %p1840_p7 = scmp.lt.s32.totalorder %s1834_s24, %s1834_s24 }
  0x2d   :  { %p1841_p8 = por %p1840_p7, %p1839_p6 }
  0x2f   :  { %p1842_p9 = pnand %p1841_p8, %p1835_p5 }
  0x31   :  { %1845 = shalt.err (!%p1842_p9)
}
  0x32   :  { %s1853_s1 = smov 512   ;;  %s1854_s18 = smov 32  }
  0x33   :  { %44 = dma.hbm_to_vmem [thread:$0]  %s2229_s3, 16384, %s39_s15, [#allocation7], %s1853_s1, %s1853_s1, %s1854_s18  }
  0x34   :  { %1846 = dma.done.wait [#allocation5], 16  }
  0x35   :  { %1847 = vsyncadd [#allocation5], 4294967280 }
  0x36   :  { %1848 = dma.done.wait [#allocation7], 16400  }
  0x37   :  { %1849 = vsyncadd [#allocation7], 4294950896  ;;  %v58_v0 = vld [vmem:[#allocation8 + $0x8] sm:$0xff]  ;;  %v331_v6 = vld [vmem:[#allocation8 + $0x10] sm:$0xff]  ;;  %vm849_vm0 = vcmask 1046528   ;;  %vm1163_vm1 = vcmask 1040384  }
  0x38   :  { %v59_v1 = vld [vmem:[#allocation8 + $0x28] sm:$0xff]  ;;  %v332_v7 = vld [vmem:[#allocation8 + $0x30] sm:$0xff]  ;;  %s1856_s8 = smov 96   ;;  %s1857_s9 = smov 112   ;;  %vm1295_vm2 = vcmask 64512   ;;  %vm1301_vm3 = vcmask 130048  }
  0x39   :  { %v60_v2 = vld [vmem:[#allocation8 + $0x48] sm:$0xff]  ;;  %v1618_v3 = vcombine.high %v58_v0, %v59_v1  ;;  %v1617_v4 = vcombine.low %v58_v0, %v59_v1  ;;  %v1650_v9 = vcombine.high %v331_v6, %v332_v7  ;;  %v1649_v10 = vcombine.low %v331_v6, %v332_v7  ;;  %v333_v13 = vld [vmem:[#allocation8 + $0x50] sm:$0xff]  ;;  %s1858_s10 = smov 120   ;;  %s1859_s11 = smov 8  }
  0x3a   :  { %v61_v5 = vld [vmem:[#allocation8 + $0x68] sm:$0xff]  ;;  %v334_v14 = vld [vmem:[#allocation8 + $0x70] sm:$0xff]  ;;  %s1860_s12 = smov 16   ;;  %vm1307_vm4 = vcmask 261120   ;;  %vm1313_vm5 = vcmask 523264  }
  0x3b   :  { %v1620_v8 = vcombine.high %v60_v2, %v61_v5  ;;  %v62_v11 = vld [vmem:[#allocation8 + $0x88] sm:$0xff]  ;;  %270 = vmatprep.subr.bf16.mxu0 %v1618_v3  ;;  %v1619_v15 = vcombine.low %v60_v2, %v61_v5  ;;  %523 = vmatprep.subr.bf16.mxu1 %v1650_v9  ;;  %v1652_v16 = vcombine.high %v333_v13, %v334_v14  ;;  %v335_v17 = vld [vmem:[#allocation8 + $0x90] sm:$0xff] }
  0x3c   :  { %v63_v12 = vld [vmem:[#allocation8 + $0xa8] sm:$0xff]  ;;  %271 = vmatpush1.bf16.msra.mxu0 %v1617_v4  ;;  %v336_v18 = vld [vmem:[#allocation8 + $0xb0] sm:$0xff]  ;;  %524 = vmatpush1.bf16.msra.mxu1 %v1649_v10  ;;  %v1651_v20 = vcombine.low %v333_v13, %v334_v14 }
  0x3d   :  { %272 = vmatprep.subr.bf16.mxu0 %v1620_v8  ;;  %v1622_v19 = vcombine.high %v62_v11, %v63_v12  ;;  %525 = vmatprep.subr.bf16.mxu1 %v1652_v16  ;;  %v64_v21 = vld [vmem:[#allocation8 + $0xc8] sm:$0xff]  ;;  %v1654_v23 = vcombine.high %v335_v17, %v336_v18  ;;  %v337_v24 = vld [vmem:[#allocation8 + $0xd0] sm:$0xff]  ;;  %v1621_v26 = vcombine.low %v62_v11, %v63_v12 }
  0x3e   :  { %v65_v22 = vld [vmem:[#allocation8 + $0xe8] sm:$0xff]  ;;  %v338_v25 = vld [vmem:[#allocation8 + $0xf0] sm:$0xff]  ;;  %v1653_v28 = vcombine.low %v335_v17, %v336_v18 }
  0x3f   :  { %v1624_v27 = vcombine.high %v64_v21, %v65_v22  ;;  %v66_v29 = vld [vmem:[#allocation8 + $0x108] sm:$0xff]  ;;  %v1656_v31 = vcombine.high %v337_v24, %v338_v25  ;;  %v339_v32 = vld [vmem:[#allocation8 + $0x110] sm:$0xff]  ;;  %v1623_v34 = vcombine.low %v64_v21, %v65_v22  ;;  %v1655_v36 = vcombine.low %v337_v24, %v338_v25 }
  0x40   :  { %273 = vmatpush1.bf16.msra.mxu0 %v1619_v15  ;;  %526 = vmatpush1.bf16.msra.mxu1 %v1651_v20  ;;  %v67_v30 = vld [vmem:[#allocation8 + $0x128] sm:$0xff]  ;;  %v340_v33 = vld [vmem:[#allocation8 + $0x130] sm:$0xff] }
  0x41   :  { %274 = vmatprep.subr.bf16.mxu0 %v1622_v19  ;;  %527 = vmatprep.subr.bf16.mxu1 %v1654_v23  ;;  %v1626_v35 = vcombine.high %v66_v29, %v67_v30  ;;  %v68_v37 = vld [vmem:[#allocation8 + $0x148] sm:$0xff]  ;;  %v1658_v39 = vcombine.high %v339_v32, %v340_v33  ;;  %v341_v40 = vld [vmem:[#allocation8 + $0x150] sm:$0xff]  ;;  %v1625_v42 = vcombine.low %v66_v29, %v67_v30 }
  0x42   :  { %v69_v38 = vld [vmem:[#allocation8 + $0x168] sm:$0xff]  ;;  %v342_v41 = vld [vmem:[#allocation8 + $0x170] sm:$0xff]  ;;  %v1657_v44 = vcombine.low %v339_v32, %v340_v33 }
  0x43   :  { %v1628_v43 = vcombine.high %v68_v37, %v69_v38  ;;  %v70_v45 = vld [vmem:[#allocation8 + $0x188] sm:$0xff]  ;;  %v1660_v47 = vcombine.high %v341_v40, %v342_v41  ;;  %v343_v48 = vld [vmem:[#allocation8 + $0x190] sm:$0xff]  ;;  %v1627_v50 = vcombine.low %v68_v37, %v69_v38  ;;  %v1659_v52 = vcombine.low %v341_v40, %v342_v41 }
  0x44   :  { %275 = vmatpush1.bf16.msra.mxu0 %v1621_v26  ;;  %528 = vmatpush1.bf16.msra.mxu1 %v1653_v28  ;;  %v71_v46 = vld [vmem:[#allocation8 + $0x1a8] sm:$0xff]  ;;  %v344_v49 = vld [vmem:[#allocation8 + $0x1b0] sm:$0xff] }
  0x45   :  { %276 = vmatprep.subr.bf16.mxu0 %v1624_v27  ;;  %529 = vmatprep.subr.bf16.mxu1 %v1656_v31  ;;  %v1630_v51 = vcombine.high %v70_v45, %v71_v46  ;;  %v1926_v53 = vld [vmem:[%s2226_s0 + $0x4] ss:$8 sps:$4 sm:$0xff]   ;;  %v1662_v56 = vcombine.high %v343_v48, %v344_v49  ;;  %v345_v57 = vld [vmem:[#allocation8 + $0x1d0] sm:$0xff]  ;;  %v1629_v59 = vcombine.low %v70_v45, %v71_v46 }
  0x46   :  { %v72_v54 = vld [vmem:[#allocation8 + $0x1c8] sm:$0xff]  ;;  %v346_v58 = vld [vmem:[#allocation8 + $0x1f0] sm:$0xff]  ;;  %302 = vmatprep.mubr.bf16.mxu0 %v1926_v53  ;;  %555 = vmatprep.mubr.bf16.mxu1 %v1926_v53  ;;  %v1661_v61 = vcombine.low %v343_v48, %v344_v49 }
  0x47   :  { %v73_v55 = vld [vmem:[#allocation8 + $0x1e8] sm:$0xff]  ;;  %v1664_v0 = vcombine.high %v345_v57, %v346_v58  ;;  %v347_v1 = vld [vmem:[#allocation8 + $0x210] sm:$0xff]  ;;  %v1663_v5 = vcombine.low %v345_v57, %v346_v58 }
  0x48   :  { %277 = vmatpush1.bf16.msra.mxu0 %v1623_v34  ;;  %530 = vmatpush1.bf16.msra.mxu1 %v1655_v36  ;;  %v1632_v60 = vcombine.high %v72_v54, %v73_v55  ;;  %v74_v62 = vld [vmem:[#allocation8 + $0x208] sm:$0xff]  ;;  %v348_v2 = vld [vmem:[#allocation8 + $0x230] sm:$0xff]  ;;  %v1631_v3 = vcombine.low %v72_v54, %v73_v55 }
  0x49   :  { %278 = vmatprep.subr.bf16.mxu0 %v1626_v35  ;;  %531 = vmatprep.subr.bf16.mxu1 %v1658_v39  ;;  %v75_v63 = vld [vmem:[#allocation8 + $0x228] sm:$0xff]  ;;  %v1666_v8 = vcombine.high %v347_v1, %v348_v2  ;;  %v349_v9 = vld [vmem:[#allocation8 + $0x250] sm:$0xff]  ;;  %v1665_v13 = vcombine.low %v347_v1, %v348_v2  ;;  %v898_v2 = vld [vmem:[#allocation8 + $0x18] sm:$0xff] }
  0x4a   :  { %v1634_v4 = vcombine.high %v74_v62, %v75_v63  ;;  %v76_v6 = vld [vmem:[#allocation8 + $0x248] sm:$0xff]  ;;  %v350_v10 = vld [vmem:[#allocation8 + $0x270] sm:$0xff]  ;;  %v1633_v11 = vcombine.low %v74_v62, %v75_v63  ;;  %v584_v63 = vld [vmem:[#allocation8] sm:$0xff] }
  0x4b   :  { %v77_v7 = vld [vmem:[#allocation8 + $0x268] sm:$0xff]  ;;  %v1668_v16 = vcombine.high %v349_v9, %v350_v10  ;;  %v351_v17 = vld [vmem:[#allocation8 + $0x290] sm:$0xff]  ;;  %v1667_v21 = vcombine.low %v349_v9, %v350_v10  ;;  %v1933_v10 = vld [vmem:[%s2226_s0] ss:$8 sps:$4 sm:$0xff]  }
  0x4c   :  { %279 = vmatpush1.bf16.msra.mxu0 %v1625_v42  ;;  %532 = vmatpush1.bf16.msra.mxu1 %v1657_v44  ;;  %v1636_v12 = vcombine.high %v76_v6, %v77_v7  ;;  %v78_v14 = vld [vmem:[#allocation8 + $0x288] sm:$0xff]  ;;  %v352_v18 = vld [vmem:[#allocation8 + $0x2b0] sm:$0xff]  ;;  %v1635_v19 = vcombine.low %v76_v6, %v77_v7  ;;  %v586_v7 = vld [vmem:[#allocation8 + $0x40] sm:$0xff] }
  0x4d   :  { %280 = vmatprep.subr.bf16.mxu0 %v1628_v43  ;;  %533 = vmatprep.subr.bf16.mxu1 %v1660_v47  ;;  %v79_v15 = vld [vmem:[#allocation8 + $0x2a8] sm:$0xff]  ;;  %v1670_v24 = vcombine.high %v351_v17, %v352_v18  ;;  %v353_v25 = vld [vmem:[#allocation8 + $0x2d0] sm:$0xff]  ;;  %v1669_v29 = vcombine.low %v351_v17, %v352_v18  ;;  %v589_v17 = vld [vmem:[#allocation8 + $0xa0] sm:$0xff] }
  0x4e   :  { %v1638_v20 = vcombine.high %v78_v14, %v79_v15  ;;  %v80_v22 = vld [vmem:[#allocation8 + $0x2c8] sm:$0xff]  ;;  %v354_v26 = vld [vmem:[#allocation8 + $0x2f0] sm:$0xff]  ;;  %v1637_v27 = vcombine.low %v78_v14, %v79_v15 }
  0x4f   :  { %v81_v23 = vld [vmem:[#allocation8 + $0x2e8] sm:$0xff]  ;;  %v1672_v32 = vcombine.high %v353_v25, %v354_v26  ;;  %v355_v33 = vld [vmem:[#allocation8 + $0x310] sm:$0xff]  ;;  %v1671_v37 = vcombine.low %v353_v25, %v354_v26  ;;  %v590_v25 = vld [vmem:[#allocation8 + $0xc0] sm:$0xff] }
  0x50   :  { %281 = vmatpush1.bf16.msra.mxu0 %v1627_v50  ;;  %534 = vmatpush1.bf16.msra.mxu1 %v1659_v52  ;;  %v1640_v28 = vcombine.high %v80_v22, %v81_v23  ;;  %v82_v30 = vld [vmem:[#allocation8 + $0x308] sm:$0xff]  ;;  %v356_v34 = vld [vmem:[#allocation8 + $0x330] sm:$0xff]  ;;  %v1639_v35 = vcombine.low %v80_v22, %v81_v23  ;;  %v591_v26 = vld [vmem:[#allocation8 + $0xe0] sm:$0xff] }
  0x51   :  { %282 = vmatprep.subr.bf16.mxu0 %v1630_v51  ;;  %535 = vmatprep.subr.bf16.mxu1 %v1662_v56  ;;  %v83_v31 = vld [vmem:[#allocation8 + $0x328] sm:$0xff]  ;;  %v1674_v40 = vcombine.high %v355_v33, %v356_v34  ;;  %v357_v41 = vld [vmem:[#allocation8 + $0x350] sm:$0xff]  ;;  %v1673_v45 = vcombine.low %v355_v33, %v356_v34  ;;  %v592_v34 = vld [vmem:[#allocation8 + $0x100] sm:$0xff] }
  0x52   :  { %v1642_v36 = vcombine.high %v82_v30, %v83_v31  ;;  %v84_v38 = vld [vmem:[#allocation8 + $0x348] sm:$0xff]  ;;  %v358_v42 = vld [vmem:[#allocation8 + $0x370] sm:$0xff]  ;;  %v1641_v43 = vcombine.low %v82_v30, %v83_v31 }
  0x53   :  { %v85_v39 = vld [vmem:[#allocation8 + $0x368] sm:$0xff]  ;;  %v1676_v48 = vcombine.high %v357_v41, %v358_v42  ;;  %v359_v49 = vld [vmem:[#allocation8 + $0x390] sm:$0xff]  ;;  %v1675_v54 = vcombine.low %v357_v41, %v358_v42  ;;  %v594_v42 = vld [vmem:[#allocation8 + $0x140] sm:$0xff] }
  0x54   :  { %283 = vmatpush1.bf16.msra.mxu0 %v1629_v59  ;;  %536 = vmatpush1.bf16.msra.mxu1 %v1661_v61  ;;  %v1644_v44 = vcombine.high %v84_v38, %v85_v39  ;;  %v86_v46 = vld [vmem:[#allocation8 + $0x388] sm:$0xff]  ;;  %v360_v50 = vld [vmem:[#allocation8 + $0x3b0] sm:$0xff]  ;;  %v1643_v51 = vcombine.low %v84_v38, %v85_v39  ;;  %v907_v38 = vld [vmem:[#allocation8 + $0x138] sm:$0xff]  ;;  %v1687_v39 = vcombine.low %v590_v25, %v591_v26 }
  0x55   :  { %284 = vmatprep.subr.bf16.mxu0 %v1632_v60  ;;  %537 = vmatprep.subr.bf16.mxu1 %v1664_v0  ;;  %v87_v47 = vld [vmem:[#allocation8 + $0x3a8] sm:$0xff]  ;;  %v1678_v57 = vcombine.high %v359_v49, %v360_v50  ;;  %v361_v58 = vld [vmem:[#allocation8 + $0x3d0] sm:$0xff]  ;;  %v1677_v62 = vcombine.low %v359_v49, %v360_v50  ;;  %v585_v0 = vld [vmem:[#allocation8 + $0x20] sm:$0xff] }
  0x56   :  { %v1646_v52 = vcombine.high %v86_v46, %v87_v47  ;;  %v88_v55 = vld [vmem:[#allocation8 + $0x3c8] sm:$0xff]  ;;  %v362_v59 = vld [vmem:[#allocation8 + $0x3f0] sm:$0xff]  ;;  %v1645_v60 = vcombine.low %v86_v46, %v87_v47  ;;  %v909_v46 = vld [vmem:[#allocation8 + $0x178] sm:$0xff] }
  0x57   :  { %v89_v56 = vld [vmem:[#allocation8 + $0x3e8] sm:$0xff]  ;;  %v1680_v1 = vcombine.high %v361_v58, %v362_v59  ;;  %v1679_v6 = vcombine.low %v361_v58, %v362_v59  ;;  %v596_v50 = vld [vmem:[#allocation8 + $0x180] sm:$0xff] }
  0x58   :  { %285 = vmatpush1.bf16.msra.mxu0 %v1631_v3  ;;  %538 = vmatpush1.bf16.msra.mxu1 %v1663_v5  ;;  %v1648_v61 = vcombine.high %v88_v55, %v89_v56  ;;  %v899_v3 = vld [vmem:[#allocation8 + $0x38] sm:$0xff]  ;;  %v1682_v5 = vcombine.high %v584_v63, %v585_v0  ;;  %v1946_v30 = vld [vmem:[%s2226_s0 + $0x10] ss:$8 sps:$4 sm:$0xff]   ;;  %v599_v59 = vld [vmem:[#allocation8 + $0x1e0] sm:$0xff] }
  0x59   :  { %286 = vmatprep.subr.bf16.mxu0 %v1634_v4  ;;  %539 = vmatprep.subr.bf16.mxu1 %v1666_v8  ;;  %v1647_v4 = vcombine.low %v88_v55, %v89_v56  ;;  %v587_v8 = vld [vmem:[#allocation8 + $0x60] sm:$0xff]  ;;  %v1714_v9 = vcombine.high %v898_v2, %v899_v3  ;;  %v1713_v15 = vcombine.low %v898_v2, %v899_v3  ;;  %v911_v55 = vld [vmem:[#allocation8 + $0x1b8] sm:$0xff] }
  0x5a   :  { %v1684_v14 = vcombine.high %v586_v7, %v587_v8  ;;  %v1683_v22 = vcombine.low %v586_v7, %v587_v8  ;;  %v600_v2 = vld [vmem:[#allocation8 + $0x200] sm:$0xff] }
  0x5b   :  { %v601_v3 = vld [vmem:[#allocation8 + $0x220] sm:$0xff] }
  0x5c   :  { %287 = vmatpush1.bf16.msra.mxu0 %v1633_v11  ;;  %540 = vmatpush1.bf16.msra.mxu1 %v1665_v13  ;;  %v900_v11 = vld [vmem:[#allocation8 + $0x58] sm:$0xff]  ;;  %v1681_v13 = vcombine.low %v584_v63, %v585_v0  ;;  %v1698_v8 = vcombine.high %v600_v2, %v601_v3 }
  0x5d   :  { %288 = vmatprep.subr.bf16.mxu0 %v1636_v12  ;;  %541 = vmatprep.subr.bf16.mxu1 %v1668_v16  ;;  %v901_v12 = vld [vmem:[#allocation8 + $0x78] sm:$0xff]  ;;  %v588_v16 = vld [vmem:[#allocation8 + $0x80] sm:$0xff] }
  0x5e   :  { %v1716_v18 = vcombine.high %v900_v11, %v901_v12  ;;  %v1686_v23 = vcombine.high %v588_v16, %v589_v17  ;;  %v1685_v31 = vcombine.low %v588_v16, %v589_v17  ;;  %v1697_v16 = vcombine.low %v600_v2, %v601_v3 }
  0x60   :  { %289 = vmatpush1.bf16.msra.mxu0 %v1635_v19  ;;  %542 = vmatpush1.bf16.msra.mxu1 %v1667_v21  ;;  %v1938_v19 = vld [vmem:[%s2226_s0 + $0x14] ss:$8 sps:$4 sm:$0xff]   ;;  %s1855_s0 = smov 64  }
  0x61   :  { %290 = vmatprep.subr.bf16.mxu0 %v1638_v20  ;;  %543 = vmatprep.subr.bf16.mxu1 %v1670_v24  ;;  %v902_v20 = vld [vmem:[#allocation8 + $0x98] sm:$0xff]  ;;  %v1715_v24 = vcombine.low %v900_v11, %v901_v12  ;;  %v602_v11 = vld [vmem:[#allocation8 + $0x240] sm:$0xff] }
  0x62   :  { %v903_v21 = vld [vmem:[#allocation8 + $0xb8] sm:$0xff]  ;;  %v603_v12 = vld [vmem:[#allocation8 + $0x260] sm:$0xff] }
  0x63   :  { %v1717_v33 = vcombine.low %v902_v20, %v903_v21  ;;  %v1700_v17 = vcombine.high %v602_v11, %v603_v12 }
  0x64   :  { %291 = vmatpush1.bf16.msra.mxu0 %v1637_v27  ;;  %544 = vmatpush1.bf16.msra.mxu1 %v1669_v29  ;;  %v1718_v27 = vcombine.high %v902_v20, %v903_v21  ;;  %v905_v29 = vld [vmem:[#allocation8 + $0xf8] sm:$0xff]  ;;  %v604_v20 = vld [vmem:[#allocation8 + $0x280] sm:$0xff] }
  0x65   :  { %292 = vmatprep.subr.bf16.mxu0 %v1640_v28  ;;  %545 = vmatprep.subr.bf16.mxu1 %v1672_v32  ;;  %v904_v28 = vld [vmem:[#allocation8 + $0xd8] sm:$0xff]  ;;  %v1688_v32 = vcombine.high %v590_v25, %v591_v26  ;;  %v605_v21 = vld [vmem:[#allocation8 + $0x2a0] sm:$0xff]  ;;  %v1699_v25 = vcombine.low %v602_v11, %v603_v12 }
  0x66   :  { %v1719_v41 = vcombine.low %v904_v28, %v905_v29  ;;  %v1702_v26 = vcombine.high %v604_v20, %v605_v21 }
  0x68   :  { %293 = vmatpush1.bf16.msra.mxu0 %v1639_v35  ;;  %546 = vmatpush1.bf16.msra.mxu1 %v1671_v37  ;;  %v593_v35 = vld [vmem:[#allocation8 + $0x120] sm:$0xff]  ;;  %v906_v37 = vld [vmem:[#allocation8 + $0x118] sm:$0xff] }
  0x69   :  { %294 = vmatprep.subr.bf16.mxu0 %v1642_v36  ;;  %547 = vmatprep.subr.bf16.mxu1 %v1674_v40  ;;  %v1720_v36 = vcombine.high %v904_v28, %v905_v29  ;;  %v1690_v40 = vcombine.high %v592_v34, %v593_v35  ;;  %v1689_v47 = vcombine.low %v592_v34, %v593_v35  ;;  %v606_v28 = vld [vmem:[#allocation8 + $0x2c0] sm:$0xff] }
  0x6a   :  { %v1721_v49 = vcombine.low %v906_v37, %v907_v38  ;;  %v607_v29 = vld [vmem:[#allocation8 + $0x2e0] sm:$0xff]  ;;  %v1701_v34 = vcombine.low %v604_v20, %v605_v21 }
  0x6b   :  { %v1704_v35 = vcombine.high %v606_v28, %v607_v29 }
  0x6c   :  { %295 = vmatpush1.bf16.msra.mxu0 %v1641_v43  ;;  %548 = vmatpush1.bf16.msra.mxu1 %v1673_v45  ;;  %v595_v43 = vld [vmem:[#allocation8 + $0x160] sm:$0xff]  ;;  %v908_v45 = vld [vmem:[#allocation8 + $0x158] sm:$0xff] }
  0x6d   :  { %296 = vmatprep.subr.bf16.mxu0 %v1644_v44  ;;  %549 = vmatprep.subr.bf16.mxu1 %v1676_v48  ;;  %v1722_v44 = vcombine.high %v906_v37, %v907_v38  ;;  %v1692_v48 = vcombine.high %v594_v42, %v595_v43  ;;  %v1691_v56 = vcombine.low %v594_v42, %v595_v43  ;;  %v608_v37 = vld [vmem:[#allocation8 + $0x300] sm:$0xff] }
  0x6e   :  { %v1723_v58 = vcombine.low %v908_v45, %v909_v46  ;;  %v609_v38 = vld [vmem:[#allocation8 + $0x320] sm:$0xff]  ;;  %v1703_v42 = vcombine.low %v606_v28, %v607_v29 }
  0x6f   :  { %v1706_v43 = vcombine.high %v608_v37, %v609_v38 }
  0x70   :  { %297 = vmatpush1.bf16.msra.mxu0 %v1643_v51  ;;  %550 = vmatpush1.bf16.msra.mxu1 %v1675_v54  ;;  %v597_v51 = vld [vmem:[#allocation8 + $0x1a0] sm:$0xff]  ;;  %v910_v54 = vld [vmem:[#allocation8 + $0x198] sm:$0xff] }
  0x71   :  { %298 = vmatprep.subr.bf16.mxu0 %v1646_v52  ;;  %551 = vmatprep.subr.bf16.mxu1 %v1678_v57  ;;  %v1724_v52 = vcombine.high %v908_v45, %v909_v46  ;;  %v1694_v57 = vcombine.high %v596_v50, %v597_v51  ;;  %v1693_v63 = vcombine.low %v596_v50, %v597_v51  ;;  %v610_v45 = vld [vmem:[#allocation8 + $0x340] sm:$0xff] }
  0x72   :  { %v611_v46 = vld [vmem:[#allocation8 + $0x360] sm:$0xff]  ;;  %v1705_v50 = vcombine.low %v608_v37, %v609_v38 }
  0x73   :  { %v1708_v51 = vcombine.high %v610_v45, %v611_v46 }
  0x74   :  { %299 = vmatpush1.bf16.msra.mxu0 %v1645_v60  ;;  %552 = vmatpush1.bf16.msra.mxu1 %v1677_v62  ;;  %v1726_v60 = vcombine.high %v910_v54, %v911_v55  ;;  %v913_v62 = vld [vmem:[#allocation8 + $0x1f8] sm:$0xff] }
  0x75   :  { %300 = vmatprep.subr.bf16.mxu0 %v1648_v61  ;;  %553 = vmatprep.subr.bf16.mxu1 %v1680_v1  ;;  %v912_v61 = vld [vmem:[#allocation8 + $0x1d8] sm:$0xff]  ;;  %v1725_v1 = vcombine.low %v910_v54, %v911_v55  ;;  %v612_v54 = vld [vmem:[#allocation8 + $0x380] sm:$0xff] }
  0x76   :  { %v613_v55 = vld [vmem:[#allocation8 + $0x3a0] sm:$0xff] }
  0x77   :  { %v1709_v2 = vcombine.low %v612_v54, %v613_v55 }
  0x78   :  { %301 = vmatpush1.bf16.msra.mxu0 %v1647_v4  ;;  %554 = vmatpush1.bf16.msra.mxu1 %v1679_v6  ;;  %v1728_v4 = vcombine.high %v912_v61, %v913_v62  ;;  %v915_v6 = vld [vmem:[#allocation8 + $0x238] sm:$0xff] }
  0x79   :  { %776 = vmatprep.subr.bf16.mxu0 %v1682_v5  ;;  %1090 = vmatprep.subr.bf16.mxu1 %v1714_v9  ;;  %v914_v5 = vld [vmem:[#allocation8 + $0x218] sm:$0xff]  ;;  %v1727_v9 = vcombine.low %v912_v61, %v913_v62  ;;  %v614_v61 = vld [vmem:[#allocation8 + $0x3c0] sm:$0xff] }
  0x7a   :  { %v615_v62 = vld [vmem:[#allocation8 + $0x3e0] sm:$0xff] }
  0x7b   :  { %303 = vmatmul.mubr.bf16.vlgmr.msra.gmra.mrb[0].mxu0 %v1933_v10  ;;  %556 = vmatmul.mubr.bf16.vlgmr.msra.gmra.mrb[0].mxu1 %v1933_v10  ;;  %v1712_v3 = vcombine.high %v614_v61, %v615_v62 }
  0x7c   :  { %777 = vmatpush1.bf16.msra.mxu0 %v1681_v13  ;;  %1091 = vmatpush1.bf16.msra.mxu1 %v1713_v15  ;;  %v1730_v13 = vcombine.high %v914_v5, %v915_v6  ;;  %v917_v15 = vld [vmem:[#allocation8 + $0x278] sm:$0xff] }
  0x7d   :  { %778 = vmatprep.subr.bf16.mxu0 %v1684_v14  ;;  %1092 = vmatprep.subr.bf16.mxu1 %v1716_v18  ;;  %v916_v14 = vld [vmem:[#allocation8 + $0x258] sm:$0xff]  ;;  %v1729_v18 = vcombine.low %v914_v5, %v915_v6  ;;  %v1711_v6 = vcombine.low %v614_v61, %v615_v62 }
  0x7e   :  { %312 = vmatprep.mubr.bf16.mxu0 %v1938_v19  ;;  %565 = vmatprep.mubr.bf16.mxu1 %v1938_v19 }
  0x80   :  { %779 = vmatpush1.bf16.msra.mxu0 %v1683_v22  ;;  %1093 = vmatpush1.bf16.msra.mxu1 %v1715_v24  ;;  %v1732_v22 = vcombine.high %v916_v14, %v917_v15  ;;  %v919_v24 = vld [vmem:[#allocation8 + $0x2b8] sm:$0xff] }
  0x81   :  { %780 = vmatprep.subr.bf16.mxu0 %v1686_v23  ;;  %1094 = vmatprep.subr.bf16.mxu1 %v1718_v27  ;;  %v918_v23 = vld [vmem:[#allocation8 + $0x298] sm:$0xff]  ;;  %v1731_v27 = vcombine.low %v916_v14, %v917_v15 }
  0x83   :  { %313 = vmatmul.mubr.bf16.gmra.mrb[4].mxu0 %v1946_v30  ;;  %566 = vmatmul.mubr.bf16.gmra.mrb[4].mxu1 %v1946_v30 }
  0x84   :  { %781 = vmatpush1.bf16.msra.mxu0 %v1685_v31  ;;  %1095 = vmatpush1.bf16.msra.mxu1 %v1717_v33  ;;  %v1734_v31 = vcombine.high %v918_v23, %v919_v24  ;;  %v921_v33 = vld [vmem:[#allocation8 + $0x2f8] sm:$0xff] }
  0x85   :  { %782 = vmatprep.subr.bf16.mxu0 %v1688_v32  ;;  %1096 = vmatprep.subr.bf16.mxu1 %v1720_v36  ;;  %v920_v32 = vld [vmem:[#allocation8 + $0x2d8] sm:$0xff]  ;;  %v1733_v36 = vcombine.low %v918_v23, %v919_v24 }
  0x86   :  { %808 = vmatprep.mubr.bf16.mxu0 %v1926_v53  ;;  %1122 = vmatprep.mubr.bf16.mxu1 %v1926_v53  ;;  %v598_v53 = vld [vmem:[#allocation8 + $0x1c0] sm:$0xff] }
  0x87   :  { %v1696_v0 = vcombine.high %v598_v53, %v599_v59  ;;  %v1695_v7 = vcombine.low %v598_v53, %v599_v59  ;;  %v1707_v53 = vcombine.low %v610_v45, %v611_v46  ;;  %v1710_v59 = vcombine.high %v612_v54, %v613_v55 }
  0x88   :  { %783 = vmatpush1.bf16.msra.mxu0 %v1687_v39  ;;  %1097 = vmatpush1.bf16.msra.mxu1 %v1719_v41  ;;  %v1736_v39 = vcombine.high %v920_v32, %v921_v33  ;;  %v923_v41 = vld [vmem:[#allocation8 + $0x338] sm:$0xff] }
  0x89   :  { %784 = vmatprep.subr.bf16.mxu0 %v1690_v40  ;;  %1098 = vmatprep.subr.bf16.mxu1 %v1722_v44  ;;  %v922_v40 = vld [vmem:[#allocation8 + $0x318] sm:$0xff]  ;;  %v1735_v44 = vcombine.low %v920_v32, %v921_v33 }
  0x8c   :  { %785 = vmatpush1.bf16.msra.mxu0 %v1689_v47  ;;  %1099 = vmatpush1.bf16.msra.mxu1 %v1721_v49  ;;  %v1738_v47 = vcombine.high %v922_v40, %v923_v41  ;;  %v925_v49 = vld [vmem:[#allocation8 + $0x378] sm:$0xff] }
  0x8d   :  { %786 = vmatprep.subr.bf16.mxu0 %v1692_v48  ;;  %1100 = vmatprep.subr.bf16.mxu1 %v1724_v52  ;;  %v924_v48 = vld [vmem:[#allocation8 + $0x358] sm:$0xff]  ;;  %v1737_v52 = vcombine.low %v922_v40, %v923_v41 }
  0x90   :  { %787 = vmatpush1.bf16.msra.mxu0 %v1691_v56  ;;  %1101 = vmatpush1.bf16.msra.mxu1 %v1723_v58  ;;  %v1740_v56 = vcombine.high %v924_v48, %v925_v49  ;;  %v927_v58 = vld [vmem:[#allocation8 + $0x3b8] sm:$0xff] }
  0x91   :  { %788 = vmatprep.subr.bf16.mxu0 %v1694_v57  ;;  %1102 = vmatprep.subr.bf16.mxu1 %v1726_v60  ;;  %v926_v57 = vld [vmem:[#allocation8 + $0x398] sm:$0xff]  ;;  %v1739_v60 = vcombine.low %v924_v48, %v925_v49 }
  0x94   :  { %789 = vmatpush1.bf16.msra.mxu0 %v1693_v63  ;;  %1103 = vmatpush1.bf16.msra.mxu1 %v1725_v1  ;;  %v1742_v63 = vcombine.high %v926_v57, %v927_v58  ;;  %v929_v1 = vld [vmem:[#allocation8 + $0x3f8] sm:$0xff] }
  0x95   :  { %790 = vmatprep.subr.bf16.mxu0 %v1696_v0  ;;  %1104 = vmatprep.subr.bf16.mxu1 %v1728_v4  ;;  %v928_v0 = vld [vmem:[#allocation8 + $0x3d8] sm:$0xff]  ;;  %v1741_v4 = vcombine.low %v926_v57, %v927_v58 }
  0x96   :  { %v1744_v5 = vcombine.high %v928_v0, %v929_v1 }
  0x98   :  { %791 = vmatpush1.bf16.msra.mxu0 %v1695_v7  ;;  %1105 = vmatpush1.bf16.msra.mxu1 %v1727_v9  ;;  %v1743_v7 = vcombine.low %v928_v0, %v929_v1 }
  0x99   :  { %792 = vmatprep.subr.bf16.mxu0 %v1698_v8  ;;  %1106 = vmatprep.subr.bf16.mxu1 %v1730_v13 }
  0x9c   :  { %793 = vmatpush1.bf16.msra.mxu0 %v1697_v16  ;;  %1107 = vmatpush1.bf16.msra.mxu1 %v1729_v18 }
  0x9d   :  { %794 = vmatprep.subr.bf16.mxu0 %v1700_v17  ;;  %1108 = vmatprep.subr.bf16.mxu1 %v1732_v22 }
  0xa0   :  { %795 = vmatpush1.bf16.msra.mxu0 %v1699_v25  ;;  %1109 = vmatpush1.bf16.msra.mxu1 %v1731_v27 }
  0xa1   :  { %796 = vmatprep.subr.bf16.mxu0 %v1702_v26  ;;  %1110 = vmatprep.subr.bf16.mxu1 %v1734_v31 }
  0xa4   :  { %797 = vmatpush1.bf16.msra.mxu0 %v1701_v34  ;;  %1111 = vmatpush1.bf16.msra.mxu1 %v1733_v36 }
  0xa5   :  { %798 = vmatprep.subr.bf16.mxu0 %v1704_v35  ;;  %1112 = vmatprep.subr.bf16.mxu1 %v1736_v39 }
  0xa8   :  { %799 = vmatpush1.bf16.msra.mxu0 %v1703_v42  ;;  %1113 = vmatpush1.bf16.msra.mxu1 %v1735_v44 }
  0xa9   :  { %800 = vmatprep.subr.bf16.mxu0 %v1706_v43  ;;  %1114 = vmatprep.subr.bf16.mxu1 %v1738_v47 }
  0xac   :  { %801 = vmatpush1.bf16.msra.mxu0 %v1705_v50  ;;  %1115 = vmatpush1.bf16.msra.mxu1 %v1737_v52 }
  0xad   :  { %802 = vmatprep.subr.bf16.mxu0 %v1708_v51  ;;  %1116 = vmatprep.subr.bf16.mxu1 %v1740_v56 }
  0xb0   :  { %803 = vmatpush1.bf16.msra.mxu0 %v1707_v53  ;;  %1117 = vmatpush1.bf16.msra.mxu1 %v1739_v60 }
  0xb1   :  { %804 = vmatprep.subr.bf16.mxu0 %v1710_v59  ;;  %1118 = vmatprep.subr.bf16.mxu1 %v1742_v63 }
  0xb4   :  { %805 = vmatpush1.bf16.msra.mxu0 %v1709_v2  ;;  %1119 = vmatpush1.bf16.msra.mxu1 %v1741_v4 }
  0xb5   :  { %806 = vmatprep.subr.bf16.mxu0 %v1712_v3  ;;  %1120 = vmatprep.subr.bf16.mxu1 %v1744_v5 }
  0xb8   :  { %807 = vmatpush1.bf16.msra.mxu0 %v1711_v6  ;;  %1121 = vmatpush1.bf16.msra.mxu1 %v1743_v7 }
  0xbb   :  { %809 = vmatmul.mubr.bf16.vlgmr.msra.gmra.mrb[8].mxu0 %v1933_v10  ;;  %1123 = vmatmul.mubr.bf16.vlgmr.msra.gmra.mrb[8].mxu1 %v1933_v10 }
  0xbc   :  { %818 = vmatprep.mubr.bf16.mxu0 %v1938_v19  ;;  %1132 = vmatprep.mubr.bf16.mxu1 %v1938_v19 }
  0xc3   :  { %819 = vmatmul.mubr.bf16.gmra.mrb[12].mxu0 %v1946_v30  ;;  %1133 = vmatmul.mubr.bf16.gmra.mrb[12].mxu1 %v1946_v30 }
 0x14e   :  { %v304_v8 = vpop.f32.mrb[0].mxu0  ;;  %v1959_v11 = vpop.f32.mrb[0].mxu1 }
 0x14f   :  { %323 = vst [vmem:[#allocation2] sm:$0xff] %v304_v8  ;;  %v306_v9 = vpop.f32.mrb[1].mxu0  ;;  %v1963_v13 = vpop.f32.mrb[1].mxu1 }
 0x150   :  { %324 = vst [vmem:[#allocation2 + $0x8] sm:$0xff] %v306_v9  ;;  %v1961_v12 = vpop.f32.mrb[2].mxu0  ;;  %v561_v10 = vpop.f32.mrb[2].mxu1 }
 0x151   :  { %v1965_v14 = vpop.f32.mrb[3].mxu0  ;;  %578 = vst [vmem:[#allocation2 + $0x30] sm:$0xff] %v561_v10  ;;  %v563_v15 = vpop.f32.mrb[3].mxu1 }
 0x152   :  { %579 = vst [vmem:[#allocation2 + $0x38] sm:$0xff] %v563_v15 }
 0x156   :  { %v314_v19 = vpop.f32.mrb[4].mxu0  ;;  %v1967_v30 = vpop.f32.mrb[4].mxu1  ;;  %v1151_v29 = vld [vmem:[#allocation2] sm:$0xfe] }
 0x157   :  { %327 = vst [vmem:[#allocation2 + $0x40] sm:$0xff] %v314_v19  ;;  %v316_v16 = vpop.f32.mrb[5].mxu0  ;;  %v1971_v18 = vpop.f32.mrb[5].mxu1  ;;  %v1152_v35 = vld [vmem:[#allocation2 + $0x8] sm:$0xfe] }
 0x158   :  { %328 = vst [vmem:[#allocation2 + $0x48] sm:$0xff] %v316_v16  ;;  %v1969_v17 = vpop.f32.mrb[6].mxu0  ;;  %v571_v21 = vpop.f32.mrb[6].mxu1  ;;  %v839_v37 = vld [vmem:[#allocation2 + $0x30] sm:$0x7f] }
 0x159   :  { %v1973_v20 = vpop.f32.mrb[7].mxu0  ;;  %582 = vst [vmem:[#allocation2 + $0x70] sm:$0xff] %v571_v21  ;;  %v573_v22 = vpop.f32.mrb[7].mxu1  ;;  %v840_v42 = vld [vmem:[#allocation2 + $0x38] sm:$0x7f] }
 0x15a   :  { %583 = vst [vmem:[#allocation2 + $0x78] sm:$0xff] %v573_v22 }
 0x15e   :  { %v1182_v46 = vld [vmem:[#allocation2 + $0x40] sm:$0xfe] }
 0x15f   :  { %v1183_v51 = vld [vmem:[#allocation2 + $0x48] sm:$0xfe] }
 0x160   :  { %v870_v3 = vld [vmem:[#allocation2 + $0x70] sm:$0x7f] }
 0x161   :  { %v871_v19 = vld [vmem:[#allocation2 + $0x78] sm:$0x7f] }
 0x18e   :  { %v810_v23 = vpop.f32.mrb[8].mxu0  ;;  %v1975_v25 = vpop.f32.mrb[8].mxu1 }
 0x18f   :  { %829 = vst [vmem:[#allocation3] sm:$0xff] %v810_v23  ;;  %v812_v24 = vpop.f32.mrb[9].mxu0  ;;  %v1164_v27 = vrot.slane %v1975_v25, 7  ;;  %v1978_v28 = vpop.f32.mrb[9].mxu1 }
 0x190   :  { %830 = vst [vmem:[#allocation3 + $0x8] sm:$0xff] %v812_v24  ;;  %v814_v26 = vpop.f32.mrb[10].mxu0  ;;  %v1165_v32 = vrot.slane %v1978_v28, 7  ;;  %v1128_v34 = vpop.f32.mrb[10].mxu1 }
 0x191   :  { %v816_v31 = vpop.f32.mrb[11].mxu0  ;;  %v851_v33 = vrot.slane %v814_v26, 1  ;;  %v1174_v36 = vadd.f32 %v1164_v27, %v1151_v29  ;;  %1145 = vst [vmem:[#allocation3 + $0x10] sm:$0xff] %v1128_v34  ;;  %v1130_v39 = vpop.f32.mrb[11].mxu1 }
 0x192   :  { %v854_v38 = vrot.slane %v816_v31, 1  ;;  %v1175_v40 = vadd.f32 %v1165_v32, %v1152_v35  ;;  %1146 = vst [vmem:[#allocation3 + $0x18] sm:$0xff] %v1130_v39 }
 0x193   :  { %v862_v41 = vadd.f32 %v851_v33, %v839_v37  ;;  %1178 = vst [vmem:[#allocation2] sm:$0xfe] %v1174_v36 }
 0x194   :  { %v863_v43 = vadd.f32 %v854_v38, %v840_v42  ;;  %1179 = vst [vmem:[#allocation2 + $0x8] sm:$0xfe] %v1175_v40 }
 0x195   :  { %866 = vst [vmem:[#allocation2 + $0x30] sm:$0x7f] %v862_v41 }
 0x196   :  { %v841_v44 = vld [vmem:[#allocation3] sm:$0xfe]  ;;  %v820_v45 = vpop.f32.mrb[12].mxu0  ;;  %867 = vst [vmem:[#allocation2 + $0x38] sm:$0x7f] %v863_v43  ;;  %v1982_v50 = vpop.f32.mrb[12].mxu1 }
 0x197   :  { %v850_v47 = vrot.slane %v841_v44, 1  ;;  %1143 = vst [vmem:[#allocation3] sm:$0xff] %v1975_v25  ;;  %v842_v48 = vld [vmem:[#allocation3 + $0x8] sm:$0xfe]  ;;  %833 = vst [vmem:[#allocation3 + $0x20] sm:$0xff] %v820_v45  ;;  %v822_v49 = vpop.f32.mrb[13].mxu0 }
 0x198   :  { %v853_v52 = vrot.slane %v842_v48, 1  ;;  %1144 = vst [vmem:[#allocation3 + $0x8] sm:$0xff] %v1978_v28  ;;  %834 = vst [vmem:[#allocation3 + $0x28] sm:$0xff] %v822_v49  ;;  %v824_v54 = vpop.f32.mrb[14].mxu0  ;;  %v1194_v55 = vrot.slane %v1982_v50, 7  ;;  %v1136_v56 = vpop.f32.mrb[13].mxu1 }
 0x199   :  { %v852_v57 = vsel %vm849_vm0, %v850_v47, %v851_v33  ;;  %v1157_v58 = vld [vmem:[#allocation3 + $0x10] sm:$0x7f]  ;;  %v826_v53 = vpop.f32.mrb[15].mxu0  ;;  %v1195_v59 = vrot.slane %v1136_v56, 7  ;;  %v881_v60 = vrot.slane %v824_v54, 1  ;;  %v1138_v61 = vpop.f32.mrb[14].mxu1 }
 0x19a   :  { %v1988_v62 = vadd.f32 %v852_v57, %v1959_v11  ;;  %v1166_v63 = vrot.slane %v1157_v58, 7  ;;  %v855_v0 = vsel %vm849_vm0, %v853_v52, %v854_v38  ;;  %v1158_v1 = vld [vmem:[#allocation3 + $0x18] sm:$0x7f]  ;;  %v1204_v2 = vadd.f32 %v1194_v55, %v1182_v46  ;;  %1149 = vst [vmem:[#allocation3 + $0x30] sm:$0xff] %v1138_v61  ;;  %v1140_v4 = vpop.f32.mrb[15].mxu1  ;;  %v2008_v28 = vld [vmem:[#allocation2] sm:$0xff] }
 0x19b   :  { %v1992_v5 = vadd.f32 %v855_v0, %v1963_v13  ;;  %v1168_v6 = vrot.slane %v1158_v1, 7  ;;  %v1205_v7 = vadd.f32 %v1195_v59, %v1183_v51  ;;  %v892_v8 = vadd.f32 %v881_v60, %v870_v3  ;;  %1150 = vst [vmem:[#allocation3 + $0x38] sm:$0xff] %v1140_v4  ;;  %v2016_v34 = vld [vmem:[#allocation2 + $0x8] sm:$0xff] }
 0x19c   :  { %v1167_v9 = vsel %vm1163_vm1, %v1164_v27, %v1166_v63  ;;  %1208 = vst [vmem:[#allocation2 + $0x40] sm:$0xfe] %v1204_v2  ;;  %v884_v11 = vrot.slane %v826_v53, 1  ;;  %v2002_v22 = vld [vmem:[#allocation2 + $0x30] sm:$0xff] }
 0x19d   :  { %v1996_v10 = vadd.f32 %v1167_v9, %v1961_v12  ;;  %v1169_v15 = vsel %vm1163_vm1, %v1165_v32, %v1168_v6  ;;  %1209 = vst [vmem:[#allocation2 + $0x48] sm:$0xfe] %v1205_v7  ;;  %896 = vst [vmem:[#allocation2 + $0x70] sm:$0x7f] %v892_v8  ;;  %v2005_v12 = vld [vmem:[#allocation2 + $0x38] sm:$0xff] }
 0x19e   :  { %v2000_v16 = vadd.f32 %v1169_v15, %v1965_v14  ;;  %v872_v13 = vld [vmem:[#allocation3 + $0x20] sm:$0xfe]  ;;  %v893_v21 = vadd.f32 %v884_v11, %v871_v19  ;;  %v1248_v14 = vadd.f32 %v2002_v22, %v1988_v62 }
 0x19f   :  { %v880_v23 = vrot.slane %v872_v13, 1  ;;  %1147 = vst [vmem:[#allocation3 + $0x20] sm:$0xff] %v1982_v50  ;;  %v873_v24 = vld [vmem:[#allocation3 + $0x28] sm:$0xfe]  ;;  %v1230_v35 = vadd.f32 %v2008_v28, %v1996_v10 }
 0x1a0   :  { %v883_v25 = vrot.slane %v873_v24, 1  ;;  %1148 = vst [vmem:[#allocation3 + $0x28] sm:$0xff] %v1136_v56  ;;  %897 = vst [vmem:[#allocation2 + $0x78] sm:$0x7f] %v893_v21  ;;  %v1239_v39 = vadd.f32 %v2016_v34, %v2000_v16 }
 0x1a1   :  { %v882_v26 = vsel %vm849_vm0, %v880_v23, %v881_v60  ;;  %v1188_v27 = vld [vmem:[#allocation3 + $0x30] sm:$0x7f] }
 0x1a2   :  { %v2013_v29 = vadd.f32 %v882_v26, %v1967_v30  ;;  %v1196_v31 = vrot.slane %v1188_v27, 7  ;;  %v885_v32 = vsel %vm849_vm0, %v883_v25, %v884_v11  ;;  %v1189_v33 = vld [vmem:[#allocation3 + $0x38] sm:$0x7f]  ;;  %v1257_v30 = vadd.f32 %v2005_v12, %v1992_v5 }
 0x1a3   :  { %v2021_v36 = vadd.f32 %v885_v32, %v1971_v18  ;;  %v1198_v37 = vrot.slane %v1189_v33, 7  ;;  %v2023_v38 = vld [vmem:[#allocation2 + $0x40] sm:$0xff] }
 0x1a4   :  { %v1197_v40 = vsel %vm1163_vm1, %v1194_v55, %v1196_v31  ;;  %v2030_v41 = vld [vmem:[#allocation2 + $0x48] sm:$0xff]  ;;  %v2032_v42 = vld [vmem:[#allocation2 + $0x70] sm:$0xff]  ;;  %v1231_v43 = vadd.f32 %v1230_v35, %v2023_v38  ;;  %v1249_v18 = vadd.f32 %v1248_v14, %v2013_v29 }
 0x1a5   :  { %v2037_v44 = vadd.f32 %v1197_v40, %v1969_v17  ;;  %v1199_v45 = vsel %vm1163_vm1, %v1195_v59, %v1198_v37  ;;  %v1240_v46 = vadd.f32 %v1239_v39, %v2030_v41  ;;  %v1258_v47 = vadd.f32 %v1257_v30, %v2021_v36 }
 0x1a6   :  { %v2043_v48 = vadd.f32 %v1199_v45, %v1973_v20  ;;  %v1250_v49 = vadd.f32 %v1249_v18, %v2032_v42 }
 0x1a7   :  { %v2046_v50 = vld [vmem:[#allocation2 + $0x78] sm:$0xff]  ;;  %v1232_v51 = vadd.f32 %v1231_v43, %v2037_v44 }
 0x1a8   :  { %v1241_v52 = vadd.f32 %v1240_v46, %v2043_v48  ;;  %v1251_v54 = vrot.slane %v1250_v49, 4  ;;  %v1259_v17 = vadd.f32 %v1258_v47, %v2046_v50  ;;  %v1315_v46 = vlaneseq }
 0x1a9   :  { %v1233_v55 = vrot.slane %v1232_v51, 4 }
 0x1aa   :  { %v1242_v56 = vrot.slane %v1241_v52, 4  ;;  %v1252_v57 = vadd.f32 %v1251_v54, %v1250_v49  ;;  %v1260_v58 = vrot.slane %v1259_v17, 4  ;;  %v1316_v47 = vshrl.u32 %v1315_v46, 7 }
 0x1ab   :  { %v1234_v53 = vadd.f32 %v1233_v55, %v1232_v51 }
 0x1ac   :  { %v1243_v59 = vadd.f32 %v1242_v56, %v1241_v52  ;;  %v1253_v60 = vrot.slane %v1252_v57, 2  ;;  %v1261_v20 = vadd.f32 %v1260_v58, %v1259_v17  ;;  %v2062_v49 = vsub.s32 0, %v1316_v47 }
 0x1ad   :  { %v1235_v61 = vrot.slane %v1234_v53, 2 }
 0x1ae   :  { %v1244_v63 = vrot.slane %v1243_v59, 2  ;;  %v1254_v0 = vadd.f32 %v1253_v60, %v1252_v57  ;;  %v1262_v1 = vrot.slane %v1261_v20, 2 }
 0x1af   :  { %v1236_v2 = vadd.f32 %v1235_v61, %v1234_v53 }
 0x1b0   :  { %v1245_v3 = vadd.f32 %v1244_v63, %v1243_v59  ;;  %v1255_v4 = vrot.slane %v1254_v0, 1  ;;  %v1263_v6 = vadd.f32 %v1262_v1, %v1261_v20 }
 0x1b1   :  { %v1237_v7 = vrot.slane %v1236_v2, 1 }
 0x1b2   :  { %v1246_v8 = vrot.slane %v1245_v3, 1  ;;  %v1256_v9 = vadd.f32 %v1255_v4, %v1254_v0  ;;  %v1264_v11 = vrot.slane %v1263_v6, 1 }
 0x1b3   :  { %v1238_v15 = vadd.f32 %v1237_v7, %v1236_v2 }
 0x1b4   :  { %v1247_v19 = vadd.f32 %v1246_v8, %v1245_v3  ;;  %v1265_v13 = vadd.f32 %v1264_v11, %v1263_v6 }
 0x1b5   :  { %v1266_v21 = vadd.f32 %v1256_v9, %v1238_v15 }
 0x1b6   :  { %v1267_v23 = vadd.f32 %v1265_v13, %v1247_v19 }
 0x1b8   :  { %v1268_v24 = vadd.f32 %v1267_v23, %v1266_v21 }
 0x1ba   :  { %1270 = vrot.lane.b32.xlu0 %v1268_v24, %s1855_s0 }
 0x22c   :  { %v1271_v25 = vpop.permute.xlu0 %1270 }
 0x22d   :  { %v1273_v26 = vadd.f32 %v1271_v25, %v1268_v24 }
 0x22f   :  { %1275 = vrot.lane.b32.xlu0 %v1273_v26, %s1856_s8 }
 0x2a1   :  { %v1276_v27 = vpop.permute.xlu0 %1275 }
 0x2a2   :  { %v1278_v14 = vadd.f32 %v1276_v27, %v1273_v26 }
 0x2a4   :  { %1280 = vrot.lane.b32.xlu1 %v1278_v14, %s1857_s9 }
 0x316   :  { %v1281_v31 = vpop.permute.xlu1 %1280 }
 0x317   :  { %v1283_v32 = vadd.f32 %v1281_v31, %v1278_v14 }
 0x319   :  { %1285 = vrot.lane.b32.xlu1 %v1283_v32, %s1858_s10 }
 0x38b   :  { %v1286_v33 = vpop.permute.xlu1 %1285 }
 0x38c   :  { %v1288_v35 = vadd.f32 %v1286_v33, %v1283_v32 }
 0x38e   :  { %v1290_v37 = vmul.f32 0.00048828125, %v1288_v35 }
 0x390   :  { %1292 = vrot.lane.b32.xlu0 %v1290_v37, %s1859_s11 }
 0x402   :  { %v1293_v39 = vpop.permute.xlu0 %1292 }
 0x403   :  { %v1296_v30 = vsel %vm1295_vm2, %v1290_v37, %v1293_v39 }
 0x404   :  { %1298 = vrot.lane.b32.xlu1 %v1296_v30, %s1860_s12 }
 0x476   :  { %v1299_v40 = vpop.permute.xlu1 %1298 }
 0x477   :  { %v1302_v43 = vsel %vm1301_vm3, %v1296_v30, %v1299_v40 }
 0x478   :  { %1304 = vrot.lane.b32.xlu0 %v1302_v43, %s1854_s18 }
 0x4ea   :  { %v1305_v18 = vpop.permute.xlu0 %1304 }
 0x4eb   :  { %v1308_v45 = vsel %vm1307_vm4, %v1302_v43, %v1305_v18 }
 0x4ec   :  { %1310 = vrot.lane.b32.xlu1 %v1308_v45, %s1855_s0 }
 0x55e   :  { %v1311_v51 = vpop.permute.xlu1 %1310 }
 0x55f   :  { %v1314_v52 = vsel %vm1313_vm5, %v1308_v45, %v1311_v51 }
 0x560   :  { %v1318_v54 = vrot.slane %v1314_v52, %v2062_v49 }
 0x562   :  { %v2067_v17 = vsub.f32 %v2008_v28, %v1318_v54  ;;  %v2070_v55 = vsub.f32 %v2016_v34, %v1318_v54  ;;  %v2073_v56 = vsub.f32 %v1988_v62, %v1318_v54  ;;  %v2076_v57 = vsub.f32 %v1992_v5, %v1318_v54 }
 0x563   :  { %v2079_v58 = vsub.f32 %v1996_v10, %v1318_v54  ;;  %v2082_v53 = vsub.f32 %v2000_v16, %v1318_v54  ;;  %v2085_v59 = vsub.f32 %v2002_v22, %v1318_v54  ;;  %v2088_v28 = vsub.f32 %v2005_v12, %v1318_v54 }
 0x564   :  { %v2091_v34 = vsub.f32 %v2023_v38, %v1318_v54  ;;  %v2094_v62 = vsub.f32 %v2030_v41, %v1318_v54  ;;  %v2097_v5 = vsub.f32 %v2013_v29, %v1318_v54  ;;  %v2100_v10 = vsub.f32 %v2021_v36, %v1318_v54 }
 0x565   :  { %v2103_v16 = vsub.f32 %v2037_v44, %v1318_v54  ;;  %v2106_v22 = vsub.f32 %v2043_v48, %v1318_v54  ;;  %v2109_v12 = vsub.f32 %v2032_v42, %v1318_v54  ;;  %v2112_v38 = vsub.f32 %v2046_v50, %v1318_v54 }
 0x566   :  { %v1335_v41 = vmul.f32 %v2067_v17, %v2067_v17  ;;  %v1336_v29 = vmul.f32 %v2070_v55, %v2070_v55  ;;  %v1337_v36 = vmul.f32 %v2073_v56, %v2073_v56  ;;  %v1338_v44 = vmul.f32 %v2076_v57, %v2076_v57 }
 0x567   :  { %v1339_v48 = vmul.f32 %v2079_v58, %v2079_v58  ;;  %v1340_v42 = vmul.f32 %v2082_v53, %v2082_v53  ;;  %v1341_v50 = vmul.f32 %v2085_v59, %v2085_v59  ;;  %v1342_v60 = vmul.f32 %v2088_v28, %v2088_v28 }
 0x568   :  { %v1343_v20 = vmul.f32 %v2091_v34, %v2091_v34  ;;  %v1344_v61 = vmul.f32 %v2094_v62, %v2094_v62  ;;  %v1345_v63 = vmul.f32 %v2097_v5, %v2097_v5  ;;  %v1346_v0 = vmul.f32 %v2100_v10, %v2100_v10 }
 0x569   :  { %v1351_v1 = vadd.f32 %v1339_v48, %v1335_v41  ;;  %v1360_v2 = vadd.f32 %v1340_v42, %v1336_v29  ;;  %v1369_v3 = vadd.f32 %v1341_v50, %v1337_v36  ;;  %v1378_v4 = vadd.f32 %v1342_v60, %v1338_v44 }
 0x56a   :  { %v1347_v6 = vmul.f32 %v2103_v16, %v2103_v16  ;;  %v1348_v7 = vmul.f32 %v2106_v22, %v2106_v22  ;;  %v1349_v8 = vmul.f32 %v2109_v12, %v2109_v12  ;;  %v1350_v9 = vmul.f32 %v2112_v38, %v2112_v38 }
 0x56b   :  { %v1352_v11 = vadd.f32 %v1351_v1, %v1343_v20  ;;  %v1361_v15 = vadd.f32 %v1360_v2, %v1344_v61  ;;  %v1370_v19 = vadd.f32 %v1369_v3, %v1345_v63  ;;  %v1379_v13 = vadd.f32 %v1378_v4, %v1346_v0  ;;  %v1229_v2 = vld [vmem:[#allocation6] sm:$0x1] }
 0x56c   :  { %v1463_v4 = vrot.slane %v1229_v2, %v2062_v49 }
 0x56d   :  { %v1353_v21 = vadd.f32 %v1352_v11, %v1347_v6  ;;  %v1362_v23 = vadd.f32 %v1361_v15, %v1348_v7  ;;  %v1371_v24 = vadd.f32 %v1370_v19, %v1349_v8  ;;  %v1380_v25 = vadd.f32 %v1379_v13, %v1350_v9  ;;  %v1228_v13 = vld [vmem:[#allocation4] sm:$0x1] }
 0x56f   :  { %v1354_v26 = vrot.slane %v1353_v21, 4  ;;  %v1363_v27 = vrot.slane %v1362_v23, 4  ;;  %v1372_v14 = vrot.slane %v1371_v24, 4  ;;  %v1381_v31 = vrot.slane %v1380_v25, 4 }
 0x571   :  { %v1355_v32 = vadd.f32 %v1354_v26, %v1353_v21  ;;  %v1364_v33 = vadd.f32 %v1363_v27, %v1362_v23  ;;  %v1373_v35 = vadd.f32 %v1372_v14, %v1371_v24  ;;  %v1382_v37 = vadd.f32 %v1381_v31, %v1380_v25 }
 0x573   :  { %v1356_v39 = vrot.slane %v1355_v32, 2  ;;  %v1365_v30 = vrot.slane %v1364_v33, 2  ;;  %v1374_v40 = vrot.slane %v1373_v35, 2  ;;  %v1383_v43 = vrot.slane %v1382_v37, 2 }
 0x575   :  { %v1357_v18 = vadd.f32 %v1356_v39, %v1355_v32  ;;  %v1366_v45 = vadd.f32 %v1365_v30, %v1364_v33  ;;  %v1375_v46 = vadd.f32 %v1374_v40, %v1373_v35  ;;  %v1384_v47 = vadd.f32 %v1383_v43, %v1382_v37 }
 0x577   :  { %v1358_v51 = vrot.slane %v1357_v18, 1  ;;  %v1367_v52 = vrot.slane %v1366_v45, 1  ;;  %v1376_v54 = vrot.slane %v1375_v46, 1  ;;  %v1385_v41 = vrot.slane %v1384_v47, 1 }
 0x579   :  { %v1359_v29 = vadd.f32 %v1358_v51, %v1357_v18  ;;  %v1368_v36 = vadd.f32 %v1367_v52, %v1366_v45  ;;  %v1377_v44 = vadd.f32 %v1376_v54, %v1375_v46  ;;  %v1386_v48 = vadd.f32 %v1385_v41, %v1384_v47 }
 0x57b   :  { %v1387_v42 = vadd.f32 %v1377_v44, %v1359_v29  ;;  %v1388_v50 = vadd.f32 %v1386_v48, %v1368_v36 }
 0x57d   :  { %v1389_v60 = vadd.f32 %v1388_v50, %v1387_v42 }
 0x57f   :  { %1391 = vrot.lane.b32.xlu0 %v1389_v60, %s1855_s0 }
 0x5f1   :  { %v1392_v20 = vpop.permute.xlu0 %1391 }
 0x5f2   :  { %v1394_v61 = vadd.f32 %v1392_v20, %v1389_v60 }
 0x5f4   :  { %1396 = vrot.lane.b32.xlu1 %v1394_v61, %s1856_s8 }
 0x666   :  { %v1397_v63 = vpop.permute.xlu1 %1396 }
 0x667   :  { %v1399_v0 = vadd.f32 %v1397_v63, %v1394_v61 }
 0x669   :  { %1401 = vrot.lane.b32.xlu0 %v1399_v0, %s1857_s9 }
 0x6db   :  { %v1402_v1 = vpop.permute.xlu0 %1401 }
 0x6dc   :  { %v1404_v3 = vadd.f32 %v1402_v1, %v1399_v0 }
 0x6de   :  { %1406 = vrot.lane.b32.xlu1 %v1404_v3, %s1858_s10 }
 0x6e2   :  { %1464 = vrot.lane.b32.xlu1 %v1463_v4, %s1859_s11 }
 0x750   :  { %v1407_v6 = vpop.permute.xlu1 %1406 }
 0x751   :  { %v1409_v7 = vadd.f32 %v1407_v6, %v1404_v3 }
 0x753   :  { %v1410_v8 = vmul.f32 0.00048828125, %v1409_v7 }
 0x754   :  { %v1465_v9 = vpop.permute.xlu1 %1464 }
 0x755   :  { %v1411_v11 = vmax.f32 %v1410_v8, 0.0  ;;  %v1467_v15 = vsel %vm1295_vm2, %v1229_v2, %v1465_v9 }
 0x756   :  { %1469 = vrot.lane.b32.xlu1 %v1467_v15, %s1860_s12 }
 0x757   :  { %v1412_v19 = vadd.f32 1e-05, %v1411_v11 }
 0x759   :  { %1778 = vrsqrt.f32 %v1412_v19 }
 0x763   :  { %v1779_v21 = vpop.eup %1778 }
 0x764   :  { %v1414_v23 = vmul.f32 %v1779_v21, %v1228_v13 }
 0x766   :  { %v1419_v24 = vrot.slane %v1414_v23, %v2062_v49 }
 0x768   :  { %1420 = vrot.lane.b32.xlu0 %v1419_v24, %s1859_s11 }
 0x7c8   :  { %v1470_v25 = vpop.permute.xlu1 %1469 }
 0x7c9   :  { %v1472_v26 = vsel %vm1301_vm3, %v1467_v15, %v1470_v25 }
 0x7ca   :  { %1474 = vrot.lane.b32.xlu1 %v1472_v26, %s1854_s18 }
 0x7da   :  { %v1421_v27 = vpop.permute.xlu0 %1420 }
 0x7db   :  { %v1423_v14 = vsel %vm1295_vm2, %v1414_v23, %v1421_v27 }
 0x7dc   :  { %1425 = vrot.lane.b32.xlu0 %v1423_v14, %s1860_s12 }
 0x83c   :  { %v1475_v31 = vpop.permute.xlu1 %1474 }
 0x83d   :  { %v1477_v32 = vsel %vm1307_vm4, %v1472_v26, %v1475_v31 }
 0x83e   :  { %1479 = vrot.lane.b32.xlu1 %v1477_v32, %s1855_s0 }
 0x84e   :  { %v1426_v33 = vpop.permute.xlu0 %1425 }
 0x84f   :  { %v1428_v35 = vsel %vm1301_vm3, %v1423_v14, %v1426_v33 }
 0x850   :  { %1430 = vrot.lane.b32.xlu0 %v1428_v35, %s1854_s18 }
 0x8b0   :  { %v1480_v30 = vpop.permute.xlu1 %1479 }
 0x8b1   :  { %v1482_v40 = vsel %vm1313_vm5, %v1477_v32, %v1480_v30 }
 0x8b2   :  { %v1486_v46 = vrot.slane %v1482_v40, %v2062_v49 }
 0x8c2   :  { %v1431_v37 = vpop.permute.xlu0 %1430 }
 0x8c3   :  { %v1433_v39 = vsel %vm1307_vm4, %v1428_v35, %v1431_v37 }
 0x8c4   :  { %1435 = vrot.lane.b32.xlu0 %v1433_v39, %s1855_s0 }
 0x936   :  { %v1436_v43 = vpop.permute.xlu0 %1435 }
 0x937   :  { %v1438_v18 = vsel %vm1313_vm5, %v1433_v39, %v1436_v43 }
 0x938   :  { %v1442_v45 = vrot.slane %v1438_v18, %v2062_v49 }
 0x93a   :  { %v1443_v47 = vmul.f32 %v1442_v45, %v2067_v17  ;;  %v1444_v51 = vmul.f32 %v1442_v45, %v2070_v55  ;;  %v1445_v52 = vmul.f32 %v1442_v45, %v2073_v56  ;;  %v1446_v54 = vmul.f32 %v1442_v45, %v2076_v57 }
 0x93b   :  { %v1447_v41 = vmul.f32 %v1442_v45, %v2079_v58  ;;  %v1448_v29 = vmul.f32 %v1442_v45, %v2082_v53  ;;  %v1449_v36 = vmul.f32 %v1442_v45, %v2085_v59  ;;  %v1450_v44 = vmul.f32 %v1442_v45, %v2088_v28 }
 0x93c   :  { %v1451_v48 = vmul.f32 %v1442_v45, %v2091_v34  ;;  %v1452_v49 = vmul.f32 %v1442_v45, %v2094_v62  ;;  %v1453_v17 = vmul.f32 %v1442_v45, %v2097_v5  ;;  %v1454_v55 = vmul.f32 %v1442_v45, %v2100_v10 }
 0x93d   :  { %v1455_v56 = vmul.f32 %v1442_v45, %v2103_v16  ;;  %v1456_v57 = vmul.f32 %v1442_v45, %v2106_v22  ;;  %v1457_v58 = vmul.f32 %v1442_v45, %v2109_v12  ;;  %v1458_v53 = vmul.f32 %v1442_v45, %v2112_v38 }
 0x93e   :  { %v1487_v42 = vadd.f32 %v1486_v46, %v1443_v47  ;;  %v1488_v59 = vadd.f32 %v1486_v46, %v1444_v51  ;;  %v1489_v50 = vadd.f32 %v1486_v46, %v1445_v52  ;;  %v1490_v28 = vadd.f32 %v1486_v46, %v1446_v54 }
 0x93f   :  { %v1491_v60 = vadd.f32 %v1486_v46, %v1447_v41  ;;  %v1492_v34 = vadd.f32 %v1486_v46, %v1448_v29  ;;  %v1493_v20 = vadd.f32 %v1486_v46, %v1449_v36  ;;  %v1494_v62 = vadd.f32 %v1486_v46, %v1450_v44 }
 0x940   :  { %v1495_v61 = vadd.f32 %v1486_v46, %v1451_v48  ;;  %v1496_v5 = vadd.f32 %v1486_v46, %v1452_v49  ;;  %v1497_v63 = vadd.f32 %v1486_v46, %v1453_v17  ;;  %v1498_v10 = vadd.f32 %v1486_v46, %v1454_v55 }
 0x941   :  { %v1499_v0 = vadd.f32 %v1486_v46, %v1455_v56  ;;  %v1500_v16 = vadd.f32 %v1486_v46, %v1456_v57  ;;  %v1501_v1 = vadd.f32 %v1486_v46, %v1457_v58  ;;  %v1502_v22 = vadd.f32 %v1486_v46, %v1458_v53 }
 0x942   :  { %vm1503_vm6 = vcmp.ge.f32.partialorder %v1487_v42, 0.0  ;;  %vm1504_vm7 = vcmp.ge.f32.partialorder %v1488_v59, 0.0  ;;  %vm1505_vm8 = vcmp.ge.f32.partialorder %v1489_v50, 0.0  ;;  %vm1506_vm9 = vcmp.ge.f32.partialorder %v1490_v28, 0.0 }
 0x943   :  { %vm1507_vm10 = vcmp.ge.f32.partialorder %v1491_v60, 0.0  ;;  %vm1508_vm11 = vcmp.ge.f32.partialorder %v1492_v34, 0.0  ;;  %vm1509_vm12 = vcmp.ge.f32.partialorder %v1493_v20, 0.0  ;;  %vm1510_vm13 = vcmp.ge.f32.partialorder %v1494_v62, 0.0 }
 0x944   :  { %vm1511_vm14 = vcmp.ge.f32.partialorder %v1495_v61, 0.0  ;;  %vm1512_vm15 = vcmp.ge.f32.partialorder %v1496_v5, 0.0  ;;  %vm1513_vm0 = vcmp.ge.f32.partialorder %v1497_v63, 0.0  ;;  %vm1514_vm1 = vcmp.ge.f32.partialorder %v1498_v10, 0.0 }
 0x945   :  { %vm1515_vm2 = vcmp.ge.f32.partialorder %v1499_v0, 0.0  ;;  %vm1516_vm3 = vcmp.ge.f32.partialorder %v1500_v16, 0.0  ;;  %vm1517_vm4 = vcmp.ge.f32.partialorder %v1501_v1, 0.0  ;;  %vm1518_vm5 = vcmp.ge.f32.partialorder %v1502_v22, 0.0 }
 0x946   :  { %v1519_v12 = vmul.f32 0.2, %v1487_v42  ;;  %v1520_v38 = vmul.f32 0.2, %v1488_v59  ;;  %v1521_v2 = vmul.f32 0.2, %v1489_v50 }
 0x947   :  { %v1522_v3 = vmul.f32 0.2, %v1490_v28  ;;  %v1523_v4 = vmul.f32 0.2, %v1491_v60  ;;  %v1524_v6 = vmul.f32 0.2, %v1492_v34 }
 0x948   :  { %v1525_v7 = vmul.f32 0.2, %v1493_v20  ;;  %v1526_v8 = vmul.f32 0.2, %v1494_v62  ;;  %v1527_v9 = vmul.f32 0.2, %v1495_v61  ;;  %v1535_v11 = vsel %vm1503_vm6, %v1487_v42, %v1519_v12 }
 0x949   :  { %v1528_v15 = vmul.f32 0.2, %v1496_v5  ;;  %v1529_v19 = vmul.f32 0.2, %v1497_v63  ;;  %v1530_v13 = vmul.f32 0.2, %v1498_v10  ;;  %v1536_v21 = vsel %vm1504_vm7, %v1488_v59, %v1520_v38 }
 0x94a   :  { %v1531_v23 = vmul.f32 0.2, %v1499_v0  ;;  %v1532_v24 = vmul.f32 0.2, %v1500_v16  ;;  %v1533_v25 = vmul.f32 0.2, %v1501_v1  ;;  %v1537_v26 = vsel %vm1505_vm8, %v1489_v50, %v1521_v2 }
 0x94b   :  { %v1534_v27 = vmul.f32 0.2, %v1502_v22  ;;  %v1538_v14 = vsel %vm1506_vm9, %v1490_v28, %v1522_v3  ;;  %v1539_v31 = vsel %vm1507_vm10, %v1491_v60, %v1523_v4  ;;  %v1540_v32 = vsel %vm1508_vm11, %v1492_v34, %v1524_v6 }
 0x94c   :  { %v1541_v33 = vsel %vm1509_vm12, %v1493_v20, %v1525_v7  ;;  %v1542_v35 = vsel %vm1510_vm13, %v1494_v62, %v1526_v8  ;;  %v1543_v37 = vsel %vm1511_vm14, %v1495_v61, %v1527_v9  ;;  %v1544_v39 = vsel %vm1512_vm15, %v1496_v5, %v1528_v15 }
 0x94d   :  { %v1545_v30 = vsel %vm1513_vm0, %v1497_v63, %v1529_v19  ;;  %v1546_v40 = vsel %vm1514_vm1, %v1498_v10, %v1530_v13  ;;  %v1547_v43 = vsel %vm1515_vm2, %v1499_v0, %v1531_v23  ;;  %v1548_v18 = vsel %vm1516_vm3, %v1500_v16, %v1532_v24 }
 0x94e   :  { %v1549_v45 = vsel %vm1517_vm4, %v1501_v1, %v1533_v25  ;;  %v1550_v46 = vsel %vm1518_vm5, %v1502_v22, %v1534_v27  ;;  %v1753_v47 = vpack.c.bf16 %v1536_v21, %v1535_v11  ;;  %v1754_v51 = vpack.c.bf16 %v1538_v14, %v1537_v26 }
 0x94f   :  { %v1755_v52 = vpack.c.bf16 %v1540_v32, %v1539_v31  ;;  %v1756_v54 = vpack.c.bf16 %v1542_v35, %v1541_v33  ;;  %v1757_v41 = vpack.c.bf16 %v1544_v39, %v1543_v37  ;;  %v1758_v29 = vpack.c.bf16 %v1546_v40, %v1545_v30 }
 0x950   :  { %v1759_v36 = vpack.c.bf16 %v1548_v18, %v1547_v43  ;;  %v1760_v44 = vpack.c.bf16 %v1550_v46, %v1549_v45  ;;  %1599 = vst [vmem:[%s2230_s4] sm:$0xff] %v1753_v47  ;;  %1600 = vst [vmem:[%s2230_s4 + $0x8] sm:$0xff] %v1754_v51 }
 0x951   :  { %1601 = vst [vmem:[%s2230_s4 + $0x10] sm:$0xff] %v1755_v52  ;;  %1602 = vst [vmem:[%s2230_s4 + $0x18] sm:$0xff] %v1756_v54 }
 0x952   :  { %1603 = vst [vmem:[%s2230_s4 + $0x20] sm:$0xff] %v1757_v41  ;;  %1604 = vst [vmem:[%s2230_s4 + $0x28] sm:$0xff] %v1758_v29 }
 0x953   :  { %1605 = vst [vmem:[%s2230_s4 + $0x30] sm:$0xff] %v1759_v36  ;;  %1606 = vst [vmem:[%s2230_s4 + $0x38] sm:$0xff] %v1760_v44 }
 0x954   :  { %1611 = vsyncpa [#allocation5], 1 }
 0x955   :  { %1612 = vsyncpa [#allocation7], 1 }

// kernel: generator_forward.9
= control target key start
LH: loop header
LB: loop body
LE: loop exit
PB: predicated region body
PF: predicated region fallthrough
CT: control target
= control target key end

     0   :  { %7 = vsyncpa [#allocation5], 0  ;;  %s3455_s9 = smov [#allocation4]   ;;  %s4081_s0 = inlined_call_operand.vmem [shape: bf16[64,256], index: 0, kind: input, shape index: {}]   ;;  %s4082_s1 = inlined_call_operand.hbm [shape: bf16[256,2048], index: 1, kind: input, shape index: {}]   ;;  %s4083_s2 = inlined_call_operand.vmem [shape: f32[64,1024], index: 2, kind: output, shape index: {}]  }
   0x1   :  { %s15_s10 = sshll.u32 %s3455_s9, 4  ;;  %s3431_s13 = scalar_lea.hbm %s4082_s1, 32768  ;;  %s16_s10 = int_to_ptr.vmem [resolvable:$true] %s15_s10 }
   0x2   :  { %p3432_p0 = scmp.ne.s32.totalorder %s4082_s1, %s3431_s13  ;;  %p3435_p1 = scmp.lt.u32.totalorder %s3431_s13, %s4082_s1 }
   0x4   :  { %p3437_p2 = pnand %p3435_p1, %p3432_p0 }
   0x6   :  { %3440 = shalt.err (!%p3437_p2)
}
   0x7   :  { %s3441_s18 = scalar_lea.vmem %s16_s10, 32768  ;;  %p3446_p4 = scmp.lt.s32.totalorder %s16_s10, %s16_s10 }
   0x8   :  { %p3442_p3 = scmp.ne.s32.totalorder %s16_s10, %s3441_s18  ;;  %p3447_p5 = scmp.lt.s32.totalorder %s3441_s18, %s3441_s18 }
   0xa   :  { %p3448_p6 = por %p3447_p5, %p3446_p4 }
   0xc   :  { %p3449_p7 = pnand %p3448_p6, %p3442_p3 }
   0xe   :  { %3452 = shalt.err (!%p3449_p7)
}
   0xf   :  { %s3456_s19 = smov 1024   ;;  %s3457_s20 = smov 64  }
  0x10   :  { %21 = dma.hbm_to_vmem [thread:$0]  %s4082_s1, 32768, %s16_s10, [#allocation5], %s3456_s19, %s3456_s19, %s3457_s20  }
  0x11   :  { %3453 = dma.done.wait [#allocation5], 32768  }
  0x12   :  { %3454 = vsyncadd [#allocation5], 4294934528  ;;  %v33_v0 = vld [vmem:[#allocation4 + $0x10] sm:$0xff]  ;;  %v34_v2 = vld [vmem:[#allocation4 + $0x18] sm:$0xff]  ;;  %vm1807_vm0 = vcmask 1046528   ;;  %vm2618_vm1 = vcmask 1040384  }
  0x13   :  { %v35_v1 = vld [vmem:[#allocation4 + $0x50] sm:$0xff]  ;;  %v36_v4 = vld [vmem:[#allocation4 + $0x58] sm:$0xff]  ;;  %v3488_v56 = vld [vmem:[%s4081_s0 + $0x4] ss:$8 sps:$4 sm:$0xff]  }
  0x14   :  { %v3025_v3 = vcombine.high %v33_v0, %v35_v1  ;;  %v3024_v5 = vcombine.low %v33_v0, %v35_v1  ;;  %v37_v6 = vld [vmem:[#allocation4 + $0x90] sm:$0xff]  ;;  %v3027_v8 = vcombine.high %v34_v2, %v36_v4  ;;  %v3026_v9 = vcombine.low %v34_v2, %v36_v4  ;;  %v38_v11 = vld [vmem:[#allocation4 + $0x98] sm:$0xff]  ;;  %489 = vmatprep.mubr.bf16.mxu0 %v3488_v56 }
  0x15   :  { %v39_v7 = vld [vmem:[#allocation4 + $0xd0] sm:$0xff]  ;;  %v40_v12 = vld [vmem:[#allocation4 + $0xd8] sm:$0xff]  ;;  %562 = vmatprep.mubr.bf16.mxu1 %v3488_v56 }
  0x16   :  { %v3029_v10 = vcombine.high %v37_v6, %v39_v7  ;;  %v41_v13 = vld [vmem:[#allocation4 + $0x110] sm:$0xff]  ;;  %457 = vmatprep.subr.bf16.mxu0 %v3025_v3  ;;  %v3031_v14 = vcombine.high %v38_v11, %v40_v12  ;;  %v42_v16 = vld [vmem:[#allocation4 + $0x118] sm:$0xff]  ;;  %530 = vmatprep.subr.bf16.mxu1 %v3027_v8  ;;  %v3028_v18 = vcombine.low %v37_v6, %v39_v7 }
  0x17   :  { %v43_v15 = vld [vmem:[#allocation4 + $0x150] sm:$0xff]  ;;  %v44_v17 = vld [vmem:[#allocation4 + $0x158] sm:$0xff]  ;;  %458 = vmatpush1.bf16.msra.mxu0 %v3024_v5  ;;  %531 = vmatpush1.bf16.msra.mxu1 %v3026_v9  ;;  %v3030_v19 = vcombine.low %v38_v11, %v40_v12 }
  0x18   :  { %459 = vmatprep.subr.bf16.mxu0 %v3029_v10  ;;  %v3033_v20 = vcombine.high %v41_v13, %v43_v15  ;;  %532 = vmatprep.subr.bf16.mxu1 %v3031_v14  ;;  %v3035_v21 = vcombine.high %v42_v16, %v44_v17  ;;  %v45_v22 = vld [vmem:[#allocation4 + $0x190] sm:$0xff]  ;;  %v46_v24 = vld [vmem:[#allocation4 + $0x198] sm:$0xff]  ;;  %v3032_v26 = vcombine.low %v41_v13, %v43_v15 }
  0x19   :  { %v47_v23 = vld [vmem:[#allocation4 + $0x1d0] sm:$0xff]  ;;  %v48_v25 = vld [vmem:[#allocation4 + $0x1d8] sm:$0xff]  ;;  %v3034_v27 = vcombine.low %v42_v16, %v44_v17 }
  0x1a   :  { %v3037_v28 = vcombine.high %v45_v22, %v47_v23  ;;  %v3039_v29 = vcombine.high %v46_v24, %v48_v25  ;;  %v49_v30 = vld [vmem:[#allocation4 + $0x210] sm:$0xff]  ;;  %v50_v32 = vld [vmem:[#allocation4 + $0x218] sm:$0xff]  ;;  %v3036_v34 = vcombine.low %v45_v22, %v47_v23  ;;  %v3038_v35 = vcombine.low %v46_v24, %v48_v25 }
  0x1b   :  { %460 = vmatpush1.bf16.msra.mxu0 %v3028_v18  ;;  %533 = vmatpush1.bf16.msra.mxu1 %v3030_v19  ;;  %v51_v31 = vld [vmem:[#allocation4 + $0x250] sm:$0xff]  ;;  %v52_v33 = vld [vmem:[#allocation4 + $0x258] sm:$0xff] }
  0x1c   :  { %461 = vmatprep.subr.bf16.mxu0 %v3033_v20  ;;  %534 = vmatprep.subr.bf16.mxu1 %v3035_v21  ;;  %v3041_v36 = vcombine.high %v49_v30, %v51_v31  ;;  %v3043_v37 = vcombine.high %v50_v32, %v52_v33  ;;  %v53_v38 = vld [vmem:[#allocation4 + $0x290] sm:$0xff]  ;;  %v54_v40 = vld [vmem:[#allocation4 + $0x298] sm:$0xff]  ;;  %v3040_v42 = vcombine.low %v49_v30, %v51_v31 }
  0x1d   :  { %v55_v39 = vld [vmem:[#allocation4 + $0x2d0] sm:$0xff]  ;;  %v56_v41 = vld [vmem:[#allocation4 + $0x2d8] sm:$0xff]  ;;  %v3042_v43 = vcombine.low %v50_v32, %v52_v33 }
  0x1e   :  { %v3045_v44 = vcombine.high %v53_v38, %v55_v39  ;;  %v3047_v45 = vcombine.high %v54_v40, %v56_v41  ;;  %v57_v46 = vld [vmem:[#allocation4 + $0x310] sm:$0xff]  ;;  %v58_v48 = vld [vmem:[#allocation4 + $0x318] sm:$0xff]  ;;  %v3044_v50 = vcombine.low %v53_v38, %v55_v39  ;;  %v3046_v51 = vcombine.low %v54_v40, %v56_v41 }
  0x1f   :  { %462 = vmatpush1.bf16.msra.mxu0 %v3032_v26  ;;  %535 = vmatpush1.bf16.msra.mxu1 %v3034_v27  ;;  %v59_v47 = vld [vmem:[#allocation4 + $0x350] sm:$0xff]  ;;  %v60_v49 = vld [vmem:[#allocation4 + $0x358] sm:$0xff] }
  0x20   :  { %463 = vmatprep.subr.bf16.mxu0 %v3037_v28  ;;  %536 = vmatprep.subr.bf16.mxu1 %v3039_v29  ;;  %v3049_v52 = vcombine.high %v57_v46, %v59_v47  ;;  %v3051_v53 = vcombine.high %v58_v48, %v60_v49  ;;  %v61_v54 = vld [vmem:[#allocation4 + $0x390] sm:$0xff]  ;;  %v62_v57 = vld [vmem:[#allocation4 + $0x398] sm:$0xff]  ;;  %v3048_v59 = vcombine.low %v57_v46, %v59_v47 }
  0x21   :  { %v63_v55 = vld [vmem:[#allocation4 + $0x3d0] sm:$0xff]  ;;  %v64_v58 = vld [vmem:[#allocation4 + $0x3d8] sm:$0xff]  ;;  %v3050_v60 = vcombine.low %v58_v48, %v60_v49 }
  0x22   :  { %v3053_v61 = vcombine.high %v61_v54, %v63_v55  ;;  %v3055_v62 = vcombine.high %v62_v57, %v64_v58  ;;  %v65_v63 = vld [vmem:[#allocation4 + $0x410] sm:$0xff]  ;;  %v66_v1 = vld [vmem:[#allocation4 + $0x418] sm:$0xff]  ;;  %v3052_v3 = vcombine.low %v61_v54, %v63_v55  ;;  %v3054_v4 = vcombine.low %v62_v57, %v64_v58 }
  0x23   :  { %464 = vmatpush1.bf16.msra.mxu0 %v3036_v34  ;;  %537 = vmatpush1.bf16.msra.mxu1 %v3038_v35  ;;  %v67_v0 = vld [vmem:[#allocation4 + $0x450] sm:$0xff]  ;;  %v68_v2 = vld [vmem:[#allocation4 + $0x458] sm:$0xff] }
  0x24   :  { %465 = vmatprep.subr.bf16.mxu0 %v3041_v36  ;;  %538 = vmatprep.subr.bf16.mxu1 %v3043_v37  ;;  %v3057_v5 = vcombine.high %v65_v63, %v67_v0  ;;  %v3059_v6 = vcombine.high %v66_v1, %v68_v2  ;;  %v69_v7 = vld [vmem:[#allocation4 + $0x490] sm:$0xff]  ;;  %v70_v9 = vld [vmem:[#allocation4 + $0x498] sm:$0xff]  ;;  %v3056_v11 = vcombine.low %v65_v63, %v67_v0  ;;  %v635_v0 = vld [vmem:[#allocation4 + $0x20] sm:$0xff] }
  0x25   :  { %v71_v8 = vld [vmem:[#allocation4 + $0x4d0] sm:$0xff]  ;;  %v72_v10 = vld [vmem:[#allocation4 + $0x4d8] sm:$0xff]  ;;  %v3058_v12 = vcombine.low %v66_v1, %v68_v2  ;;  %v637_v1 = vld [vmem:[#allocation4 + $0x60] sm:$0xff] }
  0x26   :  { %v3061_v13 = vcombine.high %v69_v7, %v71_v8  ;;  %v3063_v14 = vcombine.high %v70_v9, %v72_v10  ;;  %v73_v15 = vld [vmem:[#allocation4 + $0x510] sm:$0xff]  ;;  %v74_v17 = vld [vmem:[#allocation4 + $0x518] sm:$0xff]  ;;  %v3060_v19 = vcombine.low %v69_v7, %v71_v8  ;;  %v3062_v20 = vcombine.low %v70_v9, %v72_v10  ;;  %v636_v2 = vld [vmem:[#allocation4 + $0x28] sm:$0xff] }
  0x27   :  { %466 = vmatpush1.bf16.msra.mxu0 %v3040_v42  ;;  %539 = vmatpush1.bf16.msra.mxu1 %v3042_v43  ;;  %v75_v16 = vld [vmem:[#allocation4 + $0x550] sm:$0xff]  ;;  %v76_v18 = vld [vmem:[#allocation4 + $0x558] sm:$0xff]  ;;  %v639_v8 = vld [vmem:[#allocation4 + $0xa0] sm:$0xff] }
  0x28   :  { %467 = vmatprep.subr.bf16.mxu0 %v3045_v44  ;;  %540 = vmatprep.subr.bf16.mxu1 %v3047_v45  ;;  %v3065_v21 = vcombine.high %v73_v15, %v75_v16  ;;  %v3067_v22 = vcombine.high %v74_v17, %v76_v18  ;;  %v77_v23 = vld [vmem:[#allocation4 + $0x590] sm:$0xff]  ;;  %v78_v25 = vld [vmem:[#allocation4 + $0x598] sm:$0xff]  ;;  %v3064_v27 = vcombine.low %v73_v15, %v75_v16  ;;  %v641_v9 = vld [vmem:[#allocation4 + $0xe0] sm:$0xff] }
  0x29   :  { %v79_v24 = vld [vmem:[#allocation4 + $0x5d0] sm:$0xff]  ;;  %v80_v26 = vld [vmem:[#allocation4 + $0x5d8] sm:$0xff]  ;;  %v3066_v28 = vcombine.low %v74_v17, %v76_v18  ;;  %v3495_v10 = vld [vmem:[%s4081_s0] ss:$8 sps:$4 sm:$0xff]   ;;  %v3093_v15 = vcombine.high %v639_v8, %v641_v9 }
  0x2a   :  { %v3069_v29 = vcombine.high %v77_v23, %v79_v24  ;;  %v3071_v30 = vcombine.high %v78_v25, %v80_v26  ;;  %v81_v31 = vld [vmem:[#allocation4 + $0x610] sm:$0xff]  ;;  %v82_v33 = vld [vmem:[#allocation4 + $0x618] sm:$0xff]  ;;  %v3068_v35 = vcombine.low %v77_v23, %v79_v24  ;;  %v3070_v36 = vcombine.low %v78_v25, %v80_v26  ;;  %v643_v17 = vld [vmem:[#allocation4 + $0x120] sm:$0xff] }
  0x2b   :  { %468 = vmatpush1.bf16.msra.mxu0 %v3044_v50  ;;  %541 = vmatpush1.bf16.msra.mxu1 %v3046_v51  ;;  %v83_v32 = vld [vmem:[#allocation4 + $0x650] sm:$0xff]  ;;  %v84_v34 = vld [vmem:[#allocation4 + $0x658] sm:$0xff]  ;;  %v645_v18 = vld [vmem:[#allocation4 + $0x160] sm:$0xff] }
  0x2c   :  { %469 = vmatprep.subr.bf16.mxu0 %v3049_v52  ;;  %542 = vmatprep.subr.bf16.mxu1 %v3051_v53  ;;  %v3073_v37 = vcombine.high %v81_v31, %v83_v32  ;;  %v3075_v38 = vcombine.high %v82_v33, %v84_v34  ;;  %v85_v39 = vld [vmem:[#allocation4 + $0x690] sm:$0xff]  ;;  %v86_v41 = vld [vmem:[#allocation4 + $0x698] sm:$0xff]  ;;  %v3072_v43 = vcombine.low %v81_v31, %v83_v32  ;;  %v647_v26 = vld [vmem:[#allocation4 + $0x1a0] sm:$0xff] }
  0x2d   :  { %v87_v40 = vld [vmem:[#allocation4 + $0x6d0] sm:$0xff]  ;;  %v88_v42 = vld [vmem:[#allocation4 + $0x6d8] sm:$0xff]  ;;  %v3074_v44 = vcombine.low %v82_v33, %v84_v34  ;;  %v3097_v24 = vcombine.high %v643_v17, %v645_v18  ;;  %v3096_v31 = vcombine.low %v643_v17, %v645_v18  ;;  %v671_v17 = vld [vmem:[#allocation4 + $0x4a0] sm:$0xff] }
  0x2e   :  { %v3077_v45 = vcombine.high %v85_v39, %v87_v40  ;;  %v3079_v46 = vcombine.high %v86_v41, %v88_v42  ;;  %v89_v47 = vld [vmem:[#allocation4 + $0x710] sm:$0xff]  ;;  %v90_v49 = vld [vmem:[#allocation4 + $0x718] sm:$0xff]  ;;  %v3076_v51 = vcombine.low %v85_v39, %v87_v40  ;;  %v3078_v52 = vcombine.low %v86_v41, %v88_v42  ;;  %v654_v39 = vld [vmem:[#allocation4 + $0x268] sm:$0xff] }
  0x2f   :  { %470 = vmatpush1.bf16.msra.mxu0 %v3048_v59  ;;  %543 = vmatpush1.bf16.msra.mxu1 %v3050_v60  ;;  %v91_v48 = vld [vmem:[#allocation4 + $0x750] sm:$0xff]  ;;  %v92_v50 = vld [vmem:[#allocation4 + $0x758] sm:$0xff]  ;;  %v673_v18 = vld [vmem:[#allocation4 + $0x4e0] sm:$0xff] }
  0x30   :  { %471 = vmatprep.subr.bf16.mxu0 %v3053_v61  ;;  %544 = vmatprep.subr.bf16.mxu1 %v3055_v62  ;;  %v3081_v53 = vcombine.high %v89_v47, %v91_v48  ;;  %v3083_v54 = vcombine.high %v90_v49, %v92_v50  ;;  %v93_v55 = vld [vmem:[#allocation4 + $0x790] sm:$0xff]  ;;  %v94_v58 = vld [vmem:[#allocation4 + $0x798] sm:$0xff]  ;;  %v3080_v60 = vcombine.low %v89_v47, %v91_v48  ;;  %v658_v47 = vld [vmem:[#allocation4 + $0x2e8] sm:$0xff] }
  0x31   :  { %v95_v57 = vld [vmem:[#allocation4 + $0x7d0] sm:$0xff]  ;;  %v96_v59 = vld [vmem:[#allocation4 + $0x7d8] sm:$0xff]  ;;  %v3082_v61 = vcombine.low %v90_v49, %v92_v50  ;;  %v3523_v48 = vld [vmem:[%s4081_s0 + $0x20] ss:$8 sps:$4 sm:$0xff]  }
  0x32   :  { %v3085_v62 = vcombine.high %v93_v55, %v95_v57  ;;  %v3087_v63 = vcombine.high %v94_v58, %v96_v59 }
  0x33   :  { %472 = vmatpush1.bf16.msra.mxu0 %v3052_v3  ;;  %545 = vmatpush1.bf16.msra.mxu1 %v3054_v4  ;;  %v638_v3 = vld [vmem:[#allocation4 + $0x68] sm:$0xff]  ;;  %v3084_v4 = vcombine.low %v93_v55, %v95_v57  ;;  %v3528_v55 = vld [vmem:[%s4081_s0 + $0x34] ss:$8 sps:$4 sm:$0xff]  }
  0x34   :  { %473 = vmatprep.subr.bf16.mxu0 %v3057_v5  ;;  %546 = vmatprep.subr.bf16.mxu1 %v3059_v6  ;;  %v3086_v5 = vcombine.low %v94_v58, %v96_v59  ;;  %v3089_v6 = vcombine.high %v635_v0, %v637_v1  ;;  %v3091_v7 = vcombine.high %v636_v2, %v638_v3  ;;  %v660_v57 = vld [vmem:[#allocation4 + $0x328] sm:$0xff] }
  0x35   :  { %v662_v58 = vld [vmem:[#allocation4 + $0x368] sm:$0xff] }
  0x37   :  { %474 = vmatpush1.bf16.msra.mxu0 %v3056_v11  ;;  %547 = vmatpush1.bf16.msra.mxu1 %v3058_v12  ;;  %v640_v11 = vld [vmem:[#allocation4 + $0xa8] sm:$0xff] }
  0x38   :  { %475 = vmatprep.subr.bf16.mxu0 %v3061_v13  ;;  %548 = vmatprep.subr.bf16.mxu1 %v3063_v14  ;;  %v642_v12 = vld [vmem:[#allocation4 + $0xe8] sm:$0xff]  ;;  %v3088_v13 = vcombine.low %v635_v0, %v637_v1  ;;  %v3090_v14 = vcombine.low %v636_v2, %v638_v3  ;;  %v665_v0 = vld [vmem:[#allocation4 + $0x3e0] sm:$0xff]  ;;  %v3537_v3 = vld [vmem:[%s4081_s0 + $0x30] ss:$8 sps:$4 sm:$0xff]  }
  0x39   :  { %v3095_v16 = vcombine.high %v640_v11, %v642_v12  ;;  %v3094_v23 = vcombine.low %v640_v11, %v642_v12  ;;  %v664_v1 = vld [vmem:[#allocation4 + $0x3a8] sm:$0xff] }
  0x3a   :  { %v666_v2 = vld [vmem:[#allocation4 + $0x3e8] sm:$0xff] }
  0x3b   :  { %476 = vmatpush1.bf16.msra.mxu0 %v3060_v19  ;;  %549 = vmatpush1.bf16.msra.mxu1 %v3062_v20  ;;  %v3500_v19 = vld [vmem:[%s4081_s0 + $0x14] ss:$8 sps:$4 sm:$0xff]   ;;  %v644_v20 = vld [vmem:[#allocation4 + $0x128] sm:$0xff] }
  0x3c   :  { %477 = vmatprep.subr.bf16.mxu0 %v3065_v21  ;;  %550 = vmatprep.subr.bf16.mxu1 %v3067_v22  ;;  %v646_v21 = vld [vmem:[#allocation4 + $0x168] sm:$0xff]  ;;  %v3092_v22 = vcombine.low %v639_v8, %v641_v9  ;;  %v667_v8 = vld [vmem:[#allocation4 + $0x420] sm:$0xff] }
  0x3d   :  { %v3099_v25 = vcombine.high %v644_v20, %v646_v21  ;;  %v3098_v32 = vcombine.low %v644_v20, %v646_v21  ;;  %v669_v9 = vld [vmem:[#allocation4 + $0x460] sm:$0xff]  ;;  %v668_v11 = vld [vmem:[#allocation4 + $0x428] sm:$0xff] }
  0x3e   :  { %v670_v12 = vld [vmem:[#allocation4 + $0x468] sm:$0xff] }
  0x3f   :  { %478 = vmatpush1.bf16.msra.mxu0 %v3064_v27  ;;  %551 = vmatpush1.bf16.msra.mxu1 %v3066_v28  ;;  %v649_v27 = vld [vmem:[#allocation4 + $0x1e0] sm:$0xff]  ;;  %v648_v28 = vld [vmem:[#allocation4 + $0x1a8] sm:$0xff] }
  0x40   :  { %479 = vmatprep.subr.bf16.mxu0 %v3069_v29  ;;  %552 = vmatprep.subr.bf16.mxu1 %v3071_v30  ;;  %v650_v29 = vld [vmem:[#allocation4 + $0x1e8] sm:$0xff]  ;;  %v3509_v30 = vld [vmem:[%s4081_s0 + $0x10] ss:$8 sps:$4 sm:$0xff]   ;;  %v3101_v33 = vcombine.high %v647_v26, %v649_v27  ;;  %v3100_v40 = vcombine.low %v647_v26, %v649_v27  ;;  %v675_v26 = vld [vmem:[#allocation4 + $0x520] sm:$0xff] }
  0x41   :  { %v3103_v34 = vcombine.high %v648_v28, %v650_v29  ;;  %v3102_v41 = vcombine.low %v648_v28, %v650_v29  ;;  %v672_v20 = vld [vmem:[#allocation4 + $0x4a8] sm:$0xff]  ;;  %v677_v27 = vld [vmem:[#allocation4 + $0x560] sm:$0xff] }
  0x42   :  { %v674_v21 = vld [vmem:[#allocation4 + $0x4e8] sm:$0xff] }
  0x43   :  { %480 = vmatpush1.bf16.msra.mxu0 %v3068_v35  ;;  %553 = vmatpush1.bf16.msra.mxu1 %v3070_v36  ;;  %v651_v35 = vld [vmem:[#allocation4 + $0x220] sm:$0xff]  ;;  %v676_v28 = vld [vmem:[#allocation4 + $0x528] sm:$0xff] }
  0x44   :  { %481 = vmatprep.subr.bf16.mxu0 %v3073_v37  ;;  %554 = vmatprep.subr.bf16.mxu1 %v3075_v38  ;;  %v653_v36 = vld [vmem:[#allocation4 + $0x260] sm:$0xff]  ;;  %v652_v38 = vld [vmem:[#allocation4 + $0x228] sm:$0xff] }
  0x45   :  { %v3514_v37 = vld [vmem:[%s4081_s0 + $0x24] ss:$8 sps:$4 sm:$0xff]   ;;  %v3105_v42 = vcombine.high %v651_v35, %v653_v36  ;;  %v3104_v49 = vcombine.low %v651_v35, %v653_v36  ;;  %v3106_v50 = vcombine.low %v652_v38, %v654_v39 }
  0x46   :  { %v678_v29 = vld [vmem:[#allocation4 + $0x568] sm:$0xff]  ;;  %v679_v35 = vld [vmem:[#allocation4 + $0x5a0] sm:$0xff] }
  0x47   :  { %482 = vmatpush1.bf16.msra.mxu0 %v3072_v43  ;;  %555 = vmatpush1.bf16.msra.mxu1 %v3074_v44  ;;  %v3107_v43 = vcombine.high %v652_v38, %v654_v39  ;;  %v655_v44 = vld [vmem:[#allocation4 + $0x2a0] sm:$0xff]  ;;  %v680_v38 = vld [vmem:[#allocation4 + $0x5a8] sm:$0xff] }
  0x48   :  { %483 = vmatprep.subr.bf16.mxu0 %v3077_v45  ;;  %556 = vmatprep.subr.bf16.mxu1 %v3079_v46  ;;  %v657_v45 = vld [vmem:[#allocation4 + $0x2e0] sm:$0xff]  ;;  %v656_v46 = vld [vmem:[#allocation4 + $0x2a8] sm:$0xff] }
  0x49   :  { %v3108_v59 = vcombine.low %v655_v44, %v657_v45  ;;  %v681_v36 = vld [vmem:[#allocation4 + $0x5e0] sm:$0xff]  ;;  %v682_v39 = vld [vmem:[#allocation4 + $0x5e8] sm:$0xff] }
  0x4b   :  { %484 = vmatpush1.bf16.msra.mxu0 %v3076_v51  ;;  %557 = vmatpush1.bf16.msra.mxu1 %v3078_v52  ;;  %v3109_v51 = vcombine.high %v655_v44, %v657_v45  ;;  %v3111_v52 = vcombine.high %v656_v46, %v658_v47  ;;  %v683_v44 = vld [vmem:[#allocation4 + $0x620] sm:$0xff] }
  0x4c   :  { %485 = vmatprep.subr.bf16.mxu0 %v3081_v53  ;;  %558 = vmatprep.subr.bf16.mxu1 %v3083_v54  ;;  %v659_v53 = vld [vmem:[#allocation4 + $0x320] sm:$0xff] }
  0x4d   :  { %v661_v54 = vld [vmem:[#allocation4 + $0x360] sm:$0xff] }
  0x4e   :  { %v685_v45 = vld [vmem:[#allocation4 + $0x660] sm:$0xff] }
  0x4f   :  { %486 = vmatpush1.bf16.msra.mxu0 %v3080_v60  ;;  %559 = vmatpush1.bf16.msra.mxu1 %v3082_v61  ;;  %v3110_v60 = vcombine.low %v656_v46, %v658_v47  ;;  %v3113_v61 = vcombine.high %v659_v53, %v661_v54  ;;  %v684_v46 = vld [vmem:[#allocation4 + $0x628] sm:$0xff] }
  0x50   :  { %487 = vmatprep.subr.bf16.mxu0 %v3085_v62  ;;  %560 = vmatprep.subr.bf16.mxu1 %v3087_v63  ;;  %v3115_v62 = vcombine.high %v660_v57, %v662_v58  ;;  %v663_v63 = vld [vmem:[#allocation4 + $0x3a0] sm:$0xff]  ;;  %v686_v47 = vld [vmem:[#allocation4 + $0x668] sm:$0xff] }
  0x53   :  { %488 = vmatpush1.bf16.msra.mxu0 %v3084_v4  ;;  %561 = vmatpush1.bf16.msra.mxu1 %v3086_v5  ;;  %v3112_v4 = vcombine.low %v659_v53, %v661_v54  ;;  %v3114_v5 = vcombine.low %v660_v57, %v662_v58  ;;  %v687_v53 = vld [vmem:[#allocation4 + $0x6a0] sm:$0xff]  ;;  %v688_v57 = vld [vmem:[#allocation4 + $0x6a8] sm:$0xff] }
  0x54   :  { %1019 = vmatprep.subr.bf16.mxu0 %v3089_v6  ;;  %1092 = vmatprep.subr.bf16.mxu1 %v3091_v7  ;;  %v3117_v6 = vcombine.high %v663_v63, %v665_v0  ;;  %v3119_v7 = vcombine.high %v664_v1, %v666_v2  ;;  %v689_v54 = vld [vmem:[#allocation4 + $0x6e0] sm:$0xff]  ;;  %v690_v58 = vld [vmem:[#allocation4 + $0x6e8] sm:$0xff] }
  0x56   :  { %490 = vmatmul.mubr.bf16.vlgmr.msra.gmra.mrb[0].mxu0 %v3495_v10  ;;  %563 = vmatmul.mubr.bf16.vlgmr.msra.gmra.mrb[0].mxu1 %v3495_v10 }
  0x57   :  { %1020 = vmatpush1.bf16.msra.mxu0 %v3088_v13  ;;  %1093 = vmatpush1.bf16.msra.mxu1 %v3090_v14  ;;  %v3116_v13 = vcombine.low %v663_v63, %v665_v0  ;;  %v3118_v14 = vcombine.low %v664_v1, %v666_v2  ;;  %v691_v63 = vld [vmem:[#allocation4 + $0x720] sm:$0xff]  ;;  %v692_v1 = vld [vmem:[#allocation4 + $0x728] sm:$0xff] }
  0x58   :  { %1021 = vmatprep.subr.bf16.mxu0 %v3093_v15  ;;  %1094 = vmatprep.subr.bf16.mxu1 %v3095_v16  ;;  %v3121_v15 = vcombine.high %v667_v8, %v669_v9  ;;  %v3123_v16 = vcombine.high %v668_v11, %v670_v12  ;;  %v693_v0 = vld [vmem:[#allocation4 + $0x760] sm:$0xff]  ;;  %v694_v2 = vld [vmem:[#allocation4 + $0x768] sm:$0xff] }
  0x59   :  { %499 = vmatprep.mubr.bf16.mxu0 %v3500_v19  ;;  %572 = vmatprep.mubr.bf16.mxu1 %v3500_v19 }
  0x5b   :  { %1022 = vmatpush1.bf16.msra.mxu0 %v3092_v22  ;;  %1095 = vmatpush1.bf16.msra.mxu1 %v3094_v23  ;;  %v3120_v22 = vcombine.low %v667_v8, %v669_v9  ;;  %v3122_v23 = vcombine.low %v668_v11, %v670_v12  ;;  %v695_v8 = vld [vmem:[#allocation4 + $0x7a0] sm:$0xff]  ;;  %v696_v11 = vld [vmem:[#allocation4 + $0x7a8] sm:$0xff] }
  0x5c   :  { %1023 = vmatprep.subr.bf16.mxu0 %v3097_v24  ;;  %1096 = vmatprep.subr.bf16.mxu1 %v3099_v25  ;;  %v3125_v24 = vcombine.high %v671_v17, %v673_v18  ;;  %v3127_v25 = vcombine.high %v672_v20, %v674_v21  ;;  %v697_v9 = vld [vmem:[#allocation4 + $0x7e0] sm:$0xff]  ;;  %v698_v12 = vld [vmem:[#allocation4 + $0x7e8] sm:$0xff] }
  0x5e   :  { %500 = vmatmul.mubr.bf16.gmra.mrb[4].mxu0 %v3509_v30  ;;  %573 = vmatmul.mubr.bf16.gmra.mrb[4].mxu1 %v3509_v30 }
  0x5f   :  { %1024 = vmatpush1.bf16.msra.mxu0 %v3096_v31  ;;  %1097 = vmatpush1.bf16.msra.mxu1 %v3098_v32  ;;  %v3124_v31 = vcombine.low %v671_v17, %v673_v18  ;;  %v3126_v32 = vcombine.low %v672_v20, %v674_v21  ;;  %v1197_v17 = vld [vmem:[#allocation4] sm:$0xff]  ;;  %v1198_v20 = vld [vmem:[#allocation4 + $0x8] sm:$0xff] }
  0x60   :  { %1025 = vmatprep.subr.bf16.mxu0 %v3101_v33  ;;  %1098 = vmatprep.subr.bf16.mxu1 %v3103_v34  ;;  %v3129_v33 = vcombine.high %v675_v26, %v677_v27  ;;  %v3131_v34 = vcombine.high %v676_v28, %v678_v29  ;;  %v1199_v18 = vld [vmem:[#allocation4 + $0x40] sm:$0xff]  ;;  %v1200_v21 = vld [vmem:[#allocation4 + $0x48] sm:$0xff] }
  0x61   :  { %509 = vmatprep.mubr.bf16.mxu0 %v3514_v37  ;;  %582 = vmatprep.mubr.bf16.mxu1 %v3514_v37 }
  0x63   :  { %1026 = vmatpush1.bf16.msra.mxu0 %v3100_v40  ;;  %1099 = vmatpush1.bf16.msra.mxu1 %v3102_v41  ;;  %v3128_v40 = vcombine.low %v675_v26, %v677_v27  ;;  %v3130_v41 = vcombine.low %v676_v28, %v678_v29  ;;  %v1201_v26 = vld [vmem:[#allocation4 + $0x80] sm:$0xff]  ;;  %v1202_v28 = vld [vmem:[#allocation4 + $0x88] sm:$0xff] }
  0x64   :  { %1027 = vmatprep.subr.bf16.mxu0 %v3105_v42  ;;  %1100 = vmatprep.subr.bf16.mxu1 %v3107_v43  ;;  %v3133_v42 = vcombine.high %v679_v35, %v681_v36  ;;  %v3135_v43 = vcombine.high %v680_v38, %v682_v39  ;;  %v1203_v27 = vld [vmem:[#allocation4 + $0xc0] sm:$0xff]  ;;  %v1204_v29 = vld [vmem:[#allocation4 + $0xc8] sm:$0xff] }
  0x66   :  { %510 = vmatmul.mubr.bf16.gmra.mrb[8].mxu0 %v3523_v48  ;;  %583 = vmatmul.mubr.bf16.gmra.mrb[8].mxu1 %v3523_v48 }
  0x67   :  { %1028 = vmatpush1.bf16.msra.mxu0 %v3104_v49  ;;  %1101 = vmatpush1.bf16.msra.mxu1 %v3106_v50  ;;  %v3132_v49 = vcombine.low %v679_v35, %v681_v36  ;;  %v3134_v50 = vcombine.low %v680_v38, %v682_v39  ;;  %v1205_v35 = vld [vmem:[#allocation4 + $0x100] sm:$0xff]  ;;  %v1206_v38 = vld [vmem:[#allocation4 + $0x108] sm:$0xff] }
  0x68   :  { %1029 = vmatprep.subr.bf16.mxu0 %v3109_v51  ;;  %1102 = vmatprep.subr.bf16.mxu1 %v3111_v52  ;;  %v3137_v51 = vcombine.high %v683_v44, %v685_v45  ;;  %v3139_v52 = vcombine.high %v684_v46, %v686_v47  ;;  %v1207_v36 = vld [vmem:[#allocation4 + $0x140] sm:$0xff]  ;;  %v1208_v39 = vld [vmem:[#allocation4 + $0x148] sm:$0xff] }
  0x69   :  { %519 = vmatprep.mubr.bf16.mxu0 %v3528_v55  ;;  %592 = vmatprep.mubr.bf16.mxu1 %v3528_v55 }
  0x6b   :  { %1030 = vmatpush1.bf16.msra.mxu0 %v3108_v59  ;;  %1103 = vmatpush1.bf16.msra.mxu1 %v3110_v60  ;;  %v3136_v59 = vcombine.low %v683_v44, %v685_v45  ;;  %v3138_v60 = vcombine.low %v684_v46, %v686_v47  ;;  %v1209_v44 = vld [vmem:[#allocation4 + $0x180] sm:$0xff]  ;;  %v1210_v46 = vld [vmem:[#allocation4 + $0x188] sm:$0xff] }
  0x6c   :  { %1031 = vmatprep.subr.bf16.mxu0 %v3113_v61  ;;  %1104 = vmatprep.subr.bf16.mxu1 %v3115_v62  ;;  %v3141_v61 = vcombine.high %v687_v53, %v689_v54  ;;  %v3143_v62 = vcombine.high %v688_v57, %v690_v58  ;;  %v1211_v45 = vld [vmem:[#allocation4 + $0x1c0] sm:$0xff]  ;;  %v1212_v47 = vld [vmem:[#allocation4 + $0x1c8] sm:$0xff] }
  0x6e   :  { %520 = vmatmul.mubr.bf16.gmra.mrb[12].mxu0 %v3537_v3  ;;  %593 = vmatmul.mubr.bf16.gmra.mrb[12].mxu1 %v3537_v3 }
  0x6f   :  { %1032 = vmatpush1.bf16.msra.mxu0 %v3112_v4  ;;  %1105 = vmatpush1.bf16.msra.mxu1 %v3114_v5  ;;  %v3140_v4 = vcombine.low %v687_v53, %v689_v54  ;;  %v3142_v5 = vcombine.low %v688_v57, %v690_v58  ;;  %v1213_v53 = vld [vmem:[#allocation4 + $0x200] sm:$0xff]  ;;  %v1214_v57 = vld [vmem:[#allocation4 + $0x208] sm:$0xff] }
  0x70   :  { %1033 = vmatprep.subr.bf16.mxu0 %v3117_v6  ;;  %1106 = vmatprep.subr.bf16.mxu1 %v3119_v7  ;;  %v3145_v6 = vcombine.high %v691_v63, %v693_v0  ;;  %v3147_v7 = vcombine.high %v692_v1, %v694_v2  ;;  %v1215_v54 = vld [vmem:[#allocation4 + $0x240] sm:$0xff]  ;;  %v1216_v58 = vld [vmem:[#allocation4 + $0x248] sm:$0xff] }
  0x71   :  { %1051 = vmatprep.mubr.bf16.mxu0 %v3488_v56  ;;  %1124 = vmatprep.mubr.bf16.mxu1 %v3488_v56 }
  0x73   :  { %1034 = vmatpush1.bf16.msra.mxu0 %v3116_v13  ;;  %1107 = vmatpush1.bf16.msra.mxu1 %v3118_v14  ;;  %v3144_v13 = vcombine.low %v691_v63, %v693_v0  ;;  %v3146_v14 = vcombine.low %v692_v1, %v694_v2  ;;  %v1217_v63 = vld [vmem:[#allocation4 + $0x280] sm:$0xff]  ;;  %v1218_v1 = vld [vmem:[#allocation4 + $0x288] sm:$0xff] }
  0x74   :  { %1035 = vmatprep.subr.bf16.mxu0 %v3121_v15  ;;  %1108 = vmatprep.subr.bf16.mxu1 %v3123_v16  ;;  %v3149_v15 = vcombine.high %v695_v8, %v697_v9  ;;  %v3151_v16 = vcombine.high %v696_v11, %v698_v12  ;;  %v1219_v0 = vld [vmem:[#allocation4 + $0x2c0] sm:$0xff]  ;;  %v1220_v2 = vld [vmem:[#allocation4 + $0x2c8] sm:$0xff] }
  0x77   :  { %1036 = vmatpush1.bf16.msra.mxu0 %v3120_v22  ;;  %1109 = vmatpush1.bf16.msra.mxu1 %v3122_v23  ;;  %v3148_v22 = vcombine.low %v695_v8, %v697_v9  ;;  %v3150_v23 = vcombine.low %v696_v11, %v698_v12  ;;  %v1221_v8 = vld [vmem:[#allocation4 + $0x300] sm:$0xff]  ;;  %v1222_v11 = vld [vmem:[#allocation4 + $0x308] sm:$0xff] }
  0x78   :  { %1037 = vmatprep.subr.bf16.mxu0 %v3125_v24  ;;  %1110 = vmatprep.subr.bf16.mxu1 %v3127_v25  ;;  %v3153_v24 = vcombine.high %v1197_v17, %v1199_v18  ;;  %v3155_v25 = vcombine.high %v1198_v20, %v1200_v21  ;;  %v1223_v9 = vld [vmem:[#allocation4 + $0x340] sm:$0xff]  ;;  %v1224_v12 = vld [vmem:[#allocation4 + $0x348] sm:$0xff] }
  0x7b   :  { %1038 = vmatpush1.bf16.msra.mxu0 %v3124_v31  ;;  %1111 = vmatpush1.bf16.msra.mxu1 %v3126_v32  ;;  %v3152_v31 = vcombine.low %v1197_v17, %v1199_v18  ;;  %v3154_v32 = vcombine.low %v1198_v20, %v1200_v21  ;;  %v1225_v17 = vld [vmem:[#allocation4 + $0x380] sm:$0xff]  ;;  %v1226_v20 = vld [vmem:[#allocation4 + $0x388] sm:$0xff] }
  0x7c   :  { %1039 = vmatprep.subr.bf16.mxu0 %v3129_v33  ;;  %1112 = vmatprep.subr.bf16.mxu1 %v3131_v34  ;;  %v3157_v33 = vcombine.high %v1201_v26, %v1203_v27  ;;  %v3159_v34 = vcombine.high %v1202_v28, %v1204_v29  ;;  %v1227_v18 = vld [vmem:[#allocation4 + $0x3c0] sm:$0xff]  ;;  %v1228_v21 = vld [vmem:[#allocation4 + $0x3c8] sm:$0xff] }
  0x7f   :  { %1040 = vmatpush1.bf16.msra.mxu0 %v3128_v40  ;;  %1113 = vmatpush1.bf16.msra.mxu1 %v3130_v41  ;;  %v3156_v40 = vcombine.low %v1201_v26, %v1203_v27  ;;  %v3158_v41 = vcombine.low %v1202_v28, %v1204_v29  ;;  %v1229_v26 = vld [vmem:[#allocation4 + $0x400] sm:$0xff]  ;;  %v1230_v28 = vld [vmem:[#allocation4 + $0x408] sm:$0xff] }
  0x80   :  { %1041 = vmatprep.subr.bf16.mxu0 %v3133_v42  ;;  %1114 = vmatprep.subr.bf16.mxu1 %v3135_v43  ;;  %v3161_v42 = vcombine.high %v1205_v35, %v1207_v36  ;;  %v3163_v43 = vcombine.high %v1206_v38, %v1208_v39  ;;  %v1231_v27 = vld [vmem:[#allocation4 + $0x440] sm:$0xff]  ;;  %v1232_v29 = vld [vmem:[#allocation4 + $0x448] sm:$0xff] }
  0x83   :  { %1042 = vmatpush1.bf16.msra.mxu0 %v3132_v49  ;;  %1115 = vmatpush1.bf16.msra.mxu1 %v3134_v50  ;;  %v3160_v49 = vcombine.low %v1205_v35, %v1207_v36  ;;  %v3162_v50 = vcombine.low %v1206_v38, %v1208_v39  ;;  %v1233_v35 = vld [vmem:[#allocation4 + $0x480] sm:$0xff]  ;;  %v1234_v38 = vld [vmem:[#allocation4 + $0x488] sm:$0xff] }
  0x84   :  { %1043 = vmatprep.subr.bf16.mxu0 %v3137_v51  ;;  %1116 = vmatprep.subr.bf16.mxu1 %v3139_v52  ;;  %v3165_v51 = vcombine.high %v1209_v44, %v1211_v45  ;;  %v3167_v52 = vcombine.high %v1210_v46, %v1212_v47  ;;  %v1235_v36 = vld [vmem:[#allocation4 + $0x4c0] sm:$0xff]  ;;  %v1236_v39 = vld [vmem:[#allocation4 + $0x4c8] sm:$0xff] }
  0x87   :  { %1044 = vmatpush1.bf16.msra.mxu0 %v3136_v59  ;;  %1117 = vmatpush1.bf16.msra.mxu1 %v3138_v60  ;;  %v3164_v59 = vcombine.low %v1209_v44, %v1211_v45  ;;  %v3166_v60 = vcombine.low %v1210_v46, %v1212_v47  ;;  %v1237_v44 = vld [vmem:[#allocation4 + $0x500] sm:$0xff]  ;;  %v1238_v46 = vld [vmem:[#allocation4 + $0x508] sm:$0xff] }
  0x88   :  { %1045 = vmatprep.subr.bf16.mxu0 %v3141_v61  ;;  %1118 = vmatprep.subr.bf16.mxu1 %v3143_v62  ;;  %v3169_v61 = vcombine.high %v1213_v53, %v1215_v54  ;;  %v3171_v62 = vcombine.high %v1214_v57, %v1216_v58  ;;  %v1239_v45 = vld [vmem:[#allocation4 + $0x540] sm:$0xff]  ;;  %v1240_v47 = vld [vmem:[#allocation4 + $0x548] sm:$0xff] }
  0x8b   :  { %1046 = vmatpush1.bf16.msra.mxu0 %v3140_v4  ;;  %1119 = vmatpush1.bf16.msra.mxu1 %v3142_v5  ;;  %v3168_v4 = vcombine.low %v1213_v53, %v1215_v54  ;;  %v3170_v5 = vcombine.low %v1214_v57, %v1216_v58  ;;  %v1243_v53 = vld [vmem:[#allocation4 + $0x5c0] sm:$0xff]  ;;  %v1242_v54 = vld [vmem:[#allocation4 + $0x588] sm:$0xff]  ;;  %v3192_v58 = vcombine.low %v1237_v44, %v1239_v45 }
  0x8c   :  { %1047 = vmatprep.subr.bf16.mxu0 %v3145_v6  ;;  %1120 = vmatprep.subr.bf16.mxu1 %v3147_v7  ;;  %v3173_v6 = vcombine.high %v1217_v63, %v1219_v0  ;;  %v3175_v7 = vcombine.high %v1218_v1, %v1220_v2  ;;  %v1244_v57 = vld [vmem:[#allocation4 + $0x5c8] sm:$0xff] }
  0x8f   :  { %1048 = vmatpush1.bf16.msra.mxu0 %v3144_v13  ;;  %1121 = vmatpush1.bf16.msra.mxu1 %v3146_v14  ;;  %v3172_v13 = vcombine.low %v1217_v63, %v1219_v0  ;;  %v3174_v14 = vcombine.low %v1218_v1, %v1220_v2  ;;  %v1247_v63 = vld [vmem:[#allocation4 + $0x640] sm:$0xff]  ;;  %v1246_v0 = vld [vmem:[#allocation4 + $0x608] sm:$0xff] }
  0x90   :  { %1049 = vmatprep.subr.bf16.mxu0 %v3149_v15  ;;  %1122 = vmatprep.subr.bf16.mxu1 %v3151_v16  ;;  %v3177_v15 = vcombine.high %v1221_v8, %v1223_v9  ;;  %v3179_v16 = vcombine.high %v1222_v11, %v1224_v12  ;;  %v1248_v1 = vld [vmem:[#allocation4 + $0x648] sm:$0xff] }
  0x93   :  { %1050 = vmatpush1.bf16.msra.mxu0 %v3148_v22  ;;  %1123 = vmatpush1.bf16.msra.mxu1 %v3150_v23  ;;  %v3176_v22 = vcombine.low %v1221_v8, %v1223_v9  ;;  %v3178_v23 = vcombine.low %v1222_v11, %v1224_v12  ;;  %v1251_v8 = vld [vmem:[#allocation4 + $0x6c0] sm:$0xff]  ;;  %v1250_v9 = vld [vmem:[#allocation4 + $0x688] sm:$0xff] }
  0x94   :  { %1581 = vmatprep.subr.bf16.mxu0 %v3153_v24  ;;  %1654 = vmatprep.subr.bf16.mxu1 %v3155_v25  ;;  %v3181_v24 = vcombine.high %v1225_v17, %v1227_v18  ;;  %v3183_v25 = vcombine.high %v1226_v20, %v1228_v21  ;;  %v1252_v11 = vld [vmem:[#allocation4 + $0x6c8] sm:$0xff] }
  0x96   :  { %1052 = vmatmul.mubr.bf16.vlgmr.msra.gmra.mrb[16].mxu0 %v3495_v10  ;;  %1125 = vmatmul.mubr.bf16.vlgmr.msra.gmra.mrb[16].mxu1 %v3495_v10 }
  0x97   :  { %1582 = vmatpush1.bf16.msra.mxu0 %v3152_v31  ;;  %1655 = vmatpush1.bf16.msra.mxu1 %v3154_v32  ;;  %v3180_v31 = vcombine.low %v1225_v17, %v1227_v18  ;;  %v3182_v32 = vcombine.low %v1226_v20, %v1228_v21  ;;  %v1255_v17 = vld [vmem:[#allocation4 + $0x740] sm:$0xff]  ;;  %v1254_v18 = vld [vmem:[#allocation4 + $0x708] sm:$0xff] }
  0x98   :  { %1583 = vmatprep.subr.bf16.mxu0 %v3157_v33  ;;  %1656 = vmatprep.subr.bf16.mxu1 %v3159_v34  ;;  %v3185_v33 = vcombine.high %v1229_v26, %v1231_v27  ;;  %v3187_v34 = vcombine.high %v1230_v28, %v1232_v29  ;;  %v1256_v20 = vld [vmem:[#allocation4 + $0x748] sm:$0xff] }
  0x99   :  { %1061 = vmatprep.mubr.bf16.mxu0 %v3500_v19  ;;  %1134 = vmatprep.mubr.bf16.mxu1 %v3500_v19 }
  0x9b   :  { %1584 = vmatpush1.bf16.msra.mxu0 %v3156_v40  ;;  %1657 = vmatpush1.bf16.msra.mxu1 %v3158_v41  ;;  %v3184_v40 = vcombine.low %v1229_v26, %v1231_v27  ;;  %v3186_v41 = vcombine.low %v1230_v28, %v1232_v29  ;;  %v1259_v26 = vld [vmem:[#allocation4 + $0x7c0] sm:$0xff]  ;;  %v1258_v27 = vld [vmem:[#allocation4 + $0x788] sm:$0xff] }
  0x9c   :  { %1585 = vmatprep.subr.bf16.mxu0 %v3161_v42  ;;  %1658 = vmatprep.subr.bf16.mxu1 %v3163_v43  ;;  %v3189_v42 = vcombine.high %v1233_v35, %v1235_v36  ;;  %v3191_v43 = vcombine.high %v1234_v38, %v1236_v39  ;;  %v1260_v28 = vld [vmem:[#allocation4 + $0x7c8] sm:$0xff] }
  0x9e   :  { %1062 = vmatmul.mubr.bf16.gmra.mrb[20].mxu0 %v3509_v30  ;;  %1135 = vmatmul.mubr.bf16.gmra.mrb[20].mxu1 %v3509_v30 }
  0x9f   :  { %1586 = vmatpush1.bf16.msra.mxu0 %v3160_v49  ;;  %1659 = vmatpush1.bf16.msra.mxu1 %v3162_v50  ;;  %v3188_v49 = vcombine.low %v1233_v35, %v1235_v36  ;;  %v3190_v50 = vcombine.low %v1234_v38, %v1236_v39  ;;  %v2010_v35 = vld [vmem:[#allocation4 + $0x70] sm:$0xff]  ;;  %v2009_v36 = vld [vmem:[#allocation4 + $0x38] sm:$0xff] }
  0xa0   :  { %1587 = vmatprep.subr.bf16.mxu0 %v3165_v51  ;;  %1660 = vmatprep.subr.bf16.mxu1 %v3167_v52  ;;  %v3193_v51 = vcombine.high %v1237_v44, %v1239_v45  ;;  %v1241_v52 = vld [vmem:[#allocation4 + $0x580] sm:$0xff]  ;;  %v2011_v38 = vld [vmem:[#allocation4 + $0x78] sm:$0xff]  ;;  %v2014_v44 = vld [vmem:[#allocation4 + $0xf0] sm:$0xff] }
  0xa1   :  { %1071 = vmatprep.mubr.bf16.mxu0 %v3514_v37  ;;  %1144 = vmatprep.mubr.bf16.mxu1 %v3514_v37  ;;  %v3196_v2 = vcombine.low %v1241_v52, %v1243_v53  ;;  %v2013_v45 = vld [vmem:[#allocation4 + $0xb8] sm:$0xff] }
  0xa3   :  { %1588 = vmatpush1.bf16.msra.mxu0 %v3164_v59  ;;  %1661 = vmatpush1.bf16.msra.mxu1 %v3166_v60  ;;  %v3194_v59 = vcombine.low %v1238_v46, %v1240_v47  ;;  %v3197_v60 = vcombine.high %v1241_v52, %v1243_v53  ;;  %v2018_v52 = vld [vmem:[#allocation4 + $0x170] sm:$0xff]  ;;  %v2017_v53 = vld [vmem:[#allocation4 + $0x138] sm:$0xff] }
  0xa4   :  { %1589 = vmatprep.subr.bf16.mxu0 %v3169_v61  ;;  %1662 = vmatprep.subr.bf16.mxu1 %v3171_v62  ;;  %v3199_v61 = vcombine.high %v1242_v54, %v1244_v57  ;;  %v1245_v62 = vld [vmem:[#allocation4 + $0x600] sm:$0xff] }
  0xa5   :  { %v3200_v12 = vcombine.low %v1245_v62, %v1247_v63 }
  0xa6   :  { %1072 = vmatmul.mubr.bf16.gmra.mrb[24].mxu0 %v3523_v48  ;;  %1145 = vmatmul.mubr.bf16.gmra.mrb[24].mxu1 %v3523_v48 }
  0xa7   :  { %1590 = vmatpush1.bf16.msra.mxu0 %v3168_v4  ;;  %1663 = vmatpush1.bf16.msra.mxu1 %v3170_v5  ;;  %v3198_v4 = vcombine.low %v1242_v54, %v1244_v57  ;;  %v3201_v5 = vcombine.high %v1245_v62, %v1247_v63  ;;  %v2019_v54 = vld [vmem:[#allocation4 + $0x178] sm:$0xff]  ;;  %v2022_v62 = vld [vmem:[#allocation4 + $0x1f0] sm:$0xff] }
  0xa8   :  { %1591 = vmatprep.subr.bf16.mxu0 %v3173_v6  ;;  %1664 = vmatprep.subr.bf16.mxu1 %v3175_v7  ;;  %v3203_v6 = vcombine.high %v1246_v0, %v1248_v1  ;;  %v1249_v7 = vld [vmem:[#allocation4 + $0x680] sm:$0xff]  ;;  %v2021_v63 = vld [vmem:[#allocation4 + $0x1b8] sm:$0xff] }
  0xa9   :  { %1081 = vmatprep.mubr.bf16.mxu0 %v3528_v55  ;;  %1154 = vmatprep.mubr.bf16.mxu1 %v3528_v55  ;;  %v3204_v21 = vcombine.low %v1249_v7, %v1251_v8 }
  0xab   :  { %1592 = vmatpush1.bf16.msra.mxu0 %v3172_v13  ;;  %1665 = vmatpush1.bf16.msra.mxu1 %v3174_v14  ;;  %v3202_v13 = vcombine.low %v1246_v0, %v1248_v1  ;;  %v3205_v14 = vcombine.high %v1249_v7, %v1251_v8  ;;  %v2023_v0 = vld [vmem:[#allocation4 + $0x1f8] sm:$0xff] }
  0xac   :  { %1593 = vmatprep.subr.bf16.mxu0 %v3177_v15  ;;  %1666 = vmatprep.subr.bf16.mxu1 %v3179_v16  ;;  %v3207_v15 = vcombine.high %v1250_v9, %v1252_v11  ;;  %v1253_v16 = vld [vmem:[#allocation4 + $0x700] sm:$0xff]  ;;  %v2025_v7 = vld [vmem:[#allocation4 + $0x238] sm:$0xff] }
  0xad   :  { %v3208_v29 = vcombine.low %v1253_v16, %v1255_v17  ;;  %v2027_v8 = vld [vmem:[#allocation4 + $0x278] sm:$0xff] }
  0xae   :  { %1082 = vmatmul.mubr.bf16.gmra.mrb[28].mxu0 %v3537_v3  ;;  %1155 = vmatmul.mubr.bf16.gmra.mrb[28].mxu1 %v3537_v3 }
  0xaf   :  { %1594 = vmatpush1.bf16.msra.mxu0 %v3176_v22  ;;  %1667 = vmatpush1.bf16.msra.mxu1 %v3178_v23  ;;  %v3206_v22 = vcombine.low %v1250_v9, %v1252_v11  ;;  %v3209_v23 = vcombine.high %v1253_v16, %v1255_v17  ;;  %v3230_v9 = vcombine.low %v2021_v63, %v2023_v0  ;;  %v2031_v16 = vld [vmem:[#allocation4 + $0x2f8] sm:$0xff] }
  0xb0   :  { %1595 = vmatprep.subr.bf16.mxu0 %v3181_v24  ;;  %1668 = vmatprep.subr.bf16.mxu1 %v3183_v25  ;;  %v3211_v24 = vcombine.high %v1254_v18, %v1256_v20  ;;  %v1257_v25 = vld [vmem:[#allocation4 + $0x780] sm:$0xff] }
  0xb1   :  { %1613 = vmatprep.mubr.bf16.mxu0 %v3488_v56  ;;  %1686 = vmatprep.mubr.bf16.mxu1 %v3488_v56  ;;  %v3195_v56 = vcombine.high %v1238_v46, %v1240_v47  ;;  %v3212_v39 = vcombine.low %v1257_v25, %v1259_v26  ;;  %v2015_v46 = vld [vmem:[#allocation4 + $0xf8] sm:$0xff] }
  0xb3   :  { %1596 = vmatpush1.bf16.msra.mxu0 %v3180_v31  ;;  %1669 = vmatpush1.bf16.msra.mxu1 %v3182_v32  ;;  %v3210_v31 = vcombine.low %v1254_v18, %v1256_v20  ;;  %v3213_v32 = vcombine.high %v1257_v25, %v1259_v26 }
  0xb4   :  { %1597 = vmatprep.subr.bf16.mxu0 %v3185_v33  ;;  %1670 = vmatprep.subr.bf16.mxu1 %v3187_v34  ;;  %v3215_v33 = vcombine.high %v1258_v27, %v1260_v28  ;;  %v2008_v34 = vld [vmem:[#allocation4 + $0x30] sm:$0xff] }
  0xb5   :  { %v3216_v47 = vcombine.low %v2008_v34, %v2010_v35 }
  0xb7   :  { %1598 = vmatpush1.bf16.msra.mxu0 %v3184_v40  ;;  %1671 = vmatpush1.bf16.msra.mxu1 %v3186_v41  ;;  %v3214_v40 = vcombine.low %v1258_v27, %v1260_v28  ;;  %v3217_v41 = vcombine.high %v2008_v34, %v2010_v35  ;;  %v2036_v28 = vld [vmem:[#allocation4 + $0x3b0] sm:$0xff] }
  0xb8   :  { %1599 = vmatprep.subr.bf16.mxu0 %v3189_v42  ;;  %1672 = vmatprep.subr.bf16.mxu1 %v3191_v43  ;;  %v3219_v42 = vcombine.high %v2009_v36, %v2011_v38  ;;  %v2012_v43 = vld [vmem:[#allocation4 + $0xb0] sm:$0xff] }
  0xb9   :  { %v3220_v57 = vcombine.low %v2012_v43, %v2014_v44 }
  0xbb   :  { %1600 = vmatpush1.bf16.msra.mxu0 %v3188_v49  ;;  %1673 = vmatpush1.bf16.msra.mxu1 %v3190_v50  ;;  %v3218_v49 = vcombine.low %v2009_v36, %v2011_v38  ;;  %v3221_v50 = vcombine.high %v2012_v43, %v2014_v44  ;;  %v2040_v36 = vld [vmem:[#allocation4 + $0x430] sm:$0xff] }
  0xbc   :  { %1601 = vmatprep.subr.bf16.mxu0 %v3193_v51  ;;  %1674 = vmatprep.subr.bf16.mxu1 %v3195_v56  ;;  %v3223_v51 = vcombine.high %v2013_v45, %v2015_v46  ;;  %v2016_v56 = vld [vmem:[#allocation4 + $0x130] sm:$0xff] }
  0xbd   :  { %v3224_v1 = vcombine.low %v2016_v56, %v2018_v52  ;;  %v2042_v38 = vld [vmem:[#allocation4 + $0x470] sm:$0xff] }
  0xbe   :  { %v2044_v44 = vld [vmem:[#allocation4 + $0x4b0] sm:$0xff] }
  0xbf   :  { %1602 = vmatpush1.bf16.msra.mxu0 %v3192_v58  ;;  %1675 = vmatpush1.bf16.msra.mxu1 %v3194_v59  ;;  %v3222_v58 = vcombine.low %v2013_v45, %v2015_v46  ;;  %v3225_v59 = vcombine.high %v2016_v56, %v2018_v52  ;;  %v2046_v45 = vld [vmem:[#allocation4 + $0x4f0] sm:$0xff]  ;;  %v3423_v46 = vld [vmem:[%s4081_s0 + $0x4] ss:$8 sps:$4 sm:$0xff]  }
  0xc0   :  { %1603 = vmatprep.subr.bf16.mxu0 %v3197_v60  ;;  %1676 = vmatprep.subr.bf16.mxu1 %v3199_v61  ;;  %v3227_v60 = vcombine.high %v2017_v53, %v2019_v54  ;;  %v2020_v61 = vld [vmem:[#allocation4 + $0x1b0] sm:$0xff] }
  0xc1   :  { %v2048_v52 = vld [vmem:[#allocation4 + $0x530] sm:$0xff] }
  0xc3   :  { %1604 = vmatpush1.bf16.msra.mxu0 %v3196_v2  ;;  %1677 = vmatpush1.bf16.msra.mxu1 %v3198_v4  ;;  %v3229_v2 = vcombine.high %v2020_v61, %v2022_v62  ;;  %v3231_v4 = vcombine.high %v2021_v63, %v2023_v0  ;;  %v2054_v63 = vld [vmem:[#allocation4 + $0x5f0] sm:$0xff]  ;;  %v2053_v0 = vld [vmem:[#allocation4 + $0x5b8] sm:$0xff] }
  0xc4   :  { %1605 = vmatprep.subr.bf16.mxu0 %v3201_v5  ;;  %1678 = vmatprep.subr.bf16.mxu1 %v3203_v6  ;;  %v2024_v5 = vld [vmem:[#allocation4 + $0x230] sm:$0xff] }
  0xc5   :  { %v2026_v6 = vld [vmem:[#allocation4 + $0x270] sm:$0xff] }
  0xc6   :  { %v3233_v11 = vcombine.high %v2024_v5, %v2026_v6  ;;  %v3232_v17 = vcombine.low %v2024_v5, %v2026_v6  ;;  %v2056_v6 = vld [vmem:[#allocation4 + $0x630] sm:$0xff] }
  0xc7   :  { %1606 = vmatpush1.bf16.msra.mxu0 %v3200_v12  ;;  %1679 = vmatpush1.bf16.msra.mxu1 %v3202_v13  ;;  %v3235_v12 = vcombine.high %v2025_v7, %v2027_v8  ;;  %v2028_v13 = vld [vmem:[#allocation4 + $0x2b0] sm:$0xff] }
  0xc8   :  { %1607 = vmatprep.subr.bf16.mxu0 %v3205_v14  ;;  %1680 = vmatprep.subr.bf16.mxu1 %v3207_v15  ;;  %v2030_v14 = vld [vmem:[#allocation4 + $0x2f0] sm:$0xff]  ;;  %v2029_v15 = vld [vmem:[#allocation4 + $0x2b8] sm:$0xff] }
  0xc9   :  { %v3237_v18 = vcombine.high %v2028_v13, %v2030_v14  ;;  %v3239_v20 = vcombine.high %v2029_v15, %v2031_v16  ;;  %v3238_v25 = vcombine.low %v2029_v15, %v2031_v16  ;;  %v2062_v15 = vld [vmem:[#allocation4 + $0x6f0] sm:$0xff]  ;;  %v2061_v16 = vld [vmem:[#allocation4 + $0x6b8] sm:$0xff] }
  0xcb   :  { %1608 = vmatpush1.bf16.msra.mxu0 %v3204_v21  ;;  %1681 = vmatpush1.bf16.msra.mxu1 %v3206_v22  ;;  %v2032_v21 = vld [vmem:[#allocation4 + $0x330] sm:$0xff] }
  0xcc   :  { %1609 = vmatprep.subr.bf16.mxu0 %v3209_v23  ;;  %1682 = vmatprep.subr.bf16.mxu1 %v3211_v24  ;;  %v2034_v22 = vld [vmem:[#allocation4 + $0x370] sm:$0xff]  ;;  %v2033_v23 = vld [vmem:[#allocation4 + $0x338] sm:$0xff] }
  0xcd   :  { %v2035_v24 = vld [vmem:[#allocation4 + $0x378] sm:$0xff]  ;;  %v3241_v26 = vcombine.high %v2032_v21, %v2034_v22 }
  0xce   :  { %v3243_v27 = vcombine.high %v2033_v23, %v2035_v24 }
  0xcf   :  { %1610 = vmatpush1.bf16.msra.mxu0 %v3208_v29  ;;  %1683 = vmatpush1.bf16.msra.mxu1 %v3210_v31  ;;  %v2038_v29 = vld [vmem:[#allocation4 + $0x3f0] sm:$0xff]  ;;  %v2037_v31 = vld [vmem:[#allocation4 + $0x3b8] sm:$0xff] }
  0xd0   :  { %1611 = vmatprep.subr.bf16.mxu0 %v3213_v32  ;;  %1684 = vmatprep.subr.bf16.mxu1 %v3215_v33  ;;  %v2039_v32 = vld [vmem:[#allocation4 + $0x3f8] sm:$0xff]  ;;  %v3240_v33 = vcombine.low %v2032_v21, %v2034_v22  ;;  %v3245_v34 = vcombine.high %v2036_v28, %v2038_v29  ;;  %v2064_v22 = vld [vmem:[#allocation4 + $0x730] sm:$0xff] }
  0xd1   :  { %v3247_v35 = vcombine.high %v2037_v31, %v2039_v32 }
  0xd3   :  { %1612 = vmatpush1.bf16.msra.mxu0 %v3212_v39  ;;  %1685 = vmatpush1.bf16.msra.mxu1 %v3214_v40  ;;  %v2041_v39 = vld [vmem:[#allocation4 + $0x438] sm:$0xff] }
  0xd4   :  { %2392 = vmatprep.subr.bf16.mxu0 %v3217_v41  ;;  %2465 = vmatprep.subr.bf16.mxu1 %v3219_v42  ;;  %v2043_v40 = vld [vmem:[#allocation4 + $0x478] sm:$0xff]  ;;  %v3246_v41 = vcombine.low %v2037_v31, %v2039_v32  ;;  %v3249_v42 = vcombine.high %v2040_v36, %v2042_v38  ;;  %v2070_v31 = vld [vmem:[#allocation4 + $0x7f0] sm:$0xff] }
  0xd5   :  { %v3251_v43 = vcombine.high %v2041_v39, %v2043_v40  ;;  %v2069_v32 = vld [vmem:[#allocation4 + $0x7b8] sm:$0xff] }
  0xd6   :  { %1614 = vmatmul.mubr.bf16.vlgmr.msra.gmra.mrb[32].mxu0 %v3495_v10  ;;  %1687 = vmatmul.mubr.bf16.vlgmr.msra.gmra.mrb[32].mxu1 %v3495_v10  ;;  %v3226_v10 = vcombine.low %v2017_v53, %v2019_v54  ;;  %v2050_v53 = vld [vmem:[#allocation4 + $0x570] sm:$0xff]  ;;  %v2049_v54 = vld [vmem:[#allocation4 + $0x538] sm:$0xff] }
  0xd7   :  { %2393 = vmatpush1.bf16.msra.mxu0 %v3216_v47  ;;  %2466 = vmatpush1.bf16.msra.mxu1 %v3218_v49  ;;  %v2045_v47 = vld [vmem:[#allocation4 + $0x4b8] sm:$0xff] }
  0xd8   :  { %2394 = vmatprep.subr.bf16.mxu0 %v3221_v50  ;;  %2467 = vmatprep.subr.bf16.mxu1 %v3223_v51  ;;  %v2047_v49 = vld [vmem:[#allocation4 + $0x4f8] sm:$0xff]  ;;  %v3250_v50 = vcombine.low %v2041_v39, %v2043_v40  ;;  %v3253_v51 = vcombine.high %v2044_v44, %v2046_v45  ;;  %v3424_v40 = vld [vmem:[%s4081_s0] ss:$8 sps:$4 sm:$0xff]  }
  0xd9   :  { %1623 = vmatprep.mubr.bf16.mxu0 %v3500_v19  ;;  %1696 = vmatprep.mubr.bf16.mxu1 %v3500_v19  ;;  %v3228_v19 = vcombine.low %v2020_v61, %v2022_v62  ;;  %v3255_v56 = vcombine.high %v2045_v47, %v2047_v49  ;;  %v2052_v62 = vld [vmem:[#allocation4 + $0x5b0] sm:$0xff] }
  0xdb   :  { %2395 = vmatpush1.bf16.msra.mxu0 %v3220_v57  ;;  %2468 = vmatpush1.bf16.msra.mxu1 %v3222_v58  ;;  %v2051_v57 = vld [vmem:[#allocation4 + $0x578] sm:$0xff]  ;;  %v3252_v58 = vcombine.low %v2044_v44, %v2046_v45 }
  0xdc   :  { %2396 = vmatprep.subr.bf16.mxu0 %v3225_v59  ;;  %2469 = vmatprep.subr.bf16.mxu1 %v3227_v60  ;;  %v3254_v59 = vcombine.low %v2045_v47, %v2047_v49  ;;  %v3257_v60 = vcombine.high %v2048_v52, %v2050_v53  ;;  %v3259_v61 = vcombine.high %v2049_v54, %v2051_v57  ;;  %v3429_v44 = vld [vmem:[%s4081_s0 + $0x34] ss:$8 sps:$4 sm:$0xff]  }
  0xde   :  { %1624 = vmatmul.mubr.bf16.gmra.mrb[36].mxu0 %v3509_v30  ;;  %1697 = vmatmul.mubr.bf16.gmra.mrb[36].mxu1 %v3509_v30  ;;  %v3234_v30 = vcombine.low %v2025_v7, %v2027_v8  ;;  %v2058_v7 = vld [vmem:[#allocation4 + $0x670] sm:$0xff]  ;;  %v2057_v8 = vld [vmem:[#allocation4 + $0x638] sm:$0xff] }
  0xdf   :  { %2397 = vmatpush1.bf16.msra.mxu0 %v3224_v1  ;;  %2470 = vmatpush1.bf16.msra.mxu1 %v3226_v10  ;;  %v2055_v1 = vld [vmem:[#allocation4 + $0x5f8] sm:$0xff]  ;;  %v3256_v10 = vcombine.low %v2048_v52, %v2050_v53 }
  0xe0   :  { %2398 = vmatprep.subr.bf16.mxu0 %v3229_v2  ;;  %2471 = vmatprep.subr.bf16.mxu1 %v3231_v4  ;;  %v3258_v2 = vcombine.low %v2049_v54, %v2051_v57  ;;  %v3261_v4 = vcombine.high %v2052_v62, %v2054_v63  ;;  %v3263_v5 = vcombine.high %v2053_v0, %v2055_v1  ;;  %v3430_v52 = vld [vmem:[%s4081_s0 + $0x30] ss:$8 sps:$4 sm:$0xff]  }
  0xe1   :  { %1633 = vmatprep.mubr.bf16.mxu0 %v3514_v37  ;;  %1706 = vmatprep.mubr.bf16.mxu1 %v3514_v37  ;;  %v3236_v37 = vcombine.low %v2028_v13, %v2030_v14  ;;  %v2060_v14 = vld [vmem:[#allocation4 + $0x6b0] sm:$0xff] }
  0xe3   :  { %2399 = vmatpush1.bf16.msra.mxu0 %v3228_v19  ;;  %2472 = vmatpush1.bf16.msra.mxu1 %v3230_v9  ;;  %v2059_v19 = vld [vmem:[#allocation4 + $0x678] sm:$0xff]  ;;  %v3260_v9 = vcombine.low %v2052_v62, %v2054_v63 }
  0xe4   :  { %2400 = vmatprep.subr.bf16.mxu0 %v3233_v11  ;;  %2473 = vmatprep.subr.bf16.mxu1 %v3235_v12  ;;  %v3262_v11 = vcombine.low %v2053_v0, %v2055_v1  ;;  %v3265_v12 = vcombine.high %v2056_v6, %v2058_v7  ;;  %v3267_v13 = vcombine.high %v2057_v8, %v2059_v19 }
  0xe6   :  { %1634 = vmatmul.mubr.bf16.gmra.mrb[40].mxu0 %v3523_v48  ;;  %1707 = vmatmul.mubr.bf16.gmra.mrb[40].mxu1 %v3523_v48  ;;  %v3242_v48 = vcombine.low %v2033_v23, %v2035_v24  ;;  %v2066_v23 = vld [vmem:[#allocation4 + $0x770] sm:$0xff]  ;;  %v2065_v24 = vld [vmem:[#allocation4 + $0x738] sm:$0xff] }
  0xe7   :  { %2401 = vmatpush1.bf16.msra.mxu0 %v3232_v17  ;;  %2474 = vmatpush1.bf16.msra.mxu1 %v3234_v30  ;;  %v2063_v17 = vld [vmem:[#allocation4 + $0x6f8] sm:$0xff]  ;;  %v3264_v30 = vcombine.low %v2056_v6, %v2058_v7 }
  0xe8   :  { %2402 = vmatprep.subr.bf16.mxu0 %v3237_v18  ;;  %2475 = vmatprep.subr.bf16.mxu1 %v3239_v20  ;;  %v3266_v18 = vcombine.low %v2057_v8, %v2059_v19  ;;  %v3269_v20 = vcombine.high %v2060_v14, %v2062_v15  ;;  %v3271_v21 = vcombine.high %v2061_v16, %v2063_v17 }
  0xe9   :  { %1643 = vmatprep.mubr.bf16.mxu0 %v3528_v55  ;;  %1716 = vmatprep.mubr.bf16.mxu1 %v3528_v55  ;;  %v3244_v55 = vcombine.low %v2036_v28, %v2038_v29  ;;  %v2068_v29 = vld [vmem:[#allocation4 + $0x7b0] sm:$0xff] }
  0xeb   :  { %2403 = vmatpush1.bf16.msra.mxu0 %v3236_v37  ;;  %2476 = vmatpush1.bf16.msra.mxu1 %v3238_v25  ;;  %v2067_v37 = vld [vmem:[#allocation4 + $0x778] sm:$0xff]  ;;  %v3268_v25 = vcombine.low %v2060_v14, %v2062_v15 }
  0xec   :  { %2404 = vmatprep.subr.bf16.mxu0 %v3241_v26  ;;  %2477 = vmatprep.subr.bf16.mxu1 %v3243_v27  ;;  %v3270_v26 = vcombine.low %v2061_v16, %v2063_v17  ;;  %v3273_v27 = vcombine.high %v2064_v22, %v2066_v23  ;;  %v3275_v28 = vcombine.high %v2065_v24, %v2067_v37 }
  0xee   :  { %1644 = vmatmul.mubr.bf16.gmra.mrb[44].mxu0 %v3537_v3  ;;  %1717 = vmatmul.mubr.bf16.gmra.mrb[44].mxu1 %v3537_v3  ;;  %v3248_v3 = vcombine.low %v2040_v36, %v2042_v38  ;;  %v3276_v38 = vcombine.low %v2068_v29, %v2070_v31 }
  0xef   :  { %2405 = vmatpush1.bf16.msra.mxu0 %v3240_v33  ;;  %2478 = vmatpush1.bf16.msra.mxu1 %v3242_v48  ;;  %v2071_v33 = vld [vmem:[#allocation4 + $0x7f8] sm:$0xff]  ;;  %v3272_v48 = vcombine.low %v2064_v22, %v2066_v23 }
  0xf0   :  { %2406 = vmatprep.subr.bf16.mxu0 %v3245_v34  ;;  %2479 = vmatprep.subr.bf16.mxu1 %v3247_v35  ;;  %v3274_v34 = vcombine.low %v2065_v24, %v2067_v37  ;;  %v3277_v35 = vcombine.high %v2068_v29, %v2070_v31  ;;  %v3279_v36 = vcombine.high %v2069_v32, %v2071_v33 }
  0xf1   :  { %2424 = vmatprep.mubr.bf16.mxu0 %v3423_v46  ;;  %2497 = vmatprep.mubr.bf16.mxu1 %v3423_v46  ;;  %v3278_v39 = vcombine.low %v2069_v32, %v2071_v33 }
  0xf3   :  { %2407 = vmatpush1.bf16.msra.mxu0 %v3244_v55  ;;  %2480 = vmatpush1.bf16.msra.mxu1 %v3246_v41  ;;  %v3425_v55 = vld [vmem:[%s4081_s0 + $0x14] ss:$8 sps:$4 sm:$0xff]   ;;  %v3426_v41 = vld [vmem:[%s4081_s0 + $0x10] ss:$8 sps:$4 sm:$0xff]  }
  0xf4   :  { %2408 = vmatprep.subr.bf16.mxu0 %v3249_v42  ;;  %2481 = vmatprep.subr.bf16.mxu1 %v3251_v43  ;;  %v3427_v42 = vld [vmem:[%s4081_s0 + $0x24] ss:$8 sps:$4 sm:$0xff]   ;;  %v3428_v43 = vld [vmem:[%s4081_s0 + $0x20] ss:$8 sps:$4 sm:$0xff]  }
  0xf7   :  { %2409 = vmatpush1.bf16.msra.mxu0 %v3248_v3  ;;  %2482 = vmatpush1.bf16.msra.mxu1 %v3250_v50 }
  0xf8   :  { %2410 = vmatprep.subr.bf16.mxu0 %v3253_v51  ;;  %2483 = vmatprep.subr.bf16.mxu1 %v3255_v56 }
  0xfb   :  { %2411 = vmatpush1.bf16.msra.mxu0 %v3252_v58  ;;  %2484 = vmatpush1.bf16.msra.mxu1 %v3254_v59 }
  0xfc   :  { %2412 = vmatprep.subr.bf16.mxu0 %v3257_v60  ;;  %2485 = vmatprep.subr.bf16.mxu1 %v3259_v61 }
  0xff   :  { %2413 = vmatpush1.bf16.msra.mxu0 %v3256_v10  ;;  %2486 = vmatpush1.bf16.msra.mxu1 %v3258_v2 }
 0x100   :  { %2414 = vmatprep.subr.bf16.mxu0 %v3261_v4  ;;  %2487 = vmatprep.subr.bf16.mxu1 %v3263_v5 }
 0x103   :  { %2415 = vmatpush1.bf16.msra.mxu0 %v3260_v9  ;;  %2488 = vmatpush1.bf16.msra.mxu1 %v3262_v11 }
 0x104   :  { %2416 = vmatprep.subr.bf16.mxu0 %v3265_v12  ;;  %2489 = vmatprep.subr.bf16.mxu1 %v3267_v13 }
 0x107   :  { %2417 = vmatpush1.bf16.msra.mxu0 %v3264_v30  ;;  %2490 = vmatpush1.bf16.msra.mxu1 %v3266_v18 }
 0x108   :  { %2418 = vmatprep.subr.bf16.mxu0 %v3269_v20  ;;  %2491 = vmatprep.subr.bf16.mxu1 %v3271_v21 }
 0x10b   :  { %2419 = vmatpush1.bf16.msra.mxu0 %v3268_v25  ;;  %2492 = vmatpush1.bf16.msra.mxu1 %v3270_v26 }
 0x10c   :  { %2420 = vmatprep.subr.bf16.mxu0 %v3273_v27  ;;  %2493 = vmatprep.subr.bf16.mxu1 %v3275_v28 }
 0x10f   :  { %2421 = vmatpush1.bf16.msra.mxu0 %v3272_v48  ;;  %2494 = vmatpush1.bf16.msra.mxu1 %v3274_v34 }
 0x110   :  { %2422 = vmatprep.subr.bf16.mxu0 %v3277_v35  ;;  %2495 = vmatprep.subr.bf16.mxu1 %v3279_v36 }
 0x113   :  { %2423 = vmatpush1.bf16.msra.mxu0 %v3276_v38  ;;  %2496 = vmatpush1.bf16.msra.mxu1 %v3278_v39 }
 0x116   :  { %2425 = vmatmul.mubr.bf16.vlgmr.msra.gmra.mrb[48].mxu0 %v3424_v40  ;;  %2498 = vmatmul.mubr.bf16.vlgmr.msra.gmra.mrb[48].mxu1 %v3424_v40 }
 0x117   :  { %2434 = vmatprep.mubr.bf16.mxu0 %v3425_v55  ;;  %2507 = vmatprep.mubr.bf16.mxu1 %v3425_v55 }
 0x11e   :  { %2435 = vmatmul.mubr.bf16.gmra.mrb[52].mxu0 %v3426_v41  ;;  %2508 = vmatmul.mubr.bf16.gmra.mrb[52].mxu1 %v3426_v41 }
 0x11f   :  { %2444 = vmatprep.mubr.bf16.mxu0 %v3427_v42  ;;  %2517 = vmatprep.mubr.bf16.mxu1 %v3427_v42 }
 0x126   :  { %2445 = vmatmul.mubr.bf16.gmra.mrb[56].mxu0 %v3428_v43  ;;  %2518 = vmatmul.mubr.bf16.gmra.mrb[56].mxu1 %v3428_v43 }
 0x127   :  { %2454 = vmatprep.mubr.bf16.mxu0 %v3429_v44  ;;  %2527 = vmatprep.mubr.bf16.mxu1 %v3429_v44 }
 0x129   :  { %v491_v45 = vpop.f32.mrb[0].mxu0  ;;  %v564_v46 = vpop.f32.mrb[0].mxu1 }
 0x12a   :  { %603 = vst [vmem:[#allocation2] sm:$0xff] %v491_v45  ;;  %v493_v47 = vpop.f32.mrb[1].mxu0  ;;  %605 = vst [vmem:[#allocation2 + $0x10] sm:$0xff] %v564_v46  ;;  %v566_v49 = vpop.f32.mrb[1].mxu1 }
 0x12b   :  { %604 = vst [vmem:[#allocation2 + $0x8] sm:$0xff] %v493_v47  ;;  %v3594_v3 = vpop.f32.mrb[2].mxu0  ;;  %606 = vst [vmem:[#allocation2 + $0x18] sm:$0xff] %v566_v49  ;;  %v3596_v50 = vpop.f32.mrb[2].mxu1 }
 0x12c   :  { %v3598_v51 = vpop.f32.mrb[3].mxu0  ;;  %v3600_v56 = vpop.f32.mrb[3].mxu1 }
 0x12e   :  { %2455 = vmatmul.mubr.bf16.gmra.mrb[60].mxu0 %v3430_v52  ;;  %2528 = vmatmul.mubr.bf16.gmra.mrb[60].mxu1 %v3430_v52 }
 0x131   :  { %v3605_v53 = vpop.f32.mrb[4].mxu0  ;;  %v3607_v54 = vpop.f32.mrb[4].mxu1 }
 0x132   :  { %v3609_v57 = vpop.f32.mrb[5].mxu0  ;;  %v3611_v58 = vpop.f32.mrb[5].mxu1 }
 0x133   :  { %v3613_v59 = vpop.f32.mrb[6].mxu0  ;;  %v3615_v60 = vpop.f32.mrb[6].mxu1 }
 0x134   :  { %v3617_v61 = vpop.f32.mrb[7].mxu0  ;;  %v3619_v62 = vpop.f32.mrb[7].mxu1 }
 0x139   :  { %v511_v63 = vpop.f32.mrb[8].mxu0  ;;  %v584_v0 = vpop.f32.mrb[8].mxu1 }
 0x13a   :  { %619 = vst [vmem:[#allocation2 + $0x100] sm:$0xff] %v511_v63  ;;  %v513_v1 = vpop.f32.mrb[9].mxu0  ;;  %621 = vst [vmem:[#allocation2 + $0x110] sm:$0xff] %v584_v0  ;;  %v586_v10 = vpop.f32.mrb[9].mxu1 }
 0x13b   :  { %620 = vst [vmem:[#allocation2 + $0x108] sm:$0xff] %v513_v1  ;;  %v3621_v2 = vpop.f32.mrb[10].mxu0  ;;  %622 = vst [vmem:[#allocation2 + $0x118] sm:$0xff] %v586_v10  ;;  %v3623_v4 = vpop.f32.mrb[10].mxu1 }
 0x13c   :  { %v3625_v5 = vpop.f32.mrb[11].mxu0  ;;  %v3627_v6 = vpop.f32.mrb[11].mxu1 }
 0x141   :  { %v3629_v7 = vpop.f32.mrb[12].mxu0  ;;  %v3631_v8 = vpop.f32.mrb[12].mxu1 }
 0x142   :  { %v3633_v19 = vpop.f32.mrb[13].mxu0  ;;  %v3635_v9 = vpop.f32.mrb[13].mxu1 }
 0x143   :  { %v3637_v11 = vpop.f32.mrb[14].mxu0  ;;  %v3639_v12 = vpop.f32.mrb[14].mxu1 }
 0x144   :  { %4084 = vst [vmem:[#allocation7_spill] sm:$0xff] %v3639_v12  ;;  %v3641_v13 = vpop.f32.mrb[15].mxu0  ;;  %v3643_v14 = vpop.f32.mrb[15].mxu1 }
 0x145   :  { %4085 = vst [vmem:[#allocation8_spill] sm:$0xff] %v3641_v13  ;;  %4086 = vst [vmem:[#allocation9_spill] sm:$0xff] %v3643_v14 }
 0x169   :  { %v3645_v15 = vpop.f32.mrb[16].mxu0  ;;  %v3647_v16 = vpop.f32.mrb[16].mxu1 }
 0x16a   :  { %v3649_v17 = vpop.f32.mrb[17].mxu0  ;;  %v3651_v30 = vpop.f32.mrb[17].mxu1 }
 0x16b   :  { %v3653_v18 = vpop.f32.mrb[18].mxu0  ;;  %v3655_v20 = vpop.f32.mrb[18].mxu1 }
 0x16c   :  { %v3657_v21 = vpop.f32.mrb[19].mxu0  ;;  %v3659_v22 = vpop.f32.mrb[19].mxu1 }
 0x171   :  { %v3661_v23 = vpop.f32.mrb[20].mxu0  ;;  %v3663_v24 = vpop.f32.mrb[20].mxu1 }
 0x172   :  { %v3665_v37 = vpop.f32.mrb[21].mxu0  ;;  %v3667_v25 = vpop.f32.mrb[21].mxu1 }
 0x173   :  { %v1067_v26 = vpop.f32.mrb[22].mxu0  ;;  %v1140_v27 = vpop.f32.mrb[22].mxu1 }
 0x174   :  { %1177 = vst [vmem:[#allocation2 + $0xe0] sm:$0xff] %v1067_v26  ;;  %v1069_v28 = vpop.f32.mrb[23].mxu0  ;;  %1179 = vst [vmem:[#allocation2 + $0xf0] sm:$0xff] %v1140_v27  ;;  %v1142_v29 = vpop.f32.mrb[23].mxu1 }
 0x175   :  { %1178 = vst [vmem:[#allocation2 + $0xe8] sm:$0xff] %v1069_v28  ;;  %1180 = vst [vmem:[#allocation2 + $0xf8] sm:$0xff] %v1142_v29 }
 0x179   :  { %v3669_v31 = vpop.f32.mrb[24].mxu0  ;;  %v3671_v32 = vpop.f32.mrb[24].mxu1 }
 0x17a   :  { %v3673_v33 = vpop.f32.mrb[25].mxu0  ;;  %v3675_v48 = vpop.f32.mrb[25].mxu1 }
 0x17b   :  { %v3677_v34 = vpop.f32.mrb[26].mxu0  ;;  %v1150_v35 = vpop.f32.mrb[26].mxu1 }
 0x17c   :  { %v1079_v36 = vpop.f32.mrb[27].mxu0  ;;  %1187 = vst [vmem:[#allocation2 + $0x170] sm:$0xff] %v1150_v35  ;;  %v1152_v38 = vpop.f32.mrb[27].mxu1 }
 0x17d   :  { %1186 = vst [vmem:[#allocation2 + $0x168] sm:$0xff] %v1079_v36  ;;  %1188 = vst [vmem:[#allocation2 + $0x178] sm:$0xff] %v1152_v38 }
 0x181   :  { %v1083_v39 = vpop.f32.mrb[28].mxu0  ;;  %v1156_v40 = vpop.f32.mrb[28].mxu1 }
 0x182   :  { %1189 = vst [vmem:[#allocation2 + $0x1a0] sm:$0xff] %v1083_v39  ;;  %v1085_v55 = vpop.f32.mrb[29].mxu0  ;;  %1191 = vst [vmem:[#allocation2 + $0x1b0] sm:$0xff] %v1156_v40  ;;  %v1158_v41 = vpop.f32.mrb[29].mxu1 }
 0x183   :  { %1190 = vst [vmem:[#allocation2 + $0x1a8] sm:$0xff] %v1085_v55  ;;  %v1087_v42 = vpop.f32.mrb[30].mxu0  ;;  %1192 = vst [vmem:[#allocation2 + $0x1b8] sm:$0xff] %v1158_v41  ;;  %v1160_v43 = vpop.f32.mrb[30].mxu1 }
 0x184   :  { %1193 = vst [vmem:[#allocation2 + $0x1e0] sm:$0xff] %v1087_v42  ;;  %v1089_v44 = vpop.f32.mrb[31].mxu0  ;;  %1195 = vst [vmem:[#allocation2 + $0x1f0] sm:$0xff] %v1160_v43  ;;  %v1162_v45 = vpop.f32.mrb[31].mxu1 }
 0x185   :  { %1194 = vst [vmem:[#allocation2 + $0x1e8] sm:$0xff] %v1089_v44  ;;  %1196 = vst [vmem:[#allocation2 + $0x1f8] sm:$0xff] %v1162_v45 }
 0x1a9   :  { %v1615_v46 = vpop.f32.mrb[32].mxu0  ;;  %v1688_v47 = vpop.f32.mrb[32].mxu1 }
 0x1aa   :  { %1727 = vst [vmem:[#allocation3] sm:$0xff] %v1615_v46  ;;  %v1617_v49 = vpop.f32.mrb[33].mxu0  ;;  %1729 = vst [vmem:[#allocation3 + $0x10] sm:$0xff] %v1688_v47  ;;  %v1690_v52 = vpop.f32.mrb[33].mxu1 }
 0x1ab   :  { %1728 = vst [vmem:[#allocation3 + $0x8] sm:$0xff] %v1617_v49  ;;  %v1619_v63 = vpop.f32.mrb[34].mxu0  ;;  %1730 = vst [vmem:[#allocation3 + $0x18] sm:$0xff] %v1690_v52  ;;  %v1692_v0 = vpop.f32.mrb[34].mxu1 }
 0x1ac   :  { %v1621_v1 = vpop.f32.mrb[35].mxu0  ;;  %v1694_v10 = vpop.f32.mrb[35].mxu1  ;;  %v1809_v26 = vrot.slane %v1619_v63, 1  ;;  %v1815_v29 = vrot.slane %v1692_v0, 1 }
 0x1ad   :  { %v1812_v35 = vrot.slane %v1621_v1, 1  ;;  %v1818_v36 = vrot.slane %v1694_v10, 1 }
 0x1b1   :  { %v1625_v27 = vpop.f32.mrb[36].mxu0  ;;  %v1775_v28 = vld [vmem:[#allocation3] sm:$0xfe]  ;;  %v1698_v38 = vpop.f32.mrb[36].mxu1  ;;  %v1777_v55 = vld [vmem:[#allocation3 + $0x10] sm:$0xfe] }
 0x1b2   :  { %v3679_v39 = vpop.f32.mrb[37].mxu0  ;;  %v1808_v40 = vrot.slane %v1775_v28, 1  ;;  %v1820_v41 = vrot.slane %v1625_v27, 1  ;;  %v3681_v42 = vpop.f32.mrb[37].mxu1  ;;  %v1814_v44 = vrot.slane %v1777_v55, 1  ;;  %v1824_v46 = vrot.slane %v1698_v38, 1 }
 0x1b3   :  { %v1629_v43 = vpop.f32.mrb[38].mxu0  ;;  %v1776_v45 = vld [vmem:[#allocation3 + $0x8] sm:$0xfe]  ;;  %v1702_v47 = vpop.f32.mrb[38].mxu1  ;;  %v1778_v63 = vld [vmem:[#allocation3 + $0x18] sm:$0xfe] }
 0x1b4   :  { %v1631_v49 = vpop.f32.mrb[39].mxu0  ;;  %v1811_v52 = vrot.slane %v1776_v45, 1  ;;  %v1810_v0 = vsel %vm1807_vm0, %v1808_v40, %v1809_v26  ;;  %v1821_v1 = vsel %vm1807_vm0, %v1809_v26, %v1820_v41  ;;  %v1822_v10 = vrot.slane %v3679_v39, 1  ;;  %v1704_v14 = vpop.f32.mrb[39].mxu1 }
 0x1b5   :  { %v1817_v28 = vrot.slane %v1778_v63, 1  ;;  %v1852_v27 = vadd.f32 %v1810_v0, %v3645_v15  ;;  %v1816_v13 = vsel %vm1807_vm0, %v1814_v44, %v1815_v29  ;;  %v1856_v55 = vadd.f32 %v1821_v1, %v3653_v18 }
 0x1b6   :  { %v1854_v38 = vadd.f32 %v1816_v13, %v3647_v16  ;;  %v1813_v12 = vsel %vm1807_vm0, %v1811_v52, %v1812_v35  ;;  %v1825_v45 = vsel %vm1807_vm0, %v1815_v29, %v1824_v46  ;;  %v1823_v40 = vsel %vm1807_vm0, %v1812_v35, %v1822_v10 }
 0x1b7   :  { %3295 = vtanh.f32 %v1852_v27  ;;  %v1853_v26 = vadd.f32 %v1813_v12, %v3649_v17  ;;  %v1819_v39 = vsel %vm1807_vm0, %v1817_v28, %v1818_v36  ;;  %v1858_v63 = vadd.f32 %v1825_v45, %v3655_v20  ;;  %v1771_v17 = vld [vmem:[#allocation2 + $0xe0] sm:$0x7f] }
 0x1b8   :  { %3297 = vtanh.f32 %v1854_v38  ;;  %v1855_v15 = vadd.f32 %v1819_v39, %v3651_v30  ;;  %v1857_v18 = vadd.f32 %v1823_v40, %v3657_v21  ;;  %v1826_v13 = vrot.slane %v3681_v42, 1  ;;  %v1772_v38 = vld [vmem:[#allocation2 + $0xe8] sm:$0x7f]  ;;  %v1774_v40 = vld [vmem:[#allocation2 + $0xf8] sm:$0x7f] }
 0x1b9   :  { %v1635_v16 = vpop.f32.mrb[40].mxu0  ;;  %3299 = vtanh.f32 %v1853_v26  ;;  %v1828_v44 = vrot.slane %v1629_v43, 1  ;;  %v1832_v29 = vrot.slane %v1702_v47, 1  ;;  %v1830_v52 = vrot.slane %v1631_v49, 1  ;;  %v1708_v35 = vpop.f32.mrb[40].mxu1 }
 0x1ba   :  { %1743 = vst [vmem:[#allocation3 + $0x80] sm:$0xff] %v1635_v16  ;;  %v1637_v0 = vpop.f32.mrb[41].mxu0  ;;  %3301 = vtanh.f32 %v1855_v15  ;;  %v1827_v12 = vsel %vm1807_vm0, %v1818_v36, %v1826_v13  ;;  %v1834_v20 = vrot.slane %v1704_v14, 1  ;;  %1745 = vst [vmem:[#allocation3 + $0x90] sm:$0xff] %v1708_v35  ;;  %v1710_v30 = vpop.f32.mrb[41].mxu1 }
 0x1bb   :  { %1744 = vst [vmem:[#allocation3 + $0x88] sm:$0xff] %v1637_v0  ;;  %v3700_v1 = vpop.f32.mrb[42].mxu0  ;;  %3303 = vtanh.f32 %v1856_v55  ;;  %v1859_v21 = vadd.f32 %v1827_v12, %v3659_v22  ;;  %v1829_v42 = vsel %vm1807_vm0, %v1820_v41, %v1828_v44  ;;  %v1864_v43 = vadd.f32 %v1828_v44, %v1771_v17  ;;  %v1773_v47 = vld [vmem:[#allocation2 + $0xf0] sm:$0x7f]  ;;  %1746 = vst [vmem:[#allocation3 + $0x98] sm:$0xff] %v1710_v30  ;;  %v3704_v49 = vpop.f32.mrb[42].mxu1 }
 0x1bc   :  { %v3706_v28 = vpop.f32.mrb[43].mxu0  ;;  %3305 = vtanh.f32 %v1858_v63  ;;  %v1860_v14 = vadd.f32 %v1829_v42, %v3661_v23  ;;  %v1833_v36 = vsel %vm1807_vm0, %v1824_v46, %v1832_v29  ;;  %v1866_v27 = vadd.f32 %v1832_v29, %v1773_v47  ;;  %v3710_v45 = vpop.f32.mrb[43].mxu1 }
 0x1bd   :  { %3307 = vtanh.f32 %v1857_v18  ;;  %1880 = vst [vmem:[#allocation2 + $0xe0] sm:$0x7f] %v1864_v43  ;;  %v1862_v22 = vadd.f32 %v1833_v36, %v3663_v24  ;;  %v1831_v41 = vsel %vm1807_vm0, %v1822_v10, %v1830_v52  ;;  %v1865_v55 = vadd.f32 %v1830_v52, %v1772_v38 }
 0x1be   :  { %3309 = vtanh.f32 %v1859_v21  ;;  %1882 = vst [vmem:[#allocation2 + $0xf0] sm:$0x7f] %v1866_v27  ;;  %v1861_v26 = vadd.f32 %v1831_v41, %v3665_v37  ;;  %v1835_v23 = vsel %vm1807_vm0, %v1826_v13, %v1834_v20  ;;  %v1867_v39 = vadd.f32 %v1834_v20, %v1774_v40 }
 0x1bf   :  { %3311 = vtanh.f32 %v1860_v14  ;;  %1881 = vst [vmem:[#allocation2 + $0xe8] sm:$0x7f] %v1865_v55  ;;  %v1863_v46 = vadd.f32 %v1835_v23, %v3667_v25  ;;  %v1933_v63 = vrot.slane %v3700_v1, 1  ;;  %v1939_v18 = vrot.slane %v3704_v49, 1 }
 0x1c0   :  { %3313 = vtanh.f32 %v1862_v22  ;;  %1883 = vst [vmem:[#allocation2 + $0xf8] sm:$0x7f] %v1867_v39  ;;  %v1936_v37 = vrot.slane %v3706_v28, 1  ;;  %v1942_v13 = vrot.slane %v3710_v45, 1 }
 0x1c1   :  { %v3296_v24 = vpop.eup %3295  ;;  %v3718_v15 = vpop.f32.mrb[44].mxu0  ;;  %3315 = vtanh.f32 %v1861_v26  ;;  %v1900_v10 = vld [vmem:[#allocation3 + $0x80] sm:$0xfe]  ;;  %v1902_v52 = vld [vmem:[#allocation3 + $0x90] sm:$0xfe] }
 0x1c2   :  { %v3298_v16 = vpop.eup %3297  ;;  %v3723_v44 = vpop.f32.mrb[44].mxu1  ;;  %2951 = vst [vmem:[%s4083_s2 + $0x20] sm:$0xff] %v3296_v24  ;;  %3317 = vtanh.f32 %v1863_v46  ;;  %v1932_v25 = vrot.slane %v1900_v10, 1  ;;  %v1944_v35 = vrot.slane %v3718_v15, 1  ;;  %v1938_v20 = vrot.slane %v1902_v52, 1 }
 0x1c3   :  { %v3725_v29 = vpop.f32.mrb[45].mxu0  ;;  %v3300_v0 = vpop.eup %3299  ;;  %2953 = vst [vmem:[%s4083_s2 + $0x30] sm:$0xff] %v3298_v16  ;;  %v1901_v30 = vld [vmem:[#allocation3 + $0x88] sm:$0xfe]  ;;  %v1948_v1 = vrot.slane %v3723_v44, 1  ;;  %v1895_v44 = vld [vmem:[#allocation2 + $0x1b8] sm:$0xff] }
 0x1c4   :  { %v3731_v12 = vpop.f32.mrb[45].mxu1  ;;  %v3733_v17 = vpop.f32.mrb[46].mxu0  ;;  %2952 = vst [vmem:[%s4083_s2 + $0x28] sm:$0xff] %v3300_v0  ;;  %v2847_v47 = vld [vmem:[#allocation2 + $0xe0] sm:$0xff]  ;;  %v1935_v49 = vrot.slane %v1901_v30, 1  ;;  %v1934_v36 = vsel %vm1807_vm0, %v1932_v25, %v1933_v63  ;;  %v1945_v27 = vsel %vm1807_vm0, %v1933_v63, %v1944_v35  ;;  %v1940_v26 = vsel %vm1807_vm0, %v1938_v20, %v1939_v18 }
 0x1c5   :  { %v3302_v21 = vpop.eup %3301  ;;  %v1722_v42 = vpop.f32.mrb[46].mxu1  ;;  %v1903_v14 = vld [vmem:[#allocation3 + $0x98] sm:$0xfe]  ;;  %3319 = vtanh.f32 %v2847_v47  ;;  %v2849_v41 = vld [vmem:[#allocation2 + $0xf0] sm:$0xff]  ;;  %v1976_v40 = vadd.f32 %v1934_v36, %v3669_v31  ;;  %v1978_v46 = vadd.f32 %v1940_v26, %v3671_v32  ;;  %v1980_v24 = vadd.f32 %v1945_v27, %v3677_v34 }
 0x1c6   :  { %v1651_v43 = vpop.f32.mrb[47].mxu0  ;;  %v3304_v38 = vpop.eup %3303  ;;  %1757 = vst [vmem:[#allocation3 + $0xf0] sm:$0xff] %v1722_v42  ;;  %2954 = vst [vmem:[%s4083_s2 + $0x38] sm:$0xff] %v3302_v21  ;;  %v1941_v55 = vrot.slane %v1903_v14, 1  ;;  %3321 = vtanh.f32 %v2849_v41  ;;  %v2848_v39 = vld [vmem:[#allocation2 + $0xe8] sm:$0xff]  ;;  %v1937_v63 = vsel %vm1807_vm0, %v1935_v49, %v1936_v37  ;;  %v1890_v32 = vld [vmem:[#allocation2 + $0x170] sm:$0xff]  ;;  %v1949_v52 = vsel %vm1807_vm0, %v1939_v18, %v1948_v1 }
 0x1c7   :  { %1756 = vst [vmem:[#allocation3 + $0xe8] sm:$0xff] %v1651_v43  ;;  %v1724_v22 = vpop.f32.mrb[47].mxu1  ;;  %v3306_v23 = vpop.eup %3305  ;;  %2959 = vst [vmem:[%s4083_s2 + $0x60] sm:$0xff] %v3304_v38  ;;  %3323 = vtanh.f32 %v2848_v39  ;;  %v2850_v31 = vld [vmem:[#allocation2 + $0xf8] sm:$0xff]  ;;  %v1977_v16 = vadd.f32 %v1937_v63, %v3673_v33  ;;  %v1982_v20 = vadd.f32 %v1949_v52, %v1890_v32  ;;  %v1946_v33 = vrot.slane %v3725_v29, 1  ;;  %v1892_v49 = vld [vmem:[#allocation2 + $0x1a0] sm:$0xff] }
 0x1c8   :  { %1758 = vst [vmem:[#allocation3 + $0xf8] sm:$0xff] %v1724_v22  ;;  %v3308_v10 = vpop.eup %3307  ;;  %2961 = vst [vmem:[%s4083_s2 + $0x70] sm:$0xff] %v3306_v23  ;;  %v1943_v25 = vsel %vm1807_vm0, %v1941_v55, %v1942_v13  ;;  %3325 = vtanh.f32 %v2850_v31  ;;  %v1950_v21 = vrot.slane %v3731_v12, 1  ;;  %v1952_v18 = vrot.slane %v3733_v17, 1  ;;  %v1891_v17 = vld [vmem:[#allocation2 + $0x178] sm:$0xff]  ;;  %v1894_v26 = vld [vmem:[#allocation2 + $0x1b0] sm:$0xff] }
 0x1c9   :  { %v3310_v0 = vpop.eup %3309  ;;  %2960 = vst [vmem:[%s4083_s2 + $0x68] sm:$0xff] %v3308_v10  ;;  %v1979_v34 = vadd.f32 %v1943_v25, %v3675_v48  ;;  %3327 = vtanh.f32 %v1976_v40  ;;  %1998 = vst [vmem:[#allocation2 + $0x170] sm:$0xff] %v1982_v20  ;;  %v1889_v48 = vld [vmem:[#allocation2 + $0x168] sm:$0xff]  ;;  %v1947_v29 = vsel %vm1807_vm0, %v1936_v37, %v1946_v33  ;;  %v1896_v14 = vld [vmem:[#allocation2 + $0x1e0] sm:$0x7f] }
 0x1ca   :  { %v3312_v30 = vpop.eup %3311  ;;  %2962 = vst [vmem:[%s4083_s2 + $0x78] sm:$0xff] %v3310_v0  ;;  %3329 = vtanh.f32 %v1978_v46  ;;  %v1981_v12 = vadd.f32 %v1947_v29, %v1889_v48  ;;  %v1951_v47 = vsel %vm1807_vm0, %v1942_v13, %v1950_v21  ;;  %v1953_v28 = vsel %vm1807_vm0, %v1944_v35, %v1952_v18  ;;  %v1898_v35 = vld [vmem:[#allocation2 + $0x1f0] sm:$0x7f]  ;;  %v1893_v46 = vld [vmem:[#allocation2 + $0x1a8] sm:$0xff]  ;;  %v1899_v32 = vld [vmem:[#allocation2 + $0x1f8] sm:$0x7f] }
 0x1cb   :  { %v3314_v42 = vpop.eup %3313  ;;  %2967 = vst [vmem:[%s4083_s2 + $0xa0] sm:$0xff] %v3312_v30  ;;  %3331 = vtanh.f32 %v1977_v16  ;;  %v1983_v37 = vadd.f32 %v1951_v47, %v1891_v17  ;;  %v1984_v27 = vadd.f32 %v1953_v28, %v1892_v49  ;;  %v1988_v38 = vadd.f32 %v1952_v18, %v1896_v14  ;;  %v1897_v63 = vld [vmem:[#allocation2 + $0x1e8] sm:$0x7f] }
 0x1cc   :  { %v3316_v43 = vpop.eup %3315  ;;  %2969 = vst [vmem:[%s4083_s2 + $0xb0] sm:$0xff] %v3314_v42  ;;  %3333 = vtanh.f32 %v1979_v34  ;;  %1997 = vst [vmem:[#allocation2 + $0x168] sm:$0xff] %v1981_v12 }
 0x1cd   :  { %v3318_v36 = vpop.eup %3317  ;;  %2968 = vst [vmem:[%s4083_s2 + $0xa8] sm:$0xff] %v3316_v43  ;;  %v1914_v22 = vld [vmem:[#allocation3 + $0xf0] sm:$0xff]  ;;  %3335 = vtanh.f32 %v1980_v24  ;;  %1999 = vst [vmem:[#allocation2 + $0x178] sm:$0xff] %v1983_v37 }
 0x1ce   :  { %v1913_v41 = vld [vmem:[#allocation3 + $0xe8] sm:$0xff]  ;;  %2970 = vst [vmem:[%s4083_s2 + $0xb8] sm:$0xff] %v3318_v36  ;;  %v1956_v45 = vrot.slane %v1914_v22, 1  ;;  %3337 = vtanh.f32 %v1982_v20  ;;  %2000 = vst [vmem:[#allocation2 + $0x1a0] sm:$0xff] %v1984_v27 }
 0x1cf   :  { %v1954_v15 = vrot.slane %v1913_v41, 1  ;;  %v1915_v13 = vld [vmem:[#allocation3 + $0xf8] sm:$0xff]  ;;  %2004 = vst [vmem:[#allocation2 + $0x1e0] sm:$0x7f] %v1988_v38  ;;  %v3320_v40 = vpop.eup %3319  ;;  %3339 = vtanh.f32 %v1981_v12 }
 0x1d0   :  { %v1958_v55 = vrot.slane %v1915_v13, 1  ;;  %v1957_v23 = vsel %vm1807_vm0, %v1948_v1, %v1956_v45  ;;  %v1990_v39 = vadd.f32 %v1956_v45, %v1898_v35  ;;  %v3322_v10 = vpop.eup %3321  ;;  %2975 = vst [vmem:[%s4083_s2 + $0xe0] sm:$0xff] %v3320_v40  ;;  %3341 = vtanh.f32 %v1983_v37  ;;  %v2570_v45 = vld [vmem:[#allocation2] sm:$0xfe]  ;;  %v2572_v13 = vld [vmem:[#allocation2 + $0x10] sm:$0xfe] }
 0x1d1   :  { %v1955_v24 = vsel %vm1807_vm0, %v1946_v33, %v1954_v15  ;;  %v1986_v31 = vadd.f32 %v1957_v23, %v1894_v26  ;;  %v1989_v25 = vadd.f32 %v1954_v15, %v1897_v63  ;;  %v3324_v52 = vpop.eup %3323  ;;  %2977 = vst [vmem:[%s4083_s2 + $0xf0] sm:$0xff] %v3322_v10  ;;  %3343 = vtanh.f32 %v1984_v27  ;;  %v2571_v63 = vld [vmem:[#allocation2 + $0x8] sm:$0xfe] }
 0x1d2   :  { %v1985_v16 = vadd.f32 %v1955_v24, %v1893_v46  ;;  %2006 = vst [vmem:[#allocation2 + $0x1f0] sm:$0x7f] %v1990_v39  ;;  %v1959_v1 = vsel %vm1807_vm0, %v1950_v21, %v1958_v55  ;;  %v1991_v0 = vadd.f32 %v1958_v55, %v1899_v32  ;;  %v3326_v34 = vpop.eup %3325  ;;  %2976 = vst [vmem:[%s4083_s2 + $0xe8] sm:$0xff] %v3324_v52  ;;  %v2573_v32 = vld [vmem:[#allocation2 + $0x18] sm:$0xfe] }
 0x1d3   :  { %2002 = vst [vmem:[#allocation2 + $0x1b0] sm:$0xff] %v1986_v31  ;;  %3345 = vtanh.f32 %v1986_v31  ;;  %2005 = vst [vmem:[#allocation2 + $0x1e8] sm:$0x7f] %v1989_v25  ;;  %v1987_v20 = vadd.f32 %v1959_v1, %v1895_v44  ;;  %v3328_v33 = vpop.eup %3327 }
 0x1d4   :  { %2001 = vst [vmem:[#allocation2 + $0x1a8] sm:$0xff] %v1985_v16  ;;  %2978 = vst [vmem:[%s4083_s2 + $0xf8] sm:$0xff] %v3326_v34  ;;  %3347 = vtanh.f32 %v1985_v16  ;;  %v3330_v30 = vpop.eup %3329 }
 0x1d5   :  { %2007 = vst [vmem:[#allocation2 + $0x1f8] sm:$0x7f] %v1991_v0  ;;  %2983 = vst [vmem:[%s4083_s2 + $0x120] sm:$0xff] %v3328_v33  ;;  %3349 = vtanh.f32 %v1987_v20  ;;  %v3332_v21 = vpop.eup %3331 }
 0x1d6   :  { %2003 = vst [vmem:[#allocation2 + $0x1b8] sm:$0xff] %v1987_v20  ;;  %2985 = vst [vmem:[%s4083_s2 + $0x130] sm:$0xff] %v3330_v30  ;;  %v2879_v18 = vld [vmem:[#allocation2 + $0x1e0] sm:$0xff]  ;;  %v3334_v42 = vpop.eup %3333 }
 0x1d7   :  { %2984 = vst [vmem:[%s4083_s2 + $0x128] sm:$0xff] %v3332_v21  ;;  %3351 = vtanh.f32 %v2879_v18  ;;  %v3336_v48 = vpop.eup %3335  ;;  %2986 = vst [vmem:[%s4083_s2 + $0x138] sm:$0xff] %v3334_v42 }
 0x1d8   :  { %v3338_v29 = vpop.eup %3337  ;;  %2991 = vst [vmem:[%s4083_s2 + $0x160] sm:$0xff] %v3336_v48 }
 0x1d9   :  { %v2881_v43 = vld [vmem:[#allocation2 + $0x1f0] sm:$0xff]  ;;  %v3340_v12 = vpop.eup %3339  ;;  %2993 = vst [vmem:[%s4083_s2 + $0x170] sm:$0xff] %v3338_v29 }
 0x1da   :  { %3353 = vtanh.f32 %v2881_v43  ;;  %v2880_v17 = vld [vmem:[#allocation2 + $0x1e8] sm:$0xff]  ;;  %v3342_v47 = vpop.eup %3341  ;;  %2992 = vst [vmem:[%s4083_s2 + $0x168] sm:$0xff] %v3340_v12 }
 0x1db   :  { %3355 = vtanh.f32 %v2880_v17  ;;  %v3344_v14 = vpop.eup %3343  ;;  %2994 = vst [vmem:[%s4083_s2 + $0x178] sm:$0xff] %v3342_v47 }
 0x1dc   :  { %v2882_v49 = vld [vmem:[#allocation2 + $0x1f8] sm:$0xff]  ;;  %2999 = vst [vmem:[%s4083_s2 + $0x1a0] sm:$0xff] %v3344_v14 }
 0x1dd   :  { %3357 = vtanh.f32 %v2882_v49  ;;  %v3346_v28 = vpop.eup %3345 }
 0x1de   :  { %v3348_v36 = vpop.eup %3347  ;;  %3001 = vst [vmem:[%s4083_s2 + $0x1b0] sm:$0xff] %v3346_v28 }
 0x1df   :  { %v3350_v37 = vpop.eup %3349  ;;  %3000 = vst [vmem:[%s4083_s2 + $0x1a8] sm:$0xff] %v3348_v36 }
 0x1e0   :  { %3002 = vst [vmem:[%s4083_s2 + $0x1b8] sm:$0xff] %v3350_v37 }
 0x1e1   :  { %v3352_v27 = vpop.eup %3351 }
 0x1e2   :  { %3007 = vst [vmem:[%s4083_s2 + $0x1e0] sm:$0xff] %v3352_v27 }
 0x1e4   :  { %v3354_v38 = vpop.eup %3353 }
 0x1e5   :  { %v3356_v22 = vpop.eup %3355  ;;  %3009 = vst [vmem:[%s4083_s2 + $0x1f0] sm:$0xff] %v3354_v38 }
 0x1e6   :  { %3008 = vst [vmem:[%s4083_s2 + $0x1e8] sm:$0xff] %v3356_v22 }
 0x1e7   :  { %v3358_v41 = vpop.eup %3357 }
 0x1e8   :  { %3010 = vst [vmem:[%s4083_s2 + $0x1f8] sm:$0xff] %v3358_v41 }
 0x1e9   :  { %v2426_v15 = vpop.f32.mrb[48].mxu0  ;;  %v2499_v55 = vpop.f32.mrb[48].mxu1 }
 0x1ea   :  { %2538 = vst [vmem:[#allocation3] sm:$0xff] %v2426_v15  ;;  %v2619_v35 = vrot.slane %v2426_v15, 7  ;;  %v2428_v40 = vpop.f32.mrb[49].mxu0  ;;  %2540 = vst [vmem:[#allocation3 + $0x10] sm:$0xff] %v2499_v55  ;;  %v2621_v26 = vrot.slane %v2499_v55, 7  ;;  %v2501_v39 = vpop.f32.mrb[49].mxu1 }
 0x1eb   :  { %2539 = vst [vmem:[#allocation3 + $0x8] sm:$0xff] %v2428_v40  ;;  %v2620_v23 = vrot.slane %v2428_v40, 7  ;;  %v2430_v46 = vpop.f32.mrb[50].mxu0  ;;  %2541 = vst [vmem:[#allocation3 + $0x18] sm:$0xff] %v2501_v39  ;;  %v2622_v10 = vrot.slane %v2501_v39, 7  ;;  %v2503_v16 = vpop.f32.mrb[50].mxu1 }
 0x1ec   :  { %v2663_v24 = vadd.f32 %v2619_v35, %v2570_v45  ;;  %v2623_v31 = vrot.slane %v2430_v46, 7  ;;  %v2432_v25 = vpop.f32.mrb[51].mxu0  ;;  %v2665_v52 = vadd.f32 %v2621_v26, %v2572_v13  ;;  %v2627_v1 = vrot.slane %v2503_v16, 7  ;;  %v2505_v34 = vpop.f32.mrb[51].mxu1  ;;  %v2695_v39 = vld [vmem:[#allocation2 + $0x100] sm:$0xfe] }
 0x1ed   :  { %v2664_v44 = vadd.f32 %v2620_v23, %v2571_v63  ;;  %v2625_v0 = vrot.slane %v2432_v25, 7  ;;  %v2666_v20 = vadd.f32 %v2622_v10, %v2573_v32  ;;  %v2629_v30 = vrot.slane %v2505_v34, 7  ;;  %v2697_v63 = vld [vmem:[#allocation2 + $0x110] sm:$0xfe]  ;;  %v2698_v16 = vld [vmem:[#allocation2 + $0x118] sm:$0xfe] }
 0x1ee   :  { %2679 = vst [vmem:[#allocation2] sm:$0xfe] %v2663_v24  ;;  %v2624_v33 = vsel %vm2618_vm1, %v2619_v35, %v2623_v31  ;;  %2681 = vst [vmem:[#allocation2 + $0x10] sm:$0xfe] %v2665_v52  ;;  %v2628_v18 = vsel %vm2618_vm1, %v2621_v26, %v2627_v1 }
 0x1ef   :  { %2680 = vst [vmem:[#allocation2 + $0x8] sm:$0xfe] %v2664_v44  ;;  %v2667_v21 = vadd.f32 %v2624_v33, %v3594_v3  ;;  %v2626_v42 = vsel %vm2618_vm1, %v2620_v23, %v2625_v0  ;;  %2682 = vst [vmem:[#allocation2 + $0x18] sm:$0xfe] %v2666_v20  ;;  %v2669_v48 = vadd.f32 %v2628_v18, %v3596_v50 }
 0x1f0   :  { %v2668_v29 = vadd.f32 %v2626_v42, %v3598_v51  ;;  %v2630_v43 = vsel %vm2618_vm1, %v2622_v10, %v2629_v30 }
 0x1f1   :  { %3359 = vtanh.f32 %v2667_v21  ;;  %v2670_v12 = vadd.f32 %v2630_v43, %v3600_v56  ;;  %v3873_v17 = vpop.f32.mrb[52].mxu0  ;;  %v3876_v3 = vpop.f32.mrb[52].mxu1 }
 0x1f2   :  { %3361 = vtanh.f32 %v2669_v48  ;;  %v2631_v47 = vrot.slane %v3873_v17, 7  ;;  %v3878_v49 = vpop.f32.mrb[53].mxu0  ;;  %v2635_v14 = vrot.slane %v3876_v3, 7  ;;  %v3882_v51 = vpop.f32.mrb[53].mxu1 }
 0x1f3   :  { %3363 = vtanh.f32 %v2668_v29  ;;  %v2633_v50 = vrot.slane %v3878_v49, 7  ;;  %v2440_v28 = vpop.f32.mrb[54].mxu0  ;;  %v2637_v36 = vrot.slane %v3882_v51, 7  ;;  %v2513_v37 = vpop.f32.mrb[54].mxu1 }
 0x1f4   :  { %3365 = vtanh.f32 %v2670_v12  ;;  %v2632_v56 = vsel %vm2618_vm1, %v2623_v31, %v2631_v47  ;;  %2550 = vst [vmem:[#allocation3 + $0x60] sm:$0xff] %v2440_v28  ;;  %v2442_v27 = vpop.f32.mrb[55].mxu0  ;;  %v2636_v41 = vsel %vm2618_vm1, %v2627_v1, %v2635_v14  ;;  %2552 = vst [vmem:[#allocation3 + $0x70] sm:$0xff] %v2513_v37  ;;  %v2515_v15 = vpop.f32.mrb[55].mxu1  ;;  %v2696_v31 = vld [vmem:[#allocation2 + $0x108] sm:$0xfe] }
 0x1f5   :  { %v2819_v38 = vld [vmem:[#allocation2] sm:$0xff]  ;;  %v2671_v22 = vadd.f32 %v2632_v56, %v3605_v53  ;;  %v2634_v45 = vsel %vm2618_vm1, %v2625_v0, %v2633_v50  ;;  %2551 = vst [vmem:[#allocation3 + $0x68] sm:$0xff] %v2442_v27  ;;  %v2821_v13 = vld [vmem:[#allocation2 + $0x10] sm:$0xff]  ;;  %v2673_v55 = vadd.f32 %v2636_v41, %v3607_v54  ;;  %v2638_v53 = vsel %vm2618_vm1, %v2629_v30, %v2637_v36 }
 0x1f6   :  { %3367 = vtanh.f32 %v2819_v38  ;;  %v2820_v35 = vld [vmem:[#allocation2 + $0x8] sm:$0xff]  ;;  %v2672_v40 = vadd.f32 %v2634_v45, %v3609_v57  ;;  %2553 = vst [vmem:[#allocation3 + $0x78] sm:$0xff] %v2515_v15  ;;  %v2822_v26 = vld [vmem:[#allocation2 + $0x18] sm:$0xff]  ;;  %v2674_v23 = vadd.f32 %v2638_v53, %v3611_v58 }
 0x1f7   :  { %3369 = vtanh.f32 %v2821_v13 }
 0x1f8   :  { %3371 = vtanh.f32 %v2820_v35 }
 0x1f9   :  { %3373 = vtanh.f32 %v2822_v26  ;;  %v3901_v46 = vpop.f32.mrb[56].mxu0  ;;  %v3905_v57 = vpop.f32.mrb[56].mxu1 }
 0x1fa   :  { %3375 = vtanh.f32 %v2671_v22  ;;  %2554 = vst [vmem:[#allocation3 + $0x80] sm:$0xff] %v3901_v46  ;;  %v2743_v54 = vrot.slane %v3901_v46, 7  ;;  %v3907_v24 = vpop.f32.mrb[57].mxu0  ;;  %2556 = vst [vmem:[#allocation3 + $0x90] sm:$0xff] %v3905_v57  ;;  %v2745_v25 = vrot.slane %v3905_v57, 7  ;;  %v3913_v52 = vpop.f32.mrb[57].mxu1 }
 0x1fb   :  { %v3360_v10 = vpop.eup %3359  ;;  %3377 = vtanh.f32 %v2673_v55  ;;  %v2598_v58 = vld [vmem:[#allocation3 + $0x60] sm:$0x7f]  ;;  %2555 = vst [vmem:[#allocation3 + $0x88] sm:$0xff] %v3907_v24  ;;  %v2744_v32 = vrot.slane %v3907_v24, 7  ;;  %v3915_v44 = vpop.f32.mrb[58].mxu0  ;;  %2557 = vst [vmem:[#allocation3 + $0x98] sm:$0xff] %v3913_v52 }
 0x1fc   :  { %v3362_v1 = vpop.eup %3361  ;;  %2955 = vst [vmem:[%s4083_s2 + $0x40] sm:$0xff] %v3360_v10  ;;  %3379 = vtanh.f32 %v2672_v40  ;;  %v2639_v0 = vrot.slane %v2598_v58, 7  ;;  %v2600_v34 = vld [vmem:[#allocation3 + $0x70] sm:$0x7f]  ;;  %v2599_v20 = vld [vmem:[#allocation3 + $0x68] sm:$0x7f]  ;;  %v2787_v33 = vadd.f32 %v2743_v54, %v2695_v39  ;;  %v2789_v29 = vadd.f32 %v2745_v25, %v2697_v63 }
 0x1fd   :  { %v2746_v30 = vrot.slane %v3913_v52, 7  ;;  %v3364_v21 = vpop.eup %3363  ;;  %2957 = vst [vmem:[%s4083_s2 + $0x50] sm:$0xff] %v3362_v1  ;;  %3381 = vtanh.f32 %v2674_v23  ;;  %v2643_v18 = vrot.slane %v2600_v34, 7  ;;  %v2641_v42 = vrot.slane %v2599_v20, 7  ;;  %v2601_v48 = vld [vmem:[#allocation3 + $0x78] sm:$0x7f] }
 0x1fe   :  { %v3925_v43 = vpop.f32.mrb[58].mxu1  ;;  %v3927_v12 = vpop.f32.mrb[59].mxu0  ;;  %2956 = vst [vmem:[%s4083_s2 + $0x48] sm:$0xff] %v3364_v21  ;;  %v2640_v56 = vsel %vm2618_vm1, %v2631_v47, %v2639_v0  ;;  %v2645_v37 = vrot.slane %v2601_v48, 7  ;;  %2803 = vst [vmem:[#allocation2 + $0x100] sm:$0xfe] %v2787_v33  ;;  %v2788_v27 = vadd.f32 %v2744_v32, %v2696_v31 }
 0x1ff   :  { %v3366_v28 = vpop.eup %3365  ;;  %v2790_v38 = vadd.f32 %v2746_v30, %v2698_v16  ;;  %v3935_v22 = vpop.f32.mrb[59].mxu1  ;;  %v2675_v41 = vadd.f32 %v2640_v56, %v3613_v59  ;;  %v2644_v45 = vsel %vm2618_vm1, %v2635_v14, %v2643_v18  ;;  %v2642_v17 = vsel %vm2618_vm1, %v2633_v50, %v2641_v42  ;;  %2805 = vst [vmem:[#allocation2 + $0x110] sm:$0xfe] %v2789_v29 }
 0x200   :  { %2958 = vst [vmem:[%s4083_s2 + $0x58] sm:$0xff] %v3366_v28  ;;  %v2747_v47 = vrot.slane %v3915_v44, 7  ;;  %v3368_v15 = vpop.eup %3367  ;;  %v2677_v13 = vadd.f32 %v2644_v45, %v3615_v60  ;;  %v2676_v35 = vadd.f32 %v2642_v17, %v3617_v61  ;;  %v2646_v59 = vsel %vm2618_vm1, %v2637_v36, %v2645_v37  ;;  %2804 = vst [vmem:[#allocation2 + $0x108] sm:$0xfe] %v2788_v27 }
 0x201   :  { %2806 = vst [vmem:[#allocation2 + $0x118] sm:$0xfe] %v2790_v38  ;;  %v2751_v3 = vrot.slane %v3925_v43, 7  ;;  %v3370_v14 = vpop.eup %3369  ;;  %2947 = vst [vmem:[%s4083_s2] sm:$0xff] %v3368_v15  ;;  %3383 = vtanh.f32 %v2675_v41  ;;  %v2678_v49 = vadd.f32 %v2646_v59, %v3619_v62  ;;  %v2749_v61 = vrot.slane %v3927_v12, 7  ;;  %v3960_v50 = vpop.f32.mrb[60].mxu0 }
 0x202   :  { %v2748_v60 = vsel %vm2618_vm1, %v2743_v54, %v2747_v47  ;;  %v3372_v51 = vpop.eup %3371  ;;  %2949 = vst [vmem:[%s4083_s2 + $0x10] sm:$0xff] %v3370_v14  ;;  %3385 = vtanh.f32 %v2677_v13  ;;  %v2753_v40 = vrot.slane %v3935_v22, 7  ;;  %v3968_v53 = vpop.f32.mrb[60].mxu1 }
 0x203   :  { %v2791_v36 = vadd.f32 %v2748_v60, %v3621_v2  ;;  %v2752_v55 = vsel %vm2618_vm1, %v2745_v25, %v2751_v3  ;;  %v3970_v62 = vpop.f32.mrb[61].mxu0  ;;  %v3374_v26 = vpop.eup %3373  ;;  %2948 = vst [vmem:[%s4083_s2 + $0x8] sm:$0xff] %v3372_v51  ;;  %3387 = vtanh.f32 %v2676_v35  ;;  %v2750_v39 = vsel %vm2618_vm1, %v2744_v32, %v2749_v61  ;;  %v4087_v35 = vld [vmem:[#allocation7_spill] sm:$0xff] }
 0x204   :  { %v2793_v23 = vadd.f32 %v2752_v55, %v3623_v4  ;;  %v2755_v2 = vrot.slane %v3960_v50, 7  ;;  %v3978_v46 = vpop.f32.mrb[61].mxu1  ;;  %v2460_v63 = vpop.f32.mrb[62].mxu0  ;;  %2950 = vst [vmem:[%s4083_s2 + $0x18] sm:$0xff] %v3374_v26  ;;  %3389 = vtanh.f32 %v2678_v49  ;;  %v2792_v57 = vadd.f32 %v2750_v39, %v3625_v5 }
 0x205   :  { %v3376_v54 = vpop.eup %3375  ;;  %v2754_v24 = vsel %vm2618_vm1, %v2746_v30, %v2753_v40  ;;  %v2759_v10 = vrot.slane %v3968_v53, 7  ;;  %2566 = vst [vmem:[#allocation3 + $0xe0] sm:$0xff] %v2460_v63  ;;  %v2533_v4 = vpop.f32.mrb[62].mxu1  ;;  %v2851_v58 = vld [vmem:[#allocation2 + $0x100] sm:$0xff]  ;;  %3391 = vtanh.f32 %v2791_v36  ;;  %v2757_v32 = vrot.slane %v3970_v62, 7 }
 0x206   :  { %v2462_v31 = vpop.f32.mrb[63].mxu0  ;;  %v3378_v16 = vpop.eup %3377  ;;  %2963 = vst [vmem:[%s4083_s2 + $0x80] sm:$0xff] %v3376_v54  ;;  %v2794_v25 = vadd.f32 %v2754_v24, %v3627_v6  ;;  %v2756_v5 = vsel %vm2618_vm1, %v2747_v47, %v2755_v2  ;;  %2568 = vst [vmem:[#allocation3 + $0xf0] sm:$0xff] %v2533_v4  ;;  %3393 = vtanh.f32 %v2851_v58  ;;  %v2853_v1 = vld [vmem:[#allocation2 + $0x110] sm:$0xff]  ;;  %v2761_v34 = vrot.slane %v3978_v46, 7 }
 0x207   :  { %2567 = vst [vmem:[#allocation3 + $0xe8] sm:$0xff] %v2462_v31  ;;  %v2535_v52 = vpop.f32.mrb[63].mxu1  ;;  %v3380_v44 = vpop.eup %3379  ;;  %2965 = vst [vmem:[%s4083_s2 + $0x90] sm:$0xff] %v3378_v16  ;;  %v2795_v0 = vadd.f32 %v2756_v5, %v3629_v7  ;;  %v2760_v6 = vsel %vm2618_vm1, %v2751_v3, %v2759_v10  ;;  %3395 = vtanh.f32 %v2853_v1  ;;  %v2852_v33 = vld [vmem:[#allocation2 + $0x108] sm:$0xff]  ;;  %v2758_v18 = vsel %vm2618_vm1, %v2749_v61, %v2757_v32 }
 0x208   :  { %2569 = vst [vmem:[#allocation3 + $0xf8] sm:$0xff] %v2535_v52  ;;  %v3382_v20 = vpop.eup %3381  ;;  %2964 = vst [vmem:[%s4083_s2 + $0x88] sm:$0xff] %v3380_v44  ;;  %v2854_v30 = vld [vmem:[#allocation2 + $0x118] sm:$0xff]  ;;  %v2797_v21 = vadd.f32 %v2760_v6, %v3631_v8  ;;  %3397 = vtanh.f32 %v2852_v33  ;;  %v2796_v7 = vadd.f32 %v2758_v18, %v3633_v19  ;;  %v2762_v42 = vsel %vm2618_vm1, %v2753_v40, %v2761_v34  ;;  %v4088_v3 = vld [vmem:[#allocation8_spill] sm:$0xff] }
 0x209   :  { %2966 = vst [vmem:[%s4083_s2 + $0x98] sm:$0xff] %v3382_v20  ;;  %3399 = vtanh.f32 %v2854_v30  ;;  %v2798_v48 = vadd.f32 %v2762_v42, %v3635_v9 }
 0x20a   :  { %3401 = vtanh.f32 %v2793_v23 }
 0x20b   :  { %v3384_v29 = vpop.eup %3383  ;;  %3403 = vtanh.f32 %v2792_v57 }
 0x20c   :  { %v2723_v43 = vld [vmem:[#allocation3 + $0xe0] sm:$0x7f]  ;;  %v3386_v12 = vpop.eup %3385  ;;  %2971 = vst [vmem:[%s4083_s2 + $0xc0] sm:$0xff] %v3384_v29  ;;  %3405 = vtanh.f32 %v2794_v25 }
 0x20d   :  { %v2763_v8 = vrot.slane %v2723_v43, 7  ;;  %v2725_v28 = vld [vmem:[#allocation3 + $0xf0] sm:$0x7f]  ;;  %v3388_v37 = vpop.eup %3387  ;;  %2973 = vst [vmem:[%s4083_s2 + $0xd0] sm:$0xff] %v3386_v12  ;;  %3407 = vtanh.f32 %v2795_v0 }
 0x20e   :  { %v2724_v56 = vld [vmem:[#allocation3 + $0xe8] sm:$0x7f]  ;;  %v2767_v19 = vrot.slane %v2725_v28, 7  ;;  %v3390_v38 = vpop.eup %3389  ;;  %2972 = vst [vmem:[%s4083_s2 + $0xc8] sm:$0xff] %v3388_v37  ;;  %3409 = vtanh.f32 %v2797_v21 }
 0x20f   :  { %v2765_v9 = vrot.slane %v2724_v56, 7  ;;  %v2726_v27 = vld [vmem:[#allocation3 + $0xf8] sm:$0x7f]  ;;  %v2764_v22 = vsel %vm2618_vm1, %v2755_v2, %v2763_v8  ;;  %v3392_v45 = vpop.eup %3391  ;;  %2974 = vst [vmem:[%s4083_s2 + $0xd8] sm:$0xff] %v3390_v38  ;;  %3411 = vtanh.f32 %v2796_v7 }
 0x210   :  { %v2769_v41 = vrot.slane %v2726_v27, 7  ;;  %v2799_v17 = vadd.f32 %v2764_v22, %v3637_v11  ;;  %v2768_v47 = vsel %vm2618_vm1, %v2759_v10, %v2767_v19  ;;  %v3394_v13 = vpop.eup %3393  ;;  %2987 = vst [vmem:[%s4083_s2 + $0x140] sm:$0xff] %v3392_v45  ;;  %3413 = vtanh.f32 %v2798_v48  ;;  %v4089_v11 = vld [vmem:[#allocation9_spill] sm:$0xff] }
 0x211   :  { %v2766_v15 = vsel %vm2618_vm1, %v2757_v32, %v2765_v9  ;;  %v2801_v59 = vadd.f32 %v2768_v47, %v4087_v35  ;;  %v3396_v60 = vpop.eup %3395  ;;  %2979 = vst [vmem:[%s4083_s2 + $0x100] sm:$0xff] %v3394_v13 }
 0x212   :  { %v2800_v14 = vadd.f32 %v2766_v15, %v4088_v3  ;;  %v2770_v49 = vsel %vm2618_vm1, %v2761_v34, %v2769_v41  ;;  %3415 = vtanh.f32 %v2799_v17  ;;  %v3398_v50 = vpop.eup %3397  ;;  %2981 = vst [vmem:[%s4083_s2 + $0x110] sm:$0xff] %v3396_v60 }
 0x213   :  { %v2802_v61 = vadd.f32 %v2770_v49, %v4089_v11  ;;  %3417 = vtanh.f32 %v2801_v59  ;;  %v3400_v51 = vpop.eup %3399  ;;  %2980 = vst [vmem:[%s4083_s2 + $0x108] sm:$0xff] %v3398_v50 }
 0x214   :  { %3419 = vtanh.f32 %v2800_v14  ;;  %v3402_v36 = vpop.eup %3401  ;;  %2982 = vst [vmem:[%s4083_s2 + $0x118] sm:$0xff] %v3400_v51 }
 0x215   :  { %3421 = vtanh.f32 %v2802_v61  ;;  %v3404_v55 = vpop.eup %3403  ;;  %2989 = vst [vmem:[%s4083_s2 + $0x150] sm:$0xff] %v3402_v36 }
 0x216   :  { %v3406_v40 = vpop.eup %3405  ;;  %2988 = vst [vmem:[%s4083_s2 + $0x148] sm:$0xff] %v3404_v55 }
 0x217   :  { %v3408_v53 = vpop.eup %3407  ;;  %2990 = vst [vmem:[%s4083_s2 + $0x158] sm:$0xff] %v3406_v40 }
 0x218   :  { %v3410_v62 = vpop.eup %3409  ;;  %2995 = vst [vmem:[%s4083_s2 + $0x180] sm:$0xff] %v3408_v53 }
 0x219   :  { %v3412_v26 = vpop.eup %3411  ;;  %2997 = vst [vmem:[%s4083_s2 + $0x190] sm:$0xff] %v3410_v62 }
 0x21a   :  { %v3414_v23 = vpop.eup %3413  ;;  %2996 = vst [vmem:[%s4083_s2 + $0x188] sm:$0xff] %v3412_v26 }
 0x21b   :  { %2998 = vst [vmem:[%s4083_s2 + $0x198] sm:$0xff] %v3414_v23 }
 0x21c   :  { %v3416_v39 = vpop.eup %3415 }
 0x21d   :  { %v3418_v2 = vpop.eup %3417  ;;  %3003 = vst [vmem:[%s4083_s2 + $0x1c0] sm:$0xff] %v3416_v39 }
 0x21e   :  { %v3420_v46 = vpop.eup %3419  ;;  %3005 = vst [vmem:[%s4083_s2 + $0x1d0] sm:$0xff] %v3418_v2 }
 0x21f   :  { %v3422_v63 = vpop.eup %3421  ;;  %3004 = vst [vmem:[%s4083_s2 + $0x1c8] sm:$0xff] %v3420_v46 }
 0x220   :  { %3006 = vst [vmem:[%s4083_s2 + $0x1d8] sm:$0xff] %v3422_v63 }
 0x221   :  { %3015 = vsyncpa [#allocation5], 1 }

</bundles_post_ra>
